<compile_context>
chip_gen: v5e
topology: v5e:2x2
jax: 0.10.0
libtpu: 0.0.40
codegen_flags: <defaults>
</compile_context>

<pallas_src>
import functools
import math

import jax
import jax.numpy as jnp
from jax import lax
from jax.experimental import pallas as pl
from jax.experimental.pallas import tpu as pltpu


def _round_up(a, b):
    return (a + b - 1) // b * b


def _anomaly_attention_kernel(x_ref, wqs_ref, kv_ref, z_ref, p_ref, s_ref,
                              *, n_valid, d_model):
    """Computes one query tile of Z, P, S (rows [i*TQ, (i+1)*TQ))."""
    i = pl.program_id(0)
    B, TQ, Dp = x_ref.shape
    Np = kv_ref.shape[1]
    q0 = i * TQ

    x_tile = x_ref[...]                              # (B, TQ, Dp)

    # ---- fused [Q | sigma] projection (one MXU matmul for this tile) ----
    qs = jnp.einsum('btd,de->bte', x_tile, wqs_ref[...],
                    preferred_element_type=jnp.float32)           # (B, TQ, Dp+128)
    q = qs[:, :, :Dp] * (1.0 / math.sqrt(d_model))   # fold 1/sqrt(d_model) into Q
    sigma = qs[:, :, Dp:Dp + 1]                      # (B, TQ, 1)

    # ---- prior association ----
    # P[b,i,j] = exp(-0.5*((i-j)/sig)^2) / sum_j(...); the 1/(sqrt(2pi)*sig) prefactor is
    # constant per row and cancels in the normalization, so it is dropped.
    ri = lax.broadcasted_iota(jnp.int32, (TQ, Np), 0) + q0
    ci = lax.broadcasted_iota(jnp.int32, (TQ, Np), 1)
    dist = (ri - ci).astype(jnp.float32)
    dist2 = dist * dist                              # (TQ, Np), shared across the batch
    if n_valid < Np:
        # Mask padded key columns on the 2-D dist2 (TQ*Np selects, not B*TQ*Np).  A huge
        # *finite* value drives exp() to exactly 0 without the inf*(-0.0) -> NaN hazard.
        dist2 = jnp.where(ci < n_valid, dist2, 3.0e38)
    inv_sig = pl.reciprocal(sigma + 1e-8)            # exact divide (approx risks 1e-4 parity)
    g = jnp.exp(dist2[None, :, :] * (-0.5 * inv_sig * inv_sig))   # (B, TQ, Np)
    rowsum = jnp.sum(g, axis=-1, keepdims=True)      # (B, TQ, 1)
    # maximum() only guards all-masked padded rows (valid rows always have rowsum >= 1).
    p_ref[...] = g * pl.reciprocal(jnp.maximum(rowsum, 1e-30))    # store now -> drop from live set

    # ---- series association: softmax over dim=0 (batch axis), as in the reference ----
    k = kv_ref[:, :, :Dp]                            # (B, Np, Dp)
    v = kv_ref[:, :, Dp:]                            # (B, Np, Dp)
    scores = jnp.einsum('bqd,bkd->bqk', q, k,
                        preferred_element_type=jnp.float32)       # (B, TQ, Np)
    m = jnp.max(scores, axis=0, keepdims=True)
    e = jnp.exp(scores - m)
    s = e * pl.reciprocal(jnp.sum(e, axis=0, keepdims=True))
    s_ref[...] = s                                   # store now -> only s, v live for Z

    # ---- reconstruction: Z = S @ V ----
    z_ref[...] = jnp.einsum('bqk,bkd->bqd', s, v,
                            preferred_element_type=jnp.float32)


def anomaly_attention(x, wq_t, wk_t, wv_t, ws_t, *, tile_q=128):
    """x: (B, N, D) f32; w*_t pre-transposed weights of shape (in_features, out_features)."""
    B, N, D = x.shape
    # tile_q only needs sublane (8) alignment; Np must be a multiple of 128 (lane-dense
    # unmasked stores) and of tile_q (grid coverage).  tile_q=64 halves output-block VMEM on
    # v7x and gives its second TensorCore work at small N; keep 128-256 on v5e/v6e.
    tile_q = max(8, (tile_q // 8) * 8)
    Np = _round_up(N, math.lcm(tile_q, 128))
    Dp = _round_up(D, 128)

    f32 = jnp.float32
    xp = jnp.pad(x.astype(f32), ((0, 0), (0, Np - N), (0, Dp - D)))
    wq_p = jnp.pad(wq_t.astype(f32), ((0, Dp - D), (0, Dp - D)))
    wk_p = jnp.pad(wk_t.astype(f32), ((0, Dp - D), (0, Dp - D)))
    wv_p = jnp.pad(wv_t.astype(f32), ((0, Dp - D), (0, Dp - D)))
    ws_p = jnp.pad(ws_t.astype(f32), ((0, Dp - D), (0, 127)))     # sigma column -> one lane group
    w_qs = jnp.concatenate([wq_p, ws_p], axis=1)     # (Dp, Dp+128) = [Wq | Wsigma]
    w_kv = jnp.concatenate([wk_p, wv_p], axis=1)     # (Dp, 2*Dp)   = [Wk | Wv]

    # K/V projection hoisted out of the per-tile grid loop: one full-sequence matmul, done
    # once (XLA, HIGHEST precision to preserve f32 parity), instead of once per query tile.
    kvp = jnp.einsum('bnd,de->bne', xp, w_kv,
                     precision=jax.lax.Precision.HIGHEST)         # (B, Np, 2*Dp)

    grid = (Np // tile_q,)

    # Explicit scoped-VMEM budget from the actual working set (defaults: 16 MiB v5e,
    # 32 MiB v6e/v7x can be below it for realistic B*N).  Shrink tile_q on v7x (64 MiB
    # physical) if this approaches ~56 MiB.
    it = 4
    z_blk = B * tile_q * Dp * it
    ps_blk = B * tile_q * Np * it
    kv_blk = B * Np * 2 * Dp * it
    w_blk = Dp * (Dp + 128) * it
    working = (2 * (z_blk + 2 * ps_blk)      # double-buffered Z/P/S output blocks
               + 2 * z_blk                   # double-buffered x tile
               + kv_blk + w_blk              # constant (single-buffered) inputs
               + 4 * ps_blk + 2 * z_blk)     # live temporaries (g, scores, e, s, q/qs)
    vmem_limit = int(min(max(2 * working, 32 * 2 ** 20), 100 * 2 ** 20))

    flops = 2 * B * Np * Dp * (Dp + 128) + 4 * B * Np * Np * Dp
    transcendentals = 2 * B * Np * Np
    bytes_accessed = it * (B * Np * Dp + B * Np * 2 * Dp + Dp * (Dp + 128)
                           + B * Np * Dp + 2 * B * Np * Np)

    def build_call(single_buffer_constants):
        pm = ({"pipeline_mode": pl.Buffered(1)} if single_buffer_constants else {})
        return pl.pallas_call(
            functools.partial(_anomaly_attention_kernel, n_valid=N, d_model=D),
            grid=grid,
            in_specs=[
                pl.BlockSpec((B, tile_q, Dp), lambda i: (0, i, 0)),       # x: one query tile
                pl.BlockSpec((Dp, Dp + 128), lambda i: (0, 0), **pm),     # [Wq|Wsigma]: constant
                pl.BlockSpec((B, Np, 2 * Dp), lambda i: (0, 0, 0), **pm), # KV: constant
            ],
            out_specs=(
                pl.BlockSpec((B, tile_q, Dp), lambda i: (0, i, 0)),       # Z tile
                pl.BlockSpec((B, tile_q, Np), lambda i: (0, i, 0)),       # P tile
                pl.BlockSpec((B, tile_q, Np), lambda i: (0, i, 0)),       # S tile
            ),
            out_shape=(
                jax.ShapeDtypeStruct((B, Np, Dp), jnp.float32),
                jax.ShapeDtypeStruct((B, Np, Np), jnp.float32),
                jax.ShapeDtypeStruct((B, Np, Np), jnp.float32),
            ),
            compiler_params=pltpu.CompilerParams(
                # Query tiles are independent (the dim-0 softmax couples only the batch
                # axis, which stays whole in each block) -> shard across v7x TensorCores.
                dimension_semantics=("parallel",),
                vmem_limit_bytes=vmem_limit,
            ),
            cost_estimate=pl.CostEstimate(flops=flops,
                                          transcendentals=transcendentals,
                                          bytes_accessed=bytes_accessed),
        )

    try:
        zp, pp, sp = build_call(True)(xp, w_qs, kvp)
    except Exception:
        # Fallback for jax versions where Buffered(1) on pallas_call operands is rejected;
        # identical semantics, just default double-buffering of the constant blocks.
        zp, pp, sp = build_call(False)(xp, w_qs, kvp)

    return zp[:, :N, :D], pp[:, :N, :N], sp[:, :N, :N]


def anomaly_attention_ref(x, wq_t, wk_t, wv_t, ws_t):
    """Pure-JAX reference mirroring the PyTorch module."""
    B, N, D = x.shape
    Q = x @ wq_t
    K = x @ wk_t
    V = x @ wv_t
    sigma = x @ ws_t                                  # (B, N, 1)
    idx = jnp.arange(N, dtype=jnp.float32)
    p_dist = jnp.abs(idx[:, None] - idx[None, :])     # (N, N)
    sig = sigma + 1e-8
    gaussian = (1.0 / (math.sqrt(2 * math.pi) * sig)) * jnp.exp(
        -0.5 * jnp.square(p_dist[None] / sig))
    P = gaussian / gaussian.sum(-1, keepdims=True)
    scores = jnp.einsum('bnd,bmd->bnm', Q, K) / math.sqrt(D)
    S = jax.nn.softmax(scores, axis=0)                # dim=0, as in the reference
    Z = jnp.einsum('bnm,bmd->bnd', S, V)
    return Z, P, S


def _check(B, N, D, key):
    kx, kq, kk, kv, ks = jax.random.split(key, 5)
    x = jax.random.normal(kx, (B, N, D), dtype=jnp.float32)
    # PyTorch Linear weights are (out, in); we store them pre-transposed (in, out).
    bound = 1.0 / math.sqrt(D)
    wq_t = jax.random.uniform(kq, (D, D), jnp.float32, -bound, bound)
    wk_t = jax.random.uniform(kk, (D, D), jnp.float32, -bound, bound)
    wv_t = jax.random.uniform(kv, (D, D), jnp.float32, -bound, bound)
    ws_t = jax.random.uniform(ks, (D, 1), jnp.float32, -bound, bound)

    Z, P, S = jax.block_until_ready(anomaly_attention(x, wq_t, wk_t, wv_t, ws_t))
    Zr, Pr, Sr = anomaly_attention_ref(x, wq_t, wk_t, wv_t, ws_t)
    assert jnp.allclose(Z, Zr, atol=1e-4, rtol=1e-4), "Z mismatch"
    assert jnp.allclose(P, Pr, atol=1e-4, rtol=1e-4), "P mismatch"
    assert jnp.allclose(S, Sr, atol=1e-4, rtol=1e-4), "S mismatch"


if __name__ == "__main__":
    key = jax.random.PRNGKey(0)
    k1, k2 = jax.random.split(key)
    # Module-implied small shapes: batch=2, seq N=8, d_model=32 (single tile, masked pad path).
    _check(B=2, N=8, D=32, key=k1)
    # Multi-tile grid sanity check: N=200 -> Np=256, two query tiles.
    _check(B=2, N=200, D=32, key=k2)
    print("KERNEL_OK")
</pallas_src>

<mosaic_0001>
module attributes {stable_mosaic.version = 11 : i64} {
  func.func @_anomaly_attention_kernel(%arg0: i32, %arg1: memref<2x128x128xf32, #tpu.memory_space<vmem>>, %arg2: memref<128x256xf32, #tpu.memory_space<vmem>>, %arg3: memref<2x128x256xf32, #tpu.memory_space<vmem>>, %arg4: memref<2x128x128xf32, #tpu.memory_space<vmem>>, %arg5: memref<2x128x128xf32, #tpu.memory_space<vmem>>, %arg6: memref<2x128x128xf32, #tpu.memory_space<vmem>>) attributes {dimension_semantics = [#tpu.dimension_semantics<parallel>], iteration_bounds = array<i64: 1>, scalar_prefetch = 0 : i64, scratch_operands = 0 : i64, tpu.core_type = #tpu.core_type<tc>, window_params = [{transform_indices = @transform_0, window_bounds = array<i64: 2, 128, 128>}, {pipeline_mode = #tpu.pipeline_mode<synchronous>, transform_indices = @transform_1, window_bounds = array<i64: 128, 256>}, {pipeline_mode = #tpu.pipeline_mode<synchronous>, transform_indices = @transform_2, window_bounds = array<i64: 2, 128, 256>}, {transform_indices = @transform_3, window_bounds = array<i64: 2, 128, 128>}, {transform_indices = @transform_4, window_bounds = array<i64: 2, 128, 128>}, {transform_indices = @transform_5, window_bounds = array<i64: 2, 128, 128>}]} {
    %c128_i32 = arith.constant 128 : i32
    %0 = arith.muli %arg0, %c128_i32 : i32
    %c0 = arith.constant 0 : index
    %c0_0 = arith.constant 0 : index
    %c0_1 = arith.constant 0 : index
    %1 = vector.load %arg1[%c0, %c0_0, %c0_1] : memref<2x128x128xf32, #tpu.memory_space<vmem>>, vector<2x128x128xf32>
    %c0_2 = arith.constant 0 : index
    %c0_3 = arith.constant 0 : index
    %2 = vector.load %arg2[%c0_2, %c0_3] : memref<128x256xf32, #tpu.memory_space<vmem>>, vector<128x256xf32>
    "tpu.trace_start"() <{level = 10 : i32, message = "btd,de->bte"}> : () -> ()
    %cst = arith.constant dense<0.000000e+00> : vector<2x128x256xf32>
    %3 = tpu.matmul %1, %2, %cst {dimension_numbers = #tpu.dot_dimension_numbers<[2], [0], [0, 1], [1], [0, 0, 0, 1, 1, 1], [], []>} : vector<2x128x128xf32>, vector<128x256xf32>, vector<2x128x256xf32> -> vector<2x128x256xf32>
    "tpu.trace_stop"() : () -> ()
    %4 = vector.extract_strided_slice %3 {offsets = [0, 0, 0], sizes = [2, 128, 128], strides = [1, 1, 1]} : vector<2x128x256xf32> to vector<2x128x128xf32>
    %cst_4 = arith.constant 0.176776692 : f32
    %5 = vector.broadcast %cst_4 : f32 to vector<2x128x128xf32>
    %6 = arith.mulf %4, %5 : vector<2x128x128xf32>
    %7 = vector.extract_strided_slice %3 {offsets = [0, 0, 128], sizes = [2, 128, 1], strides = [1, 1, 1]} : vector<2x128x256xf32> to vector<2x128x1xf32>
    %8 = tpu.iota {dimensions = array<i32: 0>} : vector<128x128xi32>
    %9 = vector.broadcast %0 : i32 to vector<128x128xi32>
    %10 = arith.addi %8, %9 : vector<128x128xi32>
    %11 = tpu.iota {dimensions = array<i32: 1>} : vector<128x128xi32>
    %12 = arith.subi %10, %11 : vector<128x128xi32>
    %13 = arith.sitofp %12 : vector<128x128xi32> to vector<128x128xf32>
    %14 = arith.mulf %13, %13 : vector<128x128xf32>
    %c8_i32 = arith.constant 8 : i32
    %15 = vector.broadcast %c8_i32 : i32 to vector<128x128xi32>
    %16 = arith.cmpi slt, %11, %15 : vector<128x128xi32>
    %cst_5 = arith.constant 3.000000e+38 : f32
    %17 = vector.broadcast %cst_5 : f32 to vector<128x128xf32>
    %18 = arith.select %16, %14, %17 : vector<128x128xi1>, vector<128x128xf32>
    %cst_6 = arith.constant 9.99999993E-9 : f32
    %19 = vector.broadcast %cst_6 : f32 to vector<2x128x1xf32>
    %20 = arith.addf %7, %19 : vector<2x128x1xf32>
    %21 = tpu.reciprocal %20 : vector<2x128x1xf32> -> vector<2x128x1xf32>
    %22 = vector.shape_cast %18 : vector<128x128xf32> to vector<1x128x128xf32>
    %cst_7 = arith.constant -5.000000e-01 : f32
    %23 = vector.broadcast %cst_7 : f32 to vector<2x128x1xf32>
    %24 = arith.mulf %23, %21 : vector<2x128x1xf32>
    %25 = arith.mulf %24, %21 : vector<2x128x1xf32>
    %26 = vector.broadcast %22 : vector<1x128x128xf32> to vector<2x128x128xf32>
    %27 = vector.broadcast %25 : vector<2x128x1xf32> to vector<2x128x128xf32>
    %28 = arith.mulf %26, %27 : vector<2x128x128xf32>
    %29 = math.exp %28 : vector<2x128x128xf32>
    %cst_8 = arith.constant dense<0.000000e+00> : vector<2x128xf32>
    %30 = vector.multi_reduction <add>, %29, %cst_8 [2] : vector<2x128x128xf32> to vector<2x128xf32>
    %31 = vector.shape_cast %30 : vector<2x128xf32> to vector<2x128x1xf32>
    %cst_9 = arith.constant 1.000000e-30 : f32
    %32 = vector.broadcast %cst_9 : f32 to vector<2x128x1xf32>
    %33 = arith.maximumf %31, %32 : vector<2x128x1xf32>
    %34 = tpu.reciprocal %33 : vector<2x128x1xf32> -> vector<2x128x1xf32>
    %35 = vector.broadcast %34 : vector<2x128x1xf32> to vector<2x128x128xf32>
    %36 = arith.mulf %29, %35 : vector<2x128x128xf32>
    %c0_10 = arith.constant 0 : index
    %c0_11 = arith.constant 0 : index
    %c0_12 = arith.constant 0 : index
    %37 = vector.load %arg5[%c0_10, %c0_11, %c0_12] : memref<2x128x128xf32, #tpu.memory_space<vmem>>, vector<2x128x128xf32>
    tpu.vector_store %arg5[%c0_10, %c0_11, %c0_12], %36 {strides = array<i32>} : memref<2x128x128xf32, #tpu.memory_space<vmem>>, vector<2x128x128xf32>,
    %c0_13 = arith.constant 0 : index
    %c0_14 = arith.constant 0 : index
    %c0_15 = arith.constant 0 : index
    %38 = vector.load %arg3[%c0_13, %c0_14, %c0_15] : memref<2x128x256xf32, #tpu.memory_space<vmem>>, vector<2x128x128xf32>
    %c0_16 = arith.constant 0 : index
    %c0_17 = arith.constant 0 : index
    %c128 = arith.constant 128 : index
    %39 = vector.load %arg3[%c0_16, %c0_17, %c128] : memref<2x128x256xf32, #tpu.memory_space<vmem>>, vector<2x128x128xf32>
    "tpu.trace_start"() <{level = 10 : i32, message = "bqd,bkd->bqk"}> : () -> ()
    %cst_18 = arith.constant dense<0.000000e+00> : vector<2x128x128xf32>
    %40 = tpu.matmul %6, %38, %cst_18 {dimension_numbers = #tpu.dot_dimension_numbers<[2], [2], [1], [1], [0, 0, 0, 1, 1, 1], [0], [0]>} : vector<2x128x128xf32>, vector<2x128x128xf32>, vector<2x128x128xf32> -> vector<2x128x128xf32>
    "tpu.trace_stop"() : () -> ()
    %cst_19 = arith.constant dense<0xFF800000> : vector<128x128xf32>
    %41 = vector.multi_reduction <maximumf>, %40, %cst_19 [0] : vector<2x128x128xf32> to vector<128x128xf32>
    %42 = vector.shape_cast %41 : vector<128x128xf32> to vector<1x128x128xf32>
    %43 = vector.broadcast %42 : vector<1x128x128xf32> to vector<2x128x128xf32>
    %44 = arith.subf %40, %43 : vector<2x128x128xf32>
    %45 = math.exp %44 : vector<2x128x128xf32>
    %cst_20 = arith.constant dense<0.000000e+00> : vector<128x128xf32>
    %46 = vector.multi_reduction <add>, %45, %cst_20 [0] : vector<2x128x128xf32> to vector<128x128xf32>
    %47 = vector.shape_cast %46 : vector<128x128xf32> to vector<1x128x128xf32>
    %48 = tpu.reciprocal %47 : vector<1x128x128xf32> -> vector<1x128x128xf32>
    %49 = vector.broadcast %48 : vector<1x128x128xf32> to vector<2x128x128xf32>
    %50 = arith.mulf %45, %49 : vector<2x128x128xf32>
    %c0_21 = arith.constant 0 : index
    %c0_22 = arith.constant 0 : index
    %c0_23 = arith.constant 0 : index
    %51 = vector.load %arg6[%c0_21, %c0_22, %c0_23] : memref<2x128x128xf32, #tpu.memory_space<vmem>>, vector<2x128x128xf32>
    tpu.vector_store %arg6[%c0_21, %c0_22, %c0_23], %50 {strides = array<i32>} : memref<2x128x128xf32, #tpu.memory_space<vmem>>, vector<2x128x128xf32>,
    "tpu.trace_start"() <{level = 10 : i32, message = "bqk,bkd->bqd"}> : () -> ()
    %cst_24 = arith.constant dense<0.000000e+00> : vector<2x128x128xf32>
    %52 = tpu.matmul %50, %39, %cst_24 {dimension_numbers = #tpu.dot_dimension_numbers<[2], [1], [1], [2], [0, 0, 0, 1, 1, 2], [0], [0]>} : vector<2x128x128xf32>, vector<2x128x128xf32>, vector<2x128x128xf32> -> vector<2x128x128xf32>
    "tpu.trace_stop"() : () -> ()
    %c0_25 = arith.constant 0 : index
    %c0_26 = arith.constant 0 : index
    %c0_27 = arith.constant 0 : index
    %53 = vector.load %arg4[%c0_25, %c0_26, %c0_27] : memref<2x128x128xf32, #tpu.memory_space<vmem>>, vector<2x128x128xf32>
    tpu.vector_store %arg4[%c0_25, %c0_26, %c0_27], %52 {strides = array<i32>} : memref<2x128x128xf32, #tpu.memory_space<vmem>>, vector<2x128x128xf32>,
    return
  }
  func.func @transform_0(%arg0: i32) -> (i32, i32, i32) {
    %c0_i32 = arith.constant 0 : i32
    %c0_i32_0 = arith.constant 0 : i32
    %c0_i32_1 = arith.constant 0 : i32
    return %c0_i32, %arg0, %c0_i32_0 : i32, i32, i32
  }
  func.func @transform_1(%arg0: i32) -> (i32, i32) {
    %c0_i32 = arith.constant 0 : i32
    %c0_i32_0 = arith.constant 0 : i32
    %c0_i32_1 = arith.constant 0 : i32
    return %c0_i32, %c0_i32_0 : i32, i32
  }
  func.func @transform_2(%arg0: i32) -> (i32, i32, i32) {
    %c0_i32 = arith.constant 0 : i32
    %c0_i32_0 = arith.constant 0 : i32
    %c0_i32_1 = arith.constant 0 : i32
    %c0_i32_2 = arith.constant 0 : i32
    return %c0_i32, %c0_i32_0, %c0_i32_1 : i32, i32, i32
  }
  func.func @transform_3(%arg0: i32) -> (i32, i32, i32) {
    %c0_i32 = arith.constant 0 : i32
    %c0_i32_0 = arith.constant 0 : i32
    %c0_i32_1 = arith.constant 0 : i32
    return %c0_i32, %arg0, %c0_i32_0 : i32, i32, i32
  }
  func.func @transform_4(%arg0: i32) -> (i32, i32, i32) {
    %c0_i32 = arith.constant 0 : i32
    %c0_i32_0 = arith.constant 0 : i32
    %c0_i32_1 = arith.constant 0 : i32
    return %c0_i32, %arg0, %c0_i32_0 : i32, i32, i32
  }
  func.func @transform_5(%arg0: i32) -> (i32, i32, i32) {
    %c0_i32 = arith.constant 0 : i32
    %c0_i32_0 = arith.constant 0 : i32
    %c0_i32_1 = arith.constant 0 : i32
    return %c0_i32, %arg0, %c0_i32_0 : i32, i32, i32
  }
}

module attributes {stable_mosaic.version = 11 : i64} {
  func.func @_anomaly_attention_kernel(%arg0: i32, %arg1: memref<2x128x128xf32, #tpu.memory_space<vmem>>, %arg2: memref<128x256xf32, #tpu.memory_space<vmem>>, %arg3: memref<2x128x256xf32, #tpu.memory_space<vmem>>, %arg4: memref<2x128x128xf32, #tpu.memory_space<vmem>>, %arg5: memref<2x128x128xf32, #tpu.memory_space<vmem>>, %arg6: memref<2x128x128xf32, #tpu.memory_space<vmem>>) attributes {dimension_semantics = [#tpu.dimension_semantics<parallel>], iteration_bounds = array<i64: 1>, scalar_prefetch = 0 : i64, scratch_operands = 0 : i64, tpu.core_type = #tpu.core_type<tc>, window_params = [{transform_indices = @transform_0, window_bounds = array<i64: 2, 128, 128>}, {pipeline_mode = #tpu.pipeline_mode<synchronous>, transform_indices = @transform_1, window_bounds = array<i64: 128, 256>}, {pipeline_mode = #tpu.pipeline_mode<synchronous>, transform_indices = @transform_2, window_bounds = array<i64: 2, 128, 256>}, {transform_indices = @transform_3, window_bounds = array<i64: 2, 128, 128>}, {transform_indices = @transform_4, window_bounds = array<i64: 2, 128, 128>}, {transform_indices = @transform_5, window_bounds = array<i64: 2, 128, 128>}]} {
    %c128_i32 = arith.constant 128 : i32
    %0 = arith.muli %arg0, %c128_i32 : i32
    %c0 = arith.constant 0 : index
    %c0_0 = arith.constant 0 : index
    %c0_1 = arith.constant 0 : index
    %1 = vector.load %arg1[%c0, %c0_0, %c0_1] : memref<2x128x128xf32, #tpu.memory_space<vmem>>, vector<2x128x128xf32>
    %c0_2 = arith.constant 0 : index
    %c0_3 = arith.constant 0 : index
    %2 = vector.load %arg2[%c0_2, %c0_3] : memref<128x256xf32, #tpu.memory_space<vmem>>, vector<128x256xf32>
    "tpu.trace_start"() <{level = 10 : i32, message = "btd,de->bte"}> : () -> ()
    %cst = arith.constant dense<0.000000e+00> : vector<2x128x256xf32>
    %3 = tpu.matmul %1, %2, %cst {dimension_numbers = #tpu.dot_dimension_numbers<[2], [0], [0, 1], [1], [0, 0, 0, 1, 1, 1], [], []>} : vector<2x128x128xf32>, vector<128x256xf32>, vector<2x128x256xf32> -> vector<2x128x256xf32>
    "tpu.trace_stop"() : () -> ()
    %4 = vector.extract_strided_slice %3 {offsets = [0, 0, 0], sizes = [2, 128, 128], strides = [1, 1, 1]} : vector<2x128x256xf32> to vector<2x128x128xf32>
    %cst_4 = arith.constant 0.176776692 : f32
    %5 = vector.broadcast %cst_4 : f32 to vector<2x128x128xf32>
    %6 = arith.mulf %4, %5 : vector<2x128x128xf32>
    %7 = vector.extract_strided_slice %3 {offsets = [0, 0, 128], sizes = [2, 128, 1], strides = [1, 1, 1]} : vector<2x128x256xf32> to vector<2x128x1xf32>
    %8 = tpu.iota {dimensions = array<i32: 0>} : vector<128x128xi32>
    %9 = vector.broadcast %0 : i32 to vector<128x128xi32>
    %10 = arith.addi %8, %9 : vector<128x128xi32>
    %11 = tpu.iota {dimensions = array<i32: 1>} : vector<128x128xi32>
    %12 = arith.subi %10, %11 : vector<128x128xi32>
    %13 = arith.sitofp %12 : vector<128x128xi32> to vector<128x128xf32>
    %14 = arith.mulf %13, %13 : vector<128x128xf32>
    %c8_i32 = arith.constant 8 : i32
    %15 = vector.broadcast %c8_i32 : i32 to vector<128x128xi32>
    %16 = arith.cmpi slt, %11, %15 : vector<128x128xi32>
    %cst_5 = arith.constant 3.000000e+38 : f32
    %17 = vector.broadcast %cst_5 : f32 to vector<128x128xf32>
    %18 = arith.select %16, %14, %17 : vector<128x128xi1>, vector<128x128xf32>
    %cst_6 = arith.constant 9.99999993E-9 : f32
    %19 = vector.broadcast %cst_6 : f32 to vector<2x128x1xf32>
    %20 = arith.addf %7, %19 : vector<2x128x1xf32>
    %21 = tpu.reciprocal %20 : vector<2x128x1xf32> -> vector<2x128x1xf32>
    %22 = vector.shape_cast %18 : vector<128x128xf32> to vector<1x128x128xf32>
    %cst_7 = arith.constant -5.000000e-01 : f32
    %23 = vector.broadcast %cst_7 : f32 to vector<2x128x1xf32>
    %24 = arith.mulf %23, %21 : vector<2x128x1xf32>
    %25 = arith.mulf %24, %21 : vector<2x128x1xf32>
    %26 = vector.broadcast %22 : vector<1x128x128xf32> to vector<2x128x128xf32>
    %27 = vector.broadcast %25 : vector<2x128x1xf32> to vector<2x128x128xf32>
    %28 = arith.mulf %26, %27 : vector<2x128x128xf32>
    %29 = math.exp %28 : vector<2x128x128xf32>
    %cst_8 = arith.constant dense<0.000000e+00> : vector<2x128xf32>
    %30 = vector.multi_reduction <add>, %29, %cst_8 [2] : vector<2x128x128xf32> to vector<2x128xf32>
    %31 = vector.shape_cast %30 : vector<2x128xf32> to vector<2x128x1xf32>
    %cst_9 = arith.constant 1.000000e-30 : f32
    %32 = vector.broadcast %cst_9 : f32 to vector<2x128x1xf32>
    %33 = arith.maximumf %31, %32 : vector<2x128x1xf32>
    %34 = tpu.reciprocal %33 : vector<2x128x1xf32> -> vector<2x128x1xf32>
    %35 = vector.broadcast %34 : vector<2x128x1xf32> to vector<2x128x128xf32>
    %36 = arith.mulf %29, %35 : vector<2x128x128xf32>
    %c0_10 = arith.constant 0 : index
    %c0_11 = arith.constant 0 : index
    %c0_12 = arith.constant 0 : index
    %37 = vector.load %arg5[%c0_10, %c0_11, %c0_12] : memref<2x128x128xf32, #tpu.memory_space<vmem>>, vector<2x128x128xf32>
    tpu.vector_store %arg5[%c0_10, %c0_11, %c0_12], %36 {strides = array<i32>} : memref<2x128x128xf32, #tpu.memory_space<vmem>>, vector<2x128x128xf32>,
    %c0_13 = arith.constant 0 : index
    %c0_14 = arith.constant 0 : index
    %c0_15 = arith.constant 0 : index
    %38 = vector.load %arg3[%c0_13, %c0_14, %c0_15] : memref<2x128x256xf32, #tpu.memory_space<vmem>>, vector<2x128x128xf32>
    %c0_16 = arith.constant 0 : index
    %c0_17 = arith.constant 0 : index
    %c128 = arith.constant 128 : index
    %39 = vector.load %arg3[%c0_16, %c0_17, %c128] : memref<2x128x256xf32, #tpu.memory_space<vmem>>, vector<2x128x128xf32>
    "tpu.trace_start"() <{level = 10 : i32, message = "bqd,bkd->bqk"}> : () -> ()
    %cst_18 = arith.constant dense<0.000000e+00> : vector<2x128x128xf32>
    %40 = tpu.matmul %6, %38, %cst_18 {dimension_numbers = #tpu.dot_dimension_numbers<[2], [2], [1], [1], [0, 0, 0, 1, 1, 1], [0], [0]>} : vector<2x128x128xf32>, vector<2x128x128xf32>, vector<2x128x128xf32> -> vector<2x128x128xf32>
    "tpu.trace_stop"() : () -> ()
    %cst_19 = arith.constant dense<0xFF800000> : vector<128x128xf32>
    %41 = vector.multi_reduction <maximumf>, %40, %cst_19 [0] : vector<2x128x128xf32> to vector<128x128xf32>
    %42 = vector.shape_cast %41 : vector<128x128xf32> to vector<1x128x128xf32>
    %43 = vector.broadcast %42 : vector<1x128x128xf32> to vector<2x128x128xf32>
    %44 = arith.subf %40, %43 : vector<2x128x128xf32>
    %45 = math.exp %44 : vector<2x128x128xf32>
    %cst_20 = arith.constant dense<0.000000e+00> : vector<128x128xf32>
    %46 = vector.multi_reduction <add>, %45, %cst_20 [0] : vector<2x128x128xf32> to vector<128x128xf32>
    %47 = vector.shape_cast %46 : vector<128x128xf32> to vector<1x128x128xf32>
    %48 = tpu.reciprocal %47 : vector<1x128x128xf32> -> vector<1x128x128xf32>
    %49 = vector.broadcast %48 : vector<1x128x128xf32> to vector<2x128x128xf32>
    %50 = arith.mulf %45, %49 : vector<2x128x128xf32>
    %c0_21 = arith.constant 0 : index
    %c0_22 = arith.constant 0 : index
    %c0_23 = arith.constant 0 : index
    %51 = vector.load %arg6[%c0_21, %c0_22, %c0_23] : memref<2x128x128xf32, #tpu.memory_space<vmem>>, vector<2x128x128xf32>
    tpu.vector_store %arg6[%c0_21, %c0_22, %c0_23], %50 {strides = array<i32>} : memref<2x128x128xf32, #tpu.memory_space<vmem>>, vector<2x128x128xf32>,
    "tpu.trace_start"() <{level = 10 : i32, message = "bqk,bkd->bqd"}> : () -> ()
    %cst_24 = arith.constant dense<0.000000e+00> : vector<2x128x128xf32>
    %52 = tpu.matmul %50, %39, %cst_24 {dimension_numbers = #tpu.dot_dimension_numbers<[2], [1], [1], [2], [0, 0, 0, 1, 1, 2], [0], [0]>} : vector<2x128x128xf32>, vector<2x128x128xf32>, vector<2x128x128xf32> -> vector<2x128x128xf32>
    "tpu.trace_stop"() : () -> ()
    %c0_25 = arith.constant 0 : index
    %c0_26 = arith.constant 0 : index
    %c0_27 = arith.constant 0 : index
    %53 = vector.load %arg4[%c0_25, %c0_26, %c0_27] : memref<2x128x128xf32, #tpu.memory_space<vmem>>, vector<2x128x128xf32>
    tpu.vector_store %arg4[%c0_25, %c0_26, %c0_27], %52 {strides = array<i32>} : memref<2x128x128xf32, #tpu.memory_space<vmem>>, vector<2x128x128xf32>,
    return
  }
  func.func @transform_0(%arg0: i32) -> (i32, i32, i32) {
    %c0_i32 = arith.constant 0 : i32
    %c0_i32_0 = arith.constant 0 : i32
    %c0_i32_1 = arith.constant 0 : i32
    return %c0_i32, %arg0, %c0_i32_0 : i32, i32, i32
  }
  func.func @transform_1(%arg0: i32) -> (i32, i32) {
    %c0_i32 = arith.constant 0 : i32
    %c0_i32_0 = arith.constant 0 : i32
    %c0_i32_1 = arith.constant 0 : i32
    return %c0_i32, %c0_i32_0 : i32, i32
  }
  func.func @transform_2(%arg0: i32) -> (i32, i32, i32) {
    %c0_i32 = arith.constant 0 : i32
    %c0_i32_0 = arith.constant 0 : i32
    %c0_i32_1 = arith.constant 0 : i32
    %c0_i32_2 = arith.constant 0 : i32
    return %c0_i32, %c0_i32_0, %c0_i32_1 : i32, i32, i32
  }
  func.func @transform_3(%arg0: i32) -> (i32, i32, i32) {
    %c0_i32 = arith.constant 0 : i32
    %c0_i32_0 = arith.constant 0 : i32
    %c0_i32_1 = arith.constant 0 : i32
    return %c0_i32, %arg0, %c0_i32_0 : i32, i32, i32
  }
  func.func @transform_4(%arg0: i32) -> (i32, i32, i32) {
    %c0_i32 = arith.constant 0 : i32
    %c0_i32_0 = arith.constant 0 : i32
    %c0_i32_1 = arith.constant 0 : i32
    return %c0_i32, %arg0, %c0_i32_0 : i32, i32, i32
  }
  func.func @transform_5(%arg0: i32) -> (i32, i32, i32) {
    %c0_i32 = arith.constant 0 : i32
    %c0_i32_0 = arith.constant 0 : i32
    %c0_i32_1 = arith.constant 0 : i32
    return %c0_i32, %arg0, %c0_i32_0 : i32, i32, i32
  }
}

</mosaic_0001>

<bundles_post_ra>
// kernel: tpu_custom_call.1
= control target key start
LH: loop header
LB: loop body
LE: loop exit
PB: predicated region body
PF: predicated region fallthrough
CT: control target
= control target key end

     0   :  { %11 = vsyncpa [#allocation3], 0  ;;  %s4852_s0 = inlined_call_operand.hbm [shape: f32[2,128,128], index: 0, kind: input, shape index: {}]   ;;  %s4853_s1 = inlined_call_operand.hbm [shape: f32[128,256], index: 1, kind: input, shape index: {}]   ;;  %s4854_s2 = inlined_call_operand.hbm [shape: f32[2,128,256], index: 2, kind: input, shape index: {}]   ;;  %s4855_s3 = inlined_call_operand.hbm [shape: f32[2,128,128], index: 3, kind: output, shape index: {0}]   ;;  %s4856_s4 = inlined_call_operand.hbm [shape: f32[2,128,128], index: 4, kind: output, shape index: {1}]   ;;  %s4857_s5 = inlined_call_operand.hbm [shape: f32[2,128,128], index: 5, kind: output, shape index: {2}]  }
   0x1   :  { %12 = vsyncpa [#allocation6], 0 }
   0x2   :  { %13 = vsyncpa [#allocation4], 0  ;;  %s32_s20 = sshll.u32 %s4853_s1, 4  ;;  %s33_s20 = int_to_ptr.hbm [resolvable:$true] %s32_s20 }
   0x3   :  { %14 = vsyncpa [#allocation10], 0  ;;  %s3211_s21 = smov [#allocation5]   ;;  %s19_s25 = sshll.u32 %s4852_s0, 4  ;;  %s20_s25 = int_to_ptr.hbm [resolvable:$true] %s19_s25 }
   0x4   :  { %s34_s22 = sshll.u32 %s3211_s21, 4  ;;  %s3212_s26 = smov 256   ;;  %s35_s22 = int_to_ptr.vmem [resolvable:$true] %s34_s22 }
   0x5   :  { %s3213_s27 = smov 16   ;;  %s3214_s28 = smov [#allocation2]  }
   0x6   :  { %40 = dma.hbm_to_vmem [thread:$0]  %s33_s20, 4096, %s35_s22, [#allocation6], %s3212_s26, %s3212_s26, %s3213_s27  }
   0x7   :  { %s21_s29 = sshll.u32 %s3214_s28, 4  ;;  %s3215_s30 = smov 128   ;;  %s22_s29 = int_to_ptr.vmem [resolvable:$true] %s21_s29 }
   0x8   :  { %s3216_s6 = smov 8   ;;  %s45_s8 = sshll.u32 %s4854_s2, 4  ;;  %s46_s8 = int_to_ptr.hbm [resolvable:$true] %s45_s8 }
   0x9   :  { %27 = dma.hbm_to_vmem [thread:$0]  %s20_s25, 4096, %s22_s29, [#allocation3], %s3215_s30, %s3215_s30, %s3216_s6  }
   0xa   :  { %s3217_s9 = smov [#allocation7]  }
   0xb   :  { %s47_s0 = sshll.u32 %s3217_s9, 4  ;;  %s48_s0 = int_to_ptr.vmem [resolvable:$true] %s47_s0 }
   0xc   :  { %53 = dma.hbm_to_vmem [thread:$0]  %s46_s8, 8192, %s48_s0, [#allocation6], %s3212_s26, %s3212_s26, %s3213_s27  }
   0xd   :  { %3203 = dma.done.wait [#allocation3], 4096  }
   0xe   :  { %3204 = vsyncadd [#allocation3], 4294963200 }
   0xf   :  { %3205 = dma.done.wait [#allocation6], 12288  }
  0x10   :  { %3206 = vsyncadd [#allocation6], 4294955008  ;;  %v130_v0 = vld [vmem:[#allocation5 + $0xf8] sm:$0xff]  ;;  %v128_v1 = vld [vmem:[#allocation5 + $0xe8] sm:$0xff]  ;;  %v3218_v47 = vmov 0   ;;  %s3219_s2 = smov [#allocation8]  }
  0x11   :  { %244 = vmatpush.msra.mxu1 %v130_v0  ;;  %v126_v2 = vld [vmem:[#allocation5 + $0xd8] sm:$0xff]  ;;  %v124_v3 = vld [vmem:[#allocation5 + $0xc8] sm:$0xff]  ;;  %v129_v10 = vld [vmem:[#allocation5 + $0xf0] sm:$0xff]  ;;  %2768 = vset.pattern.permute.xlu0 %v3218_v47  ;;  %s2674_s10 = sshll.u32 %s3219_s2, 4  ;;  %s2676_s13 = sshll.u32 %s4855_s3, 4  ;;  %s2675_s10 = int_to_ptr.vmem [resolvable:$true] %s2674_s10  ;;  %s2677_s13 = int_to_ptr.hbm [resolvable:$true] %s2676_s13 }
  0x12   :  { %v122_v4 = vld [vmem:[#allocation5 + $0xb8] sm:$0xff]  ;;  %v120_v5 = vld [vmem:[#allocation5 + $0xa8] sm:$0xff]  ;;  %v127_v11 = vld [vmem:[#allocation5 + $0xe0] sm:$0xff]  ;;  %131 = vmatpush.msra.mxu0 %v129_v10  ;;  %2769 = vset.pattern.permute.xlu1 %v3218_v47  ;;  %s3220_s3 = smov [#allocation9]   ;;  %s2689_s17 = sshll.u32 %s4856_s4, 4  ;;  %s2690_s17 = int_to_ptr.hbm [resolvable:$true] %s2689_s17 }
  0x13   :  { %245 = vmatpush.msra.mxu1 %v128_v1  ;;  %v118_v6 = vld [vmem:[#allocation5 + $0x98] sm:$0xff]  ;;  %v116_v7 = vld [vmem:[#allocation5 + $0x88] sm:$0xff]  ;;  %v125_v16 = vld [vmem:[#allocation5 + $0xd0] sm:$0xff]  ;;  %2770 = vset.pattern.permute.xlu2 %v3218_v47  ;;  %s2687_s14 = sshll.u32 %s3220_s3, 4  ;;  %s3221_s18 = smov [#allocation11]   ;;  %s2688_s14 = int_to_ptr.vmem [resolvable:$true] %s2687_s14 }
  0x14   :  { %v114_v8 = vld [vmem:[#allocation5 + $0x78] sm:$0xff]  ;;  %v112_v9 = vld [vmem:[#allocation5 + $0x68] sm:$0xff]  ;;  %132 = vmatpush.msra.mxu0 %v127_v11  ;;  %v123_v17 = vld [vmem:[#allocation5 + $0xc0] sm:$0xff]  ;;  %s2700_s19 = sshll.u32 %s3221_s18, 4  ;;  %s2702_s22 = sshll.u32 %s4857_s5, 4  ;;  %s2701_s19 = int_to_ptr.vmem [resolvable:$true] %s2700_s19  ;;  %s2703_s22 = int_to_ptr.hbm [resolvable:$true] %s2702_s22 }
  0x15   :  { %246 = vmatpush.msra.mxu1 %v126_v2  ;;  %v110_v12 = vld [vmem:[#allocation5 + $0x58] sm:$0xff]  ;;  %v108_v13 = vld [vmem:[#allocation5 + $0x48] sm:$0xff]  ;;  %v121_v19 = vld [vmem:[#allocation5 + $0xb0] sm:$0xff] }
  0x16   :  { %v106_v14 = vld [vmem:[#allocation5 + $0x38] sm:$0xff]  ;;  %v104_v15 = vld [vmem:[#allocation5 + $0x28] sm:$0xff]  ;;  %133 = vmatpush.msra.mxu0 %v125_v16  ;;  %v119_v21 = vld [vmem:[#allocation5 + $0xa0] sm:$0xff] }
  0x17   :  { %247 = vmatpush.msra.mxu1 %v124_v3  ;;  %v102_v18 = vld [vmem:[#allocation5 + $0x18] sm:$0xff]  ;;  %v100_v20 = vld [vmem:[#allocation5 + $0x8] sm:$0xff]  ;;  %v67_v22 = vld [vmem:[#allocation2] sm:$0xff] }
  0x18   :  { %134 = vmatpush.msra.mxu0 %v123_v17  ;;  %v117_v23 = vld [vmem:[#allocation5 + $0x90] sm:$0xff]  ;;  %v115_v24 = vld [vmem:[#allocation5 + $0x80] sm:$0xff]  ;;  %v68_v27 = vld [vmem:[#allocation2 + $0x8] sm:$0xff] }
  0x19   :  { %248 = vmatpush.msra.mxu1 %v122_v4  ;;  %v113_v25 = vld [vmem:[#allocation5 + $0x70] sm:$0xff]  ;;  %v111_v26 = vld [vmem:[#allocation5 + $0x60] sm:$0xff]  ;;  %v70_v35 = vld [vmem:[#allocation2 + $0x18] sm:$0xff] }
  0x1a   :  { %135 = vmatpush.msra.mxu0 %v121_v19  ;;  %v109_v28 = vld [vmem:[#allocation5 + $0x50] sm:$0xff]  ;;  %v107_v29 = vld [vmem:[#allocation5 + $0x40] sm:$0xff]  ;;  %v72_v37 = vld [vmem:[#allocation2 + $0x28] sm:$0xff] }
  0x1b   :  { %249 = vmatpush.msra.mxu1 %v120_v5  ;;  %v105_v30 = vld [vmem:[#allocation5 + $0x30] sm:$0xff]  ;;  %v103_v31 = vld [vmem:[#allocation5 + $0x20] sm:$0xff]  ;;  %v74_v39 = vld [vmem:[#allocation2 + $0x38] sm:$0xff] }
  0x1c   :  { %136 = vmatpush.msra.mxu0 %v119_v21  ;;  %v69_v32 = vld [vmem:[#allocation2 + $0x10] sm:$0xff]  ;;  %v99_v34 = vld [vmem:[#allocation5] sm:$0xff]  ;;  %v76_v41 = vld [vmem:[#allocation2 + $0x48] sm:$0xff] }
  0x1d   :  { %250 = vmatpush.msra.mxu1 %v118_v6  ;;  %v101_v33 = vld [vmem:[#allocation5 + $0x10] sm:$0xff]  ;;  %v71_v36 = vld [vmem:[#allocation2 + $0x20] sm:$0xff]  ;;  %v78_v43 = vld [vmem:[#allocation2 + $0x58] sm:$0xff] }
  0x1e   :  { %137 = vmatpush.msra.mxu0 %v117_v23  ;;  %v73_v38 = vld [vmem:[#allocation2 + $0x30] sm:$0xff]  ;;  %v75_v40 = vld [vmem:[#allocation2 + $0x40] sm:$0xff]  ;;  %v80_v45 = vld [vmem:[#allocation2 + $0x68] sm:$0xff] }
  0x1f   :  { %251 = vmatpush.msra.mxu1 %v116_v7  ;;  %v77_v42 = vld [vmem:[#allocation2 + $0x50] sm:$0xff]  ;;  %v79_v44 = vld [vmem:[#allocation2 + $0x60] sm:$0xff]  ;;  %v82_v48 = vld [vmem:[#allocation2 + $0x78] sm:$0xff] }
  0x20   :  { %138 = vmatpush.msra.mxu0 %v115_v24  ;;  %v81_v46 = vld [vmem:[#allocation2 + $0x70] sm:$0xff]  ;;  %v83_v50 = vld [vmem:[#allocation2 + $0x80] sm:$0xff]  ;;  %v84_v53 = vld [vmem:[#allocation2 + $0x88] sm:$0xff] }
  0x21   :  { %252 = vmatpush.msra.mxu1 %v114_v8  ;;  %v3264_v63 = vld [vmem:[#allocation2 + $0x90] sm:$0xff] }
  0x22   :  { %139 = vmatpush.msra.mxu0 %v113_v25 }
  0x23   :  { %253 = vmatpush.msra.mxu1 %v112_v9 }
  0x24   :  { %140 = vmatpush.msra.mxu0 %v111_v26 }
  0x25   :  { %254 = vmatpush.msra.mxu1 %v110_v12 }
  0x26   :  { %141 = vmatpush.msra.mxu0 %v109_v28 }
  0x27   :  { %255 = vmatpush.msra.mxu1 %v108_v13 }
  0x28   :  { %142 = vmatpush.msra.mxu0 %v107_v29 }
  0x29   :  { %256 = vmatpush.msra.mxu1 %v106_v14 }
  0x2a   :  { %143 = vmatpush.msra.mxu0 %v105_v30 }
  0x2b   :  { %257 = vmatpush.msra.mxu1 %v104_v15  ;;  %v86_v15 = vld [vmem:[#allocation2 + $0x98] sm:$0xff] }
  0x2c   :  { %144 = vmatpush.msra.mxu0 %v103_v31 }
  0x2d   :  { %258 = vmatpush.msra.mxu1 %v102_v18 }
  0x2e   :  { %145 = vmatpush.msra.mxu0 %v101_v33 }
  0x2f   :  { %259 = vmatpush.msra.mxu1 %v100_v20 }
  0x30   :  { %260 = vmatmul.f32.vlgmr.msra.gmra.mxu1 %v67_v22  ;;  %146 = vmatpush.msra.mxu0 %v99_v34 }
  0x31   :  { %147 = vmatmul.f32.vlgmr.msra.gmra.mxu0 %v67_v22 }
  0x38   :  { %263 = vmatmul.f32.gmra.mxu1 %v68_v27 }
  0x39   :  { %150 = vmatmul.f32.gmra.mxu0 %v68_v27 }
  0x40   :  { %266 = vmatmul.f32.gmra.mxu1 %v69_v32 }
  0x41   :  { %153 = vmatmul.f32.gmra.mxu0 %v69_v32 }
  0x48   :  { %269 = vmatmul.f32.gmra.mxu1 %v70_v35 }
  0x49   :  { %156 = vmatmul.f32.gmra.mxu0 %v70_v35 }
  0x50   :  { %272 = vmatmul.f32.gmra.mxu1 %v71_v36 }
  0x51   :  { %159 = vmatmul.f32.gmra.mxu0 %v71_v36 }
  0x58   :  { %275 = vmatmul.f32.gmra.mxu1 %v72_v37 }
  0x59   :  { %162 = vmatmul.f32.gmra.mxu0 %v72_v37 }
  0x60   :  { %278 = vmatmul.f32.gmra.mxu1 %v73_v38 }
  0x61   :  { %165 = vmatmul.f32.gmra.mxu0 %v73_v38 }
  0x68   :  { %281 = vmatmul.f32.gmra.mxu1 %v74_v39 }
  0x69   :  { %168 = vmatmul.f32.gmra.mxu0 %v74_v39 }
  0x70   :  { %284 = vmatmul.f32.gmra.mxu1 %v75_v40 }
  0x71   :  { %171 = vmatmul.f32.gmra.mxu0 %v75_v40 }
  0x78   :  { %287 = vmatmul.f32.gmra.mxu1 %v76_v41 }
  0x79   :  { %174 = vmatmul.f32.gmra.mxu0 %v76_v41 }
  0x80   :  { %290 = vmatmul.f32.gmra.mxu1 %v77_v42 }
  0x81   :  { %177 = vmatmul.f32.gmra.mxu0 %v77_v42 }
  0x88   :  { %293 = vmatmul.f32.gmra.mxu1 %v78_v43 }
  0x89   :  { %180 = vmatmul.f32.gmra.mxu0 %v78_v43 }
  0x90   :  { %296 = vmatmul.f32.gmra.mxu1 %v79_v44 }
  0x91   :  { %183 = vmatmul.f32.gmra.mxu0 %v79_v44 }
  0x98   :  { %299 = vmatmul.f32.gmra.mxu1 %v80_v45 }
  0x99   :  { %186 = vmatmul.f32.gmra.mxu0 %v80_v45 }
  0xa0   :  { %302 = vmatmul.f32.gmra.mxu1 %v81_v46 }
  0xa1   :  { %189 = vmatmul.f32.gmra.mxu0 %v81_v46 }
  0xa8   :  { %305 = vmatmul.f32.gmra.mxu1 %v82_v48 }
  0xa9   :  { %192 = vmatmul.f32.gmra.mxu0 %v82_v48 }
  0xad   :  { %v261_v49 = vpop.f32.mrf.mxu1 }
  0xae   :  { %v490_v51 = vadd.f32 1e-08, %v261_v49  ;;  %v3267_v12 = vpop.f32.mrf.mxu0 }
  0xb0   :  { %2771 = vrcp.f32 %v490_v51  ;;  %308 = vmatmul.f32.gmra.mxu1 %v83_v50  ;;  %v533_v58 = vand.u32 2147483648, %v490_v51  ;;  %v531_v60 = vand.u32 2147483647, %v490_v51  ;;  %vm527_vm1 = vweird.f32 %v490_v51 }
  0xb1   :  { %195 = vmatmul.f32.gmra.mxu0 %v83_v50 }
  0xb2   :  { %v534_v2 = vor.u32 1.1754944e-38, %v533_v58  ;;  %vm532_vm3 = vcmp.eq.f32.partialorder %v531_v60, 8.507059e+37 }
  0xb5   :  { %v264_v52 = vpop.f32.mrf.mxu1 }
  0xb6   :  { %v2772_v54 = vpop.eup %2771  ;;  %v491_v55 = vadd.f32 1e-08, %v264_v52  ;;  %v3269_v28 = vpop.f32.mrf.mxu0 }
  0xb7   :  { %v523_v56 = vmul.f32 %v2772_v54, %v490_v51  ;;  %vm528_vm0 = vweird.f32 %v2772_v54 }
  0xb8   :  { %2773 = vrcp.f32 %v491_v55  ;;  %311 = vmatmul.f32.gmra.mxu1 %v84_v53  ;;  %vm529_vm2 = vmor %vm527_vm1, %vm528_vm0  ;;  %v547_v8 = vand.u32 2147483648, %v491_v55  ;;  %v545_v11 = vand.u32 2147483647, %v491_v55  ;;  %vm541_vm5 = vweird.f32 %v491_v55 }
  0xb9   :  { %v524_v57 = vsub.f32 1.0, %v523_v56  ;;  %198 = vmatmul.f32.gmra.mxu0 %v84_v53 }
  0xba   :  { %v548_v18 = vor.u32 1.1754944e-38, %v547_v8  ;;  %vm546_vm7 = vcmp.eq.f32.partialorder %v545_v11, 8.507059e+37 }
  0xbb   :  { %v525_v59 = vmul.f32 %v2772_v54, %v524_v57 }
  0xbd   :  { %v267_v61 = vpop.f32.mrf.mxu1  ;;  %v526_v62 = vadd.f32 %v2772_v54, %v525_v59 }
  0xbe   :  { %v2774_v0 = vpop.eup %2773  ;;  %v492_v1 = vadd.f32 1e-08, %v267_v61  ;;  %v3271_v43 = vpop.f32.mrf.mxu0 }
  0xbf   :  { %v537_v3 = vmul.f32 %v2774_v0, %v491_v55  ;;  %v530_v4 = vsel %vm529_vm2, %v2772_v54, %v526_v62  ;;  %vm542_vm4 = vweird.f32 %v2774_v0 }
  0xc0   :  { %2775 = vrcp.f32 %v492_v1  ;;  %v535_v5 = vsel %vm532_vm3, %v534_v2, %v530_v4  ;;  %314 = vmatmul.f32.gmra.mxu1 %v3264_v63  ;;  %vm543_vm6 = vmor %vm541_vm5, %vm542_vm4  ;;  %v561_v24 = vand.u32 2147483648, %v492_v1  ;;  %v559_v27 = vand.u32 2147483647, %v492_v1 }
  0xc1   :  { %v538_v6 = vsub.f32 1.0, %v537_v3  ;;  %v970_v7 = vmul.f32 -0.5, %v535_v5  ;;  %vm555_vm9 = vweird.f32 %v492_v1  ;;  %201 = vmatmul.f32.gmra.mxu0 %v3264_v63 }
  0xc2   :  { %v562_v33 = vor.u32 1.1754944e-38, %v561_v24  ;;  %vm560_vm11 = vcmp.eq.f32.partialorder %v559_v27, 8.507059e+37 }
  0xc3   :  { %v1002_v9 = vmul.f32 %v970_v7, %v535_v5  ;;  %v539_v10 = vmul.f32 %v2774_v0, %v538_v6 }
  0xc5   :  { %1036 = vperm.xlu0 %2768, %v1002_v9   ;;  %v270_v13 = vpop.f32.mrf.mxu1  ;;  %v540_v14 = vadd.f32 %v2774_v0, %v539_v10 }
  0xc6   :  { %v2776_v16 = vpop.eup %2775  ;;  %v493_v17 = vadd.f32 1e-08, %v270_v13  ;;  %v3274_v58 = vpop.f32.mrf.mxu0  ;;  %v87_v13 = vld [vmem:[#allocation2 + $0xa0] sm:$0xff] }
  0xc7   :  { %v544_v19 = vsel %vm543_vm6, %v2774_v0, %v540_v14  ;;  %v551_v20 = vmul.f32 %v2776_v16, %v492_v1  ;;  %vm556_vm8 = vweird.f32 %v2776_v16 }
  0xc8   :  { %2777 = vrcp.f32 %v493_v17  ;;  %v549_v21 = vsel %vm546_vm7, %v548_v18, %v544_v19  ;;  %317 = vmatmul.f32.gmra.mxu1 %v86_v15  ;;  %vm557_vm10 = vmor %vm555_vm9, %vm556_vm8  ;;  %v575_v39 = vand.u32 2147483648, %v493_v17  ;;  %v573_v42 = vand.u32 2147483647, %v493_v17 }
  0xc9   :  { %v971_v22 = vmul.f32 -0.5, %v549_v21  ;;  %v552_v23 = vsub.f32 1.0, %v551_v20  ;;  %vm569_vm13 = vweird.f32 %v493_v17  ;;  %204 = vmatmul.f32.gmra.mxu0 %v86_v15 }
  0xca   :  { %v576_v48 = vor.u32 1.1754944e-38, %v575_v39  ;;  %vm574_vm15 = vcmp.eq.f32.partialorder %v573_v42, 8.507059e+37 }
  0xcb   :  { %v1003_v25 = vmul.f32 %v971_v22, %v549_v21  ;;  %v553_v26 = vmul.f32 %v2776_v16, %v552_v23  ;;  %v1913_v22 = vld [vmem:[#allocation7 + $0xf0] sm:$0xff] }
  0xcc   :  { %v1929_v23 = vld [vmem:[#allocation7 + $0x1f0] sm:$0xff]  ;;  %1962 = vmatpush.xpose.msrb.mxu0 %v1913_v22  ;;  %2725 = vmatpush.xpose.msra.mxu2 %v1913_v22  ;;  %v91_v22 = vld [vmem:[#allocation2 + $0xc0] sm:$0xff] }
  0xcd   :  { %1041 = vperm.xlu0 %2768, %v1003_v25   ;;  %v273_v29 = vpop.f32.mrf.mxu1  ;;  %v554_v30 = vadd.f32 %v2776_v16, %v553_v26  ;;  %2027 = vmatpush.xpose.msrb.mxu1 %v1929_v23 }
  0xce   :  { %v2778_v31 = vpop.eup %2777  ;;  %v494_v32 = vadd.f32 1e-08, %v273_v29  ;;  %v3276_v9 = vpop.f32.mrf.mxu0  ;;  %2741 = vmatpush.xpose.msra.mxu3 %v1929_v23 }
  0xcf   :  { %v565_v34 = vmul.f32 %v2778_v31, %v493_v17  ;;  %v558_v35 = vsel %vm557_vm10, %v2776_v16, %v554_v30  ;;  %vm570_vm12 = vweird.f32 %v2778_v31 }
  0xd0   :  { %2779 = vrcp.f32 %v494_v32  ;;  %v563_v36 = vsel %vm560_vm11, %v562_v33, %v558_v35  ;;  %vm571_vm14 = vmor %vm569_vm13, %vm570_vm12  ;;  %v589_v54 = vand.u32 2147483648, %v494_v32  ;;  %v587_v57 = vand.u32 2147483647, %v494_v32  ;;  %320 = vmatmul.f32.gmra.mxu1 %v87_v13 }
  0xd1   :  { %v566_v37 = vsub.f32 1.0, %v565_v34  ;;  %v972_v38 = vmul.f32 -0.5, %v563_v36  ;;  %vm583_vm1 = vweird.f32 %v494_v32  ;;  %207 = vmatmul.f32.gmra.mxu0 %v87_v13 }
  0xd2   :  { %v590_v63 = vor.u32 1.1754944e-38, %v589_v54  ;;  %vm588_vm3 = vcmp.eq.f32.partialorder %v587_v57, 8.507059e+37 }
  0xd3   :  { %v1004_v40 = vmul.f32 %v972_v38, %v563_v36  ;;  %v567_v41 = vmul.f32 %v2778_v31, %v566_v37 }
  0xd5   :  { %1046 = vperm.xlu1 %2769, %v1004_v40   ;;  %v276_v44 = vpop.f32.mrf.mxu1  ;;  %v568_v45 = vadd.f32 %v2778_v31, %v567_v41 }
  0xd6   :  { %v2780_v46 = vpop.eup %2779  ;;  %v495_v47 = vadd.f32 1e-08, %v276_v44  ;;  %v3278_v29 = vpop.f32.mrf.mxu0 }
  0xd7   :  { %v572_v49 = vsel %vm571_vm14, %v2778_v31, %v568_v45  ;;  %v579_v50 = vmul.f32 %v2780_v46, %v494_v32  ;;  %vm584_vm0 = vweird.f32 %v2780_v46  ;;  %v88_v32 = vld [vmem:[#allocation2 + $0xa8] sm:$0xff] }
  0xd8   :  { %2781 = vrcp.f32 %v495_v47  ;;  %v577_v51 = vsel %vm574_vm15, %v576_v48, %v572_v49  ;;  %vm585_vm2 = vmor %vm583_vm1, %vm584_vm0  ;;  %v603_v5 = vand.u32 2147483648, %v495_v47  ;;  %v601_v8 = vand.u32 2147483647, %v495_v47  ;;  %323 = vmatmul.f32.gmra.mxu1 %v88_v32  ;;  %v89_v49 = vld [vmem:[#allocation2 + $0xb0] sm:$0xff] }
  0xd9   :  { %v973_v52 = vmul.f32 -0.5, %v577_v51  ;;  %v580_v53 = vsub.f32 1.0, %v579_v50  ;;  %vm597_vm5 = vweird.f32 %v495_v47  ;;  %210 = vmatmul.f32.gmra.mxu0 %v88_v32 }
  0xda   :  { %v604_v16 = vor.u32 1.1754944e-38, %v603_v5  ;;  %vm602_vm7 = vcmp.eq.f32.partialorder %v601_v8, 8.507059e+37 }
  0xdb   :  { %v1005_v55 = vmul.f32 %v973_v52, %v577_v51  ;;  %v581_v56 = vmul.f32 %v2780_v46, %v580_v53 }
  0xdd   :  { %1051 = vperm.xlu1 %2769, %v1005_v55   ;;  %v279_v59 = vpop.f32.mrf.mxu1  ;;  %v582_v60 = vadd.f32 %v2780_v46, %v581_v56 }
  0xde   :  { %v2782_v61 = vpop.eup %2781  ;;  %v496_v62 = vadd.f32 1e-08, %v279_v59  ;;  %v1912_v59 = vld [vmem:[#allocation7 + $0xe0] sm:$0xff] }
  0xdf   :  { %v593_v0 = vmul.f32 %v2782_v61, %v495_v47  ;;  %v586_v1 = vsel %vm585_vm2, %v2780_v46, %v582_v60  ;;  %vm598_vm4 = vweird.f32 %v2782_v61  ;;  %v3280_v46 = vpop.f32.mrf.mxu0  ;;  %v1928_v60 = vld [vmem:[#allocation7 + $0x1e0] sm:$0xff]  ;;  %1963 = vmatpush.xpose.msrb.mxu0 %v1912_v59  ;;  %2726 = vmatpush.xpose.msra.mxu2 %v1912_v59 }
  0xe0   :  { %2783 = vrcp.f32 %v496_v62  ;;  %v591_v2 = vsel %vm588_vm3, %v590_v63, %v586_v1  ;;  %vm599_vm6 = vmor %vm597_vm5, %vm598_vm4  ;;  %v617_v24 = vand.u32 2147483648, %v496_v62  ;;  %v615_v27 = vand.u32 2147483647, %v496_v62  ;;  %326 = vmatmul.f32.gmra.mxu1 %v89_v49  ;;  %2742 = vmatpush.xpose.msra.mxu3 %v1928_v60 }
  0xe1   :  { %v594_v3 = vsub.f32 1.0, %v593_v0  ;;  %v974_v4 = vmul.f32 -0.5, %v591_v2  ;;  %vm611_vm9 = vweird.f32 %v496_v62  ;;  %213 = vmatmul.f32.gmra.mxu0 %v89_v49  ;;  %2028 = vmatpush.xpose.msrb.mxu1 %v1928_v60 }
  0xe2   :  { %v618_v35 = vor.u32 1.1754944e-38, %v617_v24  ;;  %vm616_vm11 = vcmp.eq.f32.partialorder %v615_v27, 8.507059e+37 }
  0xe3   :  { %v1006_v6 = vmul.f32 %v974_v4, %v591_v2  ;;  %v595_v7 = vmul.f32 %v2782_v61, %v594_v3  ;;  %v90_v4 = vld [vmem:[#allocation2 + $0xb8] sm:$0xff] }
  0xe5   :  { %1056 = vperm.xlu2 %2770, %v1006_v6   ;;  %v282_v10 = vpop.f32.mrf.mxu1  ;;  %v596_v11 = vadd.f32 %v2782_v61, %v595_v7 }
  0xe6   :  { %v2784_v14 = vpop.eup %2783  ;;  %v497_v15 = vadd.f32 1e-08, %v282_v10 }
  0xe7   :  { %v607_v17 = vmul.f32 %v2784_v14, %v496_v62  ;;  %v600_v18 = vsel %vm599_vm6, %v2782_v61, %v596_v11  ;;  %vm612_vm8 = vweird.f32 %v2784_v14  ;;  %v3282_v1 = vpop.f32.mrf.mxu0 }
  0xe8   :  { %2785 = vrcp.f32 %v497_v15  ;;  %v605_v19 = vsel %vm602_vm7, %v604_v16, %v600_v18  ;;  %vm613_vm10 = vmor %vm611_vm9, %vm612_vm8  ;;  %v631_v41 = vand.u32 2147483648, %v497_v15  ;;  %v629_v45 = vand.u32 2147483647, %v497_v15  ;;  %329 = vmatmul.f32.gmra.mxu1 %v90_v4 }
  0xe9   :  { %v608_v20 = vsub.f32 1.0, %v607_v17  ;;  %v975_v21 = vmul.f32 -0.5, %v605_v19  ;;  %vm625_vm13 = vweird.f32 %v497_v15  ;;  %216 = vmatmul.f32.gmra.mxu0 %v90_v4  ;;  %v1909_v4 = vld [vmem:[#allocation7 + $0xb0] sm:$0xff] }
  0xea   :  { %v632_v52 = vor.u32 1.1754944e-38, %v631_v41  ;;  %vm630_vm15 = vcmp.eq.f32.partialorder %v629_v45, 8.507059e+37 }
  0xeb   :  { %v1007_v25 = vmul.f32 %v975_v21, %v605_v19  ;;  %v609_v26 = vmul.f32 %v2784_v14, %v608_v20 }
  0xed   :  { %1061 = vperm.xlu2 %2770, %v1007_v25   ;;  %v285_v30 = vpop.f32.mrf.mxu1  ;;  %v610_v31 = vadd.f32 %v2784_v14, %v609_v26 }
  0xee   :  { %v2786_v33 = vpop.eup %2785  ;;  %v498_v34 = vadd.f32 1e-08, %v285_v30 }
  0xef   :  { %v621_v36 = vmul.f32 %v2786_v33, %v497_v15  ;;  %v614_v37 = vsel %vm613_vm10, %v2784_v14, %v610_v31  ;;  %vm626_vm12 = vweird.f32 %v2786_v33  ;;  %v3284_v19 = vpop.f32.mrf.mxu0 }
  0xf0   :  { %2787 = vrcp.f32 %v498_v34  ;;  %v619_v38 = vsel %vm616_vm11, %v618_v35, %v614_v37  ;;  %vm627_vm14 = vmor %vm625_vm13, %vm626_vm12  ;;  %v645_v61 = vand.u32 2147483648, %v498_v34  ;;  %v643_v0 = vand.u32 2147483647, %v498_v34  ;;  %332 = vmatmul.f32.gmra.mxu1 %v91_v22 }
  0xf1   :  { %v622_v39 = vsub.f32 1.0, %v621_v36  ;;  %v976_v40 = vmul.f32 -0.5, %v619_v38  ;;  %vm639_vm1 = vweird.f32 %v498_v34  ;;  %219 = vmatmul.f32.gmra.mxu0 %v91_v22 }
  0xf2   :  { %v646_v7 = vor.u32 1.1754944e-38, %v645_v61  ;;  %vm644_vm3 = vcmp.eq.f32.partialorder %v643_v0, 8.507059e+37 }
  0xf3   :  { %v1008_v42 = vmul.f32 %v976_v40, %v619_v38  ;;  %v623_v44 = vmul.f32 %v2786_v33, %v622_v39 }
  0xf5   :  { %1066 = vperm.xlu0 %2768, %v1008_v42   ;;  %v288_v47 = vpop.f32.mrf.mxu1  ;;  %v624_v48 = vadd.f32 %v2786_v33, %v623_v44  ;;  %v92_v42 = vld [vmem:[#allocation2 + $0xc8] sm:$0xff] }
  0xf6   :  { %v2788_v50 = vpop.eup %2787  ;;  %v499_v51 = vadd.f32 1e-08, %v288_v47 }
  0xf7   :  { %v635_v53 = vmul.f32 %v2788_v50, %v498_v34  ;;  %v628_v54 = vsel %vm627_vm14, %v2786_v33, %v624_v48  ;;  %vm640_vm0 = vweird.f32 %v2788_v50  ;;  %v1911_v33 = vld [vmem:[#allocation7 + $0xd0] sm:$0xff]  ;;  %v3289_v39 = vpop.f32.mrf.mxu0 }
  0xf8   :  { %2789 = vrcp.f32 %v499_v51  ;;  %v633_v55 = vsel %vm630_vm15, %v632_v52, %v628_v54  ;;  %vm641_vm2 = vmor %vm639_vm1, %vm640_vm0  ;;  %v659_v15 = vand.u32 2147483648, %v499_v51  ;;  %v657_v18 = vand.u32 2147483647, %v499_v51  ;;  %v1927_v34 = vld [vmem:[#allocation7 + $0x1d0] sm:$0xff]  ;;  %1964 = vmatpush.xpose.msrb.mxu0 %v1911_v33  ;;  %2727 = vmatpush.xpose.msra.mxu2 %v1911_v33  ;;  %v1910_v54 = vld [vmem:[#allocation7 + $0xc0] sm:$0xff] }
  0xf9   :  { %v636_v56 = vsub.f32 1.0, %v635_v53  ;;  %v977_v57 = vmul.f32 -0.5, %v633_v55  ;;  %vm653_vm5 = vweird.f32 %v499_v51  ;;  %2029 = vmatpush.xpose.msrb.mxu1 %v1927_v34  ;;  %2743 = vmatpush.xpose.msra.mxu3 %v1927_v34 }
  0xfa   :  { %v660_v25 = vor.u32 1.1754944e-38, %v659_v15  ;;  %vm658_vm7 = vcmp.eq.f32.partialorder %v657_v18, 8.507059e+37  ;;  %335 = vmatmul.f32.gmra.mxu1 %v92_v42  ;;  %222 = vmatmul.f32.gmra.mxu0 %v92_v42  ;;  %v1924_v15 = vld [vmem:[#allocation7 + $0x1a0] sm:$0xff] }
  0xfb   :  { %v1009_v62 = vmul.f32 %v977_v57, %v633_v55  ;;  %v637_v63 = vmul.f32 %v2788_v50, %v636_v56  ;;  %v1926_v55 = vld [vmem:[#allocation7 + $0x1c0] sm:$0xff] }
  0xfc   :  { %1965 = vmatpush.xpose.msrb.mxu0 %v1910_v54  ;;  %2728 = vmatpush.xpose.msra.mxu2 %v1910_v54 }
  0xfd   :  { %1071 = vperm.xlu1 %2769, %v1009_v62   ;;  %v291_v2 = vpop.f32.mrf.mxu1  ;;  %v638_v3 = vadd.f32 %v2788_v50, %v637_v63  ;;  %2030 = vmatpush.xpose.msrb.mxu1 %v1926_v55  ;;  %v93_v63 = vld [vmem:[#allocation2 + $0xd0] sm:$0xff] }
  0xfe   :  { %v2790_v5 = vpop.eup %2789  ;;  %v500_v6 = vadd.f32 1e-08, %v291_v2  ;;  %2744 = vmatpush.xpose.msra.mxu3 %v1926_v55 }
  0xff   :  { %v649_v8 = vmul.f32 %v2790_v5, %v499_v51  ;;  %v642_v10 = vsel %vm641_vm2, %v2788_v50, %v638_v3  ;;  %vm654_vm4 = vweird.f32 %v2790_v5  ;;  %v3297_v60 = vpop.f32.mrf.mxu0 }
 0x100   :  { %2791 = vrcp.f32 %v500_v6  ;;  %v647_v11 = vsel %vm644_vm3, %v646_v7, %v642_v10  ;;  %vm655_vm6 = vmor %vm653_vm5, %vm654_vm4  ;;  %v673_v35 = vand.u32 2147483648, %v500_v6  ;;  %v671_v38 = vand.u32 2147483647, %v500_v6  ;;  %1966 = vmatpush.xpose.msrb.mxu0 %v1909_v4  ;;  %2729 = vmatpush.xpose.msra.mxu2 %v1909_v4 }
 0x101   :  { %v650_v13 = vsub.f32 1.0, %v649_v8  ;;  %v978_v14 = vmul.f32 -0.5, %v647_v11  ;;  %vm667_vm9 = vweird.f32 %v500_v6 }
 0x102   :  { %v674_v47 = vor.u32 1.1754944e-38, %v673_v35  ;;  %vm672_vm11 = vcmp.eq.f32.partialorder %v671_v38, 8.507059e+37  ;;  %338 = vmatmul.f32.gmra.mxu1 %v93_v63  ;;  %225 = vmatmul.f32.gmra.mxu0 %v93_v63  ;;  %v1922_v38 = vld [vmem:[#allocation7 + $0x180] sm:$0xff] }
 0x103   :  { %v1010_v16 = vmul.f32 %v978_v14, %v647_v11  ;;  %v651_v17 = vmul.f32 %v2790_v5, %v650_v13  ;;  %v1908_v14 = vld [vmem:[#allocation7 + $0xa0] sm:$0xff] }
 0x104   :  { %1967 = vmatpush.xpose.msrb.mxu0 %v1908_v14  ;;  %2730 = vmatpush.xpose.msra.mxu2 %v1908_v14  ;;  %v1920_v63 = vld [vmem:[#allocation7 + $0x160] sm:$0xff] }
 0x105   :  { %1076 = vperm.xlu2 %2770, %v1010_v16   ;;  %v294_v20 = vpop.f32.mrf.mxu1  ;;  %v652_v21 = vadd.f32 %v2790_v5, %v651_v17 }
 0x106   :  { %v2792_v23 = vpop.eup %2791  ;;  %v3286_v24 = vadd.f32 1e-08, %v294_v20 }
 0x107   :  { %v663_v26 = vmul.f32 %v2792_v23, %v500_v6  ;;  %v656_v27 = vsel %vm655_vm6, %v2790_v5, %v652_v21  ;;  %vm668_vm8 = vweird.f32 %v2792_v23  ;;  %v1925_v5 = vld [vmem:[#allocation7 + $0x1b0] sm:$0xff]  ;;  %v3306_v20 = vpop.f32.mrf.mxu0  ;;  %v94_v21 = vld [vmem:[#allocation2 + $0xd8] sm:$0xff] }
 0x108   :  { %2793 = vrcp.f32 %v3286_v24  ;;  %v661_v30 = vsel %vm658_vm7, %v660_v25, %v656_v27  ;;  %vm669_vm10 = vmor %vm667_vm9, %vm668_vm8  ;;  %v687_v53 = vand.u32 2147483648, %v3286_v24  ;;  %v685_v59 = vand.u32 2147483647, %v3286_v24  ;;  %2031 = vmatpush.xpose.msrb.mxu1 %v1925_v5  ;;  %2745 = vmatpush.xpose.msra.mxu3 %v1925_v5  ;;  %v1923_v25 = vld [vmem:[#allocation7 + $0x190] sm:$0xff] }
 0x109   :  { %v664_v31 = vsub.f32 1.0, %v663_v26  ;;  %v979_v32 = vmul.f32 -0.5, %v661_v30  ;;  %vm681_vm13 = vweird.f32 %v3286_v24 }
 0x10a   :  { %v688_v3 = vor.u32 1.1754944e-38, %v687_v53  ;;  %vm686_vm15 = vcmp.eq.f32.partialorder %v685_v59, 8.507059e+37  ;;  %341 = vmatmul.f32.gmra.mxu1 %v94_v21  ;;  %228 = vmatmul.f32.gmra.mxu0 %v94_v21 }
 0x10b   :  { %v1011_v36 = vmul.f32 %v979_v32, %v661_v30  ;;  %v665_v37 = vmul.f32 %v2792_v23, %v664_v31 }
 0x10c   :  { %2032 = vmatpush.xpose.msrb.mxu1 %v1924_v15  ;;  %2746 = vmatpush.xpose.msra.mxu3 %v1924_v15 }
 0x10d   :  { %1081 = vperm.xlu0 %2768, %v1011_v36   ;;  %v297_v40 = vpop.f32.mrf.mxu1  ;;  %v666_v41 = vadd.f32 %v2792_v23, %v665_v37  ;;  %v1906_v37 = vld [vmem:[#allocation7 + $0x80] sm:$0xff] }
 0x10e   :  { %v2794_v44 = vpop.eup %2793  ;;  %v3291_v45 = vadd.f32 1e-08, %v297_v40 }
 0x10f   :  { %v677_v48 = vmul.f32 %v2794_v44, %v3286_v24  ;;  %v670_v49 = vsel %vm669_vm10, %v2792_v23, %v666_v41  ;;  %vm682_vm12 = vweird.f32 %v2794_v44  ;;  %v1907_v24 = vld [vmem:[#allocation7 + $0x90] sm:$0xff] }
 0x110   :  { %2795 = vrcp.f32 %v3291_v45  ;;  %v675_v50 = vsel %vm672_vm11, %v674_v47, %v670_v49  ;;  %vm683_vm14 = vmor %vm681_vm13, %vm682_vm12  ;;  %v701_v13 = vand.u32 2147483648, %v3291_v45  ;;  %v699_v18 = vand.u32 2147483647, %v3291_v45  ;;  %1968 = vmatpush.xpose.msrb.mxu0 %v1907_v24  ;;  %2033 = vmatpush.xpose.msrb.mxu1 %v1923_v25  ;;  %v1905_v49 = vld [vmem:[#allocation7 + $0x70] sm:$0xff] }
 0x111   :  { %v678_v51 = vsub.f32 1.0, %v677_v48  ;;  %v980_v52 = vmul.f32 -0.5, %v675_v50  ;;  %vm695_vm1 = vweird.f32 %v3291_v45  ;;  %2731 = vmatpush.xpose.msra.mxu2 %v1907_v24  ;;  %2747 = vmatpush.xpose.msra.mxu3 %v1923_v25  ;;  %v95_v48 = vld [vmem:[#allocation2 + $0xe0] sm:$0xff] }
 0x112   :  { %v702_v30 = vor.u32 1.1754944e-38, %v701_v13  ;;  %vm700_vm3 = vcmp.eq.f32.partialorder %v699_v18, 8.507059e+37  ;;  %344 = vmatmul.f32.gmra.mxu1 %v95_v48  ;;  %231 = vmatmul.f32.gmra.mxu0 %v95_v48  ;;  %v1918_v24 = vld [vmem:[#allocation7 + $0x140] sm:$0xff] }
 0x113   :  { %v1012_v56 = vmul.f32 %v980_v52, %v675_v50  ;;  %v679_v57 = vmul.f32 %v2794_v44, %v678_v51  ;;  %v1921_v50 = vld [vmem:[#allocation7 + $0x170] sm:$0xff] }
 0x114   :  { %1969 = vmatpush.xpose.msrb.mxu0 %v1906_v37  ;;  %2034 = vmatpush.xpose.msrb.mxu1 %v1922_v38 }
 0x115   :  { %1086 = vperm.xlu1 %2769, %v1012_v56   ;;  %v300_v61 = vpop.f32.mrf.mxu1  ;;  %v680_v62 = vadd.f32 %v2794_v44, %v679_v57  ;;  %2732 = vmatpush.xpose.msra.mxu2 %v1906_v37 }
 0x116   :  { %v2796_v0 = vpop.eup %2795  ;;  %v3300_v2 = vadd.f32 1e-08, %v300_v61  ;;  %2748 = vmatpush.xpose.msra.mxu3 %v1922_v38 }
 0x117   :  { %v691_v6 = vmul.f32 %v2796_v0, %v3291_v45  ;;  %v684_v7 = vsel %vm683_vm14, %v2794_v44, %v680_v62  ;;  %vm696_vm0 = vweird.f32 %v2796_v0  ;;  %v3316_v44 = vpop.f32.mrf.mxu0  ;;  %v1904_v62 = vld [vmem:[#allocation7 + $0x60] sm:$0xff] }
 0x118   :  { %2797 = vrcp.f32 %v3300_v2  ;;  %v689_v8 = vsel %vm686_vm15, %v688_v3, %v684_v7  ;;  %vm697_vm2 = vmor %vm695_vm1, %vm696_vm0  ;;  %v715_v36 = vand.u32 2147483648, %v3300_v2  ;;  %v713_v42 = vand.u32 2147483647, %v3300_v2  ;;  %1970 = vmatpush.xpose.msrb.mxu0 %v1905_v49  ;;  %2035 = vmatpush.xpose.msrb.mxu1 %v1921_v50  ;;  %v96_v7 = vld [vmem:[#allocation2 + $0xe8] sm:$0xff] }
 0x119   :  { %v692_v10 = vsub.f32 1.0, %v691_v6  ;;  %v981_v11 = vmul.f32 -0.5, %v689_v8  ;;  %vm709_vm5 = vweird.f32 %v3300_v2  ;;  %2733 = vmatpush.xpose.msra.mxu2 %v1905_v49 }
 0x11a   :  { %v716_v53 = vor.u32 1.1754944e-38, %v715_v36  ;;  %vm714_vm7 = vcmp.eq.f32.partialorder %v713_v42, 8.507059e+37  ;;  %2749 = vmatpush.xpose.msra.mxu3 %v1921_v50  ;;  %234 = vmatmul.f32.gmra.mxu0 %v96_v7  ;;  %v1900_v42 = vld [vmem:[#allocation7 + $0x20] sm:$0xff] }
 0x11b   :  { %v1013_v16 = vmul.f32 %v981_v11, %v689_v8  ;;  %v693_v17 = vmul.f32 %v2796_v0, %v692_v10  ;;  %v1903_v8 = vld [vmem:[#allocation7 + $0x50] sm:$0xff]  ;;  %347 = vmatmul.f32.gmra.mxu1 %v96_v7  ;;  %v1914_v7 = vld [vmem:[#allocation7 + $0x100] sm:$0xff] }
 0x11c   :  { %1971 = vmatpush.xpose.msrb.mxu0 %v1904_v62  ;;  %2036 = vmatpush.xpose.msrb.mxu1 %v1920_v63  ;;  %v1919_v10 = vld [vmem:[#allocation7 + $0x150] sm:$0xff] }
 0x11d   :  { %1091 = vperm.xlu2 %2770, %v1013_v16   ;;  %v303_v22 = vpop.f32.mrf.mxu1  ;;  %v694_v23 = vadd.f32 %v2796_v0, %v693_v17  ;;  %2734 = vmatpush.xpose.msra.mxu2 %v1904_v62 }
 0x11e   :  { %v2798_v26 = vpop.eup %2797  ;;  %v3309_v27 = vadd.f32 1e-08, %v303_v22  ;;  %2750 = vmatpush.xpose.msra.mxu3 %v1920_v63 }
 0x11f   :  { %v705_v31 = vmul.f32 %v2798_v26, %v3300_v2  ;;  %v698_v32 = vsel %vm697_vm2, %v2796_v0, %v694_v23  ;;  %vm710_vm4 = vweird.f32 %v2798_v26  ;;  %v3326_v4 = vpop.f32.mrf.mxu0  ;;  %v1902_v23 = vld [vmem:[#allocation7 + $0x40] sm:$0xff] }
 0x120   :  { %2799 = vrcp.f32 %v3309_v27  ;;  %v703_v33 = vsel %vm700_vm3, %v702_v30, %v698_v32  ;;  %vm711_vm6 = vmor %vm709_vm5, %vm710_vm4  ;;  %v729_v61 = vand.u32 2147483648, %v3309_v27  ;;  %v727_v3 = vand.u32 2147483647, %v3309_v27  ;;  %1972 = vmatpush.xpose.msrb.mxu0 %v1903_v8  ;;  %2037 = vmatpush.xpose.msrb.mxu1 %v1919_v10  ;;  %v1901_v32 = vld [vmem:[#allocation7 + $0x30] sm:$0xff] }
 0x121   :  { %v706_v34 = vsub.f32 1.0, %v705_v31  ;;  %v982_v35 = vmul.f32 -0.5, %v703_v33  ;;  %vm723_vm9 = vweird.f32 %v3309_v27  ;;  %2735 = vmatpush.xpose.msra.mxu2 %v1903_v8  ;;  %v97_v31 = vld [vmem:[#allocation2 + $0xf0] sm:$0xff] }
 0x122   :  { %v730_v14 = vor.u32 1.1754944e-38, %v729_v61  ;;  %vm728_vm11 = vcmp.eq.f32.partialorder %v727_v3, 8.507059e+37  ;;  %2751 = vmatpush.xpose.msra.mxu3 %v1919_v10  ;;  %237 = vmatmul.f32.gmra.mxu0 %v97_v31 }
 0x123   :  { %v1014_v40 = vmul.f32 %v982_v35, %v703_v33  ;;  %v707_v41 = vmul.f32 %v2798_v26, %v706_v34  ;;  %v1917_v33 = vld [vmem:[#allocation7 + $0x130] sm:$0xff]  ;;  %350 = vmatmul.f32.gmra.mxu1 %v97_v31 }
 0x124   :  { %1973 = vmatpush.xpose.msrb.mxu0 %v1902_v23  ;;  %2038 = vmatpush.xpose.msrb.mxu1 %v1918_v24 }
 0x125   :  { %1096 = vperm.xlu0 %2768, %v1014_v40   ;;  %v306_v45 = vpop.f32.mrf.mxu1  ;;  %v708_v47 = vadd.f32 %v2798_v26, %v707_v41  ;;  %2736 = vmatpush.xpose.msra.mxu2 %v1902_v23  ;;  %v389_v40 = vlaneseq }
 0x126   :  { %v2800_v51 = vpop.eup %2799  ;;  %v3319_v52 = vadd.f32 1e-08, %v306_v45  ;;  %2752 = vmatpush.xpose.msra.mxu3 %v1918_v24  ;;  %v1916_v45 = vld [vmem:[#allocation7 + $0x120] sm:$0xff] }
 0x127   :  { %v719_v54 = vmul.f32 %v2800_v51, %v3309_v27  ;;  %v712_v55 = vsel %vm711_vm6, %v2798_v26, %v708_v47  ;;  %vm724_vm8 = vweird.f32 %v2800_v51  ;;  %v3336_v30 = vpop.f32.mrf.mxu0 }
 0x128   :  { %2801 = vrcp.f32 %v3319_v52  ;;  %v717_v56 = vsel %vm714_vm7, %v716_v53, %v712_v55  ;;  %vm725_vm10 = vmor %vm723_vm9, %vm724_vm8  ;;  %v743_v22 = vand.u32 2147483648, %v3319_v52  ;;  %v741_v27 = vand.u32 2147483647, %v3319_v52  ;;  %1974 = vmatpush.xpose.msrb.mxu0 %v1901_v32  ;;  %2039 = vmatpush.xpose.msrb.mxu1 %v1917_v33 }
 0x129   :  { %v720_v57 = vsub.f32 1.0, %v719_v54  ;;  %v983_v59 = vmul.f32 -0.5, %v717_v56  ;;  %vm737_vm13 = vweird.f32 %v3319_v52  ;;  %2737 = vmatpush.xpose.msra.mxu2 %v1901_v32  ;;  %v98_v54 = vld [vmem:[#allocation2 + $0xf8] sm:$0xff]  ;;  %v3344_v55 = vshrl.u32 %v389_v40, 7 }
 0x12a   :  { %v744_v36 = vor.u32 1.1754944e-38, %v743_v22  ;;  %vm742_vm15 = vcmp.eq.f32.partialorder %v741_v27, 8.507059e+37  ;;  %2753 = vmatpush.xpose.msra.mxu3 %v1917_v33  ;;  %240 = vmatmul.f32.gmra.mxu0 %v98_v54 }
 0x12b   :  { %v1015_v0 = vmul.f32 %v983_v59, %v717_v56  ;;  %v721_v2 = vmul.f32 %v2800_v51, %v720_v57  ;;  %v3346_v56 = vand.u32 127, %v389_v40  ;;  %v1899_v57 = vld [vmem:[#allocation7 + $0x10] sm:$0xff]  ;;  %353 = vmatmul.f32.gmra.mxu1 %v98_v54  ;;  %v360_v54 = vmul.f32 0.17677669, %v3274_v58 }
 0x12c   :  { %1975 = vmatpush.xpose.msrb.mxu0 %v1900_v42  ;;  %2040 = vmatpush.xpose.msrb.mxu1 %v1916_v45  ;;  %v1915_v59 = vld [vmem:[#allocation7 + $0x110] sm:$0xff] }
 0x12d   :  { %1101 = vperm.xlu1 %2769, %v1015_v0   ;;  %v309_v5 = vpop.f32.mrf.mxu1  ;;  %v722_v6 = vadd.f32 %v2800_v51, %v721_v2  ;;  %2738 = vmatpush.xpose.msra.mxu2 %v1900_v42  ;;  %v425_v0 = vsub.s32 %v3344_v55, %v3346_v56  ;;  %vm473_vm4 = vcmp.lt.s32.totalorder %v3346_v56, 8 }
 0x12e   :  { %v2802_v11 = vpop.eup %2801  ;;  %v3329_v13 = vadd.f32 1e-08, %v309_v5  ;;  %2754 = vmatpush.xpose.msra.mxu3 %v1916_v45  ;;  %v357_v5 = vmul.f32 0.17677669, %v3267_v12 }
 0x12f   :  { %v733_v15 = vmul.f32 %v2802_v11, %v3319_v52  ;;  %v726_v16 = vsel %vm725_vm10, %v2800_v51, %v722_v6  ;;  %vm738_vm12 = vweird.f32 %v2802_v11  ;;  %v3342_v53 = vpop.f32.mrf.mxu0  ;;  %v1898_v6 = vld [vmem:[#allocation7] sm:$0xff] }
 0x130   :  { %2803 = vrcp.f32 %v3329_v13  ;;  %v731_v17 = vsel %vm728_vm11, %v730_v14, %v726_v16  ;;  %vm739_vm14 = vmor %vm737_vm13, %vm738_vm12  ;;  %v757_v49 = vand.u32 2147483648, %v3329_v13  ;;  %v755_v52 = vand.u32 2147483647, %v3329_v13  ;;  %1976 = vmatpush.xpose.msrb.mxu0 %v1899_v57  ;;  %2041 = vmatpush.xpose.msrb.mxu1 %v1915_v59 }
 0x131   :  { %v734_v18 = vsub.f32 1.0, %v733_v15  ;;  %v984_v21 = vmul.f32 -0.5, %v731_v17  ;;  %vm751_vm1 = vweird.f32 %v3329_v13  ;;  %2739 = vmatpush.xpose.msra.mxu2 %v1899_v57  ;;  %v391_v14 = vadd.s32 8, %v3344_v55 }
 0x132   :  { %v758_v62 = vor.u32 1.1754944e-38, %v757_v49  ;;  %vm756_vm3 = vcmp.eq.f32.partialorder %v755_v52, 8.507059e+37  ;;  %2755 = vmatpush.xpose.msra.mxu3 %v1915_v59 }
 0x133   :  { %v1016_v25 = vmul.f32 %v984_v21, %v731_v17  ;;  %v735_v26 = vmul.f32 %v2802_v11, %v734_v18  ;;  %v426_v12 = vsub.s32 %v391_v14, %v3346_v56  ;;  %v358_v17 = vmul.f32 0.17677669, %v3269_v28 }
 0x134   :  { %1977 = vmatpush.xpose.msrb.mxu0 %v1898_v6  ;;  %2042 = vmatpush.xpose.msrb.mxu1 %v1914_v7 }
 0x135   :  { %1106 = vperm.xlu2 %2770, %v1016_v25   ;;  %v736_v34 = vadd.f32 %v2802_v11, %v735_v26  ;;  %2740 = vmatpush.xpose.msra.mxu2 %v1898_v6  ;;  %v312_v15 = vpop.f32.mrf.mxu1  ;;  %v442_v24 = vcvt.s32.f32 %v426_v12  ;;  %v392_v25 = vadd.s32 16, %v3344_v55 }
 0x136   :  { %v2804_v35 = vpop.eup %2803  ;;  %2756 = vmatpush.xpose.msra.mxu3 %v1914_v7  ;;  %v3362_v26 = vadd.f32 1e-08, %v312_v15 }
 0x137   :  { %v747_v37 = vmul.f32 %v2804_v35, %v3329_v13  ;;  %v740_v38 = vsel %vm739_vm14, %v2802_v11, %v736_v34  ;;  %vm752_vm0 = vweird.f32 %v2804_v35  ;;  %v196_v10 = vpop.f32.mrf.mxu0  ;;  %v441_v11 = vcvt.s32.f32 %v425_v0  ;;  %1978 = vmatmul.f32.vlgmr.msrb.gmra.mxu0 %v357_v5  ;;  %v1037_v18 = vpop.permute.xlu0 %1036 }
 0x138   :  { %v745_v41 = vsel %vm742_vm15, %v744_v36, %v740_v38  ;;  %vm753_vm2 = vmor %vm751_vm1, %vm752_vm0  ;;  %v373_v13 = vmul.f32 0.17677669, %v196_v10  ;;  %v458_v32 = vmul.f32 %v442_v24, %v442_v24  ;;  %v427_v28 = vsub.s32 %v392_v25, %v3346_v56 }
 0x139   :  { %v748_v47 = vsub.f32 1.0, %v747_v37  ;;  %v985_v48 = vmul.f32 -0.5, %v745_v41  ;;  %v457_v16 = vmul.f32 %v441_v11, %v441_v11  ;;  %2805 = vrcp.f32 %v3362_v26 }
 0x13a   :  { %2043 = vmatmul.f32.vlgmr.msrb.gmra.mxu1 %v373_v13  ;;  %v359_v37 = vmul.f32 0.17677669, %v3271_v43  ;;  %v3372_v38 = vsel %vm473_vm4, %v458_v32, 3e+38  ;;  %vm765_vm5 = vweird.f32 %v3362_v26  ;;  %v361_v10 = vmul.f32 0.17677669, %v3276_v9 }
 0x13b   :  { %v1017_v50 = vmul.f32 %v985_v48, %v745_v41  ;;  %v749_v51 = vmul.f32 %v2804_v35, %v748_v47  ;;  %v3359_v22 = vsel %vm473_vm4, %v457_v16, 3e+38  ;;  %4872 = vst [vmem:[#allocation17_spill] sm:$0xff] %v3372_v38  ;;  %v443_v41 = vcvt.s32.f32 %v427_v28 }
 0x13c   :  { %4871 = vst [vmem:[#allocation16_spill] sm:$0xff] %v3359_v22  ;;  %v1194_v27 = vmul.f32 %v1037_v18, %v3359_v22  ;;  %1984 = vmatmul.f32.vlgmr.msra.gmra.mxu2 %v359_v37  ;;  %v771_v11 = vand.u32 2147483648, %v3362_v26  ;;  %v769_v15 = vand.u32 2147483647, %v3362_v26  ;;  %v362_v32 = vmul.f32 0.17677669, %v3278_v29 }
 0x13d   :  { %1111 = vperm.xlu0 %2768, %v1017_v50   ;;  %v750_v61 = vadd.f32 %v2804_v35, %v749_v51  ;;  %v315_v31 = vpop.f32.mrf.mxu1  ;;  %v459_v47 = vmul.f32 %v443_v41, %v443_v41  ;;  %v363_v29 = vmul.f32 0.17677669, %v3280_v46 }
 0x13e   :  { %v3367_v33 = vadd.f32 1e-08, %v315_v31  ;;  %v1226_v34 = vmul.f32 1.442695, %v1194_v27  ;;  %v772_v18 = vor.u32 1.1754944e-38, %v771_v11  ;;  %vm770_vm10 = vcmp.eq.f32.partialorder %v769_v15, 8.507059e+37 }
 0x13f   :  { %v754_v63 = vsel %vm753_vm2, %v2804_v35, %v750_v61  ;;  %v199_v21 = vpop.f32.mrf.mxu0  ;;  %1981 = vmatmul.f32.gmra.mxu0 %v358_v17  ;;  %v1042_v40 = vpop.permute.xlu0 %1041  ;;  %v3382_v59 = vsel %vm473_vm4, %v459_v47, 3e+38  ;;  %v394_v15 = vadd.s32 32, %v3344_v55 }
 0x140   :  { %v759_v2 = vsel %vm756_vm3, %v758_v62, %v754_v63  ;;  %v374_v23 = vmul.f32 0.17677669, %v199_v21  ;;  %2807 = vrcp.f32 %v3367_v33  ;;  %v2806_v42 = vpop.eup %2805  ;;  %v1195_v45 = vmul.f32 %v1042_v40, %v3372_v38  ;;  %4873 = vst [vmem:[#allocation18_spill] sm:$0xff] %v3382_v59 }
 0x141   :  { %v986_v3 = vmul.f32 -0.5, %v759_v2  ;;  %2809 = vpow2.f32 %v1226_v34  ;;  %v761_v48 = vmul.f32 %v2806_v42, %v3362_v26  ;;  %vm766_vm6 = vweird.f32 %v2806_v42 }
 0x142   :  { %2046 = vmatmul.f32.gmra.mxu1 %v374_v23  ;;  %v1228_v51 = vmul.f32 1.442695, %v1195_v45  ;;  %vm3399_vm7 = vmor %vm765_vm5, %vm766_vm6  ;;  %vm779_vm8 = vweird.f32 %v3367_v33  ;;  %v785_v21 = vand.u32 2147483648, %v3367_v33  ;;  %v783_v24 = vand.u32 2147483647, %v3367_v33 }
 0x143   :  { %v1018_v8 = vmul.f32 %v986_v3, %v759_v2  ;;  %v762_v62 = vsub.f32 1.0, %v761_v48 }
 0x144   :  { %1987 = vmatmul.f32.gmra.mxu2 %v360_v54  ;;  %2811 = vpow2.f32 %v1228_v51  ;;  %vm784_vm12 = vcmp.eq.f32.partialorder %v783_v24, 8.507059e+37 }
 0x145   :  { %1116 = vperm.xlu1 %2769, %v1018_v8   ;;  %v318_v49 = vpop.f32.mrf.mxu1  ;;  %v763_v58 = vmul.f32 %v2806_v42, %v762_v62 }
 0x146   :  { %v2808_v43 = vpop.eup %2807  ;;  %v3386_v0 = vadd.f32 1e-08, %v318_v49 }
 0x147   :  { %v202_v35 = vpop.f32.mrf.mxu0  ;;  %v3378_v57 = vpop.eup %2809  ;;  %v775_v63 = vmul.f32 %v2808_v43, %v3367_v33  ;;  %v764_v14 = vadd.f32 %v2806_v42, %v763_v58  ;;  %vm780_vm9 = vweird.f32 %v2808_v43  ;;  %v393_v58 = vadd.s32 24, %v3344_v55 }
 0x148   :  { %v375_v36 = vmul.f32 0.17677669, %v202_v35  ;;  %v1047_v61 = vpop.permute.xlu1 %1046  ;;  %2813 = vrcp.f32 %v3386_v0  ;;  %vm781_vm11 = vmor %vm779_vm8, %vm780_vm9  ;;  %v786_v35 = vor.u32 1.1754944e-38, %v785_v21  ;;  %vm793_vm13 = vweird.f32 %v3386_v0 }
 0x149   :  { %v1196_v2 = vmul.f32 %v1047_v61, %v3382_v59  ;;  %v776_v3 = vsub.f32 1.0, %v775_v63  ;;  %v768_v9 = vsel %vm3399_vm7, %v2806_v42, %v764_v14  ;;  %v797_v51 = vand.u32 2147483647, %v3386_v0 }
 0x14a   :  { %2049 = vmatmul.f32.vlgmr.msra.gmra.mxu3 %v375_v36  ;;  %v3395_v13 = vpop.eup %2811  ;;  %v773_v28 = vsel %vm770_vm10, %v772_v18, %v768_v9  ;;  %v365_v14 = vmul.f32 0.17677669, %v3284_v19  ;;  %v429_v18 = vsub.s32 %v394_v15, %v3346_v56  ;;  %v366_v21 = vmul.f32 0.17677669, %v3289_v39 }
 0x14b   :  { %v1230_v7 = vmul.f32 1.442695, %v1196_v2  ;;  %v777_v12 = vmul.f32 %v2808_v43, %v776_v3  ;;  %v987_v37 = vmul.f32 -0.5, %v773_v28  ;;  %vm798_vm0 = vcmp.eq.f32.partialorder %v797_v51, 8.507059e+37 }
 0x14c   :  { %1990 = vmatmul.f32.gmra.mxu2 %v361_v10  ;;  %v364_v2 = vmul.f32 0.17677669, %v3282_v1 }
 0x14d   :  { %v3391_v6 = vpop.f32.mrf.mxu1  ;;  %2815 = vpow2.f32 %v1230_v7  ;;  %v778_v23 = vadd.f32 %v2808_v43, %v777_v12  ;;  %v1019_v45 = vmul.f32 %v987_v37, %v773_v28  ;;  %v395_v7 = vadd.s32 40, %v3344_v55 }
 0x14e   :  { %v2814_v17 = vpop.eup %2813  ;;  %v367_v37 = vmul.f32 0.17677669, %v3297_v60 }
 0x14f   :  { %v205_v50 = vpop.f32.mrf.mxu0  ;;  %v789_v27 = vmul.f32 %v2814_v17, %v3386_v0  ;;  %v782_v36 = vsel %vm781_vm11, %v2808_v43, %v778_v23  ;;  %vm794_vm14 = vweird.f32 %v2814_v17  ;;  %v430_v12 = vsub.s32 %v395_v7, %v3346_v56 }
 0x150   :  { %v376_v52 = vmul.f32 0.17677669, %v205_v50  ;;  %v787_v40 = vsel %vm784_vm12, %v786_v35, %v782_v36  ;;  %v799_v50 = vand.u32 2147483648, %v3386_v0  ;;  %vm795_vm15 = vmor %vm793_vm13, %vm794_vm14  ;;  %v396_v36 = vadd.s32 48, %v3344_v55 }
 0x151   :  { %v790_v33 = vsub.f32 1.0, %v789_v27  ;;  %v988_v49 = vmul.f32 -0.5, %v787_v40  ;;  %v446_v23 = vcvt.s32.f32 %v430_v12  ;;  %v445_v27 = vcvt.s32.f32 %v429_v18 }
 0x152   :  { %2052 = vmatmul.f32.gmra.mxu3 %v376_v52  ;;  %v800_v54 = vor.u32 1.1754944e-38, %v799_v50  ;;  %v3460_v50 = vadd.f32 1e-08, %v3391_v6 }
 0x153   :  { %v3412_v34 = vpop.eup %2815  ;;  %v791_v47 = vmul.f32 %v2814_v17, %v790_v33  ;;  %v1020_v52 = vmul.f32 %v988_v49, %v787_v40  ;;  %v462_v28 = vmul.f32 %v446_v23, %v446_v23  ;;  %v461_v33 = vmul.f32 %v445_v27, %v445_v27 }
 0x154   :  { %1993 = vmatmul.f32.gmra.mxu2 %v362_v32  ;;  %v1052_v32 = vpop.permute.xlu1 %1051  ;;  %v370_v27 = vmul.f32 0.17677669, %v3326_v4  ;;  %vm807_vm6 = vweird.f32 %v3460_v50  ;;  %v813_v4 = vand.u32 2147483648, %v3460_v50 }
 0x155   :  { %v3408_v26 = vpop.f32.mrf.mxu1  ;;  %v792_v43 = vadd.f32 %v2814_v17, %v791_v47 }
 0x156   :  { %v3443_v39 = vadd.f32 1e-08, %v3408_v26  ;;  %v3456_v26 = vsel %vm473_vm4, %v461_v33, 3e+38 }
 0x157   :  { %v208_v5 = vpop.f32.mrf.mxu0  ;;  %v796_v46 = vsel %vm795_vm15, %v2814_v17, %v792_v43  ;;  %v1057_v17 = vpop.permute.xlu2 %1056  ;;  %4878 = vst [vmem:[#allocation21_spill] sm:$0xff] %v3456_v26 }
 0x158   :  { %v377_v8 = vmul.f32 0.17677669, %v208_v5  ;;  %v801_v3 = vsel %vm798_vm0, %v800_v54, %v796_v46  ;;  %v428_v5 = vsub.s32 %v393_v58, %v3346_v56  ;;  %2817 = vrcp.f32 %v3443_v39 }
 0x159   :  { %v989_v0 = vmul.f32 -0.5, %v801_v3  ;;  %v1198_v43 = vmul.f32 %v1057_v17, %v3456_v26  ;;  %v368_v54 = vmul.f32 0.17677669, %v3306_v20  ;;  %vm821_vm1 = vweird.f32 %v3443_v39  ;;  %v1949_v26 = vld [vmem:[#allocation7 + $0x138] sm:$0xff] }
 0x15a   :  { %2055 = vmatmul.f32.gmra.mxu3 %v377_v8  ;;  %v444_v16 = vcvt.s32.f32 %v428_v5  ;;  %v827_v23 = vand.u32 2147483648, %v3443_v39 }
 0x15b   :  { %v1021_v1 = vmul.f32 %v989_v0, %v801_v3 }
 0x15c   :  { %1996 = vmatmul.f32.gmra.mxu2 %v363_v29  ;;  %v460_v9 = vmul.f32 %v444_v16, %v444_v16  ;;  %v431_v29 = vsub.s32 %v396_v36, %v3346_v56 }
 0x15d   :  { %v3415_v42 = vpop.f32.mrf.mxu1 }
 0x15e   :  { %1290 = vadd.xlane.f32.xlu2 %v3378_v57  ;;  %v447_v51 = vcvt.s32.f32 %v431_v29  ;;  %v811_v29 = vand.u32 2147483647, %v3460_v50 }
 0x15f   :  { %v211_v25 = vpop.f32.mrf.mxu0  ;;  %v1062_v40 = vpop.permute.xlu2 %1061 }
 0x160   :  { %v378_v31 = vmul.f32 0.17677669, %v211_v25  ;;  %v463_v58 = vmul.f32 %v447_v51, %v447_v51  ;;  %v814_v51 = vor.u32 1.1754944e-38, %v813_v4  ;;  %vm812_vm9 = vcmp.eq.f32.partialorder %v811_v29, 8.507059e+37 }
 0x162   :  { %2058 = vmatmul.f32.gmra.mxu3 %v378_v31  ;;  %v3438_v31 = vsel %vm473_vm4, %v460_v9, 3e+38  ;;  %v3478_v0 = vsel %vm473_vm4, %v463_v58, 3e+38 }
 0x163   :  { %4876 = vst [vmem:[#allocation19_spill] sm:$0xff] %v3438_v31  ;;  %v1197_v35 = vmul.f32 %v1052_v32, %v3438_v31 }
 0x164   :  { %1999 = vmatmul.f32.gmra.mxu2 %v364_v2  ;;  %v1234_v2 = vmul.f32 1.442695, %v1198_v43  ;;  %4879 = vst [vmem:[#allocation22_spill] sm:$0xff] %v3478_v0  ;;  %v371_v43 = vmul.f32 0.17677669, %v3336_v30 }
 0x165   :  { %v3421_v62 = vpop.f32.mrf.mxu1 }
 0x167   :  { %1292 = vadd.xlane.f32.xlu0 %v3395_v13  ;;  %v214_v41 = vpop.f32.mrf.mxu0  ;;  %v1067_v7 = vpop.permute.xlu0 %1066 }
 0x168   :  { %v379_v48 = vmul.f32 0.17677669, %v214_v41  ;;  %v3448_v41 = vsel %vm473_vm4, %v462_v28, 3e+38  ;;  %v1200_v15 = vmul.f32 %v1067_v7, %v3478_v0 }
 0x169   :  { %4877 = vst [vmem:[#allocation20_spill] sm:$0xff] %v3448_v41  ;;  %v1199_v60 = vmul.f32 %v1062_v40, %v3448_v41 }
 0x16a   :  { %2061 = vmatmul.f32.gmra.mxu3 %v379_v48  ;;  %v1232_v48 = vmul.f32 1.442695, %v1197_v35 }
 0x16c   :  { %2002 = vmatmul.f32.gmra.mxu2 %v365_v14  ;;  %2819 = vpow2.f32 %v1232_v48  ;;  %v3482_v14 = vadd.f32 1e-08, %v3415_v42 }
 0x16d   :  { %v3427_v10 = vpop.f32.mrf.mxu1  ;;  %2821 = vrcp.f32 %v3460_v50 }
 0x16e   :  { %vm835_vm10 = vweird.f32 %v3482_v14 }
 0x16f   :  { %1294 = vadd.xlane.f32.xlu1 %v3412_v34  ;;  %v217_v61 = vpop.f32.mrf.mxu0 }
 0x170   :  { %v380_v63 = vmul.f32 0.17677669, %v217_v61  ;;  %v1236_v61 = vmul.f32 1.442695, %v1199_v60 }
 0x172   :  { %2064 = vmatmul.f32.gmra.mxu3 %v380_v63  ;;  %2823 = vpow2.f32 %v1236_v61 }
 0x173   :  { %2825 = vpow2.f32 %v1234_v2 }
 0x174   :  { %2005 = vmatmul.f32.gmra.mxu2 %v366_v21  ;;  %2827 = vrcp.f32 %v3482_v14 }
 0x176   :  { %1121 = vperm.xlu2 %2770, %v1019_v45  }
 0x177   :  { %v220_v8 = vpop.f32.mrf.mxu0  ;;  %v3434_v25 = vpop.f32.mrf.mxu1 }
 0x178   :  { %v381_v11 = vmul.f32 0.17677669, %v220_v8 }
 0x17a   :  { %2067 = vmatmul.f32.gmra.mxu3 %v381_v11  ;;  %v369_v11 = vmul.f32 0.17677669, %v3316_v44  ;;  %v1238_v44 = vmul.f32 1.442695, %v1200_v15 }
 0x17b   :  { %1126 = vperm.xlu0 %2768, %v1020_v52   ;;  %v3463_v52 = vpop.eup %2817 }
 0x17c   :  { %2008 = vmatmul.f32.gmra.mxu2 %v367_v37  ;;  %v817_v3 = vmul.f32 %v3463_v52, %v3443_v39  ;;  %v3471_v5 = vpop.eup %2819  ;;  %vm822_vm2 = vweird.f32 %v3463_v52  ;;  %2829 = vpow2.f32 %v1238_v44  ;;  %v828_v37 = vor.u32 1.1754944e-38, %v827_v23 }
 0x17d   :  { %v3474_v20 = vpop.eup %2821  ;;  %vm3503_vm3 = vmor %vm821_vm1, %vm822_vm2 }
 0x17e   :  { %v818_v8 = vsub.f32 1.0, %v817_v3  ;;  %v803_v16 = vmul.f32 %v3474_v20, %v3460_v50  ;;  %v3489_v17 = vpop.eup %2823  ;;  %vm808_vm7 = vweird.f32 %v3474_v20  ;;  %v398_v50 = vadd.s32 64, %v3344_v55 }
 0x17f   :  { %v223_v24 = vpop.f32.mrf.mxu0  ;;  %v3450_v47 = vpop.f32.mrf.mxu1  ;;  %vm809_vm8 = vmor %vm807_vm6, %vm808_vm7 }
 0x180   :  { %v382_v19 = vmul.f32 0.17677669, %v223_v24  ;;  %v819_v9 = vmul.f32 %v3463_v52, %v818_v8  ;;  %v3493_v21 = vpop.eup %2825  ;;  %v804_v42 = vsub.f32 1.0, %v803_v16  ;;  %v433_v8 = vsub.s32 %v398_v50, %v3346_v56 }
 0x181   :  { %v3510_v33 = vpop.eup %2827  ;;  %v372_v16 = vmul.f32 0.17677669, %v3342_v53 }
 0x182   :  { %2070 = vmatmul.f32.gmra.mxu3 %v382_v19  ;;  %v820_v24 = vadd.f32 %v3463_v52, %v819_v9  ;;  %v825_v19 = vand.u32 2147483647, %v3443_v39  ;;  %v805_v28 = vmul.f32 %v3474_v20, %v804_v42  ;;  %v3522_v60 = vpop.eup %2829  ;;  %vm836_vm11 = vweird.f32 %v3510_v33 }
 0x183   :  { %v3540_v9 = vadd.f32 1e-08, %v3421_v62  ;;  %v839_v42 = vand.u32 2147483647, %v3482_v14  ;;  %vm3546_vm12 = vmor %vm835_vm10, %vm836_vm11  ;;  %v399_v62 = vadd.s32 72, %v3344_v55 }
 0x184   :  { %2011 = vmatmul.f32.gmra.mxu2 %v368_v54  ;;  %v824_v39 = vsel %vm3503_vm3, %v3463_v52, %v820_v24  ;;  %vm826_vm5 = vcmp.eq.f32.partialorder %v825_v19, 8.507059e+37  ;;  %v806_v48 = vadd.f32 %v3474_v20, %v805_v28  ;;  %v449_v19 = vcvt.s32.f32 %v433_v8 }
 0x185   :  { %2831 = vrcp.f32 %v3540_v9  ;;  %vm840_vm13 = vcmp.eq.f32.partialorder %v839_v42, 8.507059e+37  ;;  %vm849_vm14 = vweird.f32 %v3540_v9 }
 0x186   :  { %v810_v61 = vsel %vm809_vm8, %v3474_v20, %v806_v48  ;;  %v465_v4 = vmul.f32 %v449_v19, %v449_v19  ;;  %v1072_v48 = vpop.permute.xlu1 %1071 }
 0x187   :  { %v226_v45 = vpop.f32.mrf.mxu0  ;;  %v3467_v63 = vpop.f32.mrf.mxu1  ;;  %v815_v3 = vsel %vm812_vm9, %v814_v51, %v810_v61 }
 0x188   :  { %1131 = vperm.xlu1 %2769, %v1021_v1   ;;  %v383_v49 = vmul.f32 0.17677669, %v226_v45  ;;  %v831_v45 = vmul.f32 %v3510_v33, %v3482_v14  ;;  %v990_v15 = vmul.f32 -0.5, %v815_v3  ;;  %v3563_v51 = vpop.permute.xlu0 %1081 }
 0x18a   :  { %2073 = vmatmul.f32.gmra.mxu3 %v383_v49  ;;  %v829_v49 = vsel %vm826_vm5, %v828_v37, %v824_v39  ;;  %v832_v52 = vsub.f32 1.0, %v831_v45  ;;  %v1022_v28 = vmul.f32 %v990_v15, %v815_v3  ;;  %v400_v37 = vadd.s32 80, %v3344_v55  ;;  %v1945_v15 = vld [vmem:[#allocation7 + $0xf8] sm:$0xff] }
 0x18b   :  { %v991_v54 = vmul.f32 -0.5, %v829_v49  ;;  %2508 = vmatpush.msrb.mxu2 %v1945_v15 }
 0x18c   :  { %2014 = vmatmul.f32.gmra.mxu2 %v369_v11  ;;  %v833_v30 = vmul.f32 %v3510_v33, %v832_v52  ;;  %v1077_v11 = vpop.permute.xlu2 %1076 }
 0x18d   :  { %v1023_v7 = vmul.f32 %v991_v54, %v829_v49 }
 0x18e   :  { %v834_v44 = vadd.f32 %v3510_v33, %v833_v30 }
 0x18f   :  { %v229_v46 = vpop.f32.mrf.mxu0  ;;  %v3487_v12 = vpop.f32.mrf.mxu1 }
 0x190   :  { %v384_v6 = vmul.f32 0.17677669, %v229_v46  ;;  %v838_v39 = vsel %vm3546_vm12, %v3510_v33, %v834_v44  ;;  %v3569_v33 = vsel %vm473_vm4, %v465_v4, 3e+38 }
 0x191   :  { %4886 = vst [vmem:[#allocation25_spill] sm:$0xff] %v3569_v33 }
 0x192   :  { %2076 = vmatmul.f32.gmra.mxu3 %v384_v6  ;;  %v397_v6 = vadd.s32 56, %v3344_v55 }
 0x194   :  { %2017 = vmatmul.f32.gmra.mxu2 %v370_v27  ;;  %v432_v20 = vsub.s32 %v397_v6, %v3346_v56  ;;  %v3560_v29 = vpop.permute.xlu2 %1091  ;;  %v1944_v27 = vld [vmem:[#allocation7 + $0xe8] sm:$0xff] }
 0x195   :  { %2509 = vmatpush.msrb.mxu2 %v1944_v27 }
 0x196   :  { %v448_v32 = vcvt.s32.f32 %v432_v20 }
 0x197   :  { %v232_v1 = vpop.f32.mrf.mxu0  ;;  %v3597_v4 = vpop.permute.xlu0 %1096 }
 0x198   :  { %v385_v18 = vmul.f32 0.17677669, %v232_v1  ;;  %v3508_v36 = vpop.f32.mrf.mxu1  ;;  %v401_v1 = vadd.s32 88, %v3344_v55  ;;  %v464_v45 = vmul.f32 %v448_v32, %v448_v32 }
 0x199   :  { %4882 = vst [vmem:[#allocation23_spill] sm:$0xff] %v3508_v36 }
 0x19a   :  { %2079 = vmatmul.f32.gmra.mxu3 %v385_v18  ;;  %v841_v18 = vand.u32 2147483648, %v3482_v14  ;;  %v3555_v14 = vadd.f32 1e-08, %v3427_v10  ;;  %v435_v10 = vsub.s32 %v400_v37, %v3346_v56  ;;  %v3576_v6 = vsel %vm473_vm4, %v464_v45, 3e+38  ;;  %v1943_v45 = vld [vmem:[#allocation7 + $0xd8] sm:$0xff] }
 0x19b   :  { %4887 = vst [vmem:[#allocation26_spill] sm:$0xff] %v3576_v6  ;;  %2510 = vmatpush.msrb.mxu2 %v1943_v45 }
 0x19c   :  { %2020 = vmatmul.f32.gmra.mxu2 %v371_v43  ;;  %v434_v43 = vsub.s32 %v399_v62, %v3346_v56  ;;  %2833 = vrcp.f32 %v3555_v14  ;;  %v3591_v62 = vadd.f32 1e-08, %v3434_v25  ;;  %vm863_vm1 = vweird.f32 %v3555_v14 }
 0x19e   :  { %v450_v30 = vcvt.s32.f32 %v434_v43 }
 0x19f   :  { %1296 = vadd.xlane.f32.xlu2 %v3471_v5  ;;  %v235_v35 = vpop.f32.mrf.mxu0 }
 0x1a0   :  { %v386_v40 = vmul.f32 0.17677669, %v235_v35  ;;  %v3527_v2 = vpop.f32.mrf.mxu1  ;;  %v436_v35 = vsub.s32 %v401_v1, %v3346_v56  ;;  %v451_v1 = vcvt.s32.f32 %v435_v10 }
 0x1a2   :  { %2082 = vmatmul.f32.gmra.mxu3 %v386_v40  ;;  %v842_v40 = vor.u32 1.1754944e-38, %v841_v18  ;;  %v452_v49 = vcvt.s32.f32 %v436_v35  ;;  %v402_v18 = vadd.s32 96, %v3344_v55  ;;  %v3586_v35 = vpop.permute.xlu1 %1086  ;;  %v467_v43 = vmul.f32 %v451_v1, %v451_v1  ;;  %v1958_v1 = vld [vmem:[#allocation7 + $0x1c8] sm:$0xff] }
 0x1a4   :  { %2023 = vmatmul.f32.gmra.mxu2 %v372_v16  ;;  %v843_v52 = vsel %vm840_vm13, %v842_v40, %v838_v39  ;;  %v1202_v16 = vmul.f32 %v1077_v11, %v3569_v33  ;;  %v3588_v11 = vpop.permute.xlu2 %1106  ;;  %v466_v39 = vmul.f32 %v450_v30, %v450_v30  ;;  %v437_v10 = vsub.s32 %v402_v18, %v3346_v56 }
 0x1a5   :  { %1300 = vadd.xlane.f32.xlu0 %v3489_v17  ;;  %v992_v3 = vmul.f32 -0.5, %v843_v52 }
 0x1a7   :  { %1298 = vadd.xlane.f32.xlu2 %v3493_v21  ;;  %v238_v46 = vpop.f32.mrf.mxu0  ;;  %v1024_v37 = vmul.f32 %v992_v3, %v843_v52  ;;  %v1942_v3 = vld [vmem:[#allocation7 + $0xc8] sm:$0xff] }
 0x1a8   :  { %v387_v58 = vmul.f32 0.17677669, %v238_v46  ;;  %v3544_v24 = vpop.f32.mrf.mxu1  ;;  %v404_v46 = vadd.s32 112, %v3344_v55  ;;  %2511 = vmatpush.msrb.mxu2 %v1942_v3 }
 0x1a9   :  { %4883 = vst [vmem:[#allocation24_spill] sm:$0xff] %v3544_v24 }
 0x1aa   :  { %2085 = vmatmul.f32.gmra.mxu3 %v387_v58  ;;  %v3572_v58 = vpop.eup %2831  ;;  %v439_v44 = vsub.s32 %v404_v46, %v3346_v56  ;;  %v3621_v45 = vpop.permute.xlu1 %1101 }
 0x1ab   :  { %v845_v42 = vmul.f32 %v3572_v58, %v3540_v9  ;;  %v3583_v32 = vpop.eup %2833  ;;  %4891 = vst [vmem:[#allocation30_spill] sm:$0xff] %v3621_v45  ;;  %vm850_vm15 = vweird.f32 %v3572_v58 }
 0x1ac   :  { %v859_v46 = vmul.f32 %v3583_v32, %v3555_v14  ;;  %vm3651_vm0 = vmor %vm849_vm14, %vm850_vm15  ;;  %vm864_vm2 = vweird.f32 %v3583_v32 }
 0x1ad   :  { %vm3696_vm5 = vmor %vm863_vm1, %vm864_vm2 }
 0x1ae   :  { %v860_v27 = vsub.f32 1.0, %v859_v46 }
 0x1af   :  { %v241_v23 = vpop.f32.mrf.mxu0 }
 0x1b0   :  { %v388_v53 = vmul.f32 0.17677669, %v241_v23 }
 0x1b2   :  { %1302 = vadd.xlane.f32.xlu1 %v3522_v60  ;;  %2088 = vmatmul.f32.gmra.mxu3 %v388_v53  ;;  %v1961_v53 = vld [vmem:[#allocation7 + $0x1f8] sm:$0xff] }
 0x1b3   :  { %2573 = vmatpush.msrb.mxu3 %v1961_v53 }
 0x1b7   :  { %v1979_v54 = vpop.f32.mrf.mxu0  ;;  %v2044_v61 = vpop.f32.mrf.mxu1 }
 0x1b8   :  { %v2092_v50 = vmax.f32 %v1979_v54, %v2044_v61 }
 0x1b9   :  { %1141 = vperm.xlu0 %2768, %v1023_v7   ;;  %v468_v7 = vmul.f32 %v452_v49, %v452_v49  ;;  %v1242_v49 = vmul.f32 1.442695, %v1202_v16  ;;  %v1941_v16 = vld [vmem:[#allocation7 + $0xb8] sm:$0xff] }
 0x1ba   :  { %v2108_v8 = vsub.f32 %v1979_v54, %v2092_v50  ;;  %v2124_v20 = vsub.f32 %v2044_v61, %v2092_v50  ;;  %v455_v54 = vcvt.s32.f32 %v439_v44  ;;  %v846_v61 = vsub.f32 1.0, %v845_v42  ;;  %2512 = vmatpush.msrb.mxu2 %v1941_v16 }
 0x1bb   :  { %v3595_v40 = vsel %vm473_vm4, %v468_v7, 3e+38  ;;  %v1959_v7 = vld [vmem:[#allocation7 + $0x1d8] sm:$0xff]  ;;  %v3611_v44 = vsel %vm473_vm4, %v467_v43, 3e+38  ;;  %v453_v42 = vcvt.s32.f32 %v437_v10  ;;  %v3624_v10 = vpop.permute.xlu0 %1111 }
 0x1bc   :  { %v2140_v23 = vmul.f32 1.442695, %v2108_v8  ;;  %v2172_v19 = vmul.f32 1.442695, %v2124_v20  ;;  %4888 = vst [vmem:[#allocation27_spill] sm:$0xff] %v3595_v40  ;;  %v1205_v18 = vmul.f32 %v3560_v29, %v3595_v40  ;;  %v1957_v43 = vld [vmem:[#allocation7 + $0x1b8] sm:$0xff] }
 0x1bd   :  { %v3605_v8 = vsel %vm473_vm4, %v466_v39, 3e+38  ;;  %4890 = vst [vmem:[#allocation29_spill] sm:$0xff] %v3611_v44  ;;  %v403_v39 = vadd.s32 104, %v3344_v55  ;;  %v469_v3 = vmul.f32 %v453_v42, %v453_v42  ;;  %v3644_v42 = vadd.f32 1e-08, %v3450_v47 }
 0x1be   :  { %2835 = vpow2.f32 %v2140_v23  ;;  %4889 = vst [vmem:[#allocation28_spill] sm:$0xff] %v3605_v8  ;;  %v1203_v29 = vmul.f32 %v3563_v51, %v3605_v8  ;;  %v1939_v51 = vld [vmem:[#allocation7 + $0x98] sm:$0xff]  ;;  %v1954_v47 = vld [vmem:[#allocation7 + $0x188] sm:$0xff] }
 0x1bf   :  { %1136 = vperm.xlu2 %2770, %v1022_v28   ;;  %v1201_v28 = vmul.f32 %v1072_v48, %v3576_v6  ;;  %v1960_v48 = vld [vmem:[#allocation7 + $0x1e8] sm:$0xff]  ;;  %2837 = vpow2.f32 %v2172_v19  ;;  %v1982_v25 = vpop.f32.mrf.mxu0  ;;  %v2047_v52 = vpop.f32.mrf.mxu1  ;;  %v471_v19 = vmul.f32 %v455_v54, %v455_v54  ;;  %4892 = vst [vmem:[#allocation31_spill] sm:$0xff] %v3624_v10  ;;  %v1933_v6 = vld [vmem:[#allocation7 + $0x38] sm:$0xff] }
 0x1c0   :  { %v2093_v50 = vmax.f32 %v1982_v25, %v2047_v52  ;;  %2574 = vmatpush.msrb.mxu3 %v1960_v48  ;;  %2839 = vrcp.f32 %v3591_v62  ;;  %v1931_v10 = vld [vmem:[#allocation7 + $0x18] sm:$0xff] }
 0x1c1   :  { %v1240_v30 = vmul.f32 1.442695, %v1201_v28  ;;  %2841 = vpow2.f32 %v1242_v49  ;;  %v847_v28 = vmul.f32 %v3572_v58, %v846_v61  ;;  %v1940_v49 = vld [vmem:[#allocation7 + $0xa8] sm:$0xff] }
 0x1c2   :  { %v2109_v20 = vsub.f32 %v1982_v25, %v2093_v50  ;;  %v2125_v15 = vsub.f32 %v2047_v52, %v2093_v50  ;;  %2575 = vmatpush.msrb.mxu3 %v1959_v7  ;;  %2513 = vmatpush.msrb.mxu2 %v1940_v49  ;;  %v1956_v61 = vld [vmem:[#allocation7 + $0x1a8] sm:$0xff]  ;;  %v1248_v50 = vmul.f32 1.442695, %v1205_v18  ;;  %v855_v7 = vand.u32 2147483648, %v3540_v9 }
 0x1c3   :  { %2843 = vpow2.f32 %v1240_v30  ;;  %v1938_v30 = vld [vmem:[#allocation7 + $0x88] sm:$0xff]  ;;  %v848_v16 = vadd.f32 %v3572_v58, %v847_v28  ;;  %v1244_v49 = vmul.f32 1.442695, %v1203_v29  ;;  %v438_v18 = vsub.s32 %v403_v39, %v3346_v56  ;;  %v1937_v28 = vld [vmem:[#allocation7 + $0x78] sm:$0xff] }
 0x1c4   :  { %v3613_v23 = vpop.eup %2835  ;;  %v2142_v53 = vmul.f32 1.442695, %v2109_v20  ;;  %2576 = vmatpush.msrb.mxu3 %v1958_v1  ;;  %v2174_v54 = vmul.f32 1.442695, %v2125_v15  ;;  %2514 = vmatpush.msrb.mxu2 %v1939_v51  ;;  %v1955_v20 = vld [vmem:[#allocation7 + $0x198] sm:$0xff]  ;;  %v861_v15 = vmul.f32 %v3583_v32, %v860_v27  ;;  %v1952_v27 = vld [vmem:[#allocation7 + $0x168] sm:$0xff] }
 0x1c5   :  { %v853_v1 = vand.u32 2147483647, %v3540_v9  ;;  %v3665_v9 = vsel %vm473_vm4, %v471_v19, 3e+38  ;;  %v3669_v39 = vsel %vm473_vm4, %v469_v3, 3e+38 }
 0x1c6   :  { %2577 = vmatpush.msrb.mxu3 %v1957_v43  ;;  %2845 = vpow2.f32 %v2142_v53  ;;  %2515 = vmatpush.msrb.mxu2 %v1938_v30  ;;  %4895 = vst [vmem:[#allocation32_spill] sm:$0xff] %v3669_v39  ;;  %v856_v43 = vor.u32 1.1754944e-38, %v855_v7  ;;  %v867_v51 = vand.u32 2147483647, %v3555_v14  ;;  %v1953_v30 = vld [vmem:[#allocation7 + $0x178] sm:$0xff]  ;;  %v3686_v7 = vmul.f32 %v3586_v35, %v3611_v44 }
 0x1c7   :  { %vm3678_vm3 = vcmp.eq.f32.partialorder %v853_v1, 8.507059e+37  ;;  %v1985_v1 = vpop.f32.mrf.mxu2  ;;  %v1951_v44 = vld [vmem:[#allocation7 + $0x158] sm:$0xff] }
 0x1c8   :  { %2578 = vmatpush.msrb.mxu3 %v1956_v61  ;;  %2516 = vmatpush.msrb.mxu2 %v1937_v28  ;;  %v1936_v61 = vld [vmem:[#allocation7 + $0x68] sm:$0xff]  ;;  %vm3726_vm6 = vcmp.eq.f32.partialorder %v867_v51, 8.507059e+37 }
 0x1ca   :  { %2579 = vmatpush.msrb.mxu3 %v1955_v20  ;;  %v3688_v20 = vcvt.s32.f32 %v438_v18  ;;  %2517 = vmatpush.msrb.mxu2 %v1936_v61 }
 0x1cb   :  { %1146 = vperm.xlu1 %2769, %v1024_v37   ;;  %v3616_v37 = vpop.eup %2837 }
 0x1cc   :  { %v3630_v52 = vadd.f32 %v3616_v37, %v3613_v23  ;;  %v3633_v46 = vpop.eup %2839  ;;  %2580 = vmatpush.msrb.mxu3 %v1954_v47  ;;  %4898 = vst [vmem:[#allocation33_spill] sm:$0xff] %v3688_v20 }
 0x1cd   :  { %v3657_v53 = vmul.f32 %v3633_v46, %v3591_v62  ;;  %v2050_v33 = vpop.f32.mrf.mxu3 }
 0x1ce   :  { %2581 = vmatpush.msrb.mxu3 %v1953_v30  ;;  %vm2225_vm10 = vweird.f32 %v3630_v52 }
 0x1d0   :  { %2582 = vmatpush.msrb.mxu3 %v1952_v27 }
 0x1d1   :  { %v1291_v48 = vpop.xlane.xlu2 %1290 }
 0x1d2   :  { %v3626_v25 = vmax.f32 %v1291_v48, 1e-30  ;;  %v3640_v48 = vpop.eup %2841  ;;  %2583 = vmatpush.msrb.mxu3 %v1951_v44 }
 0x1d3   :  { %v3661_v29 = vpop.eup %2843 }
 0x1d4   :  { %2847 = vrcp.f32 %v3626_v25  ;;  %v3682_v3 = vpop.eup %2845  ;;  %v1395_v18 = vand.u32 2147483647, %v3626_v25  ;;  %v1397_v47 = vand.u32 2147483648, %v3626_v25  ;;  %vm1391_vm7 = vweird.f32 %v3626_v25 }
 0x1d5   :  { %2849 = vrcp.f32 %v3630_v52 }
 0x1d6   :  { %2851 = vpow2.f32 %v2174_v54  ;;  %v3672_v54 = vadd.f32 %v3583_v32, %v861_v15  ;;  %v3690_v15 = vpop.permute.xlu1 %1116  ;;  %vm3736_vm8 = vcmp.eq.f32.partialorder %v1395_v18, 8.507059e+37  ;;  %v1398_v31 = vor.u32 1.1754944e-38, %v1397_v47  ;;  %v1932_v18 = vld [vmem:[#allocation7 + $0x28] sm:$0xff] }
 0x1d7   :  { %2853 = vpow2.f32 %v1248_v50  ;;  %v852_v50 = vsel %vm3651_vm0, %v3572_v58, %v848_v16  ;;  %4899 = vst [vmem:[#allocation34_spill] sm:$0xff] %v3690_v15  ;;  %v869_v16 = vand.u32 2147483648, %v3555_v14  ;;  %v3710_v14 = vadd.f32 1e-08, %v3467_v63  ;;  %v1950_v15 = vld [vmem:[#allocation7 + $0x148] sm:$0xff] }
 0x1d8   :  { %2855 = vpow2.f32 %v1244_v49  ;;  %v1935_v49 = vld [vmem:[#allocation7 + $0x58] sm:$0xff]  ;;  %v3718_v35 = vsel %vm3678_vm3, %v856_v43, %v852_v50  ;;  %v2094_v63 = vmax.f32 %v1985_v1, %v2050_v33  ;;  %2584 = vmatpush.msrb.mxu3 %v1950_v15 }
 0x1d9   :  { %2857 = vrcp.f32 %v3644_v42  ;;  %2518 = vmatpush.msrb.mxu2 %v1935_v49  ;;  %v870_v61 = vor.u32 1.1754944e-38, %v869_v16 }
 0x1da   :  { %v3701_v28 = vpop.eup %2847  ;;  %v1293_v40 = vpop.xlane.xlu0 %1292  ;;  %v2110_v27 = vsub.f32 %v1985_v1, %v2094_v63  ;;  %v2126_v16 = vsub.f32 %v2050_v33, %v2094_v63  ;;  %v1948_v33 = vld [vmem:[#allocation7 + $0x128] sm:$0xff]  ;;  %2585 = vmatpush.msrb.mxu3 %v1949_v26 }
 0x1db   :  { %v3707_v41 = vpop.eup %2849  ;;  %v1387_v8 = vmul.f32 %v3701_v28, %v3626_v25  ;;  %v3714_v59 = vmax.f32 %v1293_v40, 1e-30  ;;  %v1934_v40 = vld [vmem:[#allocation7 + $0x48] sm:$0xff]  ;;  %vm1392_vm9 = vweird.f32 %v3701_v28 }
 0x1dc   :  { %v3720_v0 = vpop.eup %2851  ;;  %v2221_v43 = vmul.f32 %v3707_v41, %v3630_v52  ;;  %2519 = vmatpush.msrb.mxu2 %v1934_v40  ;;  %v2144_v1 = vmul.f32 1.442695, %v2110_v27  ;;  %v2176_v40 = vmul.f32 1.442695, %v2126_v16  ;;  %vm2226_vm11 = vweird.f32 %v3707_v41  ;;  %vm3760_vm12 = vmor %vm1391_vm7, %vm1392_vm9  ;;  %2586 = vmatpush.msrb.mxu3 %v1948_v33 }
 0x1dd   :  { %v3732_v50 = vpop.eup %2853  ;;  %v1388_v19 = vsub.f32 1.0, %v1387_v8  ;;  %2859 = vrcp.f32 %v3714_v59  ;;  %v3742_v49 = vadd.f32 %v3720_v0, %v3682_v3  ;;  %v1409_v24 = vand.u32 2147483647, %v3714_v59  ;;  %vm3785_vm13 = vmor %vm2225_vm10, %vm2226_vm11 }
 0x1de   :  { %v3744_v8 = vpop.eup %2855  ;;  %v2222_v38 = vsub.f32 1.0, %v2221_v43  ;;  %2520 = vmatpush.msrb.mxu2 %v1933_v6  ;;  %v1411_v6 = vand.u32 2147483648, %v3714_v59  ;;  %v2229_v27 = vand.u32 2147483647, %v3630_v52  ;;  %vm1405_vm14 = vweird.f32 %v3714_v59 }
 0x1df   :  { %v1389_v22 = vmul.f32 %v3701_v28, %v1388_v19  ;;  %v3748_v47 = vpop.eup %2857  ;;  %2861 = vrcp.f32 %v3742_v49  ;;  %v1988_v19 = vpop.f32.mrf.mxu2  ;;  %vm3803_vm15 = vcmp.eq.f32.partialorder %v1409_v24, 8.507059e+37  ;;  %vm2239_vm2 = vweird.f32 %v3742_v49 }
 0x1e0   :  { %v2223_v63 = vmul.f32 %v3707_v41, %v2222_v38  ;;  %2863 = vpow2.f32 %v2144_v1  ;;  %2521 = vmatpush.msrb.mxu2 %v1932_v18  ;;  %v2231_v38 = vand.u32 2147483648, %v3630_v52  ;;  %v1930_v1 = vld [vmem:[#allocation7 + $0x8] sm:$0xff]  ;;  %v1947_v18 = vld [vmem:[#allocation7 + $0x118] sm:$0xff]  ;;  %v1412_v58 = vor.u32 1.1754944e-38, %v1411_v6 }
 0x1e1   :  { %v1390_v44 = vadd.f32 %v3701_v28, %v1389_v22  ;;  %v2053_v22 = vpop.f32.mrf.mxu3  ;;  %2865 = vpow2.f32 %v2176_v40  ;;  %v1946_v52 = vld [vmem:[#allocation7 + $0x108] sm:$0xff]  ;;  %2587 = vmatpush.msrb.mxu3 %v1947_v18  ;;  %vm2230_vm0 = vcmp.eq.f32.partialorder %v2229_v27, 8.507059e+37 }
 0x1e2   :  { %v1295_v15 = vpop.xlane.xlu1 %1294  ;;  %v2095_v36 = vmax.f32 %v1988_v19, %v2053_v22  ;;  %2867 = vrcp.f32 %v3710_v14  ;;  %2522 = vmatpush.msrb.mxu2 %v1931_v10 }
 0x1e3   :  { %v3767_v16 = vpop.eup %2859  ;;  %v1394_v25 = vsel %vm3760_vm12, %v3701_v28, %v1390_v44  ;;  %v3772_v45 = vmax.f32 %v1295_v15, 1e-30  ;;  %1306 = vadd.xlane.f32.xlu0 %v3640_v48  ;;  %v2224_v28 = vadd.f32 %v3707_v41, %v2223_v63  ;;  %2588 = vmatpush.msrb.mxu3 %v1946_v52  ;;  %v881_v63 = vand.u32 2147483647, %v3591_v62 }
 0x1e4   :  { %v1399_v26 = vsel %vm3736_vm8, %v1398_v31, %v1394_v25  ;;  %v1401_v20 = vmul.f32 %v3767_v16, %v3714_v59  ;;  %v4910_v31 = vsel %vm3696_vm5, %v3583_v32, %v3672_v54  ;;  %v2127_v43 = vsub.f32 %v2053_v22, %v2095_v36  ;;  %2523 = vmatpush.msrb.mxu2 %v1930_v1 }
 0x1e5   :  { %v1834_v40 = vmul.f32 %v3378_v57, %v1399_v26  ;;  %2869 = vrcp.f32 %v3772_v45  ;;  %v3799_v10 = vsel %vm3726_vm6, %v870_v61, %v4910_v31  ;;  %v3801_v51 = vpop.eup %2861  ;;  %v2111_v57 = vsub.f32 %v1988_v19, %v2095_v36 }
 0x1e6   :  { %v1402_v33 = vsub.f32 1.0, %v1401_v20  ;;  %v2228_v32 = vsel %vm3785_vm13, %v3707_v41, %v2224_v28  ;;  %v2232_v54 = vor.u32 1.1754944e-38, %v2231_v38  ;;  %v3810_v61 = vpop.eup %2863  ;;  %vm1406_vm1 = vweird.f32 %v3767_v16 }
 0x1e7   :  { %1866 = vst [vmem:[#allocation9] sm:$0xff] %v1834_v40  ;;  %v2146_v24 = vmul.f32 1.442695, %v2111_v57  ;;  %v2178_v36 = vmul.f32 1.442695, %v2127_v43  ;;  %v3815_v30 = vpop.eup %2865  ;;  %v1991_v6 = vpop.f32.mrf.mxu2  ;;  %v2235_v41 = vmul.f32 %v3801_v51, %v3742_v49  ;;  %vm2240_vm3 = vweird.f32 %v3801_v51  ;;  %vm1407_vm5 = vmor %vm1405_vm14, %vm1406_vm1 }
 0x1e8   :  { %v1403_v20 = vmul.f32 %v3767_v16, %v1402_v33  ;;  %1304 = vadd.xlane.f32.xlu2 %v3661_v29  ;;  %v2233_v19 = vsel %vm2230_vm0, %v2232_v54, %v2228_v32  ;;  %v3821_v15 = vpop.eup %2867  ;;  %v3826_v27 = vadd.f32 %v3815_v30, %v3810_v61  ;;  %v994_v59 = vmul.f32 -0.5, %v3799_v10  ;;  %vm3849_vm6 = vmor %vm2239_vm2, %vm2240_vm3 }
 0x1e9   :  { %2871 = vpow2.f32 %v2146_v24  ;;  %v2444_v38 = vmul.f32 %v3613_v23, %v2233_v19  ;;  %v2056_v25 = vpop.f32.mrf.mxu3  ;;  %v2460_v18 = vmul.f32 %v3616_v37, %v2233_v19  ;;  %v2236_v28 = vsub.f32 1.0, %v2235_v41 }
 0x1ea   :  { %v1404_v22 = vadd.f32 %v3767_v16, %v1403_v20  ;;  %2873 = vpow2.f32 %v2178_v36  ;;  %v2096_v26 = vmax.f32 %v1991_v6, %v2056_v25  ;;  %v2243_v23 = vand.u32 2147483647, %v3742_v49 }
 0x1eb   :  { %v2870_v1 = vpop.eup %2869  ;;  %2875 = vrcp.f32 %v3826_v27  ;;  %2476 = vst [vmem:[#allocation11] sm:$0xff] %v2444_v38  ;;  %2524 = vmatmul.f32.vlgmr.msrb.gmra.mxu2 %v2444_v38  ;;  %2589 = vmatmul.f32.vlgmr.msrb.gmra.mxu3 %v2460_v18  ;;  %v1423_v57 = vand.u32 2147483647, %v3772_v45  ;;  %v2237_v43 = vmul.f32 %v3801_v51, %v2236_v28  ;;  %v1425_v32 = vand.u32 2147483648, %v3772_v45 }
 0x1ec   :  { %v1408_v44 = vsel %vm1407_vm5, %v3767_v16, %v1404_v22  ;;  %v1415_v40 = vmul.f32 %v2870_v1, %v3772_v45  ;;  %2492 = vst [vmem:[#allocation11 + $0x80] sm:$0xff] %v2460_v18  ;;  %v2112_v37 = vsub.f32 %v1991_v6, %v2096_v26  ;;  %v2128_v52 = vsub.f32 %v2056_v25, %v2096_v26 }
 0x1ed   :  { %v1413_v31 = vsel %vm3803_vm15, %v1412_v58, %v1408_v44  ;;  %v2245_v58 = vand.u32 2147483648, %v3742_v49  ;;  %vm1420_vm7 = vweird.f32 %v2870_v1  ;;  %v2238_v36 = vadd.f32 %v3801_v51, %v2237_v43 }
 0x1ee   :  { %v1835_v33 = vmul.f32 %v3395_v13, %v1413_v31  ;;  %v1416_v16 = vsub.f32 1.0, %v1415_v40  ;;  %v2148_v54 = vmul.f32 1.442695, %v2112_v37  ;;  %v2180_v20 = vmul.f32 1.442695, %v2128_v52 }
 0x1ef   :  { %v3854_v13 = vpop.eup %2871  ;;  %vm3857_vm8 = vcmp.eq.f32.partialorder %v2243_v23, 8.507059e+37  ;;  %vm1419_vm9 = vweird.f32 %v3772_v45  ;;  %v1026_v41 = vmul.f32 %v994_v59, %v3799_v10  ;;  %v2246_v22 = vor.u32 1.1754944e-38, %v2245_v58  ;;  %v1994_v49 = vpop.f32.mrf.mxu2 }
 0x1f0   :  { %1867 = vst [vmem:[#allocation9 + $0x8] sm:$0xff] %v1835_v33  ;;  %v1417_v24 = vmul.f32 %v2870_v1, %v1416_v16  ;;  %v3861_v6 = vpop.eup %2873  ;;  %2877 = vpow2.f32 %v2148_v54  ;;  %vm1424_vm10 = vcmp.eq.f32.partialorder %v1423_v57, 8.507059e+37  ;;  %v2242_v26 = vsel %vm3849_vm6, %v3801_v51, %v2238_v36  ;;  %vm1421_vm11 = vmor %vm1419_vm9, %vm1420_vm7 }
 0x1f1   :  { %v3865_v38 = vpop.eup %2875  ;;  %v3869_v18 = vadd.f32 %v3861_v6, %v3854_v13  ;;  %v2059_v28 = vpop.f32.mrf.mxu3  ;;  %v1426_v45 = vor.u32 1.1754944e-38, %v1425_v32  ;;  %2879 = vpow2.f32 %v2180_v20  ;;  %v2247_v10 = vsel %vm3857_vm8, %v2246_v22, %v2242_v26 }
 0x1f2   :  { %v1418_v25 = vadd.f32 %v2870_v1, %v1417_v24  ;;  %v2097_v44 = vmax.f32 %v1994_v49, %v2059_v28  ;;  %v2445_v23 = vmul.f32 %v3682_v3, %v2247_v10  ;;  %v2461_v31 = vmul.f32 %v3720_v0, %v2247_v10 }
 0x1f3   :  { %2881 = vrcp.f32 %v3869_v18  ;;  %v2249_v52 = vmul.f32 %v3865_v38, %v3826_v27  ;;  %v993_v16 = vmul.f32 -0.5, %v3718_v35  ;;  %v2259_v0 = vand.u32 2147483648, %v3826_v27 }
 0x1f4   :  { %v1422_v40 = vsel %vm1421_vm11, %v2870_v1, %v1418_v25  ;;  %v2113_v51 = vsub.f32 %v1994_v49, %v2097_v44  ;;  %v2129_v37 = vsub.f32 %v2059_v28, %v2097_v44  ;;  %2477 = vst [vmem:[#allocation11 + $0x8] sm:$0xff] %v2445_v23  ;;  %2527 = vmatmul.f32.gmra.mxu2 %v2445_v23  ;;  %v4917_v1 = vsub.f32 1.0, %v3657_v53 }
 0x1f5   :  { %v1427_v59 = vsel %vm1424_vm10, %v1426_v45, %v1422_v40  ;;  %1308 = vadd.xlane.f32.xlu1 %v3744_v8  ;;  %2592 = vmatmul.f32.gmra.mxu3 %v2461_v31  ;;  %2493 = vst [vmem:[#allocation11 + $0x88] sm:$0xff] %v2461_v31  ;;  %v2250_v54 = vsub.f32 1.0, %v2249_v52  ;;  %vm2253_vm12 = vweird.f32 %v3826_v27  ;;  %vm877_vm13 = vweird.f32 %v3591_v62 }
 0x1f6   :  { %v1836_v33 = vmul.f32 %v3412_v34, %v1427_v59  ;;  %v875_v3 = vmul.f32 %v3633_v46, %v4917_v1  ;;  %v3889_v57 = vpop.eup %2877  ;;  %v2150_v43 = vmul.f32 1.442695, %v2113_v51  ;;  %v2182_v32 = vmul.f32 1.442695, %v2129_v37 }
 0x1f7   :  { %1156 = vperm.xlu0 %2768, %v1026_v41   ;;  %v883_v34 = vand.u32 2147483648, %v3591_v62  ;;  %vm2254_vm14 = vweird.f32 %v3865_v38  ;;  %v2257_v53 = vand.u32 2147483647, %v3826_v27  ;;  %v3896_v20 = vpop.eup %2879  ;;  %vm878_vm15 = vweird.f32 %v3633_v46  ;;  %v1997_v58 = vpop.f32.mrf.mxu2 }
 0x1f8   :  { %1868 = vst [vmem:[#allocation9 + $0x10] sm:$0xff] %v1836_v33  ;;  %2883 = vpow2.f32 %v2150_v43  ;;  %v2251_v24 = vmul.f32 %v3865_v38, %v2250_v54  ;;  %v3905_v19 = vadd.f32 %v3896_v20, %v3889_v57  ;;  %v876_v41 = vadd.f32 %v3633_v46, %v875_v3  ;;  %vm3910_vm0 = vmor %vm2253_vm12, %vm2254_vm14 }
 0x1f9   :  { %v3901_v36 = vpop.eup %2881  ;;  %2885 = vpow2.f32 %v2182_v32  ;;  %v2062_v22 = vpop.f32.mrf.mxu3  ;;  %v2260_v25 = vor.u32 1.1754944e-38, %v2259_v0  ;;  %vm2258_vm1 = vcmp.eq.f32.partialorder %v2257_v53, 8.507059e+37  ;;  %v3918_v10 = vmul.f32 1.442695, %v3686_v7  ;;  %vm3929_vm2 = vmor %vm877_vm13, %vm878_vm15 }
 0x1fa   :  { %v2098_v26 = vmax.f32 %v1997_v58, %v2062_v22  ;;  %v2252_v28 = vadd.f32 %v3865_v38, %v2251_v24  ;;  %v2263_v45 = vmul.f32 %v3901_v36, %v3869_v18  ;;  %v3921_v44 = vadd.s32 120, %v3344_v55 }
 0x1fb   :  { %v1025_v27 = vmul.f32 %v993_v16, %v3718_v35  ;;  %2887 = vrcp.f32 %v3905_v19  ;;  %v884_v23 = vor.u32 1.1754944e-38, %v883_v34  ;;  %vm3936_vm3 = vcmp.eq.f32.partialorder %v881_v63, 8.507059e+37 }
 0x1fc   :  { %v2114_v31 = vsub.f32 %v1997_v58, %v2098_v26  ;;  %v2130_v59 = vsub.f32 %v2062_v22, %v2098_v26  ;;  %v2256_v55 = vsel %vm3910_vm0, %v3865_v38, %v2252_v28  ;;  %v2264_v51 = vsub.f32 1.0, %v2263_v45 }
 0x1fd   :  { %v2261_v35 = vsel %vm2258_vm1, %v2260_v25, %v2256_v55  ;;  %v2273_v37 = vand.u32 2147483648, %v3869_v18  ;;  %v880_v52 = vsel %vm3929_vm2, %v3633_v46, %v876_v41  ;;  %vm2267_vm5 = vweird.f32 %v3869_v18 }
 0x1fe   :  { %v3941_v62 = vpop.eup %2883  ;;  %v2152_v33 = vmul.f32 1.442695, %v2114_v31  ;;  %v2184_v16 = vmul.f32 1.442695, %v2130_v59  ;;  %v2446_v1 = vmul.f32 %v3810_v61, %v2261_v35  ;;  %v2462_v38 = vmul.f32 %v3815_v30, %v2261_v35 }
 0x1ff   :  { %v3947_v3 = vpop.eup %2885  ;;  %v2265_v0 = vmul.f32 %v3901_v36, %v2264_v51  ;;  %vm2268_vm6 = vweird.f32 %v3901_v36  ;;  %v2271_v61 = vand.u32 2147483647, %v3869_v18  ;;  %v2274_v30 = vor.u32 1.1754944e-38, %v2273_v37  ;;  %v2000_v53 = vpop.f32.mrf.mxu2 }
 0x200   :  { %1151 = vperm.xlu2 %2770, %v1025_v27   ;;  %v3955_v43 = vadd.f32 %v3947_v3, %v3941_v62  ;;  %2889 = vpow2.f32 %v2152_v33  ;;  %2478 = vst [vmem:[#allocation11 + $0x10] sm:$0xff] %v2446_v1  ;;  %2530 = vmatmul.f32.gmra.mxu2 %v2446_v1  ;;  %vm3957_vm7 = vmor %vm2267_vm5, %vm2268_vm6  ;;  %v1206_v54 = vmul.f32 %v3597_v4, %v3669_v39  ;;  %v3965_v34 = vadd.f32 1e-08, %v3487_v12  ;;  %v3996_v37 = vpop.permute.xlu2 %1121 }
 0x201   :  { %v2888_v32 = vpop.eup %2887  ;;  %2891 = vpow2.f32 %v2184_v16  ;;  %2494 = vst [vmem:[#allocation11 + $0x90] sm:$0xff] %v2462_v38  ;;  %2595 = vmatmul.f32.gmra.mxu3 %v2462_v38  ;;  %v2065_v63 = vpop.f32.mrf.mxu3  ;;  %v2266_v58 = vadd.f32 %v3901_v36, %v2265_v0  ;;  %vm2272_vm8 = vcmp.eq.f32.partialorder %v2271_v61, 8.507059e+37  ;;  %v3972_v41 = vmul.f32 %v3748_v47, %v3644_v42 }
 0x202   :  { %2893 = vrcp.f32 %v3955_v43  ;;  %v2099_v24 = vmax.f32 %v2000_v53, %v2065_v63  ;;  %v2277_v18 = vmul.f32 %v2888_v32, %v3905_v19  ;;  %v901_v12 = vmul.f32 %v3821_v15, %v3710_v14 }
 0x203   :  { %v885_v4 = vsel %vm3936_vm3, %v884_v23, %v880_v52  ;;  %v2270_v22 = vsel %vm3957_vm7, %v3901_v36, %v2266_v58  ;;  %2895 = vrcp.f32 %v3965_v34  ;;  %v2287_v40 = vand.u32 2147483648, %v3905_v19 }
 0x204   :  { %v2115_v49 = vsub.f32 %v2000_v53, %v2099_v24  ;;  %v2131_v25 = vsub.f32 %v2065_v63, %v2099_v24  ;;  %v2275_v26 = vsel %vm2272_vm8, %v2274_v30, %v2270_v22  ;;  %v2278_v28 = vsub.f32 1.0, %v2277_v18 }
 0x205   :  { %v2447_v45 = vmul.f32 %v3854_v13, %v2275_v26  ;;  %v2463_v27 = vmul.f32 %v3861_v6, %v2275_v26  ;;  %vm2281_vm9 = vweird.f32 %v3905_v19  ;;  %v995_v7 = vmul.f32 -0.5, %v885_v4 }
 0x206   :  { %v3985_v31 = vpop.eup %2889  ;;  %v2154_v59 = vmul.f32 1.442695, %v2115_v49  ;;  %v2186_v23 = vmul.f32 1.442695, %v2131_v25  ;;  %v2279_v55 = vmul.f32 %v2888_v32, %v2278_v28  ;;  %vm2282_vm10 = vweird.f32 %v2888_v32 }
 0x207   :  { %v3988_v36 = vpop.eup %2891  ;;  %2479 = vst [vmem:[#allocation11 + $0x18] sm:$0xff] %v2447_v45  ;;  %v2285_v35 = vand.u32 2147483647, %v3905_v19  ;;  %v2288_v51 = vor.u32 1.1754944e-38, %v2287_v40  ;;  %2897 = vpow2.f32 %v3918_v10  ;;  %v3994_v6 = vmul.f32 1.442695, %v1206_v54  ;;  %vm4004_vm11 = vmor %vm2281_vm9, %vm2282_vm10  ;;  %v2003_v10 = vpop.f32.mrf.mxu2 }
 0x208   :  { %v3991_v13 = vpop.eup %2893  ;;  %v4000_v52 = vadd.f32 %v3988_v36, %v3985_v31  ;;  %2533 = vmatmul.f32.gmra.mxu2 %v2447_v45  ;;  %2495 = vst [vmem:[#allocation11 + $0x98] sm:$0xff] %v2463_v27  ;;  %v2280_v33 = vadd.f32 %v2888_v32, %v2279_v55  ;;  %v902_v1 = vsub.f32 1.0, %v901_v12  ;;  %2899 = vpow2.f32 %v2154_v59 }
 0x209   :  { %2598 = vmatmul.f32.gmra.mxu3 %v2463_v27  ;;  %v2068_v38 = vpop.f32.mrf.mxu3  ;;  %vm2286_vm12 = vcmp.eq.f32.partialorder %v2285_v35, 8.507059e+37  ;;  %v2291_v0 = vmul.f32 %v3991_v13, %v3955_v43  ;;  %v888_v46 = vsub.f32 1.0, %v3972_v41  ;;  %2901 = vpow2.f32 %v2186_v23  ;;  %v4013_v30 = vpop.eup %2895 }
 0x20a   :  { %v2100_v61 = vmax.f32 %v2003_v10, %v2068_v38  ;;  %v2284_v19 = vsel %vm4004_vm11, %v2888_v32, %v2280_v33  ;;  %v1027_v54 = vmul.f32 %v995_v7, %v885_v4  ;;  %2903 = vrcp.f32 %v4000_v52 }
 0x20b   :  { %v2289_v53 = vsel %vm2286_vm12, %v2288_v51, %v2284_v19  ;;  %v2292_v63 = vsub.f32 1.0, %v2291_v0  ;;  %v2301_v22 = vand.u32 2147483648, %v3955_v43  ;;  %v903_v32 = vmul.f32 %v3821_v15, %v902_v1 }
 0x20c   :  { %v2116_v58 = vsub.f32 %v2003_v10, %v2100_v61  ;;  %v2132_v24 = vsub.f32 %v2068_v38, %v2100_v61  ;;  %v2448_v18 = vmul.f32 %v3889_v57, %v2289_v53  ;;  %v2464_v12 = vmul.f32 %v3896_v20, %v2289_v53  ;;  %v4028_v20 = vpop.permute.xlu0 %1126 }
 0x20d   :  { %v2293_v41 = vmul.f32 %v3991_v13, %v2292_v63  ;;  %v911_v49 = vand.u32 2147483648, %v3710_v14  ;;  %v4022_v4 = vpop.eup %2897  ;;  %vm2295_vm13 = vweird.f32 %v3955_v43  ;;  %vm2296_vm14 = vweird.f32 %v3991_v13  ;;  %4928 = vst [vmem:[#allocation35_spill] sm:$0xff] %v4028_v20 }
 0x20e   :  { %1161 = vperm.xlu1 %2769, %v1027_v54   ;;  %v2156_v25 = vmul.f32 1.442695, %v2116_v58  ;;  %v2188_v26 = vmul.f32 1.442695, %v2132_v24  ;;  %2480 = vst [vmem:[#allocation11 + $0x20] sm:$0xff] %v2448_v18  ;;  %v4026_v57 = vpop.eup %2899  ;;  %vm4031_vm15 = vmor %vm2295_vm13, %vm2296_vm14  ;;  %v2302_v40 = vor.u32 1.1754944e-38, %v2301_v22  ;;  %v904_v59 = vadd.f32 %v3821_v15, %v903_v32 }
 0x20f   :  { %2496 = vst [vmem:[#allocation11 + $0xa0] sm:$0xff] %v2464_v12  ;;  %v2294_v28 = vadd.f32 %v3991_v13, %v2293_v41  ;;  %v2299_v27 = vand.u32 2147483647, %v3955_v43  ;;  %v4037_v23 = vpop.eup %2901  ;;  %v4041_v55 = vmul.f32 %v4013_v30, %v3965_v34  ;;  %vm905_vm0 = vweird.f32 %v3710_v14  ;;  %v2006_v43 = vpop.f32.mrf.mxu2 }
 0x210   :  { %2905 = vpow2.f32 %v2156_v25  ;;  %2536 = vmatmul.f32.gmra.mxu2 %v2448_v18  ;;  %vm906_vm1 = vweird.f32 %v3821_v15  ;;  %v4045_v7 = vpop.eup %2903  ;;  %v909_v16 = vand.u32 2147483647, %v3710_v14  ;;  %v4056_v1 = vadd.f32 1e-08, %v3527_v2 }
 0x211   :  { %2907 = vpow2.f32 %v2188_v26  ;;  %2601 = vmatmul.f32.gmra.mxu3 %v2464_v12  ;;  %v2298_v51 = vsel %vm4031_vm15, %v3991_v13, %v2294_v28  ;;  %vm2300_vm2 = vcmp.eq.f32.partialorder %v2299_v27, 8.507059e+37  ;;  %vm4050_vm3 = vmor %vm905_vm0, %vm906_vm1  ;;  %v2071_v38 = vpop.f32.mrf.mxu3  ;;  %v912_v54 = vor.u32 1.1754944e-38, %v911_v49 }
 0x212   :  { %v1297_v35 = vpop.xlane.xlu2 %1296  ;;  %v2303_v0 = vsel %vm2300_vm2, %v2302_v40, %v2298_v51  ;;  %v908_v61 = vsel %vm4050_vm3, %v3821_v15, %v904_v59  ;;  %v2101_v19 = vmax.f32 %v2006_v43, %v2071_v38  ;;  %vm910_vm5 = vcmp.eq.f32.partialorder %v909_v16, 8.507059e+37 }
 0x213   :  { %v4058_v10 = vmax.f32 %v1297_v35, 1e-30  ;;  %v2449_v13 = vmul.f32 %v3941_v62, %v2303_v0  ;;  %v4068_v2 = vadd.f32 %v4037_v23, %v4026_v57  ;;  %v889_v53 = vmul.f32 %v3748_v47, %v888_v46 }
 0x214   :  { %v2117_v63 = vsub.f32 %v2006_v43, %v2101_v19  ;;  %v2133_v58 = vsub.f32 %v2071_v38, %v2101_v19  ;;  %v913_v24 = vsel %vm910_vm5, %v912_v54, %v908_v61  ;;  %v2465_v15 = vmul.f32 %v3947_v3, %v2303_v0  ;;  %v4113_v19 = vpop.permute.xlu1 %1131 }
 0x215   :  { %2909 = vrcp.f32 %v4058_v10  ;;  %v1439_v14 = vand.u32 2147483648, %v4058_v10  ;;  %2481 = vst [vmem:[#allocation11 + $0x28] sm:$0xff] %v2449_v13  ;;  %v2305_v41 = vmul.f32 %v4045_v7, %v4000_v52  ;;  %v1437_v46 = vand.u32 2147483647, %v4058_v10 }
 0x216   :  { %v4072_v18 = vpop.eup %2905  ;;  %2911 = vpow2.f32 %v3994_v6  ;;  %v2158_v3 = vmul.f32 1.442695, %v2117_v63  ;;  %v997_v49 = vmul.f32 -0.5, %v913_v24  ;;  %2497 = vst [vmem:[#allocation11 + $0xa8] sm:$0xff] %v2465_v15  ;;  %v4088_v6 = vadd.f32 %v3748_v47, %v889_v53 }
 0x217   :  { %v4080_v22 = vpop.eup %2907  ;;  %2913 = vrcp.f32 %v4056_v1  ;;  %vm1433_vm6 = vweird.f32 %v4058_v10  ;;  %v4092_v28 = vor.u32 1.1754944e-38, %v1439_v14  ;;  %v2190_v27 = vmul.f32 1.442695, %v2133_v58  ;;  %v2009_v40 = vpop.f32.mrf.mxu2 }
 0x218   :  { %v1301_v32 = vpop.xlane.xlu0 %1300  ;;  %2915 = vrcp.f32 %v4068_v2  ;;  %2539 = vmatmul.f32.gmra.mxu2 %v2449_v13  ;;  %vm2309_vm7 = vweird.f32 %v4000_v52  ;;  %v4098_v35 = vadd.f32 %v4080_v22, %v4072_v18  ;;  %v2306_v51 = vsub.f32 1.0, %v2305_v41 }
 0x219   :  { %v4084_v25 = vmax.f32 %v1301_v32, 1e-30  ;;  %2604 = vmatmul.f32.gmra.mxu3 %v2465_v15  ;;  %v2074_v43 = vpop.f32.mrf.mxu3  ;;  %vm2310_vm8 = vweird.f32 %v4045_v7  ;;  %vm4102_vm9 = vcmp.eq.f32.partialorder %v1437_v46, 8.507059e+37  ;;  %v4108_v0 = vmul.f32 %v997_v49, %v913_v24 }
 0x21a   :  { %v1299_v45 = vpop.xlane.xlu2 %1298  ;;  %vm891_vm10 = vweird.f32 %v3644_v42  ;;  %v2102_v13 = vmax.f32 %v2009_v40, %v2074_v43  ;;  %v2313_v54 = vand.u32 2147483647, %v4000_v52  ;;  %v2315_v14 = vand.u32 2147483648, %v4000_v52  ;;  %vm4135_vm14 = vmor %vm2309_vm7, %vm2310_vm8 }
 0x21b   :  { %v2910_v59 = vpop.eup %2909  ;;  %2917 = vrcp.f32 %v4084_v25  ;;  %v4106_v38 = vmax.f32 %v1299_v45, 1e-30  ;;  %vm892_vm11 = vweird.f32 %v3748_v47  ;;  %v1465_v58 = vand.u32 2147483647, %v4084_v25 }
 0x21c   :  { %v1429_v33 = vmul.f32 %v2910_v59, %v4058_v10  ;;  %2919 = vpow2.f32 %v2158_v3  ;;  %v4111_v61 = vpop.eup %2911  ;;  %v1467_v24 = vand.u32 2147483648, %v4084_v25  ;;  %v2118_v41 = vsub.f32 %v2009_v40, %v2102_v13 }
 0x21d   :  { %v4118_v53 = vpop.eup %2913  ;;  %2921 = vrcp.f32 %v4106_v38  ;;  %v2134_v46 = vsub.f32 %v2074_v43, %v2102_v13  ;;  %v2307_v32 = vmul.f32 %v4045_v7, %v2306_v51  ;;  %vm1434_vm12 = vweird.f32 %v2910_v59 }
 0x21e   :  { %v1430_v63 = vsub.f32 1.0, %v1429_v33  ;;  %v4123_v15 = vpop.eup %2915  ;;  %2923 = vpow2.f32 %v2190_v27  ;;  %vm1461_vm13 = vweird.f32 %v4084_v25  ;;  %v1451_v45 = vand.u32 2147483647, %v4106_v38  ;;  %vm1435_vm0 = vmor %vm1433_vm6, %vm1434_vm12 }
 0x21f   :  { %2925 = vrcp.f32 %v4098_v35  ;;  %v2160_v33 = vmul.f32 1.442695, %v2118_v41  ;;  %v2192_v62 = vmul.f32 1.442695, %v2134_v46  ;;  %v2308_v12 = vadd.f32 %v4045_v7, %v2307_v32  ;;  %v2012_v41 = vpop.f32.mrf.mxu2  ;;  %vm4179_vm6 = vmor %vm891_vm10, %vm892_vm11 }
 0x220   :  { %v1431_v3 = vmul.f32 %v2910_v59, %v1430_v63  ;;  %vm4142_vm15 = vcmp.eq.f32.partialorder %v1465_v58, 8.507059e+37  ;;  %v1468_v63 = vor.u32 1.1754944e-38, %v1467_v24  ;;  %v1453_v52 = vand.u32 2147483648, %v4106_v38 }
 0x221   :  { %v2918_v49 = vpop.eup %2917  ;;  %1312 = vadd.xlane.f32.xlu0 %v3732_v50  ;;  %2927 = vpow2.f32 %v2160_v33  ;;  %vm4150_vm1 = vcmp.eq.f32.partialorder %v2313_v54, 8.507059e+37  ;;  %v2316_v32 = vor.u32 1.1754944e-38, %v2315_v14  ;;  %v2312_v24 = vsel %vm4135_vm14, %v4045_v7, %v2308_v12 }
 0x222   :  { %v4139_v40 = vpop.eup %2919  ;;  %v1432_v43 = vadd.f32 %v2910_v59, %v1431_v3  ;;  %v1457_v51 = vmul.f32 %v2918_v49, %v4084_v25  ;;  %v2077_v3 = vpop.f32.mrf.mxu3  ;;  %2929 = vpow2.f32 %v2192_v62  ;;  %vm1447_vm2 = vweird.f32 %v4106_v38 }
 0x223   :  { %v2922_v26 = vpop.eup %2921  ;;  %vm4164_vm3 = vcmp.eq.f32.partialorder %v1451_v45, 8.507059e+37  ;;  %vm1462_vm5 = vweird.f32 %v2918_v49  ;;  %v1454_v16 = vor.u32 1.1754944e-38, %v1453_v52  ;;  %vm2324_vm14 = vweird.f32 %v4123_v15 }
 0x224   :  { %v1436_v58 = vsel %vm1435_vm0, %v2910_v59, %v1432_v43  ;;  %v1458_v39 = vsub.f32 1.0, %v1457_v51  ;;  %v4157_v20 = vpop.eup %2923  ;;  %v1443_v54 = vmul.f32 %v2922_v26, %v4106_v38  ;;  %v2103_v43 = vmax.f32 %v2012_v41, %v2077_v3  ;;  %vm1463_vm7 = vmor %vm1461_vm13, %vm1462_vm5 }
 0x225   :  { %v1441_v10 = vsel %vm4102_vm9, %v4092_v28, %v1436_v58  ;;  %v1303_v59 = vpop.xlane.xlu1 %1302  ;;  %v4168_v62 = vpop.eup %2925  ;;  %v2317_v28 = vsel %vm4150_vm1, %v2316_v32, %v2312_v24  ;;  %v895_v51 = vand.u32 2147483647, %v3644_v42  ;;  %vm1448_vm8 = vweird.f32 %v2922_v26 }
 0x226   :  { %v1837_v33 = vmul.f32 %v3471_v5, %v1441_v10  ;;  %v1459_v7 = vmul.f32 %v2918_v49, %v1458_v39  ;;  %v4171_v12 = vmax.f32 %v1303_v59, 1e-30  ;;  %v1444_v27 = vsub.f32 1.0, %v1443_v54  ;;  %vm1449_vm9 = vmor %vm1447_vm2, %vm1448_vm8 }
 0x227   :  { %v4186_v39 = vadd.f32 %v4157_v20, %v4139_v40  ;;  %v4189_v52 = vpop.eup %2927  ;;  %v2450_v32 = vmul.f32 %v3985_v31, %v2317_v28  ;;  %v2466_v58 = vmul.f32 %v3988_v36, %v2317_v28  ;;  %v2119_v54 = vsub.f32 %v2012_v41, %v2103_v43  ;;  %v4202_v25 = vpop.f32.mrf.mxu2 }
 0x228   :  { %1869 = vst [vmem:[#allocation9 + $0x18] sm:$0xff] %v1837_v33  ;;  %v1460_v5 = vadd.f32 %v2918_v49, %v1459_v7  ;;  %2931 = vrcp.f32 %v4171_v12  ;;  %v1445_v46 = vmul.f32 %v2922_v26, %v1444_v27  ;;  %v4196_v24 = vpop.eup %2929  ;;  %v2135_v59 = vsub.f32 %v2077_v3, %v2103_v43 }
 0x229   :  { %1310 = vadd.xlane.f32.xlu2 %v4022_v4  ;;  %v894_v33 = vsel %vm4179_vm6, %v3748_v47, %v4088_v6  ;;  %v1479_v31 = vand.u32 2147483647, %v4171_v12  ;;  %v1481_v36 = vand.u32 2147483648, %v4171_v12  ;;  %2482 = vst [vmem:[#allocation11 + $0x30] sm:$0xff] %v2450_v32  ;;  %2542 = vmatmul.f32.gmra.mxu2 %v2450_v32  ;;  %v4214_v47 = vadd.f32 %v4196_v24, %v4189_v52 }
 0x22a   :  { %v1464_v10 = vsel %vm1463_vm7, %v2918_v49, %v1460_v5  ;;  %v1446_v27 = vadd.f32 %v2922_v26, %v1445_v46  ;;  %v2080_v49 = vpop.f32.mrf.mxu3  ;;  %2498 = vst [vmem:[#allocation11 + $0xb0] sm:$0xff] %v2466_v58  ;;  %2607 = vmatmul.f32.gmra.mxu3 %v2466_v58  ;;  %v2162_v6 = vmul.f32 1.442695, %v2119_v54  ;;  %v2194_v13 = vmul.f32 1.442695, %v2135_v59 }
 0x22b   :  { %v1469_v7 = vsel %vm4142_vm15, %v1468_v63, %v1464_v10  ;;  %2933 = vrcp.f32 %v4186_v39  ;;  %vm896_vm10 = vcmp.eq.f32.partialorder %v895_v51, 8.507059e+37  ;;  %v4945_v3 = vand.u32 2147483648, %v3644_v42 }
 0x22c   :  { %v1839_v41 = vmul.f32 %v3489_v17, %v1469_v7  ;;  %v1450_v63 = vsel %vm1449_vm9, %v2922_v26, %v1446_v27  ;;  %vm1475_vm11 = vweird.f32 %v4171_v12  ;;  %2935 = vpow2.f32 %v2162_v6 }
 0x22d   :  { %v898_v28 = vor.u32 1.1754944e-38, %v4945_v3  ;;  %v1455_v38 = vsel %vm4164_vm3, %v1454_v16, %v1450_v63  ;;  %v2319_v43 = vmul.f32 %v4123_v15, %v4068_v2  ;;  %vm4226_vm12 = vcmp.eq.f32.partialorder %v1479_v31, 8.507059e+37 }
 0x22e   :  { %v2932_v17 = vpop.eup %2931  ;;  %1871 = vst [vmem:[#allocation9 + $0x28] sm:$0xff] %v1839_v41  ;;  %v1838_v45 = vmul.f32 %v3493_v21, %v1455_v38  ;;  %v1482_v42 = vor.u32 1.1754944e-38, %v1481_v36  ;;  %2937 = vpow2.f32 %v2194_v13  ;;  %vm2323_vm13 = vweird.f32 %v4068_v2 }
 0x22f   :  { %v1471_v26 = vmul.f32 %v2932_v17, %v4171_v12  ;;  %2939 = vrcp.f32 %v4214_v47  ;;  %v899_v14 = vsel %vm896_vm10, %v898_v28, %v894_v33  ;;  %v2320_v16 = vsub.f32 1.0, %v2319_v43  ;;  %v4239_v59 = vpop.f32.mrf.mxu2  ;;  %vm4243_vm0 = vmor %vm2323_vm13, %vm2324_vm14 }
 0x230   :  { %1870 = vst [vmem:[#allocation9 + $0x20] sm:$0xff] %v1838_v45  ;;  %v996_v46 = vmul.f32 -0.5, %v899_v14  ;;  %v2327_v21 = vand.u32 2147483647, %v4068_v2  ;;  %v2329_v58 = vand.u32 2147483648, %v4068_v2  ;;  %v2104_v10 = vmax.f32 %v4202_v25, %v2080_v49 }
 0x231   :  { %v1472_v51 = vsub.f32 1.0, %v1471_v26  ;;  %v2321_v32 = vmul.f32 %v4123_v15, %v2320_v16  ;;  %v2333_v54 = vmul.f32 %v4168_v62, %v4098_v35  ;;  %v4241_v33 = vpop.eup %2933  ;;  %vm1476_vm15 = vweird.f32 %v2932_v17 }
 0x232   :  { %vm4247_vm1 = vcmp.eq.f32.partialorder %v2327_v21, 8.507059e+37  ;;  %vm2337_vm2 = vweird.f32 %v4098_v35  ;;  %v2083_v2 = vpop.f32.mrf.mxu3  ;;  %v4252_v36 = vpop.eup %2935  ;;  %v2330_v6 = vor.u32 1.1754944e-38, %v2329_v58  ;;  %v2120_v13 = vsub.f32 %v4202_v25, %v2104_v10  ;;  %vm1477_vm5 = vmor %vm1475_vm11, %vm1476_vm15 }
 0x233   :  { %v1473_v7 = vmul.f32 %v2932_v17, %v1472_v51  ;;  %v2322_v41 = vadd.f32 %v4123_v15, %v2321_v32  ;;  %v2136_v63 = vsub.f32 %v2080_v49, %v2104_v10  ;;  %v2334_v38 = vsub.f32 1.0, %v2333_v54 }
 0x234   :  { %v4256_v3 = vpop.eup %2937  ;;  %vm2338_vm3 = vweird.f32 %v4168_v62  ;;  %v2341_v43 = vand.u32 2147483647, %v4098_v35  ;;  %v1028_v26 = vmul.f32 %v996_v46, %v899_v14  ;;  %v2164_v49 = vmul.f32 1.442695, %v2120_v13 }
 0x235   :  { %v1474_v28 = vadd.f32 %v2932_v17, %v1473_v7  ;;  %1171 = vperm.xlu0 %2768, %v4108_v0   ;;  %v4261_v45 = vpop.eup %2939  ;;  %v2326_v25 = vsel %vm4243_vm0, %v4123_v15, %v2322_v41  ;;  %v2196_v16 = vmul.f32 1.442695, %v2136_v63  ;;  %v4271_v0 = vadd.f32 %v4256_v3, %v4252_v36  ;;  %vm4285_vm6 = vmor %vm2337_vm2, %vm2338_vm3 }
 0x236   :  { %v2331_v21 = vsel %vm4247_vm1, %v2330_v6, %v2326_v25  ;;  %v2335_v32 = vmul.f32 %v4168_v62, %v2334_v38  ;;  %vm4289_vm7 = vcmp.eq.f32.partialorder %v2341_v43, 8.507059e+37  ;;  %2941 = vpow2.f32 %v2164_v49 }
 0x237   :  { %v1478_v51 = vsel %vm1477_vm5, %v2932_v17, %v1474_v28  ;;  %v2451_v14 = vmul.f32 %v4026_v57, %v2331_v21  ;;  %v2467_v15 = vmul.f32 %v4037_v23, %v2331_v21  ;;  %v2343_v57 = vand.u32 2147483648, %v4098_v35  ;;  %v2021_v6 = vpop.f32.mrf.mxu2 }
 0x238   :  { %v1483_v12 = vsel %vm4226_vm12, %v1482_v42, %v1478_v51  ;;  %1314 = vadd.xlane.f32.xlu1 %v4111_v61  ;;  %v2336_v42 = vadd.f32 %v4168_v62, %v2335_v32  ;;  %2943 = vpow2.f32 %v2196_v16  ;;  %v2105_v23 = vmax.f32 %v4239_v59, %v2083_v2 }
 0x239   :  { %v1840_v5 = vmul.f32 %v3522_v60, %v1483_v12  ;;  %2483 = vst [vmem:[#allocation11 + $0x38] sm:$0xff] %v2451_v14  ;;  %2545 = vmatmul.f32.gmra.mxu2 %v2451_v14  ;;  %2610 = vmatmul.f32.gmra.mxu3 %v2467_v15  ;;  %v4956_v58 = vsub.f32 1.0, %v4041_v55  ;;  %vm919_vm8 = vweird.f32 %v3965_v34  ;;  %v2344_v54 = vor.u32 1.1754944e-38, %v2343_v57 }
 0x23a   :  { %v2340_v60 = vsel %vm4285_vm6, %v4168_v62, %v2336_v42  ;;  %vm920_vm9 = vweird.f32 %v4013_v30  ;;  %v923_v35 = vand.u32 2147483647, %v3965_v34  ;;  %2499 = vst [vmem:[#allocation11 + $0xb8] sm:$0xff] %v2467_v15  ;;  %v2121_v7 = vsub.f32 %v4239_v59, %v2105_v23  ;;  %v2086_v13 = vpop.f32.mrf.mxu3 }
 0x23b   :  { %v917_v10 = vmul.f32 %v4013_v30, %v4956_v58  ;;  %1872 = vst [vmem:[#allocation9 + $0x30] sm:$0xff] %v1840_v5  ;;  %v2137_v27 = vsub.f32 %v2083_v2, %v2105_v23  ;;  %vm4308_vm10 = vmor %vm919_vm8, %vm920_vm9  ;;  %v925_v41 = vand.u32 2147483648, %v3965_v34  ;;  %2945 = vrcp.f32 %v4271_v0 }
 0x23c   :  { %v2345_v62 = vsel %vm4289_vm7, %v2344_v54, %v2340_v60  ;;  %vm4316_vm11 = vcmp.eq.f32.partialorder %v923_v35, 8.507059e+37  ;;  %v2347_v59 = vmul.f32 %v4241_v33, %v4186_v39  ;;  %v2166_v38 = vmul.f32 1.442695, %v2121_v7  ;;  %v4325_v34 = vpop.eup %2941 }
 0x23d   :  { %v918_v55 = vadd.f32 %v4013_v30, %v917_v10  ;;  %v2452_v2 = vmul.f32 %v4072_v18, %v2345_v62  ;;  %v2468_v28 = vmul.f32 %v4080_v22, %v2345_v62  ;;  %vm2351_vm12 = vweird.f32 %v4186_v39 }
 0x23e   :  { %v2198_v43 = vmul.f32 1.442695, %v2137_v27  ;;  %v926_v49 = vor.u32 1.1754944e-38, %v925_v41  ;;  %v2348_v16 = vsub.f32 1.0, %v2347_v59  ;;  %v4330_v51 = vpop.eup %2943  ;;  %v4334_v21 = vmul.f32 %v3588_v11, %v3665_v9 }
 0x23f   :  { %v922_v25 = vsel %vm4308_vm10, %v4013_v30, %v918_v55  ;;  %2484 = vst [vmem:[#allocation11 + $0x40] sm:$0xff] %v2452_v2  ;;  %2947 = vpow2.f32 %v2166_v38  ;;  %vm2352_vm13 = vweird.f32 %v4241_v33  ;;  %v2355_v18 = vand.u32 2147483647, %v4186_v39  ;;  %v2024_v58 = vpop.f32.mrf.mxu2 }
 0x240   :  { %v4340_v22 = vadd.f32 %v4330_v51, %v4325_v34  ;;  %2500 = vst [vmem:[#allocation11 + $0xc0] sm:$0xff] %v2468_v28  ;;  %2949 = vpow2.f32 %v2198_v43  ;;  %v927_v30 = vsel %vm4316_vm11, %v926_v49, %v922_v25  ;;  %v2349_v32 = vmul.f32 %v4241_v33, %v2348_v16  ;;  %vm4351_vm14 = vmor %vm2351_vm12, %vm2352_vm13 }
 0x241   :  { %1166 = vperm.xlu2 %2770, %v1028_v26   ;;  %v4347_v11 = vmul.f32 %v4118_v53, %v4056_v1  ;;  %2548 = vmatmul.f32.gmra.mxu2 %v2452_v2  ;;  %v998_v12 = vmul.f32 -0.5, %v927_v30  ;;  %vm4355_vm15 = vcmp.eq.f32.partialorder %v2355_v18, 8.507059e+37  ;;  %v2357_v15 = vand.u32 2147483648, %v4186_v39  ;;  %v4360_v17 = vpop.eup %2945 }
 0x242   :  { %2613 = vmatmul.f32.gmra.mxu3 %v2468_v28  ;;  %2951 = vrcp.f32 %v4340_v22  ;;  %v2350_v46 = vadd.f32 %v4241_v33, %v2349_v32  ;;  %v2106_v5 = vmax.f32 %v2021_v6, %v2086_v13  ;;  %v2361_v42 = vmul.f32 %v4261_v45, %v4214_v47  ;;  %v2089_v10 = vpop.f32.mrf.mxu3 }
 0x243   :  { %v4366_v57 = vmul.f32 %v998_v12, %v927_v30  ;;  %v2358_v23 = vor.u32 1.1754944e-38, %v2357_v15  ;;  %vm2365_vm0 = vweird.f32 %v4214_v47  ;;  %vm2366_vm1 = vweird.f32 %v4261_v45 }
 0x244   :  { %v2354_v39 = vsel %vm4351_vm14, %v4241_v33, %v2350_v46  ;;  %v2122_v60 = vsub.f32 %v2021_v6, %v2106_v5  ;;  %v2138_v54 = vsub.f32 %v2086_v13, %v2106_v5  ;;  %v2362_v35 = vsub.f32 1.0, %v2361_v42  ;;  %vm4398_vm3 = vmor %vm2365_vm0, %vm2366_vm1  ;;  %v4419_v5 = vpop.permute.xlu0 %1141 }
 0x245   :  { %v4373_v7 = vpop.eup %2947  ;;  %v2359_v27 = vsel %vm4355_vm15, %v2358_v23, %v2354_v39  ;;  %v2369_v55 = vand.u32 2147483647, %v4214_v47  ;;  %v2371_v31 = vand.u32 2147483648, %v4214_v47  ;;  %v2107_v41 = vmax.f32 %v2024_v58, %v2089_v10 }
 0x246   :  { %v4379_v62 = vpop.eup %2949  ;;  %v2453_v63 = vmul.f32 %v4139_v40, %v2359_v27  ;;  %v2469_v59 = vmul.f32 %v4157_v20, %v2359_v27  ;;  %v2168_v33 = vmul.f32 1.442695, %v2122_v60  ;;  %v2200_v6 = vmul.f32 1.442695, %v2138_v54  ;;  %v4973_v54 = vld [vmem:[#allocation33_spill] sm:$0xff] }
 0x247   :  { %v4385_v13 = vadd.f32 %v4379_v62, %v4373_v7  ;;  %v2363_v2 = vmul.f32 %v4261_v45, %v2362_v35  ;;  %vm4388_vm2 = vcmp.eq.f32.partialorder %v2369_v55, 8.507059e+37  ;;  %v2372_v38 = vor.u32 1.1754944e-38, %v2371_v31 }
 0x248   :  { %v4392_v43 = vpop.eup %2951  ;;  %2485 = vst [vmem:[#allocation11 + $0x48] sm:$0xff] %v2453_v63  ;;  %2953 = vpow2.f32 %v2168_v33  ;;  %v2123_v40 = vsub.f32 %v2024_v58, %v2107_v41  ;;  %v2139_v25 = vsub.f32 %v2089_v10, %v2107_v41  ;;  %v2375_v49 = vmul.f32 %v4360_v17, %v4271_v0 }
 0x249   :  { %2955 = vrcp.f32 %v4385_v13  ;;  %2551 = vmatmul.f32.gmra.mxu2 %v2453_v63  ;;  %2501 = vst [vmem:[#allocation11 + $0xc8] sm:$0xff] %v2469_v59  ;;  %v2364_v16 = vadd.f32 %v4261_v45, %v2363_v2  ;;  %vm2379_vm5 = vweird.f32 %v4271_v0  ;;  %vm2380_vm6 = vweird.f32 %v4360_v17 }
 0x24a   :  { %2616 = vmatmul.f32.gmra.mxu3 %v2469_v59  ;;  %2957 = vpow2.f32 %v2200_v6  ;;  %v2170_v47 = vmul.f32 1.442695, %v2123_v40  ;;  %v2202_v18 = vmul.f32 1.442695, %v2139_v25  ;;  %v2376_v30 = vsub.f32 1.0, %v2375_v49  ;;  %vm4427_vm8 = vmor %vm2379_vm5, %vm2380_vm6  ;;  %v4977_v25 = vld [vmem:[#allocation23_spill] sm:$0xff] }
 0x24b   :  { %v2368_v32 = vsel %vm4398_vm3, %v4261_v45, %v2364_v16  ;;  %v2383_v12 = vand.u32 2147483647, %v4271_v0  ;;  %v2385_v26 = vand.u32 2147483648, %v4271_v0  ;;  %v2389_v14 = vmul.f32 %v4392_v43, %v4340_v22 }
 0x24c   :  { %v2373_v15 = vsel %vm4388_vm2, %v2372_v38, %v2368_v32  ;;  %2959 = vpow2.f32 %v2170_v47  ;;  %v2377_v46 = vmul.f32 %v4360_v17, %v2376_v30  ;;  %vm2393_vm7 = vweird.f32 %v4340_v22 }
 0x24d   :  { %v2454_v42 = vmul.f32 %v4189_v52, %v2373_v15  ;;  %v2470_v45 = vmul.f32 %v4196_v24, %v2373_v15  ;;  %2961 = vpow2.f32 %v2202_v18  ;;  %vm4431_vm9 = vcmp.eq.f32.partialorder %v2383_v12, 8.507059e+37 }
 0x24e   :  { %v4435_v10 = vpop.eup %2953  ;;  %v2378_v39 = vadd.f32 %v4360_v17, %v2377_v46  ;;  %v2386_v52 = vor.u32 1.1754944e-38, %v2385_v26  ;;  %v2390_v60 = vsub.f32 1.0, %v2389_v14  ;;  %vm2394_vm10 = vweird.f32 %v4392_v43 }
 0x24f   :  { %v4439_v24 = vpop.eup %2955  ;;  %v470_v0 = vmul.f32 %v4973_v54, %v4973_v54  ;;  %2486 = vst [vmem:[#allocation11 + $0x50] sm:$0xff] %v2454_v42  ;;  %v2397_v35 = vand.u32 2147483647, %v4340_v22  ;;  %v2399_v27 = vand.u32 2147483648, %v4340_v22  ;;  %v1254_v31 = vmul.f32 1.442695, %v4334_v21  ;;  %vm4467_vm11 = vmor %vm2393_vm7, %vm2394_vm10 }
 0x250   :  { %v4445_v55 = vpop.eup %2957  ;;  %v4974_v41 = vsub.s32 %v3921_v44, %v3346_v56  ;;  %2502 = vst [vmem:[#allocation11 + $0xd0] sm:$0xff] %v2470_v45  ;;  %v2382_v59 = vsel %vm4427_vm8, %v4360_v17, %v2378_v39  ;;  %v2391_v33 = vmul.f32 %v4392_v43, %v2390_v60  ;;  %v944_v6 = vsub.f32 1.0, %v4347_v11  ;;  %v4473_v11 = vpop.permute.xlu2 %1136 }
 0x251   :  { %1176 = vperm.xlu1 %2769, %v4366_v57   ;;  %v4459_v2 = vadd.f32 %v4445_v55, %v4435_v10  ;;  %2554 = vmatmul.f32.gmra.mxu2 %v2454_v42  ;;  %v2387_v44 = vsel %vm4431_vm9, %v2386_v52, %v2382_v59  ;;  %v2400_v17 = vor.u32 1.1754944e-38, %v2399_v27  ;;  %vm2398_vm12 = vcmp.eq.f32.partialorder %v2397_v35, 8.507059e+37 }
 0x252   :  { %v456_v63 = vcvt.s32.f32 %v4974_v41  ;;  %2619 = vmatmul.f32.gmra.mxu3 %v2470_v45  ;;  %v4471_v57 = vpop.eup %2959  ;;  %v2455_v28 = vmul.f32 %v4252_v36, %v2387_v44  ;;  %v2471_v38 = vmul.f32 %v4256_v3, %v2387_v44  ;;  %v2392_v20 = vadd.f32 %v4392_v43, %v2391_v33  ;;  %v4978_v45 = vld [vmem:[#allocation30_spill] sm:$0xff] }
 0x253   :  { %v4478_v40 = vpop.eup %2961  ;;  %v4482_v22 = vsel %vm473_vm4, %v470_v0, 3e+38  ;;  %v4485_v49 = vadd.f32 1e-08, %v4977_v25  ;;  %2963 = vrcp.f32 %v4459_v2  ;;  %v2403_v16 = vmul.f32 %v4439_v24, %v4385_v13 }
 0x254   :  { %2965 = vpow2.f32 %v1254_v31  ;;  %v472_v36 = vmul.f32 %v456_v63, %v456_v63  ;;  %v4492_v3 = vadd.f32 %v4478_v40, %v4471_v57  ;;  %2487 = vst [vmem:[#allocation11 + $0x58] sm:$0xff] %v2455_v28  ;;  %v2396_v47 = vsel %vm4467_vm11, %v4392_v43, %v2392_v20 }
 0x255   :  { %2503 = vst [vmem:[#allocation11 + $0xd8] sm:$0xff] %v2471_v38  ;;  %v2401_v30 = vsel %vm2398_vm12, %v2400_v17, %v2396_v47  ;;  %v2404_v32 = vsub.f32 1.0, %v2403_v16  ;;  %vm2407_vm13 = vweird.f32 %v4385_v13  ;;  %vm2408_vm14 = vweird.f32 %v4439_v24 }
 0x256   :  { %v1307_v18 = vpop.xlane.xlu0 %1306  ;;  %v2456_v26 = vmul.f32 %v4325_v34, %v2401_v30  ;;  %v2472_v14 = vmul.f32 %v4330_v51, %v2401_v30  ;;  %v945_v15 = vmul.f32 %v4118_v53, %v944_v6  ;;  %2967 = vrcp.f32 %v4485_v49  ;;  %vm4515_vm1 = vmor %vm2407_vm13, %vm2408_vm14 }
 0x257   :  { %v4499_v12 = vmax.f32 %v1307_v18, 1e-30  ;;  %v2405_v43 = vmul.f32 %v4439_v24, %v2404_v32  ;;  %v2411_v46 = vand.u32 2147483647, %v4385_v13  ;;  %v2413_v42 = vand.u32 2147483648, %v4385_v13 }
 0x258   :  { %v1207_v23 = vmul.f32 %v4978_v45, %v4482_v22  ;;  %2488 = vst [vmem:[#allocation11 + $0x60] sm:$0xff] %v2456_v26  ;;  %vm947_vm15 = vweird.f32 %v4056_v1  ;;  %vm948_vm0 = vweird.f32 %v4118_v53  ;;  %v946_v54 = vadd.f32 %v4118_v53, %v945_v15 }
 0x259   :  { %2969 = vrcp.f32 %v4499_v12  ;;  %v2964_v51 = vpop.eup %2963  ;;  %2557 = vmatmul.f32.gmra.mxu2 %v2455_v28  ;;  %2504 = vst [vmem:[#allocation11 + $0xe0] sm:$0xff] %v2472_v14  ;;  %v2406_v58 = vadd.f32 %v4439_v24, %v2405_v43  ;;  %vm2412_vm2 = vcmp.eq.f32.partialorder %v2411_v46, 8.507059e+37  ;;  %v2414_v39 = vor.u32 1.1754944e-38, %v2413_v42  ;;  %vm4542_vm6 = vmor %vm947_vm15, %vm948_vm0  ;;  %v4989_v43 = vld [vmem:[#allocation31_spill] sm:$0xff] }
 0x25a   :  { %2971 = vrcp.f32 %v4492_v3  ;;  %2622 = vmatmul.f32.gmra.mxu3 %v2471_v38  ;;  %v4521_v52 = vpop.eup %2965  ;;  %v951_v13 = vand.u32 2147483647, %v4056_v1  ;;  %v953_v0 = vand.u32 2147483648, %v4056_v1  ;;  %v2417_v35 = vmul.f32 %v2964_v51, %v4459_v2  ;;  %v4557_v1 = vpop.permute.xlu1 %1146 }
 0x25b   :  { %v1305_v60 = vpop.xlane.xlu2 %1304  ;;  %v2410_v31 = vsel %vm4515_vm1, %v4439_v24, %v2406_v58  ;;  %vm2421_vm3 = vweird.f32 %v4459_v2  ;;  %vm2422_vm5 = vweird.f32 %v2964_v51  ;;  %v2425_v59 = vand.u32 2147483647, %v4459_v2 }
 0x25c   :  { %v4527_v27 = vmax.f32 %v1305_v60, 1e-30  ;;  %v2415_v41 = vsel %vm2412_vm2, %v2414_v39, %v2410_v31  ;;  %v2418_v63 = vsub.f32 1.0, %v2417_v35  ;;  %v2427_v33 = vand.u32 2147483648, %v4459_v2  ;;  %v4535_v6 = vpop.eup %2967  ;;  %vm4567_vm8 = vmor %vm2421_vm3, %vm2422_vm5 }
 0x25d   :  { %v1252_v44 = vmul.f32 1.442695, %v1207_v23  ;;  %v2457_v17 = vmul.f32 %v4373_v7, %v2415_v41  ;;  %v4549_v28 = vmul.f32 %v4379_v62, %v2415_v41  ;;  %v4555_v25 = vsel %vm473_vm4, %v472_v36, 3e+38 }
 0x25e   :  { %2973 = vrcp.f32 %v4527_v27  ;;  %v2419_v38 = vmul.f32 %v2964_v51, %v2418_v63  ;;  %vm4560_vm7 = vcmp.eq.f32.partialorder %v951_v13, 8.507059e+37  ;;  %v954_v18 = vor.u32 1.1754944e-38, %v953_v0 }
 0x25f   :  { %v2970_v21 = vpop.eup %2969  ;;  %1318 = vadd.xlane.f32.xlu0 %v4521_v52  ;;  %v950_v56 = vsel %vm4542_vm6, %v4118_v53, %v946_v54  ;;  %2489 = vst [vmem:[#allocation11 + $0x68] sm:$0xff] %v2457_v17  ;;  %vm4574_vm4 = vcmp.eq.f32.partialorder %v2425_v59, 8.507059e+37  ;;  %v2428_v30 = vor.u32 1.1754944e-38, %v2427_v33  ;;  %2975 = vpow2.f32 %v1252_v44 }
 0x260   :  { %v4551_v20 = vpop.eup %2971  ;;  %v1499_v16 = vmul.f32 %v2970_v21, %v4499_v12  ;;  %v2420_v62 = vadd.f32 %v2964_v51, %v2419_v38  ;;  %v1507_v15 = vand.u32 2147483647, %v4499_v12  ;;  %v1509_v2 = vand.u32 2147483648, %v4499_v12  ;;  %2505 = vst [vmem:[#allocation11 + $0xe8] sm:$0xff] %v4549_v28 }
 0x261   :  { %2560 = vmatmul.f32.gmra.mxu2 %v2456_v26  ;;  %v1209_v53 = vmul.f32 %v4989_v43, %v4555_v25  ;;  %v929_v46 = vmul.f32 %v4535_v6, %v4485_v49  ;;  %v2431_v45 = vmul.f32 %v4551_v20, %v4492_v3  ;;  %vm1504_vm9 = vweird.f32 %v2970_v21 }
 0x262   :  { %v1500_v32 = vsub.f32 1.0, %v1499_v16  ;;  %2625 = vmatmul.f32.gmra.mxu3 %v2472_v14  ;;  %v2424_v42 = vsel %vm4567_vm8, %v2964_v51, %v2420_v62  ;;  %v955_v26 = vsel %vm4560_vm7, %v954_v18, %v950_v56  ;;  %vm1503_vm10 = vweird.f32 %v4499_v12  ;;  %v4992_v16 = vld [vmem:[#allocation24_spill] sm:$0xff] }
 0x263   :  { %v2429_v14 = vsel %vm4574_vm4, %v2428_v30, %v2424_v42  ;;  %vm4601_vm11 = vcmp.eq.f32.partialorder %v1507_v15, 8.507059e+37  ;;  %v1510_v13 = vor.u32 1.1754944e-38, %v1509_v2  ;;  %v1493_v0 = vand.u32 2147483647, %v4527_v27  ;;  %vm1505_vm12 = vmor %vm1503_vm10, %vm1504_vm9 }
 0x264   :  { %v2974_v23 = vpop.eup %2973  ;;  %v1501_v34 = vmul.f32 %v2970_v21, %v1500_v32  ;;  %v4596_v39 = vmul.f32 %v4435_v10, %v2429_v14  ;;  %v4599_v51 = vmul.f32 %v4445_v55, %v2429_v14  ;;  %v1495_v12 = vand.u32 2147483648, %v4527_v27 }
 0x265   :  { %v1485_v58 = vmul.f32 %v2974_v23, %v4527_v27  ;;  %v2432_v31 = vsub.f32 1.0, %v2431_v45  ;;  %vm2435_vm13 = vweird.f32 %v4492_v3  ;;  %v4609_v10 = vpop.eup %2975  ;;  %vm1490_vm14 = vweird.f32 %v2974_v23 }
 0x266   :  { %v1502_v60 = vadd.f32 %v2970_v21, %v1501_v34  ;;  %2490 = vst [vmem:[#allocation11 + $0x70] sm:$0xff] %v4596_v39  ;;  %vm2436_vm15 = vweird.f32 %v4551_v20  ;;  %v2439_v63 = vand.u32 2147483647, %v4492_v3  ;;  %v2441_v24 = vand.u32 2147483648, %v4492_v3 }
 0x267   :  { %v1486_v35 = vsub.f32 1.0, %v1485_v58  ;;  %2506 = vst [vmem:[#allocation11 + $0xf0] sm:$0xff] %v4599_v51  ;;  %v930_v38 = vsub.f32 1.0, %v929_v46  ;;  %v4620_v47 = vadd.f32 1e-08, %v4992_v16  ;;  %v2433_v18 = vmul.f32 %v4551_v20, %v2432_v31  ;;  %vm4632_vm1 = vmor %vm2435_vm13, %vm2436_vm15 }
 0x268   :  { %v1506_v55 = vsel %vm1505_vm12, %v2970_v21, %v1502_v60  ;;  %v1309_v41 = vpop.xlane.xlu1 %1308  ;;  %vm1489_vm0 = vweird.f32 %v4527_v27  ;;  %v1000_v56 = vmul.f32 -0.5, %v955_v26  ;;  %vm2440_vm3 = vcmp.eq.f32.partialorder %v2439_v63, 8.507059e+37 }
 0x269   :  { %v1511_v59 = vsel %vm4601_vm11, %v1510_v13, %v1506_v55  ;;  %v1487_v33 = vmul.f32 %v2974_v23, %v1486_v35  ;;  %v4616_v44 = vmax.f32 %v1309_v41, 1e-30  ;;  %2563 = vmatmul.f32.gmra.mxu2 %v2457_v17  ;;  %vm1491_vm2 = vmor %vm1489_vm0, %vm1490_vm14  ;;  %v2434_v17 = vadd.f32 %v4551_v20, %v2433_v18 }
 0x26a   :  { %v1842_v21 = vmul.f32 %v3640_v48, %v1511_v59  ;;  %1316 = vadd.xlane.f32.xlu2 %v4609_v10  ;;  %2628 = vmatmul.f32.gmra.mxu3 %v4549_v28  ;;  %v1496_v48 = vor.u32 1.1754944e-38, %v1495_v12  ;;  %vm1494_vm5 = vcmp.eq.f32.partialorder %v1493_v0, 8.507059e+37  ;;  %v2442_v36 = vor.u32 1.1754944e-38, %v2441_v24 }
 0x26b   :  { %v1488_v7 = vadd.f32 %v2974_v23, %v1487_v33  ;;  %2977 = vrcp.f32 %v4616_v44  ;;  %v1256_v30 = vmul.f32 1.442695, %v1209_v53  ;;  %v931_v32 = vmul.f32 %v4535_v6, %v930_v38 }
 0x26c   :  { %1874 = vst [vmem:[#allocation9 + $0x40] sm:$0xff] %v1842_v21  ;;  %v2438_v3 = vsel %vm4632_vm1, %v4551_v20, %v2434_v17  ;;  %2979 = vrcp.f32 %v4620_v47  ;;  %v1032_v2 = vmul.f32 %v1000_v56, %v955_v26  ;;  %vm933_vm6 = vweird.f32 %v4485_v49 }
 0x26d   :  { %v1492_v27 = vsel %vm1491_vm2, %v2974_v23, %v1488_v7  ;;  %v2443_v43 = vsel %vm2440_vm3, %v2442_v36, %v2438_v3  ;;  %vm934_vm7 = vweird.f32 %v4535_v6  ;;  %v937_v20 = vand.u32 2147483647, %v4485_v49  ;;  %v4997_v36 = vld [vmem:[#allocation17_spill] sm:$0xff]  ;;  %v1152_v3 = vpop.permute.xlu2 %1151 }
 0x26e   :  { %v1497_v28 = vsel %vm1494_vm5, %v1496_v48, %v1492_v27  ;;  %v2525_v46 = vpop.f32.mrf.mxu2  ;;  %v2459_v53 = vmul.f32 %v4471_v57, %v2443_v43  ;;  %v2475_v42 = vmul.f32 %v4478_v40, %v2443_v43  ;;  %v2590_v45 = vpop.f32.mrf.mxu3  ;;  %v939_v34 = vand.u32 2147483648, %v4485_v49  ;;  %vm4658_vm8 = vmor %vm933_vm6, %vm934_vm7 }
 0x26f   :  { %v1841_v15 = vmul.f32 %v3661_v29, %v1497_v28  ;;  %2638 = vst [vmem:[#allocation8] sm:$0xff] %v2525_v46  ;;  %v932_v26 = vadd.f32 %v4535_v6, %v931_v32  ;;  %2981 = vpow2.f32 %v1256_v30  ;;  %v1523_v58 = vand.u32 2147483648, %v4616_v44  ;;  %v4676_v48 = vpop.permute.xlu0 %1156 }
 0x270   :  { %2491 = vst [vmem:[#allocation11 + $0x78] sm:$0xff] %v2459_v53  ;;  %vm938_vm4 = vcmp.eq.f32.partialorder %v937_v20, 8.507059e+37  ;;  %vm1517_vm10 = vweird.f32 %v4616_v44  ;;  %vm961_vm13 = vweird.f32 %v4620_v47  ;;  %v967_v38 = vand.u32 2147483648, %v4620_v47  ;;  %v5000_v20 = vld [vmem:[#allocation34_spill] sm:$0xff] }
 0x271   :  { %v2978_v23 = vpop.eup %2977  ;;  %1873 = vst [vmem:[#allocation9 + $0x38] sm:$0xff] %v1841_v15  ;;  %2566 = vmatmul.f32.gmra.mxu2 %v4596_v39  ;;  %v940_v39 = vor.u32 1.1754944e-38, %v939_v34  ;;  %v936_v49 = vsel %vm4658_vm8, %v4535_v6, %v932_v26  ;;  %v1524_v0 = vor.u32 1.1754944e-38, %v1523_v58  ;;  %v965_v21 = vand.u32 2147483647, %v4620_v47  ;;  %v5001_v58 = vld [vmem:[#allocation26_spill] sm:$0xff] }
 0x272   :  { %v1513_v29 = vmul.f32 %v2978_v23, %v4616_v44  ;;  %2631 = vmatmul.f32.gmra.mxu3 %v4599_v51  ;;  %2507 = vst [vmem:[#allocation11 + $0xf8] sm:$0xff] %v2475_v42  ;;  %v2980_v14 = vpop.eup %2979  ;;  %vm1518_vm9 = vweird.f32 %v2978_v23  ;;  %v1521_v51 = vand.u32 2147483647, %v4616_v44  ;;  %v968_v56 = vor.u32 1.1754944e-38, %v967_v38 }
 0x273   :  { %1186 = vperm.xlu0 %2768, %v1032_v2   ;;  %2654 = vst [vmem:[#allocation8 + $0x80] sm:$0xff] %v2590_v45  ;;  %v957_v54 = vmul.f32 %v2980_v14, %v4620_v47  ;;  %vm1519_vm11 = vmor %vm1517_vm10, %vm1518_vm9  ;;  %v941_v35 = vsel %vm938_vm4, %v940_v39, %v936_v49  ;;  %vm962_vm14 = vweird.f32 %v2980_v14  ;;  %vm966_vm0 = vcmp.eq.f32.partialorder %v965_v21, 8.507059e+37 }
 0x274   :  { %v1514_v40 = vsub.f32 1.0, %v1513_v29  ;;  %vm1522_vm12 = vcmp.eq.f32.partialorder %v1521_v51, 8.507059e+37  ;;  %v999_v33 = vmul.f32 -0.5, %v941_v35  ;;  %vm963_vm15 = vmor %vm961_vm13, %vm962_vm14  ;;  %v1211_v30 = vmul.f32 %v3996_v37, %v4997_v36  ;;  %v4999_v37 = vld [vmem:[#allocation16_spill] sm:$0xff] }
 0x275   :  { %v4669_v55 = vpop.eup %2981  ;;  %v958_v6 = vsub.f32 1.0, %v957_v54  ;;  %v1210_v34 = vmul.f32 %v5000_v20, %v4999_v37  ;;  %v1217_v39 = vmul.f32 %v1152_v3, %v5001_v58  ;;  %v5008_v58 = vld [vmem:[#allocation20_spill] sm:$0xff] }
 0x276   :  { %v1515_v60 = vmul.f32 %v2978_v23, %v1514_v40  ;;  %v1031_v44 = vmul.f32 %v999_v33, %v941_v35  ;;  %v1260_v47 = vmul.f32 1.442695, %v1211_v30  ;;  %v5002_v35 = vld [vmem:[#allocation19_spill] sm:$0xff] }
 0x277   :  { %v2528_v12 = vpop.f32.mrf.mxu2  ;;  %v959_v24 = vmul.f32 %v2980_v14, %v958_v6  ;;  %v1272_v54 = vmul.f32 1.442695, %v1217_v39 }
 0x278   :  { %v1516_v13 = vadd.f32 %v2978_v23, %v1515_v60  ;;  %v2593_v31 = vpop.f32.mrf.mxu3  ;;  %2639 = vst [vmem:[#allocation8 + $0x8] sm:$0xff] %v2528_v12  ;;  %2983 = vpow2.f32 %v1260_v47  ;;  %v1258_v60 = vmul.f32 1.442695, %v1210_v34  ;;  %v1213_v12 = vmul.f32 %v4113_v19, %v5002_v35 }
 0x279   :  { %2569 = vmatmul.f32.gmra.mxu2 %v2459_v53  ;;  %2655 = vst [vmem:[#allocation8 + $0x88] sm:$0xff] %v2593_v31  ;;  %v960_v16 = vadd.f32 %v2980_v14, %v959_v24  ;;  %v4998_v53 = vld [vmem:[#allocation21_spill] sm:$0xff] }
 0x27a   :  { %v1520_v41 = vsel %vm1519_vm11, %v2978_v23, %v1516_v13  ;;  %2634 = vmatmul.f32.gmra.mxu3 %v2475_v42  ;;  %v1214_v42 = vmul.f32 %v4473_v11, %v4998_v53  ;;  %v1264_v21 = vmul.f32 1.442695, %v1213_v12 }
 0x27b   :  { %v1525_v63 = vsel %vm1522_vm12, %v1524_v0, %v1520_v41  ;;  %1320 = vadd.xlane.f32.xlu1 %v4669_v55 }
 0x27c   :  { %v1843_v59 = vmul.f32 %v3744_v8, %v1525_v63  ;;  %v964_v8 = vsel %vm963_vm15, %v2980_v14, %v960_v16  ;;  %v1266_v45 = vmul.f32 1.442695, %v1214_v42 }
 0x27d   :  { %v969_v62 = vsel %vm966_vm0, %v968_v56, %v964_v8 }
 0x27e   :  { %1875 = vst [vmem:[#allocation9 + $0x48] sm:$0xff] %v1843_v59  ;;  %v1001_v28 = vmul.f32 -0.5, %v969_v62  ;;  %v4682_v23 = vpop.eup %2983 }
 0x280   :  { %v1033_v32 = vmul.f32 %v1001_v28, %v969_v62  ;;  %v1162_v31 = vpop.permute.xlu1 %1161  ;;  %v5004_v28 = vld [vmem:[#allocation22_spill] sm:$0xff] }
 0x281   :  { %v1216_v47 = vmul.f32 %v4557_v1, %v5004_v28 }
 0x282   :  { %1181 = vperm.xlu2 %2770, %v1031_v44   ;;  %v5003_v44 = vld [vmem:[#allocation29_spill] sm:$0xff] }
 0x283   :  { %v2531_v18 = vpop.f32.mrf.mxu2  ;;  %v1270_v37 = vmul.f32 1.442695, %v1216_v47 }
 0x284   :  { %2640 = vst [vmem:[#allocation8 + $0x10] sm:$0xff] %v2531_v18  ;;  %v2596_v7 = vpop.f32.mrf.mxu3 }
 0x285   :  { %2656 = vst [vmem:[#allocation8 + $0x90] sm:$0xff] %v2596_v7 }
 0x28b   :  { %v2534_v17 = vpop.f32.mrf.mxu2 }
 0x28c   :  { %2641 = vst [vmem:[#allocation8 + $0x18] sm:$0xff] %v2534_v17  ;;  %v2599_v27 = vpop.f32.mrf.mxu3 }
 0x28d   :  { %2657 = vst [vmem:[#allocation8 + $0x98] sm:$0xff] %v2599_v27 }
 0x293   :  { %v2537_v2 = vpop.f32.mrf.mxu2 }
 0x294   :  { %v1313_v15 = vpop.xlane.xlu0 %1312  ;;  %1191 = vperm.xlu1 %2769, %v1033_v32   ;;  %2642 = vst [vmem:[#allocation8 + $0x20] sm:$0xff] %v2537_v2  ;;  %v2602_v46 = vpop.f32.mrf.mxu3 }
 0x295   :  { %v1365_v43 = vmax.f32 %v1313_v15, 1e-30  ;;  %2658 = vst [vmem:[#allocation8 + $0xa0] sm:$0xff] %v2602_v46  ;;  %v5006_v46 = vld [vmem:[#allocation35_spill] sm:$0xff] }
 0x297   :  { %2985 = vrcp.f32 %v1365_v43  ;;  %v1551_v49 = vand.u32 2147483648, %v1365_v43  ;;  %v1549_v0 = vand.u32 2147483647, %v1365_v43  ;;  %vm1545_vm2 = vweird.f32 %v1365_v43 }
 0x298   :  { %2987 = vpow2.f32 %v1266_v45 }
 0x299   :  { %v1552_v33 = vor.u32 1.1754944e-38, %v1551_v49  ;;  %vm1550_vm5 = vcmp.eq.f32.partialorder %v1549_v0, 8.507059e+37 }
 0x29b   :  { %v2540_v26 = vpop.f32.mrf.mxu2 }
 0x29c   :  { %v1311_v29 = vpop.xlane.xlu2 %1310  ;;  %2643 = vst [vmem:[#allocation8 + $0x28] sm:$0xff] %v2540_v26  ;;  %v2605_v14 = vpop.f32.mrf.mxu3 }
 0x29d   :  { %v2986_v57 = vpop.eup %2985  ;;  %v1364_v40 = vmax.f32 %v1311_v29, 1e-30  ;;  %1324 = vadd.xlane.f32.xlu0 %v4682_v23  ;;  %2659 = vst [vmem:[#allocation8 + $0xa8] sm:$0xff] %v2605_v14 }
 0x29e   :  { %v1541_v11 = vmul.f32 %v2986_v57, %v1365_v43  ;;  %vm1546_vm1 = vweird.f32 %v2986_v57  ;;  %v4690_v41 = vpop.eup %2987  ;;  %v5005_v43 = vld [vmem:[#allocation18_spill] sm:$0xff] }
 0x29f   :  { %2989 = vrcp.f32 %v1364_v40  ;;  %vm1547_vm3 = vmor %vm1545_vm2, %vm1546_vm1  ;;  %v1537_v56 = vand.u32 2147483648, %v1364_v40  ;;  %v1535_v27 = vand.u32 2147483647, %v1364_v40  ;;  %vm1531_vm7 = vweird.f32 %v1364_v40 }
 0x2a0   :  { %v1542_v51 = vsub.f32 1.0, %v1541_v11  ;;  %2991 = vpow2.f32 %v1258_v60  ;;  %v1212_v53 = vmul.f32 %v5006_v46, %v5005_v43 }
 0x2a1   :  { %2993 = vpow2.f32 %v1272_v54  ;;  %v1538_v3 = vor.u32 1.1754944e-38, %v1537_v56  ;;  %vm1536_vm4 = vcmp.eq.f32.partialorder %v1535_v27, 8.507059e+37 }
 0x2a2   :  { %v1543_v13 = vmul.f32 %v2986_v57, %v1542_v51  ;;  %2995 = vpow2.f32 %v1264_v21  ;;  %v1262_v29 = vmul.f32 1.442695, %v1212_v53 }
 0x2a4   :  { %v1544_v63 = vadd.f32 %v2986_v57, %v1543_v13  ;;  %v1167_v6 = vpop.permute.xlu2 %1166 }
 0x2a5   :  { %v2990_v59 = vpop.eup %2989  ;;  %v1220_v24 = vmul.f32 %v1167_v6, %v5003_v44  ;;  %1330 = vadd.xlane.f32.xlu0 %v4690_v41 }
 0x2a6   :  { %v1548_v38 = vsel %vm1547_vm3, %v2986_v57, %v1544_v63  ;;  %v1527_v16 = vmul.f32 %v2990_v59, %v1364_v40  ;;  %v4695_v62 = vpop.eup %2991  ;;  %vm1532_vm6 = vweird.f32 %v2990_v59  ;;  %v5007_v57 = vld [vmem:[#allocation28_spill] sm:$0xff] }
 0x2a7   :  { %v1553_v19 = vsel %vm1550_vm5, %v1552_v33, %v1548_v38  ;;  %v1278_v8 = vmul.f32 1.442695, %v1220_v24  ;;  %v4698_v30 = vpop.eup %2993  ;;  %vm1533_vm8 = vmor %vm1531_vm7, %vm1532_vm6  ;;  %v1219_v40 = vmul.f32 %v1162_v31, %v5007_v57  ;;  %v1172_v21 = vpop.permute.xlu0 %1171 }
 0x2a8   :  { %v1845_v18 = vmul.f32 %v3732_v50, %v1553_v19  ;;  %v1528_v7 = vsub.f32 1.0, %v1527_v16  ;;  %v4706_v20 = vpop.eup %2995  ;;  %v5010_v19 = vld [vmem:[#allocation32_spill] sm:$0xff] }
 0x2a9   :  { %2997 = vpow2.f32 %v1278_v8  ;;  %v1276_v11 = vmul.f32 1.442695, %v1219_v40 }
 0x2aa   :  { %1877 = vst [vmem:[#allocation9 + $0x58] sm:$0xff] %v1845_v18  ;;  %v1529_v17 = vmul.f32 %v2990_v59, %v1528_v7 }
 0x2ab   :  { %v1315_v36 = vpop.xlane.xlu1 %1314  ;;  %1322 = vadd.xlane.f32.xlu2 %v4695_v62 }
 0x2ac   :  { %v1530_v32 = vadd.f32 %v2990_v59, %v1529_v17  ;;  %v1366_v50 = vmax.f32 %v1315_v36, 1e-30  ;;  %v2543_v2 = vpop.f32.mrf.mxu2 }
 0x2ad   :  { %1336 = vadd.xlane.f32.xlu0 %v4698_v30  ;;  %2644 = vst [vmem:[#allocation8 + $0x30] sm:$0xff] %v2543_v2  ;;  %v2608_v45 = vpop.f32.mrf.mxu3 }
 0x2ae   :  { %v1534_v15 = vsel %vm1533_vm8, %v2990_v59, %v1530_v32  ;;  %2999 = vrcp.f32 %v1366_v50  ;;  %2660 = vst [vmem:[#allocation8 + $0xb0] sm:$0xff] %v2608_v45  ;;  %v1565_v60 = vand.u32 2147483648, %v1366_v50  ;;  %v1563_v49 = vand.u32 2147483647, %v1366_v50  ;;  %v5009_v59 = vld [vmem:[#allocation25_spill] sm:$0xff] }
 0x2af   :  { %v1539_v42 = vsel %vm1536_vm4, %v1538_v3, %v1534_v15  ;;  %v4708_v34 = vpop.eup %2997  ;;  %3001 = vpow2.f32 %v1270_v37  ;;  %vm1559_vm10 = vweird.f32 %v1366_v50  ;;  %v1218_v33 = vmul.f32 %v4676_v48, %v5009_v59 }
 0x2b0   :  { %v1844_v1 = vmul.f32 %v4022_v4, %v1539_v42  ;;  %3003 = vpow2.f32 %v1262_v29  ;;  %v1215_v4 = vmul.f32 %v4419_v5, %v5008_v58  ;;  %v1566_v35 = vor.u32 1.1754944e-38, %v1565_v60 }
 0x2b1   :  { %3005 = vpow2.f32 %v1276_v11  ;;  %vm1564_vm12 = vcmp.eq.f32.partialorder %v1563_v49, 8.507059e+37  ;;  %v1274_v38 = vmul.f32 1.442695, %v1218_v33 }
 0x2b2   :  { %1876 = vst [vmem:[#allocation9 + $0x50] sm:$0xff] %v1844_v1  ;;  %v1268_v13 = vmul.f32 1.442695, %v1215_v4 }
 0x2b3   :  { %1328 = vadd.xlane.f32.xlu2 %v4706_v20 }
 0x2b4   :  { %v3000_v26 = vpop.eup %2999  ;;  %3007 = vpow2.f32 %v1268_v13 }
 0x2b5   :  { %v1555_v14 = vmul.f32 %v3000_v26, %v1366_v50  ;;  %1342 = vadd.xlane.f32.xlu0 %v4708_v34  ;;  %vm1560_vm9 = vweird.f32 %v3000_v26  ;;  %v4715_v54 = vpop.eup %3001  ;;  %3009 = vpow2.f32 %v1274_v38 }
 0x2b6   :  { %vm1561_vm11 = vmor %vm1559_vm10, %vm1560_vm9  ;;  %v4718_v12 = vpop.eup %3003 }
 0x2b7   :  { %v1556_v39 = vsub.f32 1.0, %v1555_v14  ;;  %v4724_v24 = vpop.eup %3005 }
 0x2b9   :  { %v1557_v51 = vmul.f32 %v3000_v26, %v1556_v39 }
 0x2ba   :  { %v4728_v7 = vpop.eup %3007 }
 0x2bb   :  { %v1558_v0 = vadd.f32 %v3000_v26, %v1557_v51  ;;  %1334 = vadd.xlane.f32.xlu2 %v4715_v54  ;;  %v4732_v36 = vpop.eup %3009 }
 0x2bc   :  { %v2546_v5 = vpop.f32.mrf.mxu2  ;;  %v2611_v63 = vpop.f32.mrf.mxu3 }
 0x2bd   :  { %v1562_v31 = vsel %vm1561_vm11, %v3000_v26, %v1558_v0  ;;  %2645 = vst [vmem:[#allocation8 + $0x38] sm:$0xff] %v2546_v5 }
 0x2be   :  { %v1567_v6 = vsel %vm1564_vm12, %v1566_v35, %v1562_v31  ;;  %1326 = vadd.xlane.f32.xlu1 %v4718_v12  ;;  %2661 = vst [vmem:[#allocation8 + $0xb8] sm:$0xff] %v2611_v63 }
 0x2bf   :  { %v1846_v44 = vmul.f32 %v4111_v61, %v1567_v6  ;;  %v5011_v61 = vld [vmem:[#allocation27_spill] sm:$0xff] }
 0x2c0   :  { %v1221_v48 = vmul.f32 %v1172_v21, %v5011_v61 }
 0x2c1   :  { %1878 = vst [vmem:[#allocation9 + $0x60] sm:$0xff] %v1846_v44 }
 0x2c2   :  { %v1280_v27 = vmul.f32 1.442695, %v1221_v48 }
 0x2c3   :  { %v1177_v16 = vpop.permute.xlu1 %1176  ;;  %1340 = vadd.xlane.f32.xlu2 %v4724_v24 }
 0x2c4   :  { %v1222_v18 = vmul.f32 %v1177_v16, %v5010_v19  ;;  %v2549_v56 = vpop.f32.mrf.mxu2 }
 0x2c5   :  { %v2614_v8 = vpop.f32.mrf.mxu3  ;;  %2646 = vst [vmem:[#allocation8 + $0x40] sm:$0xff] %v2549_v56 }
 0x2c6   :  { %v1282_v17 = vmul.f32 1.442695, %v1222_v18  ;;  %1332 = vadd.xlane.f32.xlu1 %v4728_v7  ;;  %2662 = vst [vmem:[#allocation8 + $0xc0] sm:$0xff] %v2614_v8 }
 0x2c8   :  { %3011 = vpow2.f32 %v1282_v17 }
 0x2c9   :  { %3013 = vpow2.f32 %v1280_v27 }
 0x2cc   :  { %v2552_v28 = vpop.f32.mrf.mxu2 }
 0x2cd   :  { %v2617_v47 = vpop.f32.mrf.mxu3  ;;  %2647 = vst [vmem:[#allocation8 + $0x48] sm:$0xff] %v2552_v28 }
 0x2ce   :  { %v4734_v32 = vpop.eup %3011  ;;  %1338 = vadd.xlane.f32.xlu1 %v4732_v36  ;;  %2663 = vst [vmem:[#allocation8 + $0xc8] sm:$0xff] %v2617_v47 }
 0x2cf   :  { %1346 = vadd.xlane.f32.xlu2 %v4734_v32  ;;  %v4738_v15 = vpop.eup %3013 }
 0x2d2   :  { %v1319_v50 = vpop.xlane.xlu0 %1318 }
 0x2d3   :  { %v1368_v3 = vmax.f32 %v1319_v50, 1e-30 }
 0x2d4   :  { %v2555_v2 = vpop.f32.mrf.mxu2 }
 0x2d5   :  { %3015 = vrcp.f32 %v1368_v3  ;;  %v2620_v43 = vpop.f32.mrf.mxu3  ;;  %2648 = vst [vmem:[#allocation8 + $0x50] sm:$0xff] %v2555_v2  ;;  %v1593_v26 = vand.u32 2147483648, %v1368_v3  ;;  %v1591_v40 = vand.u32 2147483647, %v1368_v3  ;;  %vm1587_vm14 = vweird.f32 %v1368_v3 }
 0x2d6   :  { %1344 = vadd.xlane.f32.xlu1 %v4738_v15  ;;  %2664 = vst [vmem:[#allocation8 + $0xd0] sm:$0xff] %v2620_v43 }
 0x2d7   :  { %v1594_v58 = vor.u32 1.1754944e-38, %v1593_v26  ;;  %vm1592_vm0 = vcmp.eq.f32.partialorder %v1591_v40, 8.507059e+37 }
 0x2db   :  { %v3016_v46 = vpop.eup %3015 }
 0x2dc   :  { %v1583_v53 = vmul.f32 %v3016_v46, %v1368_v3  ;;  %v2558_v45 = vpop.f32.mrf.mxu2  ;;  %vm1588_vm13 = vweird.f32 %v3016_v46 }
 0x2dd   :  { %v1317_v42 = vpop.xlane.xlu2 %1316  ;;  %2649 = vst [vmem:[#allocation8 + $0x58] sm:$0xff] %v2558_v45  ;;  %v2623_v29 = vpop.f32.mrf.mxu3  ;;  %vm1589_vm15 = vmor %vm1587_vm14, %vm1588_vm13 }
 0x2de   :  { %v1584_v37 = vsub.f32 1.0, %v1583_v53  ;;  %v1367_v1 = vmax.f32 %v1317_v42, 1e-30  ;;  %2665 = vst [vmem:[#allocation8 + $0xd8] sm:$0xff] %v2623_v29 }
 0x2e0   :  { %v1585_v57 = vmul.f32 %v3016_v46, %v1584_v37  ;;  %3017 = vrcp.f32 %v1367_v1  ;;  %v1579_v33 = vand.u32 2147483648, %v1367_v1  ;;  %v1577_v38 = vand.u32 2147483647, %v1367_v1 }
 0x2e1   :  { %vm1573_vm2 = vweird.f32 %v1367_v1 }
 0x2e2   :  { %v1586_v14 = vadd.f32 %v3016_v46, %v1585_v57  ;;  %vm1578_vm5 = vcmp.eq.f32.partialorder %v1577_v38, 8.507059e+37 }
 0x2e4   :  { %v1590_v4 = vsel %vm1589_vm15, %v3016_v46, %v1586_v14  ;;  %v2561_v35 = vpop.f32.mrf.mxu2 }
 0x2e5   :  { %v1595_v39 = vsel %vm1592_vm0, %v1594_v58, %v1590_v4  ;;  %v1182_v11 = vpop.permute.xlu2 %1181  ;;  %v1187_v60 = vpop.permute.xlu0 %1186  ;;  %2650 = vst [vmem:[#allocation8 + $0x60] sm:$0xff] %v2561_v35 }
 0x2e6   :  { %v3018_v51 = vpop.eup %3017  ;;  %v1848_v49 = vmul.f32 %v4521_v52, %v1595_v39  ;;  %v1223_v13 = vmul.f32 %v1182_v11, %v4482_v22  ;;  %v1224_v0 = vmul.f32 %v1187_v60, %v3665_v9  ;;  %v2626_v31 = vpop.f32.mrf.mxu3  ;;  %v1580_v22 = vor.u32 1.1754944e-38, %v1579_v33 }
 0x2e7   :  { %v1569_v5 = vmul.f32 %v3018_v51, %v1367_v1  ;;  %2666 = vst [vmem:[#allocation8 + $0xe0] sm:$0xff] %v2626_v31  ;;  %vm1574_vm1 = vweird.f32 %v3018_v51 }
 0x2e8   :  { %1880 = vst [vmem:[#allocation9 + $0x70] sm:$0xff] %v1848_v49  ;;  %v1284_v63 = vmul.f32 1.442695, %v1223_v13  ;;  %v1286_v6 = vmul.f32 1.442695, %v1224_v0  ;;  %vm1575_vm3 = vmor %vm1573_vm2, %vm1574_vm1 }
 0x2e9   :  { %v1570_v59 = vsub.f32 1.0, %v1569_v5 }
 0x2ea   :  { %3019 = vpow2.f32 %v1284_v63 }
 0x2eb   :  { %v1571_v44 = vmul.f32 %v3018_v51, %v1570_v59  ;;  %3021 = vpow2.f32 %v1286_v6 }
 0x2ec   :  { %v2564_v16 = vpop.f32.mrf.mxu2 }
 0x2ed   :  { %v1572_v52 = vadd.f32 %v3018_v51, %v1571_v44  ;;  %2651 = vst [vmem:[#allocation8 + $0x68] sm:$0xff] %v2564_v16 }
 0x2ee   :  { %v1321_v9 = vpop.xlane.xlu1 %1320  ;;  %v2629_v18 = vpop.f32.mrf.mxu3 }
 0x2ef   :  { %v1576_v21 = vsel %vm1575_vm3, %v3018_v51, %v1572_v52  ;;  %v1369_v19 = vmax.f32 %v1321_v9, 1e-30  ;;  %2667 = vst [vmem:[#allocation8 + $0xe8] sm:$0xff] %v2629_v18 }
 0x2f0   :  { %v4744_v56 = vpop.eup %3019  ;;  %v1581_v8 = vsel %vm1578_vm5, %v1580_v22, %v1576_v21 }
 0x2f1   :  { %v4746_v17 = vpop.eup %3021  ;;  %v1847_v61 = vmul.f32 %v4609_v10, %v1581_v8  ;;  %3023 = vrcp.f32 %v1369_v19  ;;  %1348 = vadd.xlane.f32.xlu0 %v4744_v56  ;;  %v1607_v3 = vand.u32 2147483648, %v1369_v19  ;;  %v1605_v43 = vand.u32 2147483647, %v1369_v19 }
 0x2f2   :  { %1350 = vadd.xlane.f32.xlu1 %v4746_v17  ;;  %vm1601_vm7 = vweird.f32 %v1369_v19 }
 0x2f3   :  { %1879 = vst [vmem:[#allocation9 + $0x68] sm:$0xff] %v1847_v61  ;;  %v1608_v53 = vor.u32 1.1754944e-38, %v1607_v3  ;;  %vm1606_vm4 = vcmp.eq.f32.partialorder %v1605_v43, 8.507059e+37 }
 0x2f4   :  { %v2567_v48 = vpop.f32.mrf.mxu2 }
 0x2f5   :  { %2652 = vst [vmem:[#allocation8 + $0x70] sm:$0xff] %v2567_v48 }
 0x2f6   :  { %v2632_v28 = vpop.f32.mrf.mxu3 }
 0x2f7   :  { %v3024_v27 = vpop.eup %3023  ;;  %2668 = vst [vmem:[#allocation8 + $0xf0] sm:$0xff] %v2632_v28 }
 0x2f8   :  { %v1597_v47 = vmul.f32 %v3024_v27, %v1369_v19  ;;  %vm1602_vm6 = vweird.f32 %v3024_v27 }
 0x2f9   :  { %vm1603_vm8 = vmor %vm1601_vm7, %vm1602_vm6 }
 0x2fa   :  { %v1598_v50 = vsub.f32 1.0, %v1597_v47 }
 0x2fc   :  { %v1599_v2 = vmul.f32 %v3024_v27, %v1598_v50  ;;  %v2570_v10 = vpop.f32.mrf.mxu2 }
 0x2fd   :  { %2653 = vst [vmem:[#allocation8 + $0x78] sm:$0xff] %v2570_v10 }
 0x2fe   :  { %v1600_v46 = vadd.f32 %v3024_v27, %v1599_v2  ;;  %v2635_v42 = vpop.f32.mrf.mxu3 }
 0x2ff   :  { %2669 = vst [vmem:[#allocation8 + $0xf8] sm:$0xff] %v2635_v42 }
 0x300   :  { %v1604_v45 = vsel %vm1603_vm8, %v3024_v27, %v1600_v46  ;;  %2682 = dma.vmem_to_hbm [thread:$0]  %s2675_s10, 4096, %s2677_s13, [#allocation4], %s3215_s30, %s3215_s30, %s3216_s6  }
 0x301   :  { %v1609_v37 = vsel %vm1606_vm4, %v1608_v53, %v1604_v45 }
 0x302   :  { %v1849_v1 = vmul.f32 %v4669_v55, %v1609_v37 }
 0x304   :  { %1881 = vst [vmem:[#allocation9 + $0x78] sm:$0xff] %v1849_v1 }
 0x306   :  { %v1192_v29 = vpop.permute.xlu1 %1191 }
 0x307   :  { %v1225_v26 = vmul.f32 %v1192_v29, %v4555_v25 }
 0x309   :  { %v1288_v57 = vmul.f32 1.442695, %v1225_v26 }
 0x30b   :  { %3025 = vpow2.f32 %v1288_v57 }
 0x310   :  { %v1325_v40 = vpop.xlane.xlu0 %1324 }
 0x311   :  { %v4753_v14 = vpop.eup %3025  ;;  %v1371_v58 = vmax.f32 %v1325_v40, 1e-30 }
 0x312   :  { %1352 = vadd.xlane.f32.xlu2 %v4753_v14 }
 0x313   :  { %3027 = vrcp.f32 %v1371_v58  ;;  %v1635_v55 = vand.u32 2147483648, %v1371_v58  ;;  %v1633_v13 = vand.u32 2147483647, %v1371_v58  ;;  %vm1629_vm10 = vweird.f32 %v1371_v58 }
 0x315   :  { %v1636_v63 = vor.u32 1.1754944e-38, %v1635_v55  ;;  %vm1634_vm12 = vcmp.eq.f32.partialorder %v1633_v13, 8.507059e+37 }
 0x318   :  { %v1331_v4 = vpop.xlane.xlu0 %1330 }
 0x319   :  { %v3028_v39 = vpop.eup %3027  ;;  %v1374_v11 = vmax.f32 %v1331_v4, 1e-30 }
 0x31a   :  { %v1625_v60 = vmul.f32 %v3028_v39, %v1371_v58  ;;  %vm1630_vm9 = vweird.f32 %v3028_v39 }
 0x31b   :  { %3029 = vrcp.f32 %v1374_v11  ;;  %vm1631_vm11 = vmor %vm1629_vm10, %vm1630_vm9  ;;  %v1677_v22 = vand.u32 2147483648, %v1374_v11  ;;  %v1675_v16 = vand.u32 2147483647, %v1374_v11  ;;  %vm1671_vm14 = vweird.f32 %v1374_v11 }
 0x31c   :  { %v1626_v51 = vsub.f32 1.0, %v1625_v60 }
 0x31d   :  { %v1678_v27 = vor.u32 1.1754944e-38, %v1677_v22  ;;  %vm1676_vm0 = vcmp.eq.f32.partialorder %v1675_v16, 8.507059e+37 }
 0x31e   :  { %v1627_v49 = vmul.f32 %v3028_v39, %v1626_v51  ;;  %v1323_v25 = vpop.xlane.xlu2 %1322 }
 0x31f   :  { %v1370_v0 = vmax.f32 %v1323_v25, 1e-30 }
 0x320   :  { %v1628_v35 = vadd.f32 %v3028_v39, %v1627_v49  ;;  %v1337_v31 = vpop.xlane.xlu0 %1336 }
 0x321   :  { %v3030_v5 = vpop.eup %3029  ;;  %3031 = vrcp.f32 %v1370_v0  ;;  %v1377_v33 = vmax.f32 %v1337_v31, 1e-30  ;;  %v1619_v2 = vand.u32 2147483647, %v1370_v0  ;;  %v1621_v43 = vand.u32 2147483648, %v1370_v0 }
 0x322   :  { %v1632_v6 = vsel %vm1631_vm11, %v3028_v39, %v1628_v35  ;;  %v1667_v59 = vmul.f32 %v3030_v5, %v1374_v11  ;;  %vm1672_vm13 = vweird.f32 %v3030_v5  ;;  %vm1615_vm2 = vweird.f32 %v1370_v0 }
 0x323   :  { %v1637_v44 = vsel %vm1634_vm12, %v1636_v63, %v1632_v6  ;;  %3033 = vrcp.f32 %v1377_v33  ;;  %vm1673_vm15 = vmor %vm1671_vm14, %vm1672_vm13  ;;  %v1717_v37 = vand.u32 2147483647, %v1377_v33  ;;  %v1719_v1 = vand.u32 2147483648, %v1377_v33 }
 0x324   :  { %v1851_v38 = vmul.f32 %v4682_v23, %v1637_v44  ;;  %v1668_v52 = vsub.f32 1.0, %v1667_v59  ;;  %v1622_v57 = vor.u32 1.1754944e-38, %v1621_v43  ;;  %vm1620_vm6 = vcmp.eq.f32.partialorder %v1619_v2, 8.507059e+37 }
 0x325   :  { %vm1713_vm7 = vweird.f32 %v1377_v33  ;;  %vm1718_vm4 = vcmp.eq.f32.partialorder %v1717_v37, 8.507059e+37  ;;  %v1720_v49 = vor.u32 1.1754944e-38, %v1719_v1 }
 0x326   :  { %1883 = vst [vmem:[#allocation9 + $0x88] sm:$0xff] %v1851_v38  ;;  %v1669_v9 = vmul.f32 %v3030_v5, %v1668_v52  ;;  %v1329_v21 = vpop.xlane.xlu2 %1328 }
 0x327   :  { %v3032_v19 = vpop.eup %3031  ;;  %v4763_v18 = vmax.f32 %v1329_v21, 1e-30 }
 0x328   :  { %v1670_v8 = vadd.f32 %v3030_v5, %v1669_v9  ;;  %v1611_v61 = vmul.f32 %v3032_v19, %v1370_v0  ;;  %v1343_v48 = vpop.xlane.xlu0 %1342  ;;  %vm1616_vm1 = vweird.f32 %v3032_v19 }
 0x329   :  { %3035 = vrcp.f32 %v4763_v18  ;;  %v3034_v23 = vpop.eup %3033  ;;  %v4766_v50 = vmax.f32 %v1343_v48, 1e-30  ;;  %vm1617_vm3 = vmor %vm1615_vm2, %vm1616_vm1  ;;  %v1663_v0 = vand.u32 2147483648, %v4763_v18  ;;  %v1661_v6 = vand.u32 2147483647, %v4763_v18 }
 0x32a   :  { %v1674_v28 = vsel %vm1673_vm15, %v3030_v5, %v1670_v8  ;;  %v1612_v47 = vsub.f32 1.0, %v1611_v61  ;;  %v1709_v46 = vmul.f32 %v3034_v23, %v1377_v33  ;;  %vm1714_vm5 = vweird.f32 %v3034_v23 }
 0x32b   :  { %v1679_v3 = vsel %vm1676_vm0, %v1678_v27, %v1674_v28  ;;  %3037 = vrcp.f32 %v4766_v50  ;;  %vm1715_vm8 = vmor %vm1713_vm7, %vm1714_vm5  ;;  %vm1657_vm10 = vweird.f32 %v4763_v18  ;;  %v1759_v44 = vand.u32 2147483647, %v4766_v50 }
 0x32c   :  { %v1854_v10 = vmul.f32 %v4690_v41, %v1679_v3  ;;  %v1613_v53 = vmul.f32 %v3032_v19, %v1612_v47  ;;  %v1710_v42 = vsub.f32 1.0, %v1709_v46  ;;  %v1761_v38 = vand.u32 2147483648, %v4766_v50 }
 0x32d   :  { %v1664_v9 = vor.u32 1.1754944e-38, %v1663_v0  ;;  %vm1662_vm13 = vcmp.eq.f32.partialorder %v1661_v6, 8.507059e+37  ;;  %vm1755_vm14 = vweird.f32 %v4766_v50  ;;  %vm1760_vm0 = vcmp.eq.f32.partialorder %v1759_v44, 8.507059e+37 }
 0x32e   :  { %1886 = vst [vmem:[#allocation9 + $0xa0] sm:$0xff] %v1854_v10  ;;  %v1614_v45 = vadd.f32 %v3032_v19, %v1613_v53  ;;  %v1335_v29 = vpop.xlane.xlu2 %1334  ;;  %v1711_v40 = vmul.f32 %v3034_v23, %v1710_v42  ;;  %v1762_v27 = vor.u32 1.1754944e-38, %v1761_v38 }
 0x32f   :  { %v3036_v26 = vpop.eup %3035  ;;  %v4770_v58 = vmax.f32 %v1335_v29, 1e-30 }
 0x330   :  { %v1618_v4 = vsel %vm1617_vm3, %v3032_v19, %v1614_v45  ;;  %v1653_v41 = vmul.f32 %v3036_v26, %v4763_v18  ;;  %v1712_v11 = vadd.f32 %v3034_v23, %v1711_v40  ;;  %vm1658_vm9 = vweird.f32 %v3036_v26 }
 0x331   :  { %v1623_v39 = vsel %vm1620_vm6, %v1622_v57, %v1618_v4  ;;  %3039 = vrcp.f32 %v4770_v58  ;;  %v1327_v60 = vpop.xlane.xlu1 %1326  ;;  %v3038_v51 = vpop.eup %3037  ;;  %vm1659_vm11 = vmor %vm1657_vm10, %vm1658_vm9  ;;  %v1703_v3 = vand.u32 2147483647, %v4770_v58  ;;  %v1705_v2 = vand.u32 2147483648, %v4770_v58 }
 0x332   :  { %v1850_v55 = vmul.f32 %v4695_v62, %v1623_v39  ;;  %v1654_v13 = vsub.f32 1.0, %v1653_v41  ;;  %v1716_v25 = vsel %vm1715_vm8, %v3034_v23, %v1712_v11  ;;  %v1751_v35 = vmul.f32 %v3038_v51, %v4766_v50 }
 0x333   :  { %v4777_v31 = vmax.f32 %v1327_v60, 1e-30  ;;  %v1721_v5 = vsel %vm1718_vm4, %v1720_v49, %v1716_v25  ;;  %vm1756_vm12 = vweird.f32 %v3038_v51  ;;  %vm1699_vm2 = vweird.f32 %v4770_v58 }
 0x334   :  { %1882 = vst [vmem:[#allocation9 + $0x80] sm:$0xff] %v1850_v55  ;;  %v1655_v63 = vmul.f32 %v3036_v26, %v1654_v13  ;;  %v1857_v59 = vmul.f32 %v4698_v30, %v1721_v5  ;;  %v1752_v62 = vsub.f32 1.0, %v1751_v35  ;;  %vm1757_vm15 = vmor %vm1755_vm14, %vm1756_vm12  ;;  %vm1704_vm5 = vcmp.eq.f32.partialorder %v1703_v3, 8.507059e+37 }
 0x335   :  { %3041 = vrcp.f32 %v4777_v31  ;;  %v1647_v53 = vand.u32 2147483647, %v4777_v31  ;;  %v1706_v1 = vor.u32 1.1754944e-38, %v1705_v2  ;;  %v1649_v29 = vand.u32 2147483648, %v4777_v31 }
 0x336   :  { %v1656_v33 = vadd.f32 %v3036_v26, %v1655_v63  ;;  %v1341_v52 = vpop.xlane.xlu2 %1340  ;;  %1889 = vst [vmem:[#allocation9 + $0xb8] sm:$0xff] %v1857_v59  ;;  %v1753_v16 = vmul.f32 %v3038_v51, %v1752_v62  ;;  %vm1643_vm7 = vweird.f32 %v4777_v31 }
 0x337   :  { %v3040_v22 = vpop.eup %3039  ;;  %v4785_v21 = vmax.f32 %v1341_v52, 1e-30  ;;  %vm4803_vm8 = vcmp.eq.f32.partialorder %v1647_v53, 8.507059e+37  ;;  %v1650_v49 = vor.u32 1.1754944e-38, %v1649_v29 }
 0x338   :  { %v1660_v30 = vsel %vm1659_vm11, %v3036_v26, %v1656_v33  ;;  %v1695_v19 = vmul.f32 %v3040_v22, %v4770_v58  ;;  %v1754_v61 = vadd.f32 %v3038_v51, %v1753_v16  ;;  %vm1700_vm1 = vweird.f32 %v3040_v22 }
 0x339   :  { %v1665_v8 = vsel %vm1662_vm13, %v1664_v9, %v1660_v30  ;;  %3043 = vrcp.f32 %v4785_v21  ;;  %v1333_v18 = vpop.xlane.xlu1 %1332  ;;  %vm1701_vm3 = vmor %vm1699_vm2, %vm1700_vm1  ;;  %v1745_v13 = vand.u32 2147483647, %v4785_v21  ;;  %v1747_v25 = vand.u32 2147483648, %v4785_v21 }
 0x33a   :  { %v1853_v48 = vmul.f32 %v4706_v20, %v1665_v8  ;;  %v1696_v23 = vsub.f32 1.0, %v1695_v19  ;;  %v1758_v47 = vsel %vm1757_vm15, %v3038_v51, %v1754_v61  ;;  %v4793_v43 = vmax.f32 %v1333_v18, 1e-30 }
 0x33b   :  { %v3042_v28 = vpop.eup %3041  ;;  %v1763_v46 = vsel %vm1760_vm0, %v1762_v27, %v1758_v47  ;;  %vm1741_vm10 = vweird.f32 %v4785_v21  ;;  %vm1746_vm12 = vcmp.eq.f32.partialorder %v1745_v13, 8.507059e+37  ;;  %v1748_v62 = vor.u32 1.1754944e-38, %v1747_v25 }
 0x33c   :  { %1885 = vst [vmem:[#allocation9 + $0x98] sm:$0xff] %v1853_v48  ;;  %v1697_v50 = vmul.f32 %v3040_v22, %v1696_v23  ;;  %v1639_v10 = vmul.f32 %v3042_v28, %v4777_v31  ;;  %v1860_v20 = vmul.f32 %v4708_v34, %v1763_v46  ;;  %3045 = vrcp.f32 %v4793_v43 }
 0x33d   :  { %vm1644_vm6 = vweird.f32 %v3042_v28  ;;  %v1691_v33 = vand.u32 2147483648, %v4793_v43  ;;  %v1689_v52 = vand.u32 2147483647, %v4793_v43  ;;  %vm1685_vm14 = vweird.f32 %v4793_v43 }
 0x33e   :  { %v1698_v42 = vadd.f32 %v3040_v22, %v1697_v50  ;;  %v1640_v45 = vsub.f32 1.0, %v1639_v10  ;;  %1892 = vst [vmem:[#allocation9 + $0xd0] sm:$0xff] %v1860_v20  ;;  %vm1645_vm4 = vmor %vm1643_vm7, %vm1644_vm6 }
 0x33f   :  { %v3044_v37 = vpop.eup %3043  ;;  %v1692_v19 = vor.u32 1.1754944e-38, %v1691_v33  ;;  %vm1690_vm0 = vcmp.eq.f32.partialorder %v1689_v52, 8.507059e+37 }
 0x340   :  { %v1702_v26 = vsel %vm1701_vm3, %v3040_v22, %v1698_v42  ;;  %v1641_v57 = vmul.f32 %v3042_v28, %v1640_v45  ;;  %v1737_v34 = vmul.f32 %v3044_v37, %v4785_v21  ;;  %vm1742_vm9 = vweird.f32 %v3044_v37 }
 0x341   :  { %v1707_v40 = vsel %vm1704_vm5, %v1706_v1, %v1702_v26  ;;  %v1339_v58 = vpop.xlane.xlu1 %1338  ;;  %vm1743_vm11 = vmor %vm1741_vm10, %vm1742_vm9 }
 0x342   :  { %v1856_v41 = vmul.f32 %v4715_v54, %v1707_v40  ;;  %v1642_v39 = vadd.f32 %v3042_v28, %v1641_v57  ;;  %v1738_v11 = vsub.f32 1.0, %v1737_v34  ;;  %v4808_v60 = vmax.f32 %v1339_v58, 1e-30  ;;  %v1347_v51 = vpop.xlane.xlu2 %1346  ;;  %v3046_v55 = vpop.eup %3045 }
 0x343   :  { %v4812_v0 = vmax.f32 %v1347_v51, 1e-30  ;;  %v1681_v54 = vmul.f32 %v3046_v55, %v4793_v43  ;;  %vm1686_vm13 = vweird.f32 %v3046_v55 }
 0x344   :  { %1888 = vst [vmem:[#allocation9 + $0xb0] sm:$0xff] %v1856_v41  ;;  %v1646_v35 = vsel %vm1645_vm4, %v3042_v28, %v1642_v39  ;;  %v1739_v31 = vmul.f32 %v3044_v37, %v1738_v11  ;;  %3047 = vrcp.f32 %v4808_v60  ;;  %vm1687_vm15 = vmor %vm1685_vm14, %vm1686_vm13  ;;  %v1733_v28 = vand.u32 2147483648, %v4808_v60 }
 0x345   :  { %v1651_v5 = vsel %vm4803_vm8, %v1650_v49, %v1646_v35  ;;  %v1682_v59 = vsub.f32 1.0, %v1681_v54  ;;  %3049 = vrcp.f32 %v4812_v0  ;;  %v1731_v3 = vand.u32 2147483647, %v4808_v60 }
 0x346   :  { %v1852_v63 = vmul.f32 %v4718_v12, %v1651_v5  ;;  %v1740_v6 = vadd.f32 %v3044_v37, %v1739_v31  ;;  %vm1727_vm2 = vweird.f32 %v4808_v60  ;;  %v1789_v43 = vand.u32 2147483648, %v4812_v0 }
 0x347   :  { %v1683_v38 = vmul.f32 %v3046_v55, %v1682_v59  ;;  %v1734_v20 = vor.u32 1.1754944e-38, %v1733_v28  ;;  %vm1732_vm6 = vcmp.eq.f32.partialorder %v1731_v3, 8.507059e+37  ;;  %vm1783_vm7 = vweird.f32 %v4812_v0 }
 0x348   :  { %1884 = vst [vmem:[#allocation9 + $0x90] sm:$0xff] %v1852_v63  ;;  %v1744_v44 = vsel %vm1743_vm11, %v3044_v37, %v1740_v6  ;;  %v1790_v1 = vor.u32 1.1754944e-38, %v1789_v43 }
 0x349   :  { %v1749_v22 = vsel %vm1746_vm12, %v1748_v62, %v1744_v44  ;;  %v1345_v9 = vpop.xlane.xlu1 %1344  ;;  %v1684_v16 = vadd.f32 %v3046_v55, %v1683_v38 }
 0x34a   :  { %v1859_v12 = vmul.f32 %v4724_v24, %v1749_v22  ;;  %v1381_v21 = vmax.f32 %v1345_v9, 1e-30  ;;  %v3048_v30 = vpop.eup %3047 }
 0x34b   :  { %v1688_v8 = vsel %vm1687_vm15, %v3046_v55, %v1684_v16  ;;  %v1723_v61 = vmul.f32 %v3048_v30, %v4808_v60  ;;  %v3050_v18 = vpop.eup %3049  ;;  %vm1728_vm1 = vweird.f32 %v3048_v30 }
 0x34c   :  { %1891 = vst [vmem:[#allocation9 + $0xc8] sm:$0xff] %v1859_v12  ;;  %3051 = vrcp.f32 %v1381_v21  ;;  %v1693_v48 = vsel %vm1690_vm0, %v1692_v19, %v1688_v8  ;;  %v1779_v24 = vmul.f32 %v3050_v18, %v4812_v0  ;;  %vm1784_vm3 = vweird.f32 %v3050_v18  ;;  %vm1729_vm5 = vmor %vm1727_vm2, %vm1728_vm1 }
 0x34d   :  { %v1855_v27 = vmul.f32 %v4728_v7, %v1693_v48  ;;  %v1724_v23 = vsub.f32 1.0, %v1723_v61  ;;  %v1787_v7 = vand.u32 2147483647, %v4812_v0  ;;  %vm1785_vm8 = vmor %vm1783_vm7, %vm1784_vm3  ;;  %v1775_v34 = vand.u32 2147483648, %v1381_v21 }
 0x34e   :  { %v1780_v2 = vsub.f32 1.0, %v1779_v24  ;;  %v1773_v58 = vand.u32 2147483647, %v1381_v21  ;;  %vm1769_vm10 = vweird.f32 %v1381_v21 }
 0x34f   :  { %1887 = vst [vmem:[#allocation9 + $0xa8] sm:$0xff] %v1855_v27  ;;  %v1725_v47 = vmul.f32 %v3048_v30, %v1724_v23  ;;  %vm1788_vm4 = vcmp.eq.f32.partialorder %v1787_v7, 8.507059e+37  ;;  %v1776_v11 = vor.u32 1.1754944e-38, %v1775_v34 }
 0x350   :  { %v1781_v10 = vmul.f32 %v3050_v18, %v1780_v2  ;;  %vm1774_vm12 = vcmp.eq.f32.partialorder %v1773_v58, 8.507059e+37 }
 0x351   :  { %v1726_v50 = vadd.f32 %v3048_v30, %v1725_v47 }
 0x352   :  { %v3052_v46 = vpop.eup %3051  ;;  %v1782_v45 = vadd.f32 %v3050_v18, %v1781_v10 }
 0x353   :  { %v1765_v53 = vmul.f32 %v3052_v46, %v1381_v21  ;;  %v1730_v42 = vsel %vm1729_vm5, %v3048_v30, %v1726_v50  ;;  %vm1770_vm9 = vweird.f32 %v3052_v46 }
 0x354   :  { %v1735_v37 = vsel %vm1732_vm6, %v1734_v20, %v1730_v42  ;;  %v1786_v57 = vsel %vm1785_vm8, %v3050_v18, %v1782_v45  ;;  %vm1771_vm11 = vmor %vm1769_vm10, %vm1770_vm9 }
 0x355   :  { %v1766_v29 = vsub.f32 1.0, %v1765_v53  ;;  %v1858_v26 = vmul.f32 %v4732_v36, %v1735_v37  ;;  %v1791_v40 = vsel %vm1788_vm4, %v1790_v1, %v1786_v57 }
 0x356   :  { %v1862_v41 = vmul.f32 %v4734_v32, %v1791_v40 }
 0x357   :  { %v1767_v4 = vmul.f32 %v3052_v46, %v1766_v29  ;;  %1890 = vst [vmem:[#allocation9 + $0xc0] sm:$0xff] %v1858_v26 }
 0x358   :  { %1894 = vst [vmem:[#allocation9 + $0xe0] sm:$0xff] %v1862_v41 }
 0x359   :  { %v1768_v39 = vadd.f32 %v3052_v46, %v1767_v4 }
 0x35b   :  { %v1772_v60 = vsel %vm1771_vm11, %v3052_v46, %v1768_v39 }
 0x35c   :  { %v1777_v51 = vsel %vm1774_vm12, %v1776_v11, %v1772_v60 }
 0x35d   :  { %v1861_v36 = vmul.f32 %v4738_v15, %v1777_v51 }
 0x35f   :  { %1893 = vst [vmem:[#allocation9 + $0xd8] sm:$0xff] %v1861_v36 }
 0x364   :  { %v1349_v55 = vpop.xlane.xlu0 %1348 }
 0x365   :  { %v1383_v49 = vmax.f32 %v1349_v55, 1e-30  ;;  %v1351_v13 = vpop.xlane.xlu1 %1350 }
 0x366   :  { %v1384_v25 = vmax.f32 %v1351_v13, 1e-30 }
 0x367   :  { %3053 = vrcp.f32 %v1383_v49  ;;  %v1803_v5 = vand.u32 2147483648, %v1383_v49  ;;  %v1801_v59 = vand.u32 2147483647, %v1383_v49  ;;  %vm1797_vm15 = vweird.f32 %v1383_v49 }
 0x368   :  { %3055 = vrcp.f32 %v1384_v25  ;;  %v1817_v62 = vand.u32 2147483648, %v1384_v25  ;;  %v1815_v15 = vand.u32 2147483647, %v1384_v25  ;;  %vm1811_vm1 = vweird.f32 %v1384_v25 }
 0x369   :  { %v1804_v38 = vor.u32 1.1754944e-38, %v1803_v5  ;;  %vm1802_vm2 = vcmp.eq.f32.partialorder %v1801_v59, 8.507059e+37 }
 0x36a   :  { %v1818_v9 = vor.u32 1.1754944e-38, %v1817_v62  ;;  %vm1816_vm5 = vcmp.eq.f32.partialorder %v1815_v15, 8.507059e+37 }
 0x36d   :  { %v3054_v0 = vpop.eup %3053 }
 0x36e   :  { %v3056_v35 = vpop.eup %3055  ;;  %v1793_v32 = vmul.f32 %v3054_v0, %v1383_v49  ;;  %vm1798_vm13 = vweird.f32 %v3054_v0 }
 0x36f   :  { %v1807_v31 = vmul.f32 %v3056_v35, %v1384_v25  ;;  %vm1812_vm14 = vweird.f32 %v3056_v35  ;;  %vm1799_vm0 = vmor %vm1797_vm15, %vm1798_vm13 }
 0x370   :  { %v1794_v54 = vsub.f32 1.0, %v1793_v32  ;;  %vm1813_vm3 = vmor %vm1811_vm1, %vm1812_vm14 }
 0x371   :  { %v1808_v63 = vsub.f32 1.0, %v1807_v31 }
 0x372   :  { %v1795_v6 = vmul.f32 %v3054_v0, %v1794_v54 }
 0x373   :  { %v1809_v33 = vmul.f32 %v3056_v35, %v1808_v63 }
 0x374   :  { %v1796_v44 = vadd.f32 %v3054_v0, %v1795_v6 }
 0x375   :  { %v1810_v52 = vadd.f32 %v3056_v35, %v1809_v33 }
 0x376   :  { %v1800_v22 = vsel %vm1799_vm0, %v3054_v0, %v1796_v44 }
 0x377   :  { %v1805_v12 = vsel %vm1802_vm2, %v1804_v38, %v1800_v22  ;;  %v1814_v16 = vsel %vm1813_vm3, %v3056_v35, %v1810_v52 }
 0x378   :  { %v1863_v21 = vmul.f32 %v4744_v56, %v1805_v12  ;;  %v1819_v30 = vsel %vm1816_vm5, %v1818_v9, %v1814_v16 }
 0x379   :  { %v1864_v19 = vmul.f32 %v4746_v17, %v1819_v30 }
 0x37a   :  { %1895 = vst [vmem:[#allocation9 + $0xe8] sm:$0xff] %v1863_v21 }
 0x37b   :  { %1896 = vst [vmem:[#allocation9 + $0xf0] sm:$0xff] %v1864_v19 }
 0x385   :  { %v1353_v8 = vpop.xlane.xlu2 %1352 }
 0x386   :  { %v1385_v61 = vmax.f32 %v1353_v8, 1e-30 }
 0x388   :  { %3057 = vrcp.f32 %v1385_v61  ;;  %v1831_v23 = vand.u32 2147483648, %v1385_v61  ;;  %v1829_v28 = vand.u32 2147483647, %v1385_v61  ;;  %vm1825_vm7 = vweird.f32 %v1385_v61 }
 0x38a   :  { %v1832_v3 = vor.u32 1.1754944e-38, %v1831_v23  ;;  %vm1830_vm4 = vcmp.eq.f32.partialorder %v1829_v28, 8.507059e+37 }
 0x38e   :  { %v3058_v18 = vpop.eup %3057 }
 0x38f   :  { %v1821_v48 = vmul.f32 %v3058_v18, %v1385_v61  ;;  %vm1826_vm6 = vweird.f32 %v3058_v18 }
 0x390   :  { %vm1827_vm8 = vmor %vm1825_vm7, %vm1826_vm6 }
 0x391   :  { %v1822_v27 = vsub.f32 1.0, %v1821_v48 }
 0x393   :  { %v1823_v24 = vmul.f32 %v3058_v18, %v1822_v27 }
 0x395   :  { %v1824_v47 = vadd.f32 %v3058_v18, %v1823_v24 }
 0x397   :  { %v1828_v56 = vsel %vm1827_vm8, %v3058_v18, %v1824_v47 }
 0x398   :  { %v1833_v17 = vsel %vm1830_vm4, %v1832_v3, %v1828_v56 }
 0x399   :  { %v1865_v2 = vmul.f32 %v4753_v14, %v1833_v17 }
 0x39b   :  { %1897 = vst [vmem:[#allocation9 + $0xf8] sm:$0xff] %v1865_v2 }
 0x39c   :  { %2695 = dma.vmem_to_hbm [thread:$0]  %s2688_s14, 4096, %s2690_s17, [#allocation10], %s3215_s30, %s3215_s30, %s3216_s6  }
 0x39d   :  { %2708 = dma.vmem_to_hbm [thread:$0]  %s2701_s19, 4096, %s2703_s22, [#allocation10], %s3215_s30, %s3215_s30, %s3216_s6  }
 0x39e   :  { %3207 = dma.done.wait [#allocation4], 4096  }
 0x39f   :  { %3208 = vsyncadd [#allocation4], 4294963200 }
 0x3a0   :  { %3209 = dma.done.wait [#allocation10], 8192  }
 0x3a1   :  { %3210 = vsyncadd [#allocation10], 4294959104 }
 0x3a2   :  { %2721 = vsyncpa [#allocation3], 1 }
 0x3a3   :  { %2722 = vsyncpa [#allocation6], 1 }
 0x3a4   :  { %2723 = vsyncpa [#allocation4], 1 }
 0x3a5   :  { %2724 = vsyncpa [#allocation10], 1 }

// kernel: tpu_custom_call.1
= control target key start
LH: loop header
LB: loop body
LE: loop exit
PB: predicated region body
PF: predicated region fallthrough
CT: control target
= control target key end

     0   :  { %11 = vsyncpa [#allocation3], 0  ;;  %s4852_s0 = inlined_call_operand.hbm [shape: f32[2,128,128], index: 0, kind: input, shape index: {}]   ;;  %s4853_s1 = inlined_call_operand.hbm [shape: f32[128,256], index: 1, kind: input, shape index: {}]   ;;  %s4854_s2 = inlined_call_operand.hbm [shape: f32[2,128,256], index: 2, kind: input, shape index: {}]   ;;  %s4855_s3 = inlined_call_operand.hbm [shape: f32[2,128,128], index: 3, kind: output, shape index: {0}]   ;;  %s4856_s4 = inlined_call_operand.hbm [shape: f32[2,128,128], index: 4, kind: output, shape index: {1}]   ;;  %s4857_s5 = inlined_call_operand.hbm [shape: f32[2,128,128], index: 5, kind: output, shape index: {2}]  }
   0x1   :  { %12 = vsyncpa [#allocation6], 0 }
   0x2   :  { %13 = vsyncpa [#allocation4], 0  ;;  %s32_s20 = sshll.u32 %s4853_s1, 4  ;;  %s33_s20 = int_to_ptr.hbm [resolvable:$true] %s32_s20 }
   0x3   :  { %14 = vsyncpa [#allocation10], 0  ;;  %s3211_s21 = smov [#allocation5]   ;;  %s19_s25 = sshll.u32 %s4852_s0, 4  ;;  %s20_s25 = int_to_ptr.hbm [resolvable:$true] %s19_s25 }
   0x4   :  { %s34_s22 = sshll.u32 %s3211_s21, 4  ;;  %s3212_s26 = smov 256   ;;  %s35_s22 = int_to_ptr.vmem [resolvable:$true] %s34_s22 }
   0x5   :  { %s3213_s27 = smov 16   ;;  %s3214_s28 = smov [#allocation2]  }
   0x6   :  { %40 = dma.hbm_to_vmem [thread:$0]  %s33_s20, 4096, %s35_s22, [#allocation6], %s3212_s26, %s3212_s26, %s3213_s27  }
   0x7   :  { %s21_s29 = sshll.u32 %s3214_s28, 4  ;;  %s3215_s30 = smov 128   ;;  %s22_s29 = int_to_ptr.vmem [resolvable:$true] %s21_s29 }
   0x8   :  { %s3216_s6 = smov 8   ;;  %s45_s8 = sshll.u32 %s4854_s2, 4  ;;  %s46_s8 = int_to_ptr.hbm [resolvable:$true] %s45_s8 }
   0x9   :  { %27 = dma.hbm_to_vmem [thread:$0]  %s20_s25, 4096, %s22_s29, [#allocation3], %s3215_s30, %s3215_s30, %s3216_s6  }
   0xa   :  { %s3217_s9 = smov [#allocation7]  }
   0xb   :  { %s47_s0 = sshll.u32 %s3217_s9, 4  ;;  %s48_s0 = int_to_ptr.vmem [resolvable:$true] %s47_s0 }
   0xc   :  { %53 = dma.hbm_to_vmem [thread:$0]  %s46_s8, 8192, %s48_s0, [#allocation6], %s3212_s26, %s3212_s26, %s3213_s27  }
   0xd   :  { %3203 = dma.done.wait [#allocation3], 4096  }
   0xe   :  { %3204 = vsyncadd [#allocation3], 4294963200 }
   0xf   :  { %3205 = dma.done.wait [#allocation6], 12288  }
  0x10   :  { %3206 = vsyncadd [#allocation6], 4294955008  ;;  %v130_v0 = vld [vmem:[#allocation5 + $0xf8] sm:$0xff]  ;;  %v128_v1 = vld [vmem:[#allocation5 + $0xe8] sm:$0xff]  ;;  %v3218_v47 = vmov 0   ;;  %s3219_s2 = smov [#allocation8]  }
  0x11   :  { %244 = vmatpush.msra.mxu1 %v130_v0  ;;  %v126_v2 = vld [vmem:[#allocation5 + $0xd8] sm:$0xff]  ;;  %v124_v3 = vld [vmem:[#allocation5 + $0xc8] sm:$0xff]  ;;  %v129_v10 = vld [vmem:[#allocation5 + $0xf0] sm:$0xff]  ;;  %2768 = vset.pattern.permute.xlu0 %v3218_v47  ;;  %s2674_s10 = sshll.u32 %s3219_s2, 4  ;;  %s2676_s13 = sshll.u32 %s4855_s3, 4  ;;  %s2675_s10 = int_to_ptr.vmem [resolvable:$true] %s2674_s10  ;;  %s2677_s13 = int_to_ptr.hbm [resolvable:$true] %s2676_s13 }
  0x12   :  { %v122_v4 = vld [vmem:[#allocation5 + $0xb8] sm:$0xff]  ;;  %v120_v5 = vld [vmem:[#allocation5 + $0xa8] sm:$0xff]  ;;  %v127_v11 = vld [vmem:[#allocation5 + $0xe0] sm:$0xff]  ;;  %131 = vmatpush.msra.mxu0 %v129_v10  ;;  %2769 = vset.pattern.permute.xlu1 %v3218_v47  ;;  %s3220_s3 = smov [#allocation9]   ;;  %s2689_s17 = sshll.u32 %s4856_s4, 4  ;;  %s2690_s17 = int_to_ptr.hbm [resolvable:$true] %s2689_s17 }
  0x13   :  { %245 = vmatpush.msra.mxu1 %v128_v1  ;;  %v118_v6 = vld [vmem:[#allocation5 + $0x98] sm:$0xff]  ;;  %v116_v7 = vld [vmem:[#allocation5 + $0x88] sm:$0xff]  ;;  %v125_v16 = vld [vmem:[#allocation5 + $0xd0] sm:$0xff]  ;;  %2770 = vset.pattern.permute.xlu2 %v3218_v47  ;;  %s2687_s14 = sshll.u32 %s3220_s3, 4  ;;  %s3221_s18 = smov [#allocation11]   ;;  %s2688_s14 = int_to_ptr.vmem [resolvable:$true] %s2687_s14 }
  0x14   :  { %v114_v8 = vld [vmem:[#allocation5 + $0x78] sm:$0xff]  ;;  %v112_v9 = vld [vmem:[#allocation5 + $0x68] sm:$0xff]  ;;  %132 = vmatpush.msra.mxu0 %v127_v11  ;;  %v123_v17 = vld [vmem:[#allocation5 + $0xc0] sm:$0xff]  ;;  %s2700_s19 = sshll.u32 %s3221_s18, 4  ;;  %s2702_s22 = sshll.u32 %s4857_s5, 4  ;;  %s2701_s19 = int_to_ptr.vmem [resolvable:$true] %s2700_s19  ;;  %s2703_s22 = int_to_ptr.hbm [resolvable:$true] %s2702_s22 }
  0x15   :  { %246 = vmatpush.msra.mxu1 %v126_v2  ;;  %v110_v12 = vld [vmem:[#allocation5 + $0x58] sm:$0xff]  ;;  %v108_v13 = vld [vmem:[#allocation5 + $0x48] sm:$0xff]  ;;  %v121_v19 = vld [vmem:[#allocation5 + $0xb0] sm:$0xff] }
  0x16   :  { %v106_v14 = vld [vmem:[#allocation5 + $0x38] sm:$0xff]  ;;  %v104_v15 = vld [vmem:[#allocation5 + $0x28] sm:$0xff]  ;;  %133 = vmatpush.msra.mxu0 %v125_v16  ;;  %v119_v21 = vld [vmem:[#allocation5 + $0xa0] sm:$0xff] }
  0x17   :  { %247 = vmatpush.msra.mxu1 %v124_v3  ;;  %v102_v18 = vld [vmem:[#allocation5 + $0x18] sm:$0xff]  ;;  %v100_v20 = vld [vmem:[#allocation5 + $0x8] sm:$0xff]  ;;  %v67_v22 = vld [vmem:[#allocation2] sm:$0xff] }
  0x18   :  { %134 = vmatpush.msra.mxu0 %v123_v17  ;;  %v117_v23 = vld [vmem:[#allocation5 + $0x90] sm:$0xff]  ;;  %v115_v24 = vld [vmem:[#allocation5 + $0x80] sm:$0xff]  ;;  %v68_v27 = vld [vmem:[#allocation2 + $0x8] sm:$0xff] }
  0x19   :  { %248 = vmatpush.msra.mxu1 %v122_v4  ;;  %v113_v25 = vld [vmem:[#allocation5 + $0x70] sm:$0xff]  ;;  %v111_v26 = vld [vmem:[#allocation5 + $0x60] sm:$0xff]  ;;  %v70_v35 = vld [vmem:[#allocation2 + $0x18] sm:$0xff] }
  0x1a   :  { %135 = vmatpush.msra.mxu0 %v121_v19  ;;  %v109_v28 = vld [vmem:[#allocation5 + $0x50] sm:$0xff]  ;;  %v107_v29 = vld [vmem:[#allocation5 + $0x40] sm:$0xff]  ;;  %v72_v37 = vld [vmem:[#allocation2 + $0x28] sm:$0xff] }
  0x1b   :  { %249 = vmatpush.msra.mxu1 %v120_v5  ;;  %v105_v30 = vld [vmem:[#allocation5 + $0x30] sm:$0xff]  ;;  %v103_v31 = vld [vmem:[#allocation5 + $0x20] sm:$0xff]  ;;  %v74_v39 = vld [vmem:[#allocation2 + $0x38] sm:$0xff] }
  0x1c   :  { %136 = vmatpush.msra.mxu0 %v119_v21  ;;  %v69_v32 = vld [vmem:[#allocation2 + $0x10] sm:$0xff]  ;;  %v99_v34 = vld [vmem:[#allocation5] sm:$0xff]  ;;  %v76_v41 = vld [vmem:[#allocation2 + $0x48] sm:$0xff] }
  0x1d   :  { %250 = vmatpush.msra.mxu1 %v118_v6  ;;  %v101_v33 = vld [vmem:[#allocation5 + $0x10] sm:$0xff]  ;;  %v71_v36 = vld [vmem:[#allocation2 + $0x20] sm:$0xff]  ;;  %v78_v43 = vld [vmem:[#allocation2 + $0x58] sm:$0xff] }
  0x1e   :  { %137 = vmatpush.msra.mxu0 %v117_v23  ;;  %v73_v38 = vld [vmem:[#allocation2 + $0x30] sm:$0xff]  ;;  %v75_v40 = vld [vmem:[#allocation2 + $0x40] sm:$0xff]  ;;  %v80_v45 = vld [vmem:[#allocation2 + $0x68] sm:$0xff] }
  0x1f   :  { %251 = vmatpush.msra.mxu1 %v116_v7  ;;  %v77_v42 = vld [vmem:[#allocation2 + $0x50] sm:$0xff]  ;;  %v79_v44 = vld [vmem:[#allocation2 + $0x60] sm:$0xff]  ;;  %v82_v48 = vld [vmem:[#allocation2 + $0x78] sm:$0xff] }
  0x20   :  { %138 = vmatpush.msra.mxu0 %v115_v24  ;;  %v81_v46 = vld [vmem:[#allocation2 + $0x70] sm:$0xff]  ;;  %v83_v50 = vld [vmem:[#allocation2 + $0x80] sm:$0xff]  ;;  %v84_v53 = vld [vmem:[#allocation2 + $0x88] sm:$0xff] }
  0x21   :  { %252 = vmatpush.msra.mxu1 %v114_v8  ;;  %v3264_v63 = vld [vmem:[#allocation2 + $0x90] sm:$0xff] }
  0x22   :  { %139 = vmatpush.msra.mxu0 %v113_v25 }
  0x23   :  { %253 = vmatpush.msra.mxu1 %v112_v9 }
  0x24   :  { %140 = vmatpush.msra.mxu0 %v111_v26 }
  0x25   :  { %254 = vmatpush.msra.mxu1 %v110_v12 }
  0x26   :  { %141 = vmatpush.msra.mxu0 %v109_v28 }
  0x27   :  { %255 = vmatpush.msra.mxu1 %v108_v13 }
  0x28   :  { %142 = vmatpush.msra.mxu0 %v107_v29 }
  0x29   :  { %256 = vmatpush.msra.mxu1 %v106_v14 }
  0x2a   :  { %143 = vmatpush.msra.mxu0 %v105_v30 }
  0x2b   :  { %257 = vmatpush.msra.mxu1 %v104_v15  ;;  %v86_v15 = vld [vmem:[#allocation2 + $0x98] sm:$0xff] }
  0x2c   :  { %144 = vmatpush.msra.mxu0 %v103_v31 }
  0x2d   :  { %258 = vmatpush.msra.mxu1 %v102_v18 }
  0x2e   :  { %145 = vmatpush.msra.mxu0 %v101_v33 }
  0x2f   :  { %259 = vmatpush.msra.mxu1 %v100_v20 }
  0x30   :  { %260 = vmatmul.f32.vlgmr.msra.gmra.mxu1 %v67_v22  ;;  %146 = vmatpush.msra.mxu0 %v99_v34 }
  0x31   :  { %147 = vmatmul.f32.vlgmr.msra.gmra.mxu0 %v67_v22 }
  0x38   :  { %263 = vmatmul.f32.gmra.mxu1 %v68_v27 }
  0x39   :  { %150 = vmatmul.f32.gmra.mxu0 %v68_v27 }
  0x40   :  { %266 = vmatmul.f32.gmra.mxu1 %v69_v32 }
  0x41   :  { %153 = vmatmul.f32.gmra.mxu0 %v69_v32 }
  0x48   :  { %269 = vmatmul.f32.gmra.mxu1 %v70_v35 }
  0x49   :  { %156 = vmatmul.f32.gmra.mxu0 %v70_v35 }
  0x50   :  { %272 = vmatmul.f32.gmra.mxu1 %v71_v36 }
  0x51   :  { %159 = vmatmul.f32.gmra.mxu0 %v71_v36 }
  0x58   :  { %275 = vmatmul.f32.gmra.mxu1 %v72_v37 }
  0x59   :  { %162 = vmatmul.f32.gmra.mxu0 %v72_v37 }
  0x60   :  { %278 = vmatmul.f32.gmra.mxu1 %v73_v38 }
  0x61   :  { %165 = vmatmul.f32.gmra.mxu0 %v73_v38 }
  0x68   :  { %281 = vmatmul.f32.gmra.mxu1 %v74_v39 }
  0x69   :  { %168 = vmatmul.f32.gmra.mxu0 %v74_v39 }
  0x70   :  { %284 = vmatmul.f32.gmra.mxu1 %v75_v40 }
  0x71   :  { %171 = vmatmul.f32.gmra.mxu0 %v75_v40 }
  0x78   :  { %287 = vmatmul.f32.gmra.mxu1 %v76_v41 }
  0x79   :  { %174 = vmatmul.f32.gmra.mxu0 %v76_v41 }
  0x80   :  { %290 = vmatmul.f32.gmra.mxu1 %v77_v42 }
  0x81   :  { %177 = vmatmul.f32.gmra.mxu0 %v77_v42 }
  0x88   :  { %293 = vmatmul.f32.gmra.mxu1 %v78_v43 }
  0x89   :  { %180 = vmatmul.f32.gmra.mxu0 %v78_v43 }
  0x90   :  { %296 = vmatmul.f32.gmra.mxu1 %v79_v44 }
  0x91   :  { %183 = vmatmul.f32.gmra.mxu0 %v79_v44 }
  0x98   :  { %299 = vmatmul.f32.gmra.mxu1 %v80_v45 }
  0x99   :  { %186 = vmatmul.f32.gmra.mxu0 %v80_v45 }
  0xa0   :  { %302 = vmatmul.f32.gmra.mxu1 %v81_v46 }
  0xa1   :  { %189 = vmatmul.f32.gmra.mxu0 %v81_v46 }
  0xa8   :  { %305 = vmatmul.f32.gmra.mxu1 %v82_v48 }
  0xa9   :  { %192 = vmatmul.f32.gmra.mxu0 %v82_v48 }
  0xad   :  { %v261_v49 = vpop.f32.mrf.mxu1 }
  0xae   :  { %v490_v51 = vadd.f32 1e-08, %v261_v49  ;;  %v3267_v12 = vpop.f32.mrf.mxu0 }
  0xb0   :  { %2771 = vrcp.f32 %v490_v51  ;;  %308 = vmatmul.f32.gmra.mxu1 %v83_v50  ;;  %v533_v58 = vand.u32 2147483648, %v490_v51  ;;  %v531_v60 = vand.u32 2147483647, %v490_v51  ;;  %vm527_vm1 = vweird.f32 %v490_v51 }
  0xb1   :  { %195 = vmatmul.f32.gmra.mxu0 %v83_v50 }
  0xb2   :  { %v534_v2 = vor.u32 1.1754944e-38, %v533_v58  ;;  %vm532_vm3 = vcmp.eq.f32.partialorder %v531_v60, 8.507059e+37 }
  0xb5   :  { %v264_v52 = vpop.f32.mrf.mxu1 }
  0xb6   :  { %v2772_v54 = vpop.eup %2771  ;;  %v491_v55 = vadd.f32 1e-08, %v264_v52  ;;  %v3269_v28 = vpop.f32.mrf.mxu0 }
  0xb7   :  { %v523_v56 = vmul.f32 %v2772_v54, %v490_v51  ;;  %vm528_vm0 = vweird.f32 %v2772_v54 }
  0xb8   :  { %2773 = vrcp.f32 %v491_v55  ;;  %311 = vmatmul.f32.gmra.mxu1 %v84_v53  ;;  %vm529_vm2 = vmor %vm527_vm1, %vm528_vm0  ;;  %v547_v8 = vand.u32 2147483648, %v491_v55  ;;  %v545_v11 = vand.u32 2147483647, %v491_v55  ;;  %vm541_vm5 = vweird.f32 %v491_v55 }
  0xb9   :  { %v524_v57 = vsub.f32 1.0, %v523_v56  ;;  %198 = vmatmul.f32.gmra.mxu0 %v84_v53 }
  0xba   :  { %v548_v18 = vor.u32 1.1754944e-38, %v547_v8  ;;  %vm546_vm7 = vcmp.eq.f32.partialorder %v545_v11, 8.507059e+37 }
  0xbb   :  { %v525_v59 = vmul.f32 %v2772_v54, %v524_v57 }
  0xbd   :  { %v267_v61 = vpop.f32.mrf.mxu1  ;;  %v526_v62 = vadd.f32 %v2772_v54, %v525_v59 }
  0xbe   :  { %v2774_v0 = vpop.eup %2773  ;;  %v492_v1 = vadd.f32 1e-08, %v267_v61  ;;  %v3271_v43 = vpop.f32.mrf.mxu0 }
  0xbf   :  { %v537_v3 = vmul.f32 %v2774_v0, %v491_v55  ;;  %v530_v4 = vsel %vm529_vm2, %v2772_v54, %v526_v62  ;;  %vm542_vm4 = vweird.f32 %v2774_v0 }
  0xc0   :  { %2775 = vrcp.f32 %v492_v1  ;;  %v535_v5 = vsel %vm532_vm3, %v534_v2, %v530_v4  ;;  %314 = vmatmul.f32.gmra.mxu1 %v3264_v63  ;;  %vm543_vm6 = vmor %vm541_vm5, %vm542_vm4  ;;  %v561_v24 = vand.u32 2147483648, %v492_v1  ;;  %v559_v27 = vand.u32 2147483647, %v492_v1 }
  0xc1   :  { %v538_v6 = vsub.f32 1.0, %v537_v3  ;;  %v970_v7 = vmul.f32 -0.5, %v535_v5  ;;  %vm555_vm9 = vweird.f32 %v492_v1  ;;  %201 = vmatmul.f32.gmra.mxu0 %v3264_v63 }
  0xc2   :  { %v562_v33 = vor.u32 1.1754944e-38, %v561_v24  ;;  %vm560_vm11 = vcmp.eq.f32.partialorder %v559_v27, 8.507059e+37 }
  0xc3   :  { %v1002_v9 = vmul.f32 %v970_v7, %v535_v5  ;;  %v539_v10 = vmul.f32 %v2774_v0, %v538_v6 }
  0xc5   :  { %1036 = vperm.xlu0 %2768, %v1002_v9   ;;  %v270_v13 = vpop.f32.mrf.mxu1  ;;  %v540_v14 = vadd.f32 %v2774_v0, %v539_v10 }
  0xc6   :  { %v2776_v16 = vpop.eup %2775  ;;  %v493_v17 = vadd.f32 1e-08, %v270_v13  ;;  %v3274_v58 = vpop.f32.mrf.mxu0  ;;  %v87_v13 = vld [vmem:[#allocation2 + $0xa0] sm:$0xff] }
  0xc7   :  { %v544_v19 = vsel %vm543_vm6, %v2774_v0, %v540_v14  ;;  %v551_v20 = vmul.f32 %v2776_v16, %v492_v1  ;;  %vm556_vm8 = vweird.f32 %v2776_v16 }
  0xc8   :  { %2777 = vrcp.f32 %v493_v17  ;;  %v549_v21 = vsel %vm546_vm7, %v548_v18, %v544_v19  ;;  %317 = vmatmul.f32.gmra.mxu1 %v86_v15  ;;  %vm557_vm10 = vmor %vm555_vm9, %vm556_vm8  ;;  %v575_v39 = vand.u32 2147483648, %v493_v17  ;;  %v573_v42 = vand.u32 2147483647, %v493_v17 }
  0xc9   :  { %v971_v22 = vmul.f32 -0.5, %v549_v21  ;;  %v552_v23 = vsub.f32 1.0, %v551_v20  ;;  %vm569_vm13 = vweird.f32 %v493_v17  ;;  %204 = vmatmul.f32.gmra.mxu0 %v86_v15 }
  0xca   :  { %v576_v48 = vor.u32 1.1754944e-38, %v575_v39  ;;  %vm574_vm15 = vcmp.eq.f32.partialorder %v573_v42, 8.507059e+37 }
  0xcb   :  { %v1003_v25 = vmul.f32 %v971_v22, %v549_v21  ;;  %v553_v26 = vmul.f32 %v2776_v16, %v552_v23  ;;  %v1913_v22 = vld [vmem:[#allocation7 + $0xf0] sm:$0xff] }
  0xcc   :  { %v1929_v23 = vld [vmem:[#allocation7 + $0x1f0] sm:$0xff]  ;;  %1962 = vmatpush.xpose.msrb.mxu0 %v1913_v22  ;;  %2725 = vmatpush.xpose.msra.mxu2 %v1913_v22  ;;  %v91_v22 = vld [vmem:[#allocation2 + $0xc0] sm:$0xff] }
  0xcd   :  { %1041 = vperm.xlu0 %2768, %v1003_v25   ;;  %v273_v29 = vpop.f32.mrf.mxu1  ;;  %v554_v30 = vadd.f32 %v2776_v16, %v553_v26  ;;  %2027 = vmatpush.xpose.msrb.mxu1 %v1929_v23 }
  0xce   :  { %v2778_v31 = vpop.eup %2777  ;;  %v494_v32 = vadd.f32 1e-08, %v273_v29  ;;  %v3276_v9 = vpop.f32.mrf.mxu0  ;;  %2741 = vmatpush.xpose.msra.mxu3 %v1929_v23 }
  0xcf   :  { %v565_v34 = vmul.f32 %v2778_v31, %v493_v17  ;;  %v558_v35 = vsel %vm557_vm10, %v2776_v16, %v554_v30  ;;  %vm570_vm12 = vweird.f32 %v2778_v31 }
  0xd0   :  { %2779 = vrcp.f32 %v494_v32  ;;  %v563_v36 = vsel %vm560_vm11, %v562_v33, %v558_v35  ;;  %vm571_vm14 = vmor %vm569_vm13, %vm570_vm12  ;;  %v589_v54 = vand.u32 2147483648, %v494_v32  ;;  %v587_v57 = vand.u32 2147483647, %v494_v32  ;;  %320 = vmatmul.f32.gmra.mxu1 %v87_v13 }
  0xd1   :  { %v566_v37 = vsub.f32 1.0, %v565_v34  ;;  %v972_v38 = vmul.f32 -0.5, %v563_v36  ;;  %vm583_vm1 = vweird.f32 %v494_v32  ;;  %207 = vmatmul.f32.gmra.mxu0 %v87_v13 }
  0xd2   :  { %v590_v63 = vor.u32 1.1754944e-38, %v589_v54  ;;  %vm588_vm3 = vcmp.eq.f32.partialorder %v587_v57, 8.507059e+37 }
  0xd3   :  { %v1004_v40 = vmul.f32 %v972_v38, %v563_v36  ;;  %v567_v41 = vmul.f32 %v2778_v31, %v566_v37 }
  0xd5   :  { %1046 = vperm.xlu1 %2769, %v1004_v40   ;;  %v276_v44 = vpop.f32.mrf.mxu1  ;;  %v568_v45 = vadd.f32 %v2778_v31, %v567_v41 }
  0xd6   :  { %v2780_v46 = vpop.eup %2779  ;;  %v495_v47 = vadd.f32 1e-08, %v276_v44  ;;  %v3278_v29 = vpop.f32.mrf.mxu0 }
  0xd7   :  { %v572_v49 = vsel %vm571_vm14, %v2778_v31, %v568_v45  ;;  %v579_v50 = vmul.f32 %v2780_v46, %v494_v32  ;;  %vm584_vm0 = vweird.f32 %v2780_v46  ;;  %v88_v32 = vld [vmem:[#allocation2 + $0xa8] sm:$0xff] }
  0xd8   :  { %2781 = vrcp.f32 %v495_v47  ;;  %v577_v51 = vsel %vm574_vm15, %v576_v48, %v572_v49  ;;  %vm585_vm2 = vmor %vm583_vm1, %vm584_vm0  ;;  %v603_v5 = vand.u32 2147483648, %v495_v47  ;;  %v601_v8 = vand.u32 2147483647, %v495_v47  ;;  %323 = vmatmul.f32.gmra.mxu1 %v88_v32  ;;  %v89_v49 = vld [vmem:[#allocation2 + $0xb0] sm:$0xff] }
  0xd9   :  { %v973_v52 = vmul.f32 -0.5, %v577_v51  ;;  %v580_v53 = vsub.f32 1.0, %v579_v50  ;;  %vm597_vm5 = vweird.f32 %v495_v47  ;;  %210 = vmatmul.f32.gmra.mxu0 %v88_v32 }
  0xda   :  { %v604_v16 = vor.u32 1.1754944e-38, %v603_v5  ;;  %vm602_vm7 = vcmp.eq.f32.partialorder %v601_v8, 8.507059e+37 }
  0xdb   :  { %v1005_v55 = vmul.f32 %v973_v52, %v577_v51  ;;  %v581_v56 = vmul.f32 %v2780_v46, %v580_v53 }
  0xdd   :  { %1051 = vperm.xlu1 %2769, %v1005_v55   ;;  %v279_v59 = vpop.f32.mrf.mxu1  ;;  %v582_v60 = vadd.f32 %v2780_v46, %v581_v56 }
  0xde   :  { %v2782_v61 = vpop.eup %2781  ;;  %v496_v62 = vadd.f32 1e-08, %v279_v59  ;;  %v1912_v59 = vld [vmem:[#allocation7 + $0xe0] sm:$0xff] }
  0xdf   :  { %v593_v0 = vmul.f32 %v2782_v61, %v495_v47  ;;  %v586_v1 = vsel %vm585_vm2, %v2780_v46, %v582_v60  ;;  %vm598_vm4 = vweird.f32 %v2782_v61  ;;  %v3280_v46 = vpop.f32.mrf.mxu0  ;;  %v1928_v60 = vld [vmem:[#allocation7 + $0x1e0] sm:$0xff]  ;;  %1963 = vmatpush.xpose.msrb.mxu0 %v1912_v59  ;;  %2726 = vmatpush.xpose.msra.mxu2 %v1912_v59 }
  0xe0   :  { %2783 = vrcp.f32 %v496_v62  ;;  %v591_v2 = vsel %vm588_vm3, %v590_v63, %v586_v1  ;;  %vm599_vm6 = vmor %vm597_vm5, %vm598_vm4  ;;  %v617_v24 = vand.u32 2147483648, %v496_v62  ;;  %v615_v27 = vand.u32 2147483647, %v496_v62  ;;  %326 = vmatmul.f32.gmra.mxu1 %v89_v49  ;;  %2742 = vmatpush.xpose.msra.mxu3 %v1928_v60 }
  0xe1   :  { %v594_v3 = vsub.f32 1.0, %v593_v0  ;;  %v974_v4 = vmul.f32 -0.5, %v591_v2  ;;  %vm611_vm9 = vweird.f32 %v496_v62  ;;  %213 = vmatmul.f32.gmra.mxu0 %v89_v49  ;;  %2028 = vmatpush.xpose.msrb.mxu1 %v1928_v60 }
  0xe2   :  { %v618_v35 = vor.u32 1.1754944e-38, %v617_v24  ;;  %vm616_vm11 = vcmp.eq.f32.partialorder %v615_v27, 8.507059e+37 }
  0xe3   :  { %v1006_v6 = vmul.f32 %v974_v4, %v591_v2  ;;  %v595_v7 = vmul.f32 %v2782_v61, %v594_v3  ;;  %v90_v4 = vld [vmem:[#allocation2 + $0xb8] sm:$0xff] }
  0xe5   :  { %1056 = vperm.xlu2 %2770, %v1006_v6   ;;  %v282_v10 = vpop.f32.mrf.mxu1  ;;  %v596_v11 = vadd.f32 %v2782_v61, %v595_v7 }
  0xe6   :  { %v2784_v14 = vpop.eup %2783  ;;  %v497_v15 = vadd.f32 1e-08, %v282_v10 }
  0xe7   :  { %v607_v17 = vmul.f32 %v2784_v14, %v496_v62  ;;  %v600_v18 = vsel %vm599_vm6, %v2782_v61, %v596_v11  ;;  %vm612_vm8 = vweird.f32 %v2784_v14  ;;  %v3282_v1 = vpop.f32.mrf.mxu0 }
  0xe8   :  { %2785 = vrcp.f32 %v497_v15  ;;  %v605_v19 = vsel %vm602_vm7, %v604_v16, %v600_v18  ;;  %vm613_vm10 = vmor %vm611_vm9, %vm612_vm8  ;;  %v631_v41 = vand.u32 2147483648, %v497_v15  ;;  %v629_v45 = vand.u32 2147483647, %v497_v15  ;;  %329 = vmatmul.f32.gmra.mxu1 %v90_v4 }
  0xe9   :  { %v608_v20 = vsub.f32 1.0, %v607_v17  ;;  %v975_v21 = vmul.f32 -0.5, %v605_v19  ;;  %vm625_vm13 = vweird.f32 %v497_v15  ;;  %216 = vmatmul.f32.gmra.mxu0 %v90_v4  ;;  %v1909_v4 = vld [vmem:[#allocation7 + $0xb0] sm:$0xff] }
  0xea   :  { %v632_v52 = vor.u32 1.1754944e-38, %v631_v41  ;;  %vm630_vm15 = vcmp.eq.f32.partialorder %v629_v45, 8.507059e+37 }
  0xeb   :  { %v1007_v25 = vmul.f32 %v975_v21, %v605_v19  ;;  %v609_v26 = vmul.f32 %v2784_v14, %v608_v20 }
  0xed   :  { %1061 = vperm.xlu2 %2770, %v1007_v25   ;;  %v285_v30 = vpop.f32.mrf.mxu1  ;;  %v610_v31 = vadd.f32 %v2784_v14, %v609_v26 }
  0xee   :  { %v2786_v33 = vpop.eup %2785  ;;  %v498_v34 = vadd.f32 1e-08, %v285_v30 }
  0xef   :  { %v621_v36 = vmul.f32 %v2786_v33, %v497_v15  ;;  %v614_v37 = vsel %vm613_vm10, %v2784_v14, %v610_v31  ;;  %vm626_vm12 = vweird.f32 %v2786_v33  ;;  %v3284_v19 = vpop.f32.mrf.mxu0 }
  0xf0   :  { %2787 = vrcp.f32 %v498_v34  ;;  %v619_v38 = vsel %vm616_vm11, %v618_v35, %v614_v37  ;;  %vm627_vm14 = vmor %vm625_vm13, %vm626_vm12  ;;  %v645_v61 = vand.u32 2147483648, %v498_v34  ;;  %v643_v0 = vand.u32 2147483647, %v498_v34  ;;  %332 = vmatmul.f32.gmra.mxu1 %v91_v22 }
  0xf1   :  { %v622_v39 = vsub.f32 1.0, %v621_v36  ;;  %v976_v40 = vmul.f32 -0.5, %v619_v38  ;;  %vm639_vm1 = vweird.f32 %v498_v34  ;;  %219 = vmatmul.f32.gmra.mxu0 %v91_v22 }
  0xf2   :  { %v646_v7 = vor.u32 1.1754944e-38, %v645_v61  ;;  %vm644_vm3 = vcmp.eq.f32.partialorder %v643_v0, 8.507059e+37 }
  0xf3   :  { %v1008_v42 = vmul.f32 %v976_v40, %v619_v38  ;;  %v623_v44 = vmul.f32 %v2786_v33, %v622_v39 }
  0xf5   :  { %1066 = vperm.xlu0 %2768, %v1008_v42   ;;  %v288_v47 = vpop.f32.mrf.mxu1  ;;  %v624_v48 = vadd.f32 %v2786_v33, %v623_v44  ;;  %v92_v42 = vld [vmem:[#allocation2 + $0xc8] sm:$0xff] }
  0xf6   :  { %v2788_v50 = vpop.eup %2787  ;;  %v499_v51 = vadd.f32 1e-08, %v288_v47 }
  0xf7   :  { %v635_v53 = vmul.f32 %v2788_v50, %v498_v34  ;;  %v628_v54 = vsel %vm627_vm14, %v2786_v33, %v624_v48  ;;  %vm640_vm0 = vweird.f32 %v2788_v50  ;;  %v1911_v33 = vld [vmem:[#allocation7 + $0xd0] sm:$0xff]  ;;  %v3289_v39 = vpop.f32.mrf.mxu0 }
  0xf8   :  { %2789 = vrcp.f32 %v499_v51  ;;  %v633_v55 = vsel %vm630_vm15, %v632_v52, %v628_v54  ;;  %vm641_vm2 = vmor %vm639_vm1, %vm640_vm0  ;;  %v659_v15 = vand.u32 2147483648, %v499_v51  ;;  %v657_v18 = vand.u32 2147483647, %v499_v51  ;;  %v1927_v34 = vld [vmem:[#allocation7 + $0x1d0] sm:$0xff]  ;;  %1964 = vmatpush.xpose.msrb.mxu0 %v1911_v33  ;;  %2727 = vmatpush.xpose.msra.mxu2 %v1911_v33  ;;  %v1910_v54 = vld [vmem:[#allocation7 + $0xc0] sm:$0xff] }
  0xf9   :  { %v636_v56 = vsub.f32 1.0, %v635_v53  ;;  %v977_v57 = vmul.f32 -0.5, %v633_v55  ;;  %vm653_vm5 = vweird.f32 %v499_v51  ;;  %2029 = vmatpush.xpose.msrb.mxu1 %v1927_v34  ;;  %2743 = vmatpush.xpose.msra.mxu3 %v1927_v34 }
  0xfa   :  { %v660_v25 = vor.u32 1.1754944e-38, %v659_v15  ;;  %vm658_vm7 = vcmp.eq.f32.partialorder %v657_v18, 8.507059e+37  ;;  %335 = vmatmul.f32.gmra.mxu1 %v92_v42  ;;  %222 = vmatmul.f32.gmra.mxu0 %v92_v42  ;;  %v1924_v15 = vld [vmem:[#allocation7 + $0x1a0] sm:$0xff] }
  0xfb   :  { %v1009_v62 = vmul.f32 %v977_v57, %v633_v55  ;;  %v637_v63 = vmul.f32 %v2788_v50, %v636_v56  ;;  %v1926_v55 = vld [vmem:[#allocation7 + $0x1c0] sm:$0xff] }
  0xfc   :  { %1965 = vmatpush.xpose.msrb.mxu0 %v1910_v54  ;;  %2728 = vmatpush.xpose.msra.mxu2 %v1910_v54 }
  0xfd   :  { %1071 = vperm.xlu1 %2769, %v1009_v62   ;;  %v291_v2 = vpop.f32.mrf.mxu1  ;;  %v638_v3 = vadd.f32 %v2788_v50, %v637_v63  ;;  %2030 = vmatpush.xpose.msrb.mxu1 %v1926_v55  ;;  %v93_v63 = vld [vmem:[#allocation2 + $0xd0] sm:$0xff] }
  0xfe   :  { %v2790_v5 = vpop.eup %2789  ;;  %v500_v6 = vadd.f32 1e-08, %v291_v2  ;;  %2744 = vmatpush.xpose.msra.mxu3 %v1926_v55 }
  0xff   :  { %v649_v8 = vmul.f32 %v2790_v5, %v499_v51  ;;  %v642_v10 = vsel %vm641_vm2, %v2788_v50, %v638_v3  ;;  %vm654_vm4 = vweird.f32 %v2790_v5  ;;  %v3297_v60 = vpop.f32.mrf.mxu0 }
 0x100   :  { %2791 = vrcp.f32 %v500_v6  ;;  %v647_v11 = vsel %vm644_vm3, %v646_v7, %v642_v10  ;;  %vm655_vm6 = vmor %vm653_vm5, %vm654_vm4  ;;  %v673_v35 = vand.u32 2147483648, %v500_v6  ;;  %v671_v38 = vand.u32 2147483647, %v500_v6  ;;  %1966 = vmatpush.xpose.msrb.mxu0 %v1909_v4  ;;  %2729 = vmatpush.xpose.msra.mxu2 %v1909_v4 }
 0x101   :  { %v650_v13 = vsub.f32 1.0, %v649_v8  ;;  %v978_v14 = vmul.f32 -0.5, %v647_v11  ;;  %vm667_vm9 = vweird.f32 %v500_v6 }
 0x102   :  { %v674_v47 = vor.u32 1.1754944e-38, %v673_v35  ;;  %vm672_vm11 = vcmp.eq.f32.partialorder %v671_v38, 8.507059e+37  ;;  %338 = vmatmul.f32.gmra.mxu1 %v93_v63  ;;  %225 = vmatmul.f32.gmra.mxu0 %v93_v63  ;;  %v1922_v38 = vld [vmem:[#allocation7 + $0x180] sm:$0xff] }
 0x103   :  { %v1010_v16 = vmul.f32 %v978_v14, %v647_v11  ;;  %v651_v17 = vmul.f32 %v2790_v5, %v650_v13  ;;  %v1908_v14 = vld [vmem:[#allocation7 + $0xa0] sm:$0xff] }
 0x104   :  { %1967 = vmatpush.xpose.msrb.mxu0 %v1908_v14  ;;  %2730 = vmatpush.xpose.msra.mxu2 %v1908_v14  ;;  %v1920_v63 = vld [vmem:[#allocation7 + $0x160] sm:$0xff] }
 0x105   :  { %1076 = vperm.xlu2 %2770, %v1010_v16   ;;  %v294_v20 = vpop.f32.mrf.mxu1  ;;  %v652_v21 = vadd.f32 %v2790_v5, %v651_v17 }
 0x106   :  { %v2792_v23 = vpop.eup %2791  ;;  %v3286_v24 = vadd.f32 1e-08, %v294_v20 }
 0x107   :  { %v663_v26 = vmul.f32 %v2792_v23, %v500_v6  ;;  %v656_v27 = vsel %vm655_vm6, %v2790_v5, %v652_v21  ;;  %vm668_vm8 = vweird.f32 %v2792_v23  ;;  %v1925_v5 = vld [vmem:[#allocation7 + $0x1b0] sm:$0xff]  ;;  %v3306_v20 = vpop.f32.mrf.mxu0  ;;  %v94_v21 = vld [vmem:[#allocation2 + $0xd8] sm:$0xff] }
 0x108   :  { %2793 = vrcp.f32 %v3286_v24  ;;  %v661_v30 = vsel %vm658_vm7, %v660_v25, %v656_v27  ;;  %vm669_vm10 = vmor %vm667_vm9, %vm668_vm8  ;;  %v687_v53 = vand.u32 2147483648, %v3286_v24  ;;  %v685_v59 = vand.u32 2147483647, %v3286_v24  ;;  %2031 = vmatpush.xpose.msrb.mxu1 %v1925_v5  ;;  %2745 = vmatpush.xpose.msra.mxu3 %v1925_v5  ;;  %v1923_v25 = vld [vmem:[#allocation7 + $0x190] sm:$0xff] }
 0x109   :  { %v664_v31 = vsub.f32 1.0, %v663_v26  ;;  %v979_v32 = vmul.f32 -0.5, %v661_v30  ;;  %vm681_vm13 = vweird.f32 %v3286_v24 }
 0x10a   :  { %v688_v3 = vor.u32 1.1754944e-38, %v687_v53  ;;  %vm686_vm15 = vcmp.eq.f32.partialorder %v685_v59, 8.507059e+37  ;;  %341 = vmatmul.f32.gmra.mxu1 %v94_v21  ;;  %228 = vmatmul.f32.gmra.mxu0 %v94_v21 }
 0x10b   :  { %v1011_v36 = vmul.f32 %v979_v32, %v661_v30  ;;  %v665_v37 = vmul.f32 %v2792_v23, %v664_v31 }
 0x10c   :  { %2032 = vmatpush.xpose.msrb.mxu1 %v1924_v15  ;;  %2746 = vmatpush.xpose.msra.mxu3 %v1924_v15 }
 0x10d   :  { %1081 = vperm.xlu0 %2768, %v1011_v36   ;;  %v297_v40 = vpop.f32.mrf.mxu1  ;;  %v666_v41 = vadd.f32 %v2792_v23, %v665_v37  ;;  %v1906_v37 = vld [vmem:[#allocation7 + $0x80] sm:$0xff] }
 0x10e   :  { %v2794_v44 = vpop.eup %2793  ;;  %v3291_v45 = vadd.f32 1e-08, %v297_v40 }
 0x10f   :  { %v677_v48 = vmul.f32 %v2794_v44, %v3286_v24  ;;  %v670_v49 = vsel %vm669_vm10, %v2792_v23, %v666_v41  ;;  %vm682_vm12 = vweird.f32 %v2794_v44  ;;  %v1907_v24 = vld [vmem:[#allocation7 + $0x90] sm:$0xff] }
 0x110   :  { %2795 = vrcp.f32 %v3291_v45  ;;  %v675_v50 = vsel %vm672_vm11, %v674_v47, %v670_v49  ;;  %vm683_vm14 = vmor %vm681_vm13, %vm682_vm12  ;;  %v701_v13 = vand.u32 2147483648, %v3291_v45  ;;  %v699_v18 = vand.u32 2147483647, %v3291_v45  ;;  %1968 = vmatpush.xpose.msrb.mxu0 %v1907_v24  ;;  %2033 = vmatpush.xpose.msrb.mxu1 %v1923_v25  ;;  %v1905_v49 = vld [vmem:[#allocation7 + $0x70] sm:$0xff] }
 0x111   :  { %v678_v51 = vsub.f32 1.0, %v677_v48  ;;  %v980_v52 = vmul.f32 -0.5, %v675_v50  ;;  %vm695_vm1 = vweird.f32 %v3291_v45  ;;  %2731 = vmatpush.xpose.msra.mxu2 %v1907_v24  ;;  %2747 = vmatpush.xpose.msra.mxu3 %v1923_v25  ;;  %v95_v48 = vld [vmem:[#allocation2 + $0xe0] sm:$0xff] }
 0x112   :  { %v702_v30 = vor.u32 1.1754944e-38, %v701_v13  ;;  %vm700_vm3 = vcmp.eq.f32.partialorder %v699_v18, 8.507059e+37  ;;  %344 = vmatmul.f32.gmra.mxu1 %v95_v48  ;;  %231 = vmatmul.f32.gmra.mxu0 %v95_v48  ;;  %v1918_v24 = vld [vmem:[#allocation7 + $0x140] sm:$0xff] }
 0x113   :  { %v1012_v56 = vmul.f32 %v980_v52, %v675_v50  ;;  %v679_v57 = vmul.f32 %v2794_v44, %v678_v51  ;;  %v1921_v50 = vld [vmem:[#allocation7 + $0x170] sm:$0xff] }
 0x114   :  { %1969 = vmatpush.xpose.msrb.mxu0 %v1906_v37  ;;  %2034 = vmatpush.xpose.msrb.mxu1 %v1922_v38 }
 0x115   :  { %1086 = vperm.xlu1 %2769, %v1012_v56   ;;  %v300_v61 = vpop.f32.mrf.mxu1  ;;  %v680_v62 = vadd.f32 %v2794_v44, %v679_v57  ;;  %2732 = vmatpush.xpose.msra.mxu2 %v1906_v37 }
 0x116   :  { %v2796_v0 = vpop.eup %2795  ;;  %v3300_v2 = vadd.f32 1e-08, %v300_v61  ;;  %2748 = vmatpush.xpose.msra.mxu3 %v1922_v38 }
 0x117   :  { %v691_v6 = vmul.f32 %v2796_v0, %v3291_v45  ;;  %v684_v7 = vsel %vm683_vm14, %v2794_v44, %v680_v62  ;;  %vm696_vm0 = vweird.f32 %v2796_v0  ;;  %v3316_v44 = vpop.f32.mrf.mxu0  ;;  %v1904_v62 = vld [vmem:[#allocation7 + $0x60] sm:$0xff] }
 0x118   :  { %2797 = vrcp.f32 %v3300_v2  ;;  %v689_v8 = vsel %vm686_vm15, %v688_v3, %v684_v7  ;;  %vm697_vm2 = vmor %vm695_vm1, %vm696_vm0  ;;  %v715_v36 = vand.u32 2147483648, %v3300_v2  ;;  %v713_v42 = vand.u32 2147483647, %v3300_v2  ;;  %1970 = vmatpush.xpose.msrb.mxu0 %v1905_v49  ;;  %2035 = vmatpush.xpose.msrb.mxu1 %v1921_v50  ;;  %v96_v7 = vld [vmem:[#allocation2 + $0xe8] sm:$0xff] }
 0x119   :  { %v692_v10 = vsub.f32 1.0, %v691_v6  ;;  %v981_v11 = vmul.f32 -0.5, %v689_v8  ;;  %vm709_vm5 = vweird.f32 %v3300_v2  ;;  %2733 = vmatpush.xpose.msra.mxu2 %v1905_v49 }
 0x11a   :  { %v716_v53 = vor.u32 1.1754944e-38, %v715_v36  ;;  %vm714_vm7 = vcmp.eq.f32.partialorder %v713_v42, 8.507059e+37  ;;  %2749 = vmatpush.xpose.msra.mxu3 %v1921_v50  ;;  %234 = vmatmul.f32.gmra.mxu0 %v96_v7  ;;  %v1900_v42 = vld [vmem:[#allocation7 + $0x20] sm:$0xff] }
 0x11b   :  { %v1013_v16 = vmul.f32 %v981_v11, %v689_v8  ;;  %v693_v17 = vmul.f32 %v2796_v0, %v692_v10  ;;  %v1903_v8 = vld [vmem:[#allocation7 + $0x50] sm:$0xff]  ;;  %347 = vmatmul.f32.gmra.mxu1 %v96_v7  ;;  %v1914_v7 = vld [vmem:[#allocation7 + $0x100] sm:$0xff] }
 0x11c   :  { %1971 = vmatpush.xpose.msrb.mxu0 %v1904_v62  ;;  %2036 = vmatpush.xpose.msrb.mxu1 %v1920_v63  ;;  %v1919_v10 = vld [vmem:[#allocation7 + $0x150] sm:$0xff] }
 0x11d   :  { %1091 = vperm.xlu2 %2770, %v1013_v16   ;;  %v303_v22 = vpop.f32.mrf.mxu1  ;;  %v694_v23 = vadd.f32 %v2796_v0, %v693_v17  ;;  %2734 = vmatpush.xpose.msra.mxu2 %v1904_v62 }
 0x11e   :  { %v2798_v26 = vpop.eup %2797  ;;  %v3309_v27 = vadd.f32 1e-08, %v303_v22  ;;  %2750 = vmatpush.xpose.msra.mxu3 %v1920_v63 }
 0x11f   :  { %v705_v31 = vmul.f32 %v2798_v26, %v3300_v2  ;;  %v698_v32 = vsel %vm697_vm2, %v2796_v0, %v694_v23  ;;  %vm710_vm4 = vweird.f32 %v2798_v26  ;;  %v3326_v4 = vpop.f32.mrf.mxu0  ;;  %v1902_v23 = vld [vmem:[#allocation7 + $0x40] sm:$0xff] }
 0x120   :  { %2799 = vrcp.f32 %v3309_v27  ;;  %v703_v33 = vsel %vm700_vm3, %v702_v30, %v698_v32  ;;  %vm711_vm6 = vmor %vm709_vm5, %vm710_vm4  ;;  %v729_v61 = vand.u32 2147483648, %v3309_v27  ;;  %v727_v3 = vand.u32 2147483647, %v3309_v27  ;;  %1972 = vmatpush.xpose.msrb.mxu0 %v1903_v8  ;;  %2037 = vmatpush.xpose.msrb.mxu1 %v1919_v10  ;;  %v1901_v32 = vld [vmem:[#allocation7 + $0x30] sm:$0xff] }
 0x121   :  { %v706_v34 = vsub.f32 1.0, %v705_v31  ;;  %v982_v35 = vmul.f32 -0.5, %v703_v33  ;;  %vm723_vm9 = vweird.f32 %v3309_v27  ;;  %2735 = vmatpush.xpose.msra.mxu2 %v1903_v8  ;;  %v97_v31 = vld [vmem:[#allocation2 + $0xf0] sm:$0xff] }
 0x122   :  { %v730_v14 = vor.u32 1.1754944e-38, %v729_v61  ;;  %vm728_vm11 = vcmp.eq.f32.partialorder %v727_v3, 8.507059e+37  ;;  %2751 = vmatpush.xpose.msra.mxu3 %v1919_v10  ;;  %237 = vmatmul.f32.gmra.mxu0 %v97_v31 }
 0x123   :  { %v1014_v40 = vmul.f32 %v982_v35, %v703_v33  ;;  %v707_v41 = vmul.f32 %v2798_v26, %v706_v34  ;;  %v1917_v33 = vld [vmem:[#allocation7 + $0x130] sm:$0xff]  ;;  %350 = vmatmul.f32.gmra.mxu1 %v97_v31 }
 0x124   :  { %1973 = vmatpush.xpose.msrb.mxu0 %v1902_v23  ;;  %2038 = vmatpush.xpose.msrb.mxu1 %v1918_v24 }
 0x125   :  { %1096 = vperm.xlu0 %2768, %v1014_v40   ;;  %v306_v45 = vpop.f32.mrf.mxu1  ;;  %v708_v47 = vadd.f32 %v2798_v26, %v707_v41  ;;  %2736 = vmatpush.xpose.msra.mxu2 %v1902_v23  ;;  %v389_v40 = vlaneseq }
 0x126   :  { %v2800_v51 = vpop.eup %2799  ;;  %v3319_v52 = vadd.f32 1e-08, %v306_v45  ;;  %2752 = vmatpush.xpose.msra.mxu3 %v1918_v24  ;;  %v1916_v45 = vld [vmem:[#allocation7 + $0x120] sm:$0xff] }
 0x127   :  { %v719_v54 = vmul.f32 %v2800_v51, %v3309_v27  ;;  %v712_v55 = vsel %vm711_vm6, %v2798_v26, %v708_v47  ;;  %vm724_vm8 = vweird.f32 %v2800_v51  ;;  %v3336_v30 = vpop.f32.mrf.mxu0 }
 0x128   :  { %2801 = vrcp.f32 %v3319_v52  ;;  %v717_v56 = vsel %vm714_vm7, %v716_v53, %v712_v55  ;;  %vm725_vm10 = vmor %vm723_vm9, %vm724_vm8  ;;  %v743_v22 = vand.u32 2147483648, %v3319_v52  ;;  %v741_v27 = vand.u32 2147483647, %v3319_v52  ;;  %1974 = vmatpush.xpose.msrb.mxu0 %v1901_v32  ;;  %2039 = vmatpush.xpose.msrb.mxu1 %v1917_v33 }
 0x129   :  { %v720_v57 = vsub.f32 1.0, %v719_v54  ;;  %v983_v59 = vmul.f32 -0.5, %v717_v56  ;;  %vm737_vm13 = vweird.f32 %v3319_v52  ;;  %2737 = vmatpush.xpose.msra.mxu2 %v1901_v32  ;;  %v98_v54 = vld [vmem:[#allocation2 + $0xf8] sm:$0xff]  ;;  %v3344_v55 = vshrl.u32 %v389_v40, 7 }
 0x12a   :  { %v744_v36 = vor.u32 1.1754944e-38, %v743_v22  ;;  %vm742_vm15 = vcmp.eq.f32.partialorder %v741_v27, 8.507059e+37  ;;  %2753 = vmatpush.xpose.msra.mxu3 %v1917_v33  ;;  %240 = vmatmul.f32.gmra.mxu0 %v98_v54 }
 0x12b   :  { %v1015_v0 = vmul.f32 %v983_v59, %v717_v56  ;;  %v721_v2 = vmul.f32 %v2800_v51, %v720_v57  ;;  %v3346_v56 = vand.u32 127, %v389_v40  ;;  %v1899_v57 = vld [vmem:[#allocation7 + $0x10] sm:$0xff]  ;;  %353 = vmatmul.f32.gmra.mxu1 %v98_v54  ;;  %v360_v54 = vmul.f32 0.17677669, %v3274_v58 }
 0x12c   :  { %1975 = vmatpush.xpose.msrb.mxu0 %v1900_v42  ;;  %2040 = vmatpush.xpose.msrb.mxu1 %v1916_v45  ;;  %v1915_v59 = vld [vmem:[#allocation7 + $0x110] sm:$0xff] }
 0x12d   :  { %1101 = vperm.xlu1 %2769, %v1015_v0   ;;  %v309_v5 = vpop.f32.mrf.mxu1  ;;  %v722_v6 = vadd.f32 %v2800_v51, %v721_v2  ;;  %2738 = vmatpush.xpose.msra.mxu2 %v1900_v42  ;;  %v425_v0 = vsub.s32 %v3344_v55, %v3346_v56  ;;  %vm473_vm4 = vcmp.lt.s32.totalorder %v3346_v56, 8 }
 0x12e   :  { %v2802_v11 = vpop.eup %2801  ;;  %v3329_v13 = vadd.f32 1e-08, %v309_v5  ;;  %2754 = vmatpush.xpose.msra.mxu3 %v1916_v45  ;;  %v357_v5 = vmul.f32 0.17677669, %v3267_v12 }
 0x12f   :  { %v733_v15 = vmul.f32 %v2802_v11, %v3319_v52  ;;  %v726_v16 = vsel %vm725_vm10, %v2800_v51, %v722_v6  ;;  %vm738_vm12 = vweird.f32 %v2802_v11  ;;  %v3342_v53 = vpop.f32.mrf.mxu0  ;;  %v1898_v6 = vld [vmem:[#allocation7] sm:$0xff] }
 0x130   :  { %2803 = vrcp.f32 %v3329_v13  ;;  %v731_v17 = vsel %vm728_vm11, %v730_v14, %v726_v16  ;;  %vm739_vm14 = vmor %vm737_vm13, %vm738_vm12  ;;  %v757_v49 = vand.u32 2147483648, %v3329_v13  ;;  %v755_v52 = vand.u32 2147483647, %v3329_v13  ;;  %1976 = vmatpush.xpose.msrb.mxu0 %v1899_v57  ;;  %2041 = vmatpush.xpose.msrb.mxu1 %v1915_v59 }
 0x131   :  { %v734_v18 = vsub.f32 1.0, %v733_v15  ;;  %v984_v21 = vmul.f32 -0.5, %v731_v17  ;;  %vm751_vm1 = vweird.f32 %v3329_v13  ;;  %2739 = vmatpush.xpose.msra.mxu2 %v1899_v57  ;;  %v391_v14 = vadd.s32 8, %v3344_v55 }
 0x132   :  { %v758_v62 = vor.u32 1.1754944e-38, %v757_v49  ;;  %vm756_vm3 = vcmp.eq.f32.partialorder %v755_v52, 8.507059e+37  ;;  %2755 = vmatpush.xpose.msra.mxu3 %v1915_v59 }
 0x133   :  { %v1016_v25 = vmul.f32 %v984_v21, %v731_v17  ;;  %v735_v26 = vmul.f32 %v2802_v11, %v734_v18  ;;  %v426_v12 = vsub.s32 %v391_v14, %v3346_v56  ;;  %v358_v17 = vmul.f32 0.17677669, %v3269_v28 }
 0x134   :  { %1977 = vmatpush.xpose.msrb.mxu0 %v1898_v6  ;;  %2042 = vmatpush.xpose.msrb.mxu1 %v1914_v7 }
 0x135   :  { %1106 = vperm.xlu2 %2770, %v1016_v25   ;;  %v736_v34 = vadd.f32 %v2802_v11, %v735_v26  ;;  %2740 = vmatpush.xpose.msra.mxu2 %v1898_v6  ;;  %v312_v15 = vpop.f32.mrf.mxu1  ;;  %v442_v24 = vcvt.s32.f32 %v426_v12  ;;  %v392_v25 = vadd.s32 16, %v3344_v55 }
 0x136   :  { %v2804_v35 = vpop.eup %2803  ;;  %2756 = vmatpush.xpose.msra.mxu3 %v1914_v7  ;;  %v3362_v26 = vadd.f32 1e-08, %v312_v15 }
 0x137   :  { %v747_v37 = vmul.f32 %v2804_v35, %v3329_v13  ;;  %v740_v38 = vsel %vm739_vm14, %v2802_v11, %v736_v34  ;;  %vm752_vm0 = vweird.f32 %v2804_v35  ;;  %v196_v10 = vpop.f32.mrf.mxu0  ;;  %v441_v11 = vcvt.s32.f32 %v425_v0  ;;  %1978 = vmatmul.f32.vlgmr.msrb.gmra.mxu0 %v357_v5  ;;  %v1037_v18 = vpop.permute.xlu0 %1036 }
 0x138   :  { %v745_v41 = vsel %vm742_vm15, %v744_v36, %v740_v38  ;;  %vm753_vm2 = vmor %vm751_vm1, %vm752_vm0  ;;  %v373_v13 = vmul.f32 0.17677669, %v196_v10  ;;  %v458_v32 = vmul.f32 %v442_v24, %v442_v24  ;;  %v427_v28 = vsub.s32 %v392_v25, %v3346_v56 }
 0x139   :  { %v748_v47 = vsub.f32 1.0, %v747_v37  ;;  %v985_v48 = vmul.f32 -0.5, %v745_v41  ;;  %v457_v16 = vmul.f32 %v441_v11, %v441_v11  ;;  %2805 = vrcp.f32 %v3362_v26 }
 0x13a   :  { %2043 = vmatmul.f32.vlgmr.msrb.gmra.mxu1 %v373_v13  ;;  %v359_v37 = vmul.f32 0.17677669, %v3271_v43  ;;  %v3372_v38 = vsel %vm473_vm4, %v458_v32, 3e+38  ;;  %vm765_vm5 = vweird.f32 %v3362_v26  ;;  %v361_v10 = vmul.f32 0.17677669, %v3276_v9 }
 0x13b   :  { %v1017_v50 = vmul.f32 %v985_v48, %v745_v41  ;;  %v749_v51 = vmul.f32 %v2804_v35, %v748_v47  ;;  %v3359_v22 = vsel %vm473_vm4, %v457_v16, 3e+38  ;;  %4872 = vst [vmem:[#allocation17_spill] sm:$0xff] %v3372_v38  ;;  %v443_v41 = vcvt.s32.f32 %v427_v28 }
 0x13c   :  { %4871 = vst [vmem:[#allocation16_spill] sm:$0xff] %v3359_v22  ;;  %v1194_v27 = vmul.f32 %v1037_v18, %v3359_v22  ;;  %1984 = vmatmul.f32.vlgmr.msra.gmra.mxu2 %v359_v37  ;;  %v771_v11 = vand.u32 2147483648, %v3362_v26  ;;  %v769_v15 = vand.u32 2147483647, %v3362_v26  ;;  %v362_v32 = vmul.f32 0.17677669, %v3278_v29 }
 0x13d   :  { %1111 = vperm.xlu0 %2768, %v1017_v50   ;;  %v750_v61 = vadd.f32 %v2804_v35, %v749_v51  ;;  %v315_v31 = vpop.f32.mrf.mxu1  ;;  %v459_v47 = vmul.f32 %v443_v41, %v443_v41  ;;  %v363_v29 = vmul.f32 0.17677669, %v3280_v46 }
 0x13e   :  { %v3367_v33 = vadd.f32 1e-08, %v315_v31  ;;  %v1226_v34 = vmul.f32 1.442695, %v1194_v27  ;;  %v772_v18 = vor.u32 1.1754944e-38, %v771_v11  ;;  %vm770_vm10 = vcmp.eq.f32.partialorder %v769_v15, 8.507059e+37 }
 0x13f   :  { %v754_v63 = vsel %vm753_vm2, %v2804_v35, %v750_v61  ;;  %v199_v21 = vpop.f32.mrf.mxu0  ;;  %1981 = vmatmul.f32.gmra.mxu0 %v358_v17  ;;  %v1042_v40 = vpop.permute.xlu0 %1041  ;;  %v3382_v59 = vsel %vm473_vm4, %v459_v47, 3e+38  ;;  %v394_v15 = vadd.s32 32, %v3344_v55 }
 0x140   :  { %v759_v2 = vsel %vm756_vm3, %v758_v62, %v754_v63  ;;  %v374_v23 = vmul.f32 0.17677669, %v199_v21  ;;  %2807 = vrcp.f32 %v3367_v33  ;;  %v2806_v42 = vpop.eup %2805  ;;  %v1195_v45 = vmul.f32 %v1042_v40, %v3372_v38  ;;  %4873 = vst [vmem:[#allocation18_spill] sm:$0xff] %v3382_v59 }
 0x141   :  { %v986_v3 = vmul.f32 -0.5, %v759_v2  ;;  %2809 = vpow2.f32 %v1226_v34  ;;  %v761_v48 = vmul.f32 %v2806_v42, %v3362_v26  ;;  %vm766_vm6 = vweird.f32 %v2806_v42 }
 0x142   :  { %2046 = vmatmul.f32.gmra.mxu1 %v374_v23  ;;  %v1228_v51 = vmul.f32 1.442695, %v1195_v45  ;;  %vm3399_vm7 = vmor %vm765_vm5, %vm766_vm6  ;;  %vm779_vm8 = vweird.f32 %v3367_v33  ;;  %v785_v21 = vand.u32 2147483648, %v3367_v33  ;;  %v783_v24 = vand.u32 2147483647, %v3367_v33 }
 0x143   :  { %v1018_v8 = vmul.f32 %v986_v3, %v759_v2  ;;  %v762_v62 = vsub.f32 1.0, %v761_v48 }
 0x144   :  { %1987 = vmatmul.f32.gmra.mxu2 %v360_v54  ;;  %2811 = vpow2.f32 %v1228_v51  ;;  %vm784_vm12 = vcmp.eq.f32.partialorder %v783_v24, 8.507059e+37 }
 0x145   :  { %1116 = vperm.xlu1 %2769, %v1018_v8   ;;  %v318_v49 = vpop.f32.mrf.mxu1  ;;  %v763_v58 = vmul.f32 %v2806_v42, %v762_v62 }
 0x146   :  { %v2808_v43 = vpop.eup %2807  ;;  %v3386_v0 = vadd.f32 1e-08, %v318_v49 }
 0x147   :  { %v202_v35 = vpop.f32.mrf.mxu0  ;;  %v3378_v57 = vpop.eup %2809  ;;  %v775_v63 = vmul.f32 %v2808_v43, %v3367_v33  ;;  %v764_v14 = vadd.f32 %v2806_v42, %v763_v58  ;;  %vm780_vm9 = vweird.f32 %v2808_v43  ;;  %v393_v58 = vadd.s32 24, %v3344_v55 }
 0x148   :  { %v375_v36 = vmul.f32 0.17677669, %v202_v35  ;;  %v1047_v61 = vpop.permute.xlu1 %1046  ;;  %2813 = vrcp.f32 %v3386_v0  ;;  %vm781_vm11 = vmor %vm779_vm8, %vm780_vm9  ;;  %v786_v35 = vor.u32 1.1754944e-38, %v785_v21  ;;  %vm793_vm13 = vweird.f32 %v3386_v0 }
 0x149   :  { %v1196_v2 = vmul.f32 %v1047_v61, %v3382_v59  ;;  %v776_v3 = vsub.f32 1.0, %v775_v63  ;;  %v768_v9 = vsel %vm3399_vm7, %v2806_v42, %v764_v14  ;;  %v797_v51 = vand.u32 2147483647, %v3386_v0 }
 0x14a   :  { %2049 = vmatmul.f32.vlgmr.msra.gmra.mxu3 %v375_v36  ;;  %v3395_v13 = vpop.eup %2811  ;;  %v773_v28 = vsel %vm770_vm10, %v772_v18, %v768_v9  ;;  %v365_v14 = vmul.f32 0.17677669, %v3284_v19  ;;  %v429_v18 = vsub.s32 %v394_v15, %v3346_v56  ;;  %v366_v21 = vmul.f32 0.17677669, %v3289_v39 }
 0x14b   :  { %v1230_v7 = vmul.f32 1.442695, %v1196_v2  ;;  %v777_v12 = vmul.f32 %v2808_v43, %v776_v3  ;;  %v987_v37 = vmul.f32 -0.5, %v773_v28  ;;  %vm798_vm0 = vcmp.eq.f32.partialorder %v797_v51, 8.507059e+37 }
 0x14c   :  { %1990 = vmatmul.f32.gmra.mxu2 %v361_v10  ;;  %v364_v2 = vmul.f32 0.17677669, %v3282_v1 }
 0x14d   :  { %v3391_v6 = vpop.f32.mrf.mxu1  ;;  %2815 = vpow2.f32 %v1230_v7  ;;  %v778_v23 = vadd.f32 %v2808_v43, %v777_v12  ;;  %v1019_v45 = vmul.f32 %v987_v37, %v773_v28  ;;  %v395_v7 = vadd.s32 40, %v3344_v55 }
 0x14e   :  { %v2814_v17 = vpop.eup %2813  ;;  %v367_v37 = vmul.f32 0.17677669, %v3297_v60 }
 0x14f   :  { %v205_v50 = vpop.f32.mrf.mxu0  ;;  %v789_v27 = vmul.f32 %v2814_v17, %v3386_v0  ;;  %v782_v36 = vsel %vm781_vm11, %v2808_v43, %v778_v23  ;;  %vm794_vm14 = vweird.f32 %v2814_v17  ;;  %v430_v12 = vsub.s32 %v395_v7, %v3346_v56 }
 0x150   :  { %v376_v52 = vmul.f32 0.17677669, %v205_v50  ;;  %v787_v40 = vsel %vm784_vm12, %v786_v35, %v782_v36  ;;  %v799_v50 = vand.u32 2147483648, %v3386_v0  ;;  %vm795_vm15 = vmor %vm793_vm13, %vm794_vm14  ;;  %v396_v36 = vadd.s32 48, %v3344_v55 }
 0x151   :  { %v790_v33 = vsub.f32 1.0, %v789_v27  ;;  %v988_v49 = vmul.f32 -0.5, %v787_v40  ;;  %v446_v23 = vcvt.s32.f32 %v430_v12  ;;  %v445_v27 = vcvt.s32.f32 %v429_v18 }
 0x152   :  { %2052 = vmatmul.f32.gmra.mxu3 %v376_v52  ;;  %v800_v54 = vor.u32 1.1754944e-38, %v799_v50  ;;  %v3460_v50 = vadd.f32 1e-08, %v3391_v6 }
 0x153   :  { %v3412_v34 = vpop.eup %2815  ;;  %v791_v47 = vmul.f32 %v2814_v17, %v790_v33  ;;  %v1020_v52 = vmul.f32 %v988_v49, %v787_v40  ;;  %v462_v28 = vmul.f32 %v446_v23, %v446_v23  ;;  %v461_v33 = vmul.f32 %v445_v27, %v445_v27 }
 0x154   :  { %1993 = vmatmul.f32.gmra.mxu2 %v362_v32  ;;  %v1052_v32 = vpop.permute.xlu1 %1051  ;;  %v370_v27 = vmul.f32 0.17677669, %v3326_v4  ;;  %vm807_vm6 = vweird.f32 %v3460_v50  ;;  %v813_v4 = vand.u32 2147483648, %v3460_v50 }
 0x155   :  { %v3408_v26 = vpop.f32.mrf.mxu1  ;;  %v792_v43 = vadd.f32 %v2814_v17, %v791_v47 }
 0x156   :  { %v3443_v39 = vadd.f32 1e-08, %v3408_v26  ;;  %v3456_v26 = vsel %vm473_vm4, %v461_v33, 3e+38 }
 0x157   :  { %v208_v5 = vpop.f32.mrf.mxu0  ;;  %v796_v46 = vsel %vm795_vm15, %v2814_v17, %v792_v43  ;;  %v1057_v17 = vpop.permute.xlu2 %1056  ;;  %4878 = vst [vmem:[#allocation21_spill] sm:$0xff] %v3456_v26 }
 0x158   :  { %v377_v8 = vmul.f32 0.17677669, %v208_v5  ;;  %v801_v3 = vsel %vm798_vm0, %v800_v54, %v796_v46  ;;  %v428_v5 = vsub.s32 %v393_v58, %v3346_v56  ;;  %2817 = vrcp.f32 %v3443_v39 }
 0x159   :  { %v989_v0 = vmul.f32 -0.5, %v801_v3  ;;  %v1198_v43 = vmul.f32 %v1057_v17, %v3456_v26  ;;  %v368_v54 = vmul.f32 0.17677669, %v3306_v20  ;;  %vm821_vm1 = vweird.f32 %v3443_v39  ;;  %v1949_v26 = vld [vmem:[#allocation7 + $0x138] sm:$0xff] }
 0x15a   :  { %2055 = vmatmul.f32.gmra.mxu3 %v377_v8  ;;  %v444_v16 = vcvt.s32.f32 %v428_v5  ;;  %v827_v23 = vand.u32 2147483648, %v3443_v39 }
 0x15b   :  { %v1021_v1 = vmul.f32 %v989_v0, %v801_v3 }
 0x15c   :  { %1996 = vmatmul.f32.gmra.mxu2 %v363_v29  ;;  %v460_v9 = vmul.f32 %v444_v16, %v444_v16  ;;  %v431_v29 = vsub.s32 %v396_v36, %v3346_v56 }
 0x15d   :  { %v3415_v42 = vpop.f32.mrf.mxu1 }
 0x15e   :  { %1290 = vadd.xlane.f32.xlu2 %v3378_v57  ;;  %v447_v51 = vcvt.s32.f32 %v431_v29  ;;  %v811_v29 = vand.u32 2147483647, %v3460_v50 }
 0x15f   :  { %v211_v25 = vpop.f32.mrf.mxu0  ;;  %v1062_v40 = vpop.permute.xlu2 %1061 }
 0x160   :  { %v378_v31 = vmul.f32 0.17677669, %v211_v25  ;;  %v463_v58 = vmul.f32 %v447_v51, %v447_v51  ;;  %v814_v51 = vor.u32 1.1754944e-38, %v813_v4  ;;  %vm812_vm9 = vcmp.eq.f32.partialorder %v811_v29, 8.507059e+37 }
 0x162   :  { %2058 = vmatmul.f32.gmra.mxu3 %v378_v31  ;;  %v3438_v31 = vsel %vm473_vm4, %v460_v9, 3e+38  ;;  %v3478_v0 = vsel %vm473_vm4, %v463_v58, 3e+38 }
 0x163   :  { %4876 = vst [vmem:[#allocation19_spill] sm:$0xff] %v3438_v31  ;;  %v1197_v35 = vmul.f32 %v1052_v32, %v3438_v31 }
 0x164   :  { %1999 = vmatmul.f32.gmra.mxu2 %v364_v2  ;;  %v1234_v2 = vmul.f32 1.442695, %v1198_v43  ;;  %4879 = vst [vmem:[#allocation22_spill] sm:$0xff] %v3478_v0  ;;  %v371_v43 = vmul.f32 0.17677669, %v3336_v30 }
 0x165   :  { %v3421_v62 = vpop.f32.mrf.mxu1 }
 0x167   :  { %1292 = vadd.xlane.f32.xlu0 %v3395_v13  ;;  %v214_v41 = vpop.f32.mrf.mxu0  ;;  %v1067_v7 = vpop.permute.xlu0 %1066 }
 0x168   :  { %v379_v48 = vmul.f32 0.17677669, %v214_v41  ;;  %v3448_v41 = vsel %vm473_vm4, %v462_v28, 3e+38  ;;  %v1200_v15 = vmul.f32 %v1067_v7, %v3478_v0 }
 0x169   :  { %4877 = vst [vmem:[#allocation20_spill] sm:$0xff] %v3448_v41  ;;  %v1199_v60 = vmul.f32 %v1062_v40, %v3448_v41 }
 0x16a   :  { %2061 = vmatmul.f32.gmra.mxu3 %v379_v48  ;;  %v1232_v48 = vmul.f32 1.442695, %v1197_v35 }
 0x16c   :  { %2002 = vmatmul.f32.gmra.mxu2 %v365_v14  ;;  %2819 = vpow2.f32 %v1232_v48  ;;  %v3482_v14 = vadd.f32 1e-08, %v3415_v42 }
 0x16d   :  { %v3427_v10 = vpop.f32.mrf.mxu1  ;;  %2821 = vrcp.f32 %v3460_v50 }
 0x16e   :  { %vm835_vm10 = vweird.f32 %v3482_v14 }
 0x16f   :  { %1294 = vadd.xlane.f32.xlu1 %v3412_v34  ;;  %v217_v61 = vpop.f32.mrf.mxu0 }
 0x170   :  { %v380_v63 = vmul.f32 0.17677669, %v217_v61  ;;  %v1236_v61 = vmul.f32 1.442695, %v1199_v60 }
 0x172   :  { %2064 = vmatmul.f32.gmra.mxu3 %v380_v63  ;;  %2823 = vpow2.f32 %v1236_v61 }
 0x173   :  { %2825 = vpow2.f32 %v1234_v2 }
 0x174   :  { %2005 = vmatmul.f32.gmra.mxu2 %v366_v21  ;;  %2827 = vrcp.f32 %v3482_v14 }
 0x176   :  { %1121 = vperm.xlu2 %2770, %v1019_v45  }
 0x177   :  { %v220_v8 = vpop.f32.mrf.mxu0  ;;  %v3434_v25 = vpop.f32.mrf.mxu1 }
 0x178   :  { %v381_v11 = vmul.f32 0.17677669, %v220_v8 }
 0x17a   :  { %2067 = vmatmul.f32.gmra.mxu3 %v381_v11  ;;  %v369_v11 = vmul.f32 0.17677669, %v3316_v44  ;;  %v1238_v44 = vmul.f32 1.442695, %v1200_v15 }
 0x17b   :  { %1126 = vperm.xlu0 %2768, %v1020_v52   ;;  %v3463_v52 = vpop.eup %2817 }
 0x17c   :  { %2008 = vmatmul.f32.gmra.mxu2 %v367_v37  ;;  %v817_v3 = vmul.f32 %v3463_v52, %v3443_v39  ;;  %v3471_v5 = vpop.eup %2819  ;;  %vm822_vm2 = vweird.f32 %v3463_v52  ;;  %2829 = vpow2.f32 %v1238_v44  ;;  %v828_v37 = vor.u32 1.1754944e-38, %v827_v23 }
 0x17d   :  { %v3474_v20 = vpop.eup %2821  ;;  %vm3503_vm3 = vmor %vm821_vm1, %vm822_vm2 }
 0x17e   :  { %v818_v8 = vsub.f32 1.0, %v817_v3  ;;  %v803_v16 = vmul.f32 %v3474_v20, %v3460_v50  ;;  %v3489_v17 = vpop.eup %2823  ;;  %vm808_vm7 = vweird.f32 %v3474_v20  ;;  %v398_v50 = vadd.s32 64, %v3344_v55 }
 0x17f   :  { %v223_v24 = vpop.f32.mrf.mxu0  ;;  %v3450_v47 = vpop.f32.mrf.mxu1  ;;  %vm809_vm8 = vmor %vm807_vm6, %vm808_vm7 }
 0x180   :  { %v382_v19 = vmul.f32 0.17677669, %v223_v24  ;;  %v819_v9 = vmul.f32 %v3463_v52, %v818_v8  ;;  %v3493_v21 = vpop.eup %2825  ;;  %v804_v42 = vsub.f32 1.0, %v803_v16  ;;  %v433_v8 = vsub.s32 %v398_v50, %v3346_v56 }
 0x181   :  { %v3510_v33 = vpop.eup %2827  ;;  %v372_v16 = vmul.f32 0.17677669, %v3342_v53 }
 0x182   :  { %2070 = vmatmul.f32.gmra.mxu3 %v382_v19  ;;  %v820_v24 = vadd.f32 %v3463_v52, %v819_v9  ;;  %v825_v19 = vand.u32 2147483647, %v3443_v39  ;;  %v805_v28 = vmul.f32 %v3474_v20, %v804_v42  ;;  %v3522_v60 = vpop.eup %2829  ;;  %vm836_vm11 = vweird.f32 %v3510_v33 }
 0x183   :  { %v3540_v9 = vadd.f32 1e-08, %v3421_v62  ;;  %v839_v42 = vand.u32 2147483647, %v3482_v14  ;;  %vm3546_vm12 = vmor %vm835_vm10, %vm836_vm11  ;;  %v399_v62 = vadd.s32 72, %v3344_v55 }
 0x184   :  { %2011 = vmatmul.f32.gmra.mxu2 %v368_v54  ;;  %v824_v39 = vsel %vm3503_vm3, %v3463_v52, %v820_v24  ;;  %vm826_vm5 = vcmp.eq.f32.partialorder %v825_v19, 8.507059e+37  ;;  %v806_v48 = vadd.f32 %v3474_v20, %v805_v28  ;;  %v449_v19 = vcvt.s32.f32 %v433_v8 }
 0x185   :  { %2831 = vrcp.f32 %v3540_v9  ;;  %vm840_vm13 = vcmp.eq.f32.partialorder %v839_v42, 8.507059e+37  ;;  %vm849_vm14 = vweird.f32 %v3540_v9 }
 0x186   :  { %v810_v61 = vsel %vm809_vm8, %v3474_v20, %v806_v48  ;;  %v465_v4 = vmul.f32 %v449_v19, %v449_v19  ;;  %v1072_v48 = vpop.permute.xlu1 %1071 }
 0x187   :  { %v226_v45 = vpop.f32.mrf.mxu0  ;;  %v3467_v63 = vpop.f32.mrf.mxu1  ;;  %v815_v3 = vsel %vm812_vm9, %v814_v51, %v810_v61 }
 0x188   :  { %1131 = vperm.xlu1 %2769, %v1021_v1   ;;  %v383_v49 = vmul.f32 0.17677669, %v226_v45  ;;  %v831_v45 = vmul.f32 %v3510_v33, %v3482_v14  ;;  %v990_v15 = vmul.f32 -0.5, %v815_v3  ;;  %v3563_v51 = vpop.permute.xlu0 %1081 }
 0x18a   :  { %2073 = vmatmul.f32.gmra.mxu3 %v383_v49  ;;  %v829_v49 = vsel %vm826_vm5, %v828_v37, %v824_v39  ;;  %v832_v52 = vsub.f32 1.0, %v831_v45  ;;  %v1022_v28 = vmul.f32 %v990_v15, %v815_v3  ;;  %v400_v37 = vadd.s32 80, %v3344_v55  ;;  %v1945_v15 = vld [vmem:[#allocation7 + $0xf8] sm:$0xff] }
 0x18b   :  { %v991_v54 = vmul.f32 -0.5, %v829_v49  ;;  %2508 = vmatpush.msrb.mxu2 %v1945_v15 }
 0x18c   :  { %2014 = vmatmul.f32.gmra.mxu2 %v369_v11  ;;  %v833_v30 = vmul.f32 %v3510_v33, %v832_v52  ;;  %v1077_v11 = vpop.permute.xlu2 %1076 }
 0x18d   :  { %v1023_v7 = vmul.f32 %v991_v54, %v829_v49 }
 0x18e   :  { %v834_v44 = vadd.f32 %v3510_v33, %v833_v30 }
 0x18f   :  { %v229_v46 = vpop.f32.mrf.mxu0  ;;  %v3487_v12 = vpop.f32.mrf.mxu1 }
 0x190   :  { %v384_v6 = vmul.f32 0.17677669, %v229_v46  ;;  %v838_v39 = vsel %vm3546_vm12, %v3510_v33, %v834_v44  ;;  %v3569_v33 = vsel %vm473_vm4, %v465_v4, 3e+38 }
 0x191   :  { %4886 = vst [vmem:[#allocation25_spill] sm:$0xff] %v3569_v33 }
 0x192   :  { %2076 = vmatmul.f32.gmra.mxu3 %v384_v6  ;;  %v397_v6 = vadd.s32 56, %v3344_v55 }
 0x194   :  { %2017 = vmatmul.f32.gmra.mxu2 %v370_v27  ;;  %v432_v20 = vsub.s32 %v397_v6, %v3346_v56  ;;  %v3560_v29 = vpop.permute.xlu2 %1091  ;;  %v1944_v27 = vld [vmem:[#allocation7 + $0xe8] sm:$0xff] }
 0x195   :  { %2509 = vmatpush.msrb.mxu2 %v1944_v27 }
 0x196   :  { %v448_v32 = vcvt.s32.f32 %v432_v20 }
 0x197   :  { %v232_v1 = vpop.f32.mrf.mxu0  ;;  %v3597_v4 = vpop.permute.xlu0 %1096 }
 0x198   :  { %v385_v18 = vmul.f32 0.17677669, %v232_v1  ;;  %v3508_v36 = vpop.f32.mrf.mxu1  ;;  %v401_v1 = vadd.s32 88, %v3344_v55  ;;  %v464_v45 = vmul.f32 %v448_v32, %v448_v32 }
 0x199   :  { %4882 = vst [vmem:[#allocation23_spill] sm:$0xff] %v3508_v36 }
 0x19a   :  { %2079 = vmatmul.f32.gmra.mxu3 %v385_v18  ;;  %v841_v18 = vand.u32 2147483648, %v3482_v14  ;;  %v3555_v14 = vadd.f32 1e-08, %v3427_v10  ;;  %v435_v10 = vsub.s32 %v400_v37, %v3346_v56  ;;  %v3576_v6 = vsel %vm473_vm4, %v464_v45, 3e+38  ;;  %v1943_v45 = vld [vmem:[#allocation7 + $0xd8] sm:$0xff] }
 0x19b   :  { %4887 = vst [vmem:[#allocation26_spill] sm:$0xff] %v3576_v6  ;;  %2510 = vmatpush.msrb.mxu2 %v1943_v45 }
 0x19c   :  { %2020 = vmatmul.f32.gmra.mxu2 %v371_v43  ;;  %v434_v43 = vsub.s32 %v399_v62, %v3346_v56  ;;  %2833 = vrcp.f32 %v3555_v14  ;;  %v3591_v62 = vadd.f32 1e-08, %v3434_v25  ;;  %vm863_vm1 = vweird.f32 %v3555_v14 }
 0x19e   :  { %v450_v30 = vcvt.s32.f32 %v434_v43 }
 0x19f   :  { %1296 = vadd.xlane.f32.xlu2 %v3471_v5  ;;  %v235_v35 = vpop.f32.mrf.mxu0 }
 0x1a0   :  { %v386_v40 = vmul.f32 0.17677669, %v235_v35  ;;  %v3527_v2 = vpop.f32.mrf.mxu1  ;;  %v436_v35 = vsub.s32 %v401_v1, %v3346_v56  ;;  %v451_v1 = vcvt.s32.f32 %v435_v10 }
 0x1a2   :  { %2082 = vmatmul.f32.gmra.mxu3 %v386_v40  ;;  %v842_v40 = vor.u32 1.1754944e-38, %v841_v18  ;;  %v452_v49 = vcvt.s32.f32 %v436_v35  ;;  %v402_v18 = vadd.s32 96, %v3344_v55  ;;  %v3586_v35 = vpop.permute.xlu1 %1086  ;;  %v467_v43 = vmul.f32 %v451_v1, %v451_v1  ;;  %v1958_v1 = vld [vmem:[#allocation7 + $0x1c8] sm:$0xff] }
 0x1a4   :  { %2023 = vmatmul.f32.gmra.mxu2 %v372_v16  ;;  %v843_v52 = vsel %vm840_vm13, %v842_v40, %v838_v39  ;;  %v1202_v16 = vmul.f32 %v1077_v11, %v3569_v33  ;;  %v3588_v11 = vpop.permute.xlu2 %1106  ;;  %v466_v39 = vmul.f32 %v450_v30, %v450_v30  ;;  %v437_v10 = vsub.s32 %v402_v18, %v3346_v56 }
 0x1a5   :  { %1300 = vadd.xlane.f32.xlu0 %v3489_v17  ;;  %v992_v3 = vmul.f32 -0.5, %v843_v52 }
 0x1a7   :  { %1298 = vadd.xlane.f32.xlu2 %v3493_v21  ;;  %v238_v46 = vpop.f32.mrf.mxu0  ;;  %v1024_v37 = vmul.f32 %v992_v3, %v843_v52  ;;  %v1942_v3 = vld [vmem:[#allocation7 + $0xc8] sm:$0xff] }
 0x1a8   :  { %v387_v58 = vmul.f32 0.17677669, %v238_v46  ;;  %v3544_v24 = vpop.f32.mrf.mxu1  ;;  %v404_v46 = vadd.s32 112, %v3344_v55  ;;  %2511 = vmatpush.msrb.mxu2 %v1942_v3 }
 0x1a9   :  { %4883 = vst [vmem:[#allocation24_spill] sm:$0xff] %v3544_v24 }
 0x1aa   :  { %2085 = vmatmul.f32.gmra.mxu3 %v387_v58  ;;  %v3572_v58 = vpop.eup %2831  ;;  %v439_v44 = vsub.s32 %v404_v46, %v3346_v56  ;;  %v3621_v45 = vpop.permute.xlu1 %1101 }
 0x1ab   :  { %v845_v42 = vmul.f32 %v3572_v58, %v3540_v9  ;;  %v3583_v32 = vpop.eup %2833  ;;  %4891 = vst [vmem:[#allocation30_spill] sm:$0xff] %v3621_v45  ;;  %vm850_vm15 = vweird.f32 %v3572_v58 }
 0x1ac   :  { %v859_v46 = vmul.f32 %v3583_v32, %v3555_v14  ;;  %vm3651_vm0 = vmor %vm849_vm14, %vm850_vm15  ;;  %vm864_vm2 = vweird.f32 %v3583_v32 }
 0x1ad   :  { %vm3696_vm5 = vmor %vm863_vm1, %vm864_vm2 }
 0x1ae   :  { %v860_v27 = vsub.f32 1.0, %v859_v46 }
 0x1af   :  { %v241_v23 = vpop.f32.mrf.mxu0 }
 0x1b0   :  { %v388_v53 = vmul.f32 0.17677669, %v241_v23 }
 0x1b2   :  { %1302 = vadd.xlane.f32.xlu1 %v3522_v60  ;;  %2088 = vmatmul.f32.gmra.mxu3 %v388_v53  ;;  %v1961_v53 = vld [vmem:[#allocation7 + $0x1f8] sm:$0xff] }
 0x1b3   :  { %2573 = vmatpush.msrb.mxu3 %v1961_v53 }
 0x1b7   :  { %v1979_v54 = vpop.f32.mrf.mxu0  ;;  %v2044_v61 = vpop.f32.mrf.mxu1 }
 0x1b8   :  { %v2092_v50 = vmax.f32 %v1979_v54, %v2044_v61 }
 0x1b9   :  { %1141 = vperm.xlu0 %2768, %v1023_v7   ;;  %v468_v7 = vmul.f32 %v452_v49, %v452_v49  ;;  %v1242_v49 = vmul.f32 1.442695, %v1202_v16  ;;  %v1941_v16 = vld [vmem:[#allocation7 + $0xb8] sm:$0xff] }
 0x1ba   :  { %v2108_v8 = vsub.f32 %v1979_v54, %v2092_v50  ;;  %v2124_v20 = vsub.f32 %v2044_v61, %v2092_v50  ;;  %v455_v54 = vcvt.s32.f32 %v439_v44  ;;  %v846_v61 = vsub.f32 1.0, %v845_v42  ;;  %2512 = vmatpush.msrb.mxu2 %v1941_v16 }
 0x1bb   :  { %v3595_v40 = vsel %vm473_vm4, %v468_v7, 3e+38  ;;  %v1959_v7 = vld [vmem:[#allocation7 + $0x1d8] sm:$0xff]  ;;  %v3611_v44 = vsel %vm473_vm4, %v467_v43, 3e+38  ;;  %v453_v42 = vcvt.s32.f32 %v437_v10  ;;  %v3624_v10 = vpop.permute.xlu0 %1111 }
 0x1bc   :  { %v2140_v23 = vmul.f32 1.442695, %v2108_v8  ;;  %v2172_v19 = vmul.f32 1.442695, %v2124_v20  ;;  %4888 = vst [vmem:[#allocation27_spill] sm:$0xff] %v3595_v40  ;;  %v1205_v18 = vmul.f32 %v3560_v29, %v3595_v40  ;;  %v1957_v43 = vld [vmem:[#allocation7 + $0x1b8] sm:$0xff] }
 0x1bd   :  { %v3605_v8 = vsel %vm473_vm4, %v466_v39, 3e+38  ;;  %4890 = vst [vmem:[#allocation29_spill] sm:$0xff] %v3611_v44  ;;  %v403_v39 = vadd.s32 104, %v3344_v55  ;;  %v469_v3 = vmul.f32 %v453_v42, %v453_v42  ;;  %v3644_v42 = vadd.f32 1e-08, %v3450_v47 }
 0x1be   :  { %2835 = vpow2.f32 %v2140_v23  ;;  %4889 = vst [vmem:[#allocation28_spill] sm:$0xff] %v3605_v8  ;;  %v1203_v29 = vmul.f32 %v3563_v51, %v3605_v8  ;;  %v1939_v51 = vld [vmem:[#allocation7 + $0x98] sm:$0xff]  ;;  %v1954_v47 = vld [vmem:[#allocation7 + $0x188] sm:$0xff] }
 0x1bf   :  { %1136 = vperm.xlu2 %2770, %v1022_v28   ;;  %v1201_v28 = vmul.f32 %v1072_v48, %v3576_v6  ;;  %v1960_v48 = vld [vmem:[#allocation7 + $0x1e8] sm:$0xff]  ;;  %2837 = vpow2.f32 %v2172_v19  ;;  %v1982_v25 = vpop.f32.mrf.mxu0  ;;  %v2047_v52 = vpop.f32.mrf.mxu1  ;;  %v471_v19 = vmul.f32 %v455_v54, %v455_v54  ;;  %4892 = vst [vmem:[#allocation31_spill] sm:$0xff] %v3624_v10  ;;  %v1933_v6 = vld [vmem:[#allocation7 + $0x38] sm:$0xff] }
 0x1c0   :  { %v2093_v50 = vmax.f32 %v1982_v25, %v2047_v52  ;;  %2574 = vmatpush.msrb.mxu3 %v1960_v48  ;;  %2839 = vrcp.f32 %v3591_v62  ;;  %v1931_v10 = vld [vmem:[#allocation7 + $0x18] sm:$0xff] }
 0x1c1   :  { %v1240_v30 = vmul.f32 1.442695, %v1201_v28  ;;  %2841 = vpow2.f32 %v1242_v49  ;;  %v847_v28 = vmul.f32 %v3572_v58, %v846_v61  ;;  %v1940_v49 = vld [vmem:[#allocation7 + $0xa8] sm:$0xff] }
 0x1c2   :  { %v2109_v20 = vsub.f32 %v1982_v25, %v2093_v50  ;;  %v2125_v15 = vsub.f32 %v2047_v52, %v2093_v50  ;;  %2575 = vmatpush.msrb.mxu3 %v1959_v7  ;;  %2513 = vmatpush.msrb.mxu2 %v1940_v49  ;;  %v1956_v61 = vld [vmem:[#allocation7 + $0x1a8] sm:$0xff]  ;;  %v1248_v50 = vmul.f32 1.442695, %v1205_v18  ;;  %v855_v7 = vand.u32 2147483648, %v3540_v9 }
 0x1c3   :  { %2843 = vpow2.f32 %v1240_v30  ;;  %v1938_v30 = vld [vmem:[#allocation7 + $0x88] sm:$0xff]  ;;  %v848_v16 = vadd.f32 %v3572_v58, %v847_v28  ;;  %v1244_v49 = vmul.f32 1.442695, %v1203_v29  ;;  %v438_v18 = vsub.s32 %v403_v39, %v3346_v56  ;;  %v1937_v28 = vld [vmem:[#allocation7 + $0x78] sm:$0xff] }
 0x1c4   :  { %v3613_v23 = vpop.eup %2835  ;;  %v2142_v53 = vmul.f32 1.442695, %v2109_v20  ;;  %2576 = vmatpush.msrb.mxu3 %v1958_v1  ;;  %v2174_v54 = vmul.f32 1.442695, %v2125_v15  ;;  %2514 = vmatpush.msrb.mxu2 %v1939_v51  ;;  %v1955_v20 = vld [vmem:[#allocation7 + $0x198] sm:$0xff]  ;;  %v861_v15 = vmul.f32 %v3583_v32, %v860_v27  ;;  %v1952_v27 = vld [vmem:[#allocation7 + $0x168] sm:$0xff] }
 0x1c5   :  { %v853_v1 = vand.u32 2147483647, %v3540_v9  ;;  %v3665_v9 = vsel %vm473_vm4, %v471_v19, 3e+38  ;;  %v3669_v39 = vsel %vm473_vm4, %v469_v3, 3e+38 }
 0x1c6   :  { %2577 = vmatpush.msrb.mxu3 %v1957_v43  ;;  %2845 = vpow2.f32 %v2142_v53  ;;  %2515 = vmatpush.msrb.mxu2 %v1938_v30  ;;  %4895 = vst [vmem:[#allocation32_spill] sm:$0xff] %v3669_v39  ;;  %v856_v43 = vor.u32 1.1754944e-38, %v855_v7  ;;  %v867_v51 = vand.u32 2147483647, %v3555_v14  ;;  %v1953_v30 = vld [vmem:[#allocation7 + $0x178] sm:$0xff]  ;;  %v3686_v7 = vmul.f32 %v3586_v35, %v3611_v44 }
 0x1c7   :  { %vm3678_vm3 = vcmp.eq.f32.partialorder %v853_v1, 8.507059e+37  ;;  %v1985_v1 = vpop.f32.mrf.mxu2  ;;  %v1951_v44 = vld [vmem:[#allocation7 + $0x158] sm:$0xff] }
 0x1c8   :  { %2578 = vmatpush.msrb.mxu3 %v1956_v61  ;;  %2516 = vmatpush.msrb.mxu2 %v1937_v28  ;;  %v1936_v61 = vld [vmem:[#allocation7 + $0x68] sm:$0xff]  ;;  %vm3726_vm6 = vcmp.eq.f32.partialorder %v867_v51, 8.507059e+37 }
 0x1ca   :  { %2579 = vmatpush.msrb.mxu3 %v1955_v20  ;;  %v3688_v20 = vcvt.s32.f32 %v438_v18  ;;  %2517 = vmatpush.msrb.mxu2 %v1936_v61 }
 0x1cb   :  { %1146 = vperm.xlu1 %2769, %v1024_v37   ;;  %v3616_v37 = vpop.eup %2837 }
 0x1cc   :  { %v3630_v52 = vadd.f32 %v3616_v37, %v3613_v23  ;;  %v3633_v46 = vpop.eup %2839  ;;  %2580 = vmatpush.msrb.mxu3 %v1954_v47  ;;  %4898 = vst [vmem:[#allocation33_spill] sm:$0xff] %v3688_v20 }
 0x1cd   :  { %v3657_v53 = vmul.f32 %v3633_v46, %v3591_v62  ;;  %v2050_v33 = vpop.f32.mrf.mxu3 }
 0x1ce   :  { %2581 = vmatpush.msrb.mxu3 %v1953_v30  ;;  %vm2225_vm10 = vweird.f32 %v3630_v52 }
 0x1d0   :  { %2582 = vmatpush.msrb.mxu3 %v1952_v27 }
 0x1d1   :  { %v1291_v48 = vpop.xlane.xlu2 %1290 }
 0x1d2   :  { %v3626_v25 = vmax.f32 %v1291_v48, 1e-30  ;;  %v3640_v48 = vpop.eup %2841  ;;  %2583 = vmatpush.msrb.mxu3 %v1951_v44 }
 0x1d3   :  { %v3661_v29 = vpop.eup %2843 }
 0x1d4   :  { %2847 = vrcp.f32 %v3626_v25  ;;  %v3682_v3 = vpop.eup %2845  ;;  %v1395_v18 = vand.u32 2147483647, %v3626_v25  ;;  %v1397_v47 = vand.u32 2147483648, %v3626_v25  ;;  %vm1391_vm7 = vweird.f32 %v3626_v25 }
 0x1d5   :  { %2849 = vrcp.f32 %v3630_v52 }
 0x1d6   :  { %2851 = vpow2.f32 %v2174_v54  ;;  %v3672_v54 = vadd.f32 %v3583_v32, %v861_v15  ;;  %v3690_v15 = vpop.permute.xlu1 %1116  ;;  %vm3736_vm8 = vcmp.eq.f32.partialorder %v1395_v18, 8.507059e+37  ;;  %v1398_v31 = vor.u32 1.1754944e-38, %v1397_v47  ;;  %v1932_v18 = vld [vmem:[#allocation7 + $0x28] sm:$0xff] }
 0x1d7   :  { %2853 = vpow2.f32 %v1248_v50  ;;  %v852_v50 = vsel %vm3651_vm0, %v3572_v58, %v848_v16  ;;  %4899 = vst [vmem:[#allocation34_spill] sm:$0xff] %v3690_v15  ;;  %v869_v16 = vand.u32 2147483648, %v3555_v14  ;;  %v3710_v14 = vadd.f32 1e-08, %v3467_v63  ;;  %v1950_v15 = vld [vmem:[#allocation7 + $0x148] sm:$0xff] }
 0x1d8   :  { %2855 = vpow2.f32 %v1244_v49  ;;  %v1935_v49 = vld [vmem:[#allocation7 + $0x58] sm:$0xff]  ;;  %v3718_v35 = vsel %vm3678_vm3, %v856_v43, %v852_v50  ;;  %v2094_v63 = vmax.f32 %v1985_v1, %v2050_v33  ;;  %2584 = vmatpush.msrb.mxu3 %v1950_v15 }
 0x1d9   :  { %2857 = vrcp.f32 %v3644_v42  ;;  %2518 = vmatpush.msrb.mxu2 %v1935_v49  ;;  %v870_v61 = vor.u32 1.1754944e-38, %v869_v16 }
 0x1da   :  { %v3701_v28 = vpop.eup %2847  ;;  %v1293_v40 = vpop.xlane.xlu0 %1292  ;;  %v2110_v27 = vsub.f32 %v1985_v1, %v2094_v63  ;;  %v2126_v16 = vsub.f32 %v2050_v33, %v2094_v63  ;;  %v1948_v33 = vld [vmem:[#allocation7 + $0x128] sm:$0xff]  ;;  %2585 = vmatpush.msrb.mxu3 %v1949_v26 }
 0x1db   :  { %v3707_v41 = vpop.eup %2849  ;;  %v1387_v8 = vmul.f32 %v3701_v28, %v3626_v25  ;;  %v3714_v59 = vmax.f32 %v1293_v40, 1e-30  ;;  %v1934_v40 = vld [vmem:[#allocation7 + $0x48] sm:$0xff]  ;;  %vm1392_vm9 = vweird.f32 %v3701_v28 }
 0x1dc   :  { %v3720_v0 = vpop.eup %2851  ;;  %v2221_v43 = vmul.f32 %v3707_v41, %v3630_v52  ;;  %2519 = vmatpush.msrb.mxu2 %v1934_v40  ;;  %v2144_v1 = vmul.f32 1.442695, %v2110_v27  ;;  %v2176_v40 = vmul.f32 1.442695, %v2126_v16  ;;  %vm2226_vm11 = vweird.f32 %v3707_v41  ;;  %vm3760_vm12 = vmor %vm1391_vm7, %vm1392_vm9  ;;  %2586 = vmatpush.msrb.mxu3 %v1948_v33 }
 0x1dd   :  { %v3732_v50 = vpop.eup %2853  ;;  %v1388_v19 = vsub.f32 1.0, %v1387_v8  ;;  %2859 = vrcp.f32 %v3714_v59  ;;  %v3742_v49 = vadd.f32 %v3720_v0, %v3682_v3  ;;  %v1409_v24 = vand.u32 2147483647, %v3714_v59  ;;  %vm3785_vm13 = vmor %vm2225_vm10, %vm2226_vm11 }
 0x1de   :  { %v3744_v8 = vpop.eup %2855  ;;  %v2222_v38 = vsub.f32 1.0, %v2221_v43  ;;  %2520 = vmatpush.msrb.mxu2 %v1933_v6  ;;  %v1411_v6 = vand.u32 2147483648, %v3714_v59  ;;  %v2229_v27 = vand.u32 2147483647, %v3630_v52  ;;  %vm1405_vm14 = vweird.f32 %v3714_v59 }
 0x1df   :  { %v1389_v22 = vmul.f32 %v3701_v28, %v1388_v19  ;;  %v3748_v47 = vpop.eup %2857  ;;  %2861 = vrcp.f32 %v3742_v49  ;;  %v1988_v19 = vpop.f32.mrf.mxu2  ;;  %vm3803_vm15 = vcmp.eq.f32.partialorder %v1409_v24, 8.507059e+37  ;;  %vm2239_vm2 = vweird.f32 %v3742_v49 }
 0x1e0   :  { %v2223_v63 = vmul.f32 %v3707_v41, %v2222_v38  ;;  %2863 = vpow2.f32 %v2144_v1  ;;  %2521 = vmatpush.msrb.mxu2 %v1932_v18  ;;  %v2231_v38 = vand.u32 2147483648, %v3630_v52  ;;  %v1930_v1 = vld [vmem:[#allocation7 + $0x8] sm:$0xff]  ;;  %v1947_v18 = vld [vmem:[#allocation7 + $0x118] sm:$0xff]  ;;  %v1412_v58 = vor.u32 1.1754944e-38, %v1411_v6 }
 0x1e1   :  { %v1390_v44 = vadd.f32 %v3701_v28, %v1389_v22  ;;  %v2053_v22 = vpop.f32.mrf.mxu3  ;;  %2865 = vpow2.f32 %v2176_v40  ;;  %v1946_v52 = vld [vmem:[#allocation7 + $0x108] sm:$0xff]  ;;  %2587 = vmatpush.msrb.mxu3 %v1947_v18  ;;  %vm2230_vm0 = vcmp.eq.f32.partialorder %v2229_v27, 8.507059e+37 }
 0x1e2   :  { %v1295_v15 = vpop.xlane.xlu1 %1294  ;;  %v2095_v36 = vmax.f32 %v1988_v19, %v2053_v22  ;;  %2867 = vrcp.f32 %v3710_v14  ;;  %2522 = vmatpush.msrb.mxu2 %v1931_v10 }
 0x1e3   :  { %v3767_v16 = vpop.eup %2859  ;;  %v1394_v25 = vsel %vm3760_vm12, %v3701_v28, %v1390_v44  ;;  %v3772_v45 = vmax.f32 %v1295_v15, 1e-30  ;;  %1306 = vadd.xlane.f32.xlu0 %v3640_v48  ;;  %v2224_v28 = vadd.f32 %v3707_v41, %v2223_v63  ;;  %2588 = vmatpush.msrb.mxu3 %v1946_v52  ;;  %v881_v63 = vand.u32 2147483647, %v3591_v62 }
 0x1e4   :  { %v1399_v26 = vsel %vm3736_vm8, %v1398_v31, %v1394_v25  ;;  %v1401_v20 = vmul.f32 %v3767_v16, %v3714_v59  ;;  %v4910_v31 = vsel %vm3696_vm5, %v3583_v32, %v3672_v54  ;;  %v2127_v43 = vsub.f32 %v2053_v22, %v2095_v36  ;;  %2523 = vmatpush.msrb.mxu2 %v1930_v1 }
 0x1e5   :  { %v1834_v40 = vmul.f32 %v3378_v57, %v1399_v26  ;;  %2869 = vrcp.f32 %v3772_v45  ;;  %v3799_v10 = vsel %vm3726_vm6, %v870_v61, %v4910_v31  ;;  %v3801_v51 = vpop.eup %2861  ;;  %v2111_v57 = vsub.f32 %v1988_v19, %v2095_v36 }
 0x1e6   :  { %v1402_v33 = vsub.f32 1.0, %v1401_v20  ;;  %v2228_v32 = vsel %vm3785_vm13, %v3707_v41, %v2224_v28  ;;  %v2232_v54 = vor.u32 1.1754944e-38, %v2231_v38  ;;  %v3810_v61 = vpop.eup %2863  ;;  %vm1406_vm1 = vweird.f32 %v3767_v16 }
 0x1e7   :  { %1866 = vst [vmem:[#allocation9] sm:$0xff] %v1834_v40  ;;  %v2146_v24 = vmul.f32 1.442695, %v2111_v57  ;;  %v2178_v36 = vmul.f32 1.442695, %v2127_v43  ;;  %v3815_v30 = vpop.eup %2865  ;;  %v1991_v6 = vpop.f32.mrf.mxu2  ;;  %v2235_v41 = vmul.f32 %v3801_v51, %v3742_v49  ;;  %vm2240_vm3 = vweird.f32 %v3801_v51  ;;  %vm1407_vm5 = vmor %vm1405_vm14, %vm1406_vm1 }
 0x1e8   :  { %v1403_v20 = vmul.f32 %v3767_v16, %v1402_v33  ;;  %1304 = vadd.xlane.f32.xlu2 %v3661_v29  ;;  %v2233_v19 = vsel %vm2230_vm0, %v2232_v54, %v2228_v32  ;;  %v3821_v15 = vpop.eup %2867  ;;  %v3826_v27 = vadd.f32 %v3815_v30, %v3810_v61  ;;  %v994_v59 = vmul.f32 -0.5, %v3799_v10  ;;  %vm3849_vm6 = vmor %vm2239_vm2, %vm2240_vm3 }
 0x1e9   :  { %2871 = vpow2.f32 %v2146_v24  ;;  %v2444_v38 = vmul.f32 %v3613_v23, %v2233_v19  ;;  %v2056_v25 = vpop.f32.mrf.mxu3  ;;  %v2460_v18 = vmul.f32 %v3616_v37, %v2233_v19  ;;  %v2236_v28 = vsub.f32 1.0, %v2235_v41 }
 0x1ea   :  { %v1404_v22 = vadd.f32 %v3767_v16, %v1403_v20  ;;  %2873 = vpow2.f32 %v2178_v36  ;;  %v2096_v26 = vmax.f32 %v1991_v6, %v2056_v25  ;;  %v2243_v23 = vand.u32 2147483647, %v3742_v49 }
 0x1eb   :  { %v2870_v1 = vpop.eup %2869  ;;  %2875 = vrcp.f32 %v3826_v27  ;;  %2476 = vst [vmem:[#allocation11] sm:$0xff] %v2444_v38  ;;  %2524 = vmatmul.f32.vlgmr.msrb.gmra.mxu2 %v2444_v38  ;;  %2589 = vmatmul.f32.vlgmr.msrb.gmra.mxu3 %v2460_v18  ;;  %v1423_v57 = vand.u32 2147483647, %v3772_v45  ;;  %v2237_v43 = vmul.f32 %v3801_v51, %v2236_v28  ;;  %v1425_v32 = vand.u32 2147483648, %v3772_v45 }
 0x1ec   :  { %v1408_v44 = vsel %vm1407_vm5, %v3767_v16, %v1404_v22  ;;  %v1415_v40 = vmul.f32 %v2870_v1, %v3772_v45  ;;  %2492 = vst [vmem:[#allocation11 + $0x80] sm:$0xff] %v2460_v18  ;;  %v2112_v37 = vsub.f32 %v1991_v6, %v2096_v26  ;;  %v2128_v52 = vsub.f32 %v2056_v25, %v2096_v26 }
 0x1ed   :  { %v1413_v31 = vsel %vm3803_vm15, %v1412_v58, %v1408_v44  ;;  %v2245_v58 = vand.u32 2147483648, %v3742_v49  ;;  %vm1420_vm7 = vweird.f32 %v2870_v1  ;;  %v2238_v36 = vadd.f32 %v3801_v51, %v2237_v43 }
 0x1ee   :  { %v1835_v33 = vmul.f32 %v3395_v13, %v1413_v31  ;;  %v1416_v16 = vsub.f32 1.0, %v1415_v40  ;;  %v2148_v54 = vmul.f32 1.442695, %v2112_v37  ;;  %v2180_v20 = vmul.f32 1.442695, %v2128_v52 }
 0x1ef   :  { %v3854_v13 = vpop.eup %2871  ;;  %vm3857_vm8 = vcmp.eq.f32.partialorder %v2243_v23, 8.507059e+37  ;;  %vm1419_vm9 = vweird.f32 %v3772_v45  ;;  %v1026_v41 = vmul.f32 %v994_v59, %v3799_v10  ;;  %v2246_v22 = vor.u32 1.1754944e-38, %v2245_v58  ;;  %v1994_v49 = vpop.f32.mrf.mxu2 }
 0x1f0   :  { %1867 = vst [vmem:[#allocation9 + $0x8] sm:$0xff] %v1835_v33  ;;  %v1417_v24 = vmul.f32 %v2870_v1, %v1416_v16  ;;  %v3861_v6 = vpop.eup %2873  ;;  %2877 = vpow2.f32 %v2148_v54  ;;  %vm1424_vm10 = vcmp.eq.f32.partialorder %v1423_v57, 8.507059e+37  ;;  %v2242_v26 = vsel %vm3849_vm6, %v3801_v51, %v2238_v36  ;;  %vm1421_vm11 = vmor %vm1419_vm9, %vm1420_vm7 }
 0x1f1   :  { %v3865_v38 = vpop.eup %2875  ;;  %v3869_v18 = vadd.f32 %v3861_v6, %v3854_v13  ;;  %v2059_v28 = vpop.f32.mrf.mxu3  ;;  %v1426_v45 = vor.u32 1.1754944e-38, %v1425_v32  ;;  %2879 = vpow2.f32 %v2180_v20  ;;  %v2247_v10 = vsel %vm3857_vm8, %v2246_v22, %v2242_v26 }
 0x1f2   :  { %v1418_v25 = vadd.f32 %v2870_v1, %v1417_v24  ;;  %v2097_v44 = vmax.f32 %v1994_v49, %v2059_v28  ;;  %v2445_v23 = vmul.f32 %v3682_v3, %v2247_v10  ;;  %v2461_v31 = vmul.f32 %v3720_v0, %v2247_v10 }
 0x1f3   :  { %2881 = vrcp.f32 %v3869_v18  ;;  %v2249_v52 = vmul.f32 %v3865_v38, %v3826_v27  ;;  %v993_v16 = vmul.f32 -0.5, %v3718_v35  ;;  %v2259_v0 = vand.u32 2147483648, %v3826_v27 }
 0x1f4   :  { %v1422_v40 = vsel %vm1421_vm11, %v2870_v1, %v1418_v25  ;;  %v2113_v51 = vsub.f32 %v1994_v49, %v2097_v44  ;;  %v2129_v37 = vsub.f32 %v2059_v28, %v2097_v44  ;;  %2477 = vst [vmem:[#allocation11 + $0x8] sm:$0xff] %v2445_v23  ;;  %2527 = vmatmul.f32.gmra.mxu2 %v2445_v23  ;;  %v4917_v1 = vsub.f32 1.0, %v3657_v53 }
 0x1f5   :  { %v1427_v59 = vsel %vm1424_vm10, %v1426_v45, %v1422_v40  ;;  %1308 = vadd.xlane.f32.xlu1 %v3744_v8  ;;  %2592 = vmatmul.f32.gmra.mxu3 %v2461_v31  ;;  %2493 = vst [vmem:[#allocation11 + $0x88] sm:$0xff] %v2461_v31  ;;  %v2250_v54 = vsub.f32 1.0, %v2249_v52  ;;  %vm2253_vm12 = vweird.f32 %v3826_v27  ;;  %vm877_vm13 = vweird.f32 %v3591_v62 }
 0x1f6   :  { %v1836_v33 = vmul.f32 %v3412_v34, %v1427_v59  ;;  %v875_v3 = vmul.f32 %v3633_v46, %v4917_v1  ;;  %v3889_v57 = vpop.eup %2877  ;;  %v2150_v43 = vmul.f32 1.442695, %v2113_v51  ;;  %v2182_v32 = vmul.f32 1.442695, %v2129_v37 }
 0x1f7   :  { %1156 = vperm.xlu0 %2768, %v1026_v41   ;;  %v883_v34 = vand.u32 2147483648, %v3591_v62  ;;  %vm2254_vm14 = vweird.f32 %v3865_v38  ;;  %v2257_v53 = vand.u32 2147483647, %v3826_v27  ;;  %v3896_v20 = vpop.eup %2879  ;;  %vm878_vm15 = vweird.f32 %v3633_v46  ;;  %v1997_v58 = vpop.f32.mrf.mxu2 }
 0x1f8   :  { %1868 = vst [vmem:[#allocation9 + $0x10] sm:$0xff] %v1836_v33  ;;  %2883 = vpow2.f32 %v2150_v43  ;;  %v2251_v24 = vmul.f32 %v3865_v38, %v2250_v54  ;;  %v3905_v19 = vadd.f32 %v3896_v20, %v3889_v57  ;;  %v876_v41 = vadd.f32 %v3633_v46, %v875_v3  ;;  %vm3910_vm0 = vmor %vm2253_vm12, %vm2254_vm14 }
 0x1f9   :  { %v3901_v36 = vpop.eup %2881  ;;  %2885 = vpow2.f32 %v2182_v32  ;;  %v2062_v22 = vpop.f32.mrf.mxu3  ;;  %v2260_v25 = vor.u32 1.1754944e-38, %v2259_v0  ;;  %vm2258_vm1 = vcmp.eq.f32.partialorder %v2257_v53, 8.507059e+37  ;;  %v3918_v10 = vmul.f32 1.442695, %v3686_v7  ;;  %vm3929_vm2 = vmor %vm877_vm13, %vm878_vm15 }
 0x1fa   :  { %v2098_v26 = vmax.f32 %v1997_v58, %v2062_v22  ;;  %v2252_v28 = vadd.f32 %v3865_v38, %v2251_v24  ;;  %v2263_v45 = vmul.f32 %v3901_v36, %v3869_v18  ;;  %v3921_v44 = vadd.s32 120, %v3344_v55 }
 0x1fb   :  { %v1025_v27 = vmul.f32 %v993_v16, %v3718_v35  ;;  %2887 = vrcp.f32 %v3905_v19  ;;  %v884_v23 = vor.u32 1.1754944e-38, %v883_v34  ;;  %vm3936_vm3 = vcmp.eq.f32.partialorder %v881_v63, 8.507059e+37 }
 0x1fc   :  { %v2114_v31 = vsub.f32 %v1997_v58, %v2098_v26  ;;  %v2130_v59 = vsub.f32 %v2062_v22, %v2098_v26  ;;  %v2256_v55 = vsel %vm3910_vm0, %v3865_v38, %v2252_v28  ;;  %v2264_v51 = vsub.f32 1.0, %v2263_v45 }
 0x1fd   :  { %v2261_v35 = vsel %vm2258_vm1, %v2260_v25, %v2256_v55  ;;  %v2273_v37 = vand.u32 2147483648, %v3869_v18  ;;  %v880_v52 = vsel %vm3929_vm2, %v3633_v46, %v876_v41  ;;  %vm2267_vm5 = vweird.f32 %v3869_v18 }
 0x1fe   :  { %v3941_v62 = vpop.eup %2883  ;;  %v2152_v33 = vmul.f32 1.442695, %v2114_v31  ;;  %v2184_v16 = vmul.f32 1.442695, %v2130_v59  ;;  %v2446_v1 = vmul.f32 %v3810_v61, %v2261_v35  ;;  %v2462_v38 = vmul.f32 %v3815_v30, %v2261_v35 }
 0x1ff   :  { %v3947_v3 = vpop.eup %2885  ;;  %v2265_v0 = vmul.f32 %v3901_v36, %v2264_v51  ;;  %vm2268_vm6 = vweird.f32 %v3901_v36  ;;  %v2271_v61 = vand.u32 2147483647, %v3869_v18  ;;  %v2274_v30 = vor.u32 1.1754944e-38, %v2273_v37  ;;  %v2000_v53 = vpop.f32.mrf.mxu2 }
 0x200   :  { %1151 = vperm.xlu2 %2770, %v1025_v27   ;;  %v3955_v43 = vadd.f32 %v3947_v3, %v3941_v62  ;;  %2889 = vpow2.f32 %v2152_v33  ;;  %2478 = vst [vmem:[#allocation11 + $0x10] sm:$0xff] %v2446_v1  ;;  %2530 = vmatmul.f32.gmra.mxu2 %v2446_v1  ;;  %vm3957_vm7 = vmor %vm2267_vm5, %vm2268_vm6  ;;  %v1206_v54 = vmul.f32 %v3597_v4, %v3669_v39  ;;  %v3965_v34 = vadd.f32 1e-08, %v3487_v12  ;;  %v3996_v37 = vpop.permute.xlu2 %1121 }
 0x201   :  { %v2888_v32 = vpop.eup %2887  ;;  %2891 = vpow2.f32 %v2184_v16  ;;  %2494 = vst [vmem:[#allocation11 + $0x90] sm:$0xff] %v2462_v38  ;;  %2595 = vmatmul.f32.gmra.mxu3 %v2462_v38  ;;  %v2065_v63 = vpop.f32.mrf.mxu3  ;;  %v2266_v58 = vadd.f32 %v3901_v36, %v2265_v0  ;;  %vm2272_vm8 = vcmp.eq.f32.partialorder %v2271_v61, 8.507059e+37  ;;  %v3972_v41 = vmul.f32 %v3748_v47, %v3644_v42 }
 0x202   :  { %2893 = vrcp.f32 %v3955_v43  ;;  %v2099_v24 = vmax.f32 %v2000_v53, %v2065_v63  ;;  %v2277_v18 = vmul.f32 %v2888_v32, %v3905_v19  ;;  %v901_v12 = vmul.f32 %v3821_v15, %v3710_v14 }
 0x203   :  { %v885_v4 = vsel %vm3936_vm3, %v884_v23, %v880_v52  ;;  %v2270_v22 = vsel %vm3957_vm7, %v3901_v36, %v2266_v58  ;;  %2895 = vrcp.f32 %v3965_v34  ;;  %v2287_v40 = vand.u32 2147483648, %v3905_v19 }
 0x204   :  { %v2115_v49 = vsub.f32 %v2000_v53, %v2099_v24  ;;  %v2131_v25 = vsub.f32 %v2065_v63, %v2099_v24  ;;  %v2275_v26 = vsel %vm2272_vm8, %v2274_v30, %v2270_v22  ;;  %v2278_v28 = vsub.f32 1.0, %v2277_v18 }
 0x205   :  { %v2447_v45 = vmul.f32 %v3854_v13, %v2275_v26  ;;  %v2463_v27 = vmul.f32 %v3861_v6, %v2275_v26  ;;  %vm2281_vm9 = vweird.f32 %v3905_v19  ;;  %v995_v7 = vmul.f32 -0.5, %v885_v4 }
 0x206   :  { %v3985_v31 = vpop.eup %2889  ;;  %v2154_v59 = vmul.f32 1.442695, %v2115_v49  ;;  %v2186_v23 = vmul.f32 1.442695, %v2131_v25  ;;  %v2279_v55 = vmul.f32 %v2888_v32, %v2278_v28  ;;  %vm2282_vm10 = vweird.f32 %v2888_v32 }
 0x207   :  { %v3988_v36 = vpop.eup %2891  ;;  %2479 = vst [vmem:[#allocation11 + $0x18] sm:$0xff] %v2447_v45  ;;  %v2285_v35 = vand.u32 2147483647, %v3905_v19  ;;  %v2288_v51 = vor.u32 1.1754944e-38, %v2287_v40  ;;  %2897 = vpow2.f32 %v3918_v10  ;;  %v3994_v6 = vmul.f32 1.442695, %v1206_v54  ;;  %vm4004_vm11 = vmor %vm2281_vm9, %vm2282_vm10  ;;  %v2003_v10 = vpop.f32.mrf.mxu2 }
 0x208   :  { %v3991_v13 = vpop.eup %2893  ;;  %v4000_v52 = vadd.f32 %v3988_v36, %v3985_v31  ;;  %2533 = vmatmul.f32.gmra.mxu2 %v2447_v45  ;;  %2495 = vst [vmem:[#allocation11 + $0x98] sm:$0xff] %v2463_v27  ;;  %v2280_v33 = vadd.f32 %v2888_v32, %v2279_v55  ;;  %v902_v1 = vsub.f32 1.0, %v901_v12  ;;  %2899 = vpow2.f32 %v2154_v59 }
 0x209   :  { %2598 = vmatmul.f32.gmra.mxu3 %v2463_v27  ;;  %v2068_v38 = vpop.f32.mrf.mxu3  ;;  %vm2286_vm12 = vcmp.eq.f32.partialorder %v2285_v35, 8.507059e+37  ;;  %v2291_v0 = vmul.f32 %v3991_v13, %v3955_v43  ;;  %v888_v46 = vsub.f32 1.0, %v3972_v41  ;;  %2901 = vpow2.f32 %v2186_v23  ;;  %v4013_v30 = vpop.eup %2895 }
 0x20a   :  { %v2100_v61 = vmax.f32 %v2003_v10, %v2068_v38  ;;  %v2284_v19 = vsel %vm4004_vm11, %v2888_v32, %v2280_v33  ;;  %v1027_v54 = vmul.f32 %v995_v7, %v885_v4  ;;  %2903 = vrcp.f32 %v4000_v52 }
 0x20b   :  { %v2289_v53 = vsel %vm2286_vm12, %v2288_v51, %v2284_v19  ;;  %v2292_v63 = vsub.f32 1.0, %v2291_v0  ;;  %v2301_v22 = vand.u32 2147483648, %v3955_v43  ;;  %v903_v32 = vmul.f32 %v3821_v15, %v902_v1 }
 0x20c   :  { %v2116_v58 = vsub.f32 %v2003_v10, %v2100_v61  ;;  %v2132_v24 = vsub.f32 %v2068_v38, %v2100_v61  ;;  %v2448_v18 = vmul.f32 %v3889_v57, %v2289_v53  ;;  %v2464_v12 = vmul.f32 %v3896_v20, %v2289_v53  ;;  %v4028_v20 = vpop.permute.xlu0 %1126 }
 0x20d   :  { %v2293_v41 = vmul.f32 %v3991_v13, %v2292_v63  ;;  %v911_v49 = vand.u32 2147483648, %v3710_v14  ;;  %v4022_v4 = vpop.eup %2897  ;;  %vm2295_vm13 = vweird.f32 %v3955_v43  ;;  %vm2296_vm14 = vweird.f32 %v3991_v13  ;;  %4928 = vst [vmem:[#allocation35_spill] sm:$0xff] %v4028_v20 }
 0x20e   :  { %1161 = vperm.xlu1 %2769, %v1027_v54   ;;  %v2156_v25 = vmul.f32 1.442695, %v2116_v58  ;;  %v2188_v26 = vmul.f32 1.442695, %v2132_v24  ;;  %2480 = vst [vmem:[#allocation11 + $0x20] sm:$0xff] %v2448_v18  ;;  %v4026_v57 = vpop.eup %2899  ;;  %vm4031_vm15 = vmor %vm2295_vm13, %vm2296_vm14  ;;  %v2302_v40 = vor.u32 1.1754944e-38, %v2301_v22  ;;  %v904_v59 = vadd.f32 %v3821_v15, %v903_v32 }
 0x20f   :  { %2496 = vst [vmem:[#allocation11 + $0xa0] sm:$0xff] %v2464_v12  ;;  %v2294_v28 = vadd.f32 %v3991_v13, %v2293_v41  ;;  %v2299_v27 = vand.u32 2147483647, %v3955_v43  ;;  %v4037_v23 = vpop.eup %2901  ;;  %v4041_v55 = vmul.f32 %v4013_v30, %v3965_v34  ;;  %vm905_vm0 = vweird.f32 %v3710_v14  ;;  %v2006_v43 = vpop.f32.mrf.mxu2 }
 0x210   :  { %2905 = vpow2.f32 %v2156_v25  ;;  %2536 = vmatmul.f32.gmra.mxu2 %v2448_v18  ;;  %vm906_vm1 = vweird.f32 %v3821_v15  ;;  %v4045_v7 = vpop.eup %2903  ;;  %v909_v16 = vand.u32 2147483647, %v3710_v14  ;;  %v4056_v1 = vadd.f32 1e-08, %v3527_v2 }
 0x211   :  { %2907 = vpow2.f32 %v2188_v26  ;;  %2601 = vmatmul.f32.gmra.mxu3 %v2464_v12  ;;  %v2298_v51 = vsel %vm4031_vm15, %v3991_v13, %v2294_v28  ;;  %vm2300_vm2 = vcmp.eq.f32.partialorder %v2299_v27, 8.507059e+37  ;;  %vm4050_vm3 = vmor %vm905_vm0, %vm906_vm1  ;;  %v2071_v38 = vpop.f32.mrf.mxu3  ;;  %v912_v54 = vor.u32 1.1754944e-38, %v911_v49 }
 0x212   :  { %v1297_v35 = vpop.xlane.xlu2 %1296  ;;  %v2303_v0 = vsel %vm2300_vm2, %v2302_v40, %v2298_v51  ;;  %v908_v61 = vsel %vm4050_vm3, %v3821_v15, %v904_v59  ;;  %v2101_v19 = vmax.f32 %v2006_v43, %v2071_v38  ;;  %vm910_vm5 = vcmp.eq.f32.partialorder %v909_v16, 8.507059e+37 }
 0x213   :  { %v4058_v10 = vmax.f32 %v1297_v35, 1e-30  ;;  %v2449_v13 = vmul.f32 %v3941_v62, %v2303_v0  ;;  %v4068_v2 = vadd.f32 %v4037_v23, %v4026_v57  ;;  %v889_v53 = vmul.f32 %v3748_v47, %v888_v46 }
 0x214   :  { %v2117_v63 = vsub.f32 %v2006_v43, %v2101_v19  ;;  %v2133_v58 = vsub.f32 %v2071_v38, %v2101_v19  ;;  %v913_v24 = vsel %vm910_vm5, %v912_v54, %v908_v61  ;;  %v2465_v15 = vmul.f32 %v3947_v3, %v2303_v0  ;;  %v4113_v19 = vpop.permute.xlu1 %1131 }
 0x215   :  { %2909 = vrcp.f32 %v4058_v10  ;;  %v1439_v14 = vand.u32 2147483648, %v4058_v10  ;;  %2481 = vst [vmem:[#allocation11 + $0x28] sm:$0xff] %v2449_v13  ;;  %v2305_v41 = vmul.f32 %v4045_v7, %v4000_v52  ;;  %v1437_v46 = vand.u32 2147483647, %v4058_v10 }
 0x216   :  { %v4072_v18 = vpop.eup %2905  ;;  %2911 = vpow2.f32 %v3994_v6  ;;  %v2158_v3 = vmul.f32 1.442695, %v2117_v63  ;;  %v997_v49 = vmul.f32 -0.5, %v913_v24  ;;  %2497 = vst [vmem:[#allocation11 + $0xa8] sm:$0xff] %v2465_v15  ;;  %v4088_v6 = vadd.f32 %v3748_v47, %v889_v53 }
 0x217   :  { %v4080_v22 = vpop.eup %2907  ;;  %2913 = vrcp.f32 %v4056_v1  ;;  %vm1433_vm6 = vweird.f32 %v4058_v10  ;;  %v4092_v28 = vor.u32 1.1754944e-38, %v1439_v14  ;;  %v2190_v27 = vmul.f32 1.442695, %v2133_v58  ;;  %v2009_v40 = vpop.f32.mrf.mxu2 }
 0x218   :  { %v1301_v32 = vpop.xlane.xlu0 %1300  ;;  %2915 = vrcp.f32 %v4068_v2  ;;  %2539 = vmatmul.f32.gmra.mxu2 %v2449_v13  ;;  %vm2309_vm7 = vweird.f32 %v4000_v52  ;;  %v4098_v35 = vadd.f32 %v4080_v22, %v4072_v18  ;;  %v2306_v51 = vsub.f32 1.0, %v2305_v41 }
 0x219   :  { %v4084_v25 = vmax.f32 %v1301_v32, 1e-30  ;;  %2604 = vmatmul.f32.gmra.mxu3 %v2465_v15  ;;  %v2074_v43 = vpop.f32.mrf.mxu3  ;;  %vm2310_vm8 = vweird.f32 %v4045_v7  ;;  %vm4102_vm9 = vcmp.eq.f32.partialorder %v1437_v46, 8.507059e+37  ;;  %v4108_v0 = vmul.f32 %v997_v49, %v913_v24 }
 0x21a   :  { %v1299_v45 = vpop.xlane.xlu2 %1298  ;;  %vm891_vm10 = vweird.f32 %v3644_v42  ;;  %v2102_v13 = vmax.f32 %v2009_v40, %v2074_v43  ;;  %v2313_v54 = vand.u32 2147483647, %v4000_v52  ;;  %v2315_v14 = vand.u32 2147483648, %v4000_v52  ;;  %vm4135_vm14 = vmor %vm2309_vm7, %vm2310_vm8 }
 0x21b   :  { %v2910_v59 = vpop.eup %2909  ;;  %2917 = vrcp.f32 %v4084_v25  ;;  %v4106_v38 = vmax.f32 %v1299_v45, 1e-30  ;;  %vm892_vm11 = vweird.f32 %v3748_v47  ;;  %v1465_v58 = vand.u32 2147483647, %v4084_v25 }
 0x21c   :  { %v1429_v33 = vmul.f32 %v2910_v59, %v4058_v10  ;;  %2919 = vpow2.f32 %v2158_v3  ;;  %v4111_v61 = vpop.eup %2911  ;;  %v1467_v24 = vand.u32 2147483648, %v4084_v25  ;;  %v2118_v41 = vsub.f32 %v2009_v40, %v2102_v13 }
 0x21d   :  { %v4118_v53 = vpop.eup %2913  ;;  %2921 = vrcp.f32 %v4106_v38  ;;  %v2134_v46 = vsub.f32 %v2074_v43, %v2102_v13  ;;  %v2307_v32 = vmul.f32 %v4045_v7, %v2306_v51  ;;  %vm1434_vm12 = vweird.f32 %v2910_v59 }
 0x21e   :  { %v1430_v63 = vsub.f32 1.0, %v1429_v33  ;;  %v4123_v15 = vpop.eup %2915  ;;  %2923 = vpow2.f32 %v2190_v27  ;;  %vm1461_vm13 = vweird.f32 %v4084_v25  ;;  %v1451_v45 = vand.u32 2147483647, %v4106_v38  ;;  %vm1435_vm0 = vmor %vm1433_vm6, %vm1434_vm12 }
 0x21f   :  { %2925 = vrcp.f32 %v4098_v35  ;;  %v2160_v33 = vmul.f32 1.442695, %v2118_v41  ;;  %v2192_v62 = vmul.f32 1.442695, %v2134_v46  ;;  %v2308_v12 = vadd.f32 %v4045_v7, %v2307_v32  ;;  %v2012_v41 = vpop.f32.mrf.mxu2  ;;  %vm4179_vm6 = vmor %vm891_vm10, %vm892_vm11 }
 0x220   :  { %v1431_v3 = vmul.f32 %v2910_v59, %v1430_v63  ;;  %vm4142_vm15 = vcmp.eq.f32.partialorder %v1465_v58, 8.507059e+37  ;;  %v1468_v63 = vor.u32 1.1754944e-38, %v1467_v24  ;;  %v1453_v52 = vand.u32 2147483648, %v4106_v38 }
 0x221   :  { %v2918_v49 = vpop.eup %2917  ;;  %1312 = vadd.xlane.f32.xlu0 %v3732_v50  ;;  %2927 = vpow2.f32 %v2160_v33  ;;  %vm4150_vm1 = vcmp.eq.f32.partialorder %v2313_v54, 8.507059e+37  ;;  %v2316_v32 = vor.u32 1.1754944e-38, %v2315_v14  ;;  %v2312_v24 = vsel %vm4135_vm14, %v4045_v7, %v2308_v12 }
 0x222   :  { %v4139_v40 = vpop.eup %2919  ;;  %v1432_v43 = vadd.f32 %v2910_v59, %v1431_v3  ;;  %v1457_v51 = vmul.f32 %v2918_v49, %v4084_v25  ;;  %v2077_v3 = vpop.f32.mrf.mxu3  ;;  %2929 = vpow2.f32 %v2192_v62  ;;  %vm1447_vm2 = vweird.f32 %v4106_v38 }
 0x223   :  { %v2922_v26 = vpop.eup %2921  ;;  %vm4164_vm3 = vcmp.eq.f32.partialorder %v1451_v45, 8.507059e+37  ;;  %vm1462_vm5 = vweird.f32 %v2918_v49  ;;  %v1454_v16 = vor.u32 1.1754944e-38, %v1453_v52  ;;  %vm2324_vm14 = vweird.f32 %v4123_v15 }
 0x224   :  { %v1436_v58 = vsel %vm1435_vm0, %v2910_v59, %v1432_v43  ;;  %v1458_v39 = vsub.f32 1.0, %v1457_v51  ;;  %v4157_v20 = vpop.eup %2923  ;;  %v1443_v54 = vmul.f32 %v2922_v26, %v4106_v38  ;;  %v2103_v43 = vmax.f32 %v2012_v41, %v2077_v3  ;;  %vm1463_vm7 = vmor %vm1461_vm13, %vm1462_vm5 }
 0x225   :  { %v1441_v10 = vsel %vm4102_vm9, %v4092_v28, %v1436_v58  ;;  %v1303_v59 = vpop.xlane.xlu1 %1302  ;;  %v4168_v62 = vpop.eup %2925  ;;  %v2317_v28 = vsel %vm4150_vm1, %v2316_v32, %v2312_v24  ;;  %v895_v51 = vand.u32 2147483647, %v3644_v42  ;;  %vm1448_vm8 = vweird.f32 %v2922_v26 }
 0x226   :  { %v1837_v33 = vmul.f32 %v3471_v5, %v1441_v10  ;;  %v1459_v7 = vmul.f32 %v2918_v49, %v1458_v39  ;;  %v4171_v12 = vmax.f32 %v1303_v59, 1e-30  ;;  %v1444_v27 = vsub.f32 1.0, %v1443_v54  ;;  %vm1449_vm9 = vmor %vm1447_vm2, %vm1448_vm8 }
 0x227   :  { %v4186_v39 = vadd.f32 %v4157_v20, %v4139_v40  ;;  %v4189_v52 = vpop.eup %2927  ;;  %v2450_v32 = vmul.f32 %v3985_v31, %v2317_v28  ;;  %v2466_v58 = vmul.f32 %v3988_v36, %v2317_v28  ;;  %v2119_v54 = vsub.f32 %v2012_v41, %v2103_v43  ;;  %v4202_v25 = vpop.f32.mrf.mxu2 }
 0x228   :  { %1869 = vst [vmem:[#allocation9 + $0x18] sm:$0xff] %v1837_v33  ;;  %v1460_v5 = vadd.f32 %v2918_v49, %v1459_v7  ;;  %2931 = vrcp.f32 %v4171_v12  ;;  %v1445_v46 = vmul.f32 %v2922_v26, %v1444_v27  ;;  %v4196_v24 = vpop.eup %2929  ;;  %v2135_v59 = vsub.f32 %v2077_v3, %v2103_v43 }
 0x229   :  { %1310 = vadd.xlane.f32.xlu2 %v4022_v4  ;;  %v894_v33 = vsel %vm4179_vm6, %v3748_v47, %v4088_v6  ;;  %v1479_v31 = vand.u32 2147483647, %v4171_v12  ;;  %v1481_v36 = vand.u32 2147483648, %v4171_v12  ;;  %2482 = vst [vmem:[#allocation11 + $0x30] sm:$0xff] %v2450_v32  ;;  %2542 = vmatmul.f32.gmra.mxu2 %v2450_v32  ;;  %v4214_v47 = vadd.f32 %v4196_v24, %v4189_v52 }
 0x22a   :  { %v1464_v10 = vsel %vm1463_vm7, %v2918_v49, %v1460_v5  ;;  %v1446_v27 = vadd.f32 %v2922_v26, %v1445_v46  ;;  %v2080_v49 = vpop.f32.mrf.mxu3  ;;  %2498 = vst [vmem:[#allocation11 + $0xb0] sm:$0xff] %v2466_v58  ;;  %2607 = vmatmul.f32.gmra.mxu3 %v2466_v58  ;;  %v2162_v6 = vmul.f32 1.442695, %v2119_v54  ;;  %v2194_v13 = vmul.f32 1.442695, %v2135_v59 }
 0x22b   :  { %v1469_v7 = vsel %vm4142_vm15, %v1468_v63, %v1464_v10  ;;  %2933 = vrcp.f32 %v4186_v39  ;;  %vm896_vm10 = vcmp.eq.f32.partialorder %v895_v51, 8.507059e+37  ;;  %v4945_v3 = vand.u32 2147483648, %v3644_v42 }
 0x22c   :  { %v1839_v41 = vmul.f32 %v3489_v17, %v1469_v7  ;;  %v1450_v63 = vsel %vm1449_vm9, %v2922_v26, %v1446_v27  ;;  %vm1475_vm11 = vweird.f32 %v4171_v12  ;;  %2935 = vpow2.f32 %v2162_v6 }
 0x22d   :  { %v898_v28 = vor.u32 1.1754944e-38, %v4945_v3  ;;  %v1455_v38 = vsel %vm4164_vm3, %v1454_v16, %v1450_v63  ;;  %v2319_v43 = vmul.f32 %v4123_v15, %v4068_v2  ;;  %vm4226_vm12 = vcmp.eq.f32.partialorder %v1479_v31, 8.507059e+37 }
 0x22e   :  { %v2932_v17 = vpop.eup %2931  ;;  %1871 = vst [vmem:[#allocation9 + $0x28] sm:$0xff] %v1839_v41  ;;  %v1838_v45 = vmul.f32 %v3493_v21, %v1455_v38  ;;  %v1482_v42 = vor.u32 1.1754944e-38, %v1481_v36  ;;  %2937 = vpow2.f32 %v2194_v13  ;;  %vm2323_vm13 = vweird.f32 %v4068_v2 }
 0x22f   :  { %v1471_v26 = vmul.f32 %v2932_v17, %v4171_v12  ;;  %2939 = vrcp.f32 %v4214_v47  ;;  %v899_v14 = vsel %vm896_vm10, %v898_v28, %v894_v33  ;;  %v2320_v16 = vsub.f32 1.0, %v2319_v43  ;;  %v4239_v59 = vpop.f32.mrf.mxu2  ;;  %vm4243_vm0 = vmor %vm2323_vm13, %vm2324_vm14 }
 0x230   :  { %1870 = vst [vmem:[#allocation9 + $0x20] sm:$0xff] %v1838_v45  ;;  %v996_v46 = vmul.f32 -0.5, %v899_v14  ;;  %v2327_v21 = vand.u32 2147483647, %v4068_v2  ;;  %v2329_v58 = vand.u32 2147483648, %v4068_v2  ;;  %v2104_v10 = vmax.f32 %v4202_v25, %v2080_v49 }
 0x231   :  { %v1472_v51 = vsub.f32 1.0, %v1471_v26  ;;  %v2321_v32 = vmul.f32 %v4123_v15, %v2320_v16  ;;  %v2333_v54 = vmul.f32 %v4168_v62, %v4098_v35  ;;  %v4241_v33 = vpop.eup %2933  ;;  %vm1476_vm15 = vweird.f32 %v2932_v17 }
 0x232   :  { %vm4247_vm1 = vcmp.eq.f32.partialorder %v2327_v21, 8.507059e+37  ;;  %vm2337_vm2 = vweird.f32 %v4098_v35  ;;  %v2083_v2 = vpop.f32.mrf.mxu3  ;;  %v4252_v36 = vpop.eup %2935  ;;  %v2330_v6 = vor.u32 1.1754944e-38, %v2329_v58  ;;  %v2120_v13 = vsub.f32 %v4202_v25, %v2104_v10  ;;  %vm1477_vm5 = vmor %vm1475_vm11, %vm1476_vm15 }
 0x233   :  { %v1473_v7 = vmul.f32 %v2932_v17, %v1472_v51  ;;  %v2322_v41 = vadd.f32 %v4123_v15, %v2321_v32  ;;  %v2136_v63 = vsub.f32 %v2080_v49, %v2104_v10  ;;  %v2334_v38 = vsub.f32 1.0, %v2333_v54 }
 0x234   :  { %v4256_v3 = vpop.eup %2937  ;;  %vm2338_vm3 = vweird.f32 %v4168_v62  ;;  %v2341_v43 = vand.u32 2147483647, %v4098_v35  ;;  %v1028_v26 = vmul.f32 %v996_v46, %v899_v14  ;;  %v2164_v49 = vmul.f32 1.442695, %v2120_v13 }
 0x235   :  { %v1474_v28 = vadd.f32 %v2932_v17, %v1473_v7  ;;  %1171 = vperm.xlu0 %2768, %v4108_v0   ;;  %v4261_v45 = vpop.eup %2939  ;;  %v2326_v25 = vsel %vm4243_vm0, %v4123_v15, %v2322_v41  ;;  %v2196_v16 = vmul.f32 1.442695, %v2136_v63  ;;  %v4271_v0 = vadd.f32 %v4256_v3, %v4252_v36  ;;  %vm4285_vm6 = vmor %vm2337_vm2, %vm2338_vm3 }
 0x236   :  { %v2331_v21 = vsel %vm4247_vm1, %v2330_v6, %v2326_v25  ;;  %v2335_v32 = vmul.f32 %v4168_v62, %v2334_v38  ;;  %vm4289_vm7 = vcmp.eq.f32.partialorder %v2341_v43, 8.507059e+37  ;;  %2941 = vpow2.f32 %v2164_v49 }
 0x237   :  { %v1478_v51 = vsel %vm1477_vm5, %v2932_v17, %v1474_v28  ;;  %v2451_v14 = vmul.f32 %v4026_v57, %v2331_v21  ;;  %v2467_v15 = vmul.f32 %v4037_v23, %v2331_v21  ;;  %v2343_v57 = vand.u32 2147483648, %v4098_v35  ;;  %v2021_v6 = vpop.f32.mrf.mxu2 }
 0x238   :  { %v1483_v12 = vsel %vm4226_vm12, %v1482_v42, %v1478_v51  ;;  %1314 = vadd.xlane.f32.xlu1 %v4111_v61  ;;  %v2336_v42 = vadd.f32 %v4168_v62, %v2335_v32  ;;  %2943 = vpow2.f32 %v2196_v16  ;;  %v2105_v23 = vmax.f32 %v4239_v59, %v2083_v2 }
 0x239   :  { %v1840_v5 = vmul.f32 %v3522_v60, %v1483_v12  ;;  %2483 = vst [vmem:[#allocation11 + $0x38] sm:$0xff] %v2451_v14  ;;  %2545 = vmatmul.f32.gmra.mxu2 %v2451_v14  ;;  %2610 = vmatmul.f32.gmra.mxu3 %v2467_v15  ;;  %v4956_v58 = vsub.f32 1.0, %v4041_v55  ;;  %vm919_vm8 = vweird.f32 %v3965_v34  ;;  %v2344_v54 = vor.u32 1.1754944e-38, %v2343_v57 }
 0x23a   :  { %v2340_v60 = vsel %vm4285_vm6, %v4168_v62, %v2336_v42  ;;  %vm920_vm9 = vweird.f32 %v4013_v30  ;;  %v923_v35 = vand.u32 2147483647, %v3965_v34  ;;  %2499 = vst [vmem:[#allocation11 + $0xb8] sm:$0xff] %v2467_v15  ;;  %v2121_v7 = vsub.f32 %v4239_v59, %v2105_v23  ;;  %v2086_v13 = vpop.f32.mrf.mxu3 }
 0x23b   :  { %v917_v10 = vmul.f32 %v4013_v30, %v4956_v58  ;;  %1872 = vst [vmem:[#allocation9 + $0x30] sm:$0xff] %v1840_v5  ;;  %v2137_v27 = vsub.f32 %v2083_v2, %v2105_v23  ;;  %vm4308_vm10 = vmor %vm919_vm8, %vm920_vm9  ;;  %v925_v41 = vand.u32 2147483648, %v3965_v34  ;;  %2945 = vrcp.f32 %v4271_v0 }
 0x23c   :  { %v2345_v62 = vsel %vm4289_vm7, %v2344_v54, %v2340_v60  ;;  %vm4316_vm11 = vcmp.eq.f32.partialorder %v923_v35, 8.507059e+37  ;;  %v2347_v59 = vmul.f32 %v4241_v33, %v4186_v39  ;;  %v2166_v38 = vmul.f32 1.442695, %v2121_v7  ;;  %v4325_v34 = vpop.eup %2941 }
 0x23d   :  { %v918_v55 = vadd.f32 %v4013_v30, %v917_v10  ;;  %v2452_v2 = vmul.f32 %v4072_v18, %v2345_v62  ;;  %v2468_v28 = vmul.f32 %v4080_v22, %v2345_v62  ;;  %vm2351_vm12 = vweird.f32 %v4186_v39 }
 0x23e   :  { %v2198_v43 = vmul.f32 1.442695, %v2137_v27  ;;  %v926_v49 = vor.u32 1.1754944e-38, %v925_v41  ;;  %v2348_v16 = vsub.f32 1.0, %v2347_v59  ;;  %v4330_v51 = vpop.eup %2943  ;;  %v4334_v21 = vmul.f32 %v3588_v11, %v3665_v9 }
 0x23f   :  { %v922_v25 = vsel %vm4308_vm10, %v4013_v30, %v918_v55  ;;  %2484 = vst [vmem:[#allocation11 + $0x40] sm:$0xff] %v2452_v2  ;;  %2947 = vpow2.f32 %v2166_v38  ;;  %vm2352_vm13 = vweird.f32 %v4241_v33  ;;  %v2355_v18 = vand.u32 2147483647, %v4186_v39  ;;  %v2024_v58 = vpop.f32.mrf.mxu2 }
 0x240   :  { %v4340_v22 = vadd.f32 %v4330_v51, %v4325_v34  ;;  %2500 = vst [vmem:[#allocation11 + $0xc0] sm:$0xff] %v2468_v28  ;;  %2949 = vpow2.f32 %v2198_v43  ;;  %v927_v30 = vsel %vm4316_vm11, %v926_v49, %v922_v25  ;;  %v2349_v32 = vmul.f32 %v4241_v33, %v2348_v16  ;;  %vm4351_vm14 = vmor %vm2351_vm12, %vm2352_vm13 }
 0x241   :  { %1166 = vperm.xlu2 %2770, %v1028_v26   ;;  %v4347_v11 = vmul.f32 %v4118_v53, %v4056_v1  ;;  %2548 = vmatmul.f32.gmra.mxu2 %v2452_v2  ;;  %v998_v12 = vmul.f32 -0.5, %v927_v30  ;;  %vm4355_vm15 = vcmp.eq.f32.partialorder %v2355_v18, 8.507059e+37  ;;  %v2357_v15 = vand.u32 2147483648, %v4186_v39  ;;  %v4360_v17 = vpop.eup %2945 }
 0x242   :  { %2613 = vmatmul.f32.gmra.mxu3 %v2468_v28  ;;  %2951 = vrcp.f32 %v4340_v22  ;;  %v2350_v46 = vadd.f32 %v4241_v33, %v2349_v32  ;;  %v2106_v5 = vmax.f32 %v2021_v6, %v2086_v13  ;;  %v2361_v42 = vmul.f32 %v4261_v45, %v4214_v47  ;;  %v2089_v10 = vpop.f32.mrf.mxu3 }
 0x243   :  { %v4366_v57 = vmul.f32 %v998_v12, %v927_v30  ;;  %v2358_v23 = vor.u32 1.1754944e-38, %v2357_v15  ;;  %vm2365_vm0 = vweird.f32 %v4214_v47  ;;  %vm2366_vm1 = vweird.f32 %v4261_v45 }
 0x244   :  { %v2354_v39 = vsel %vm4351_vm14, %v4241_v33, %v2350_v46  ;;  %v2122_v60 = vsub.f32 %v2021_v6, %v2106_v5  ;;  %v2138_v54 = vsub.f32 %v2086_v13, %v2106_v5  ;;  %v2362_v35 = vsub.f32 1.0, %v2361_v42  ;;  %vm4398_vm3 = vmor %vm2365_vm0, %vm2366_vm1  ;;  %v4419_v5 = vpop.permute.xlu0 %1141 }
 0x245   :  { %v4373_v7 = vpop.eup %2947  ;;  %v2359_v27 = vsel %vm4355_vm15, %v2358_v23, %v2354_v39  ;;  %v2369_v55 = vand.u32 2147483647, %v4214_v47  ;;  %v2371_v31 = vand.u32 2147483648, %v4214_v47  ;;  %v2107_v41 = vmax.f32 %v2024_v58, %v2089_v10 }
 0x246   :  { %v4379_v62 = vpop.eup %2949  ;;  %v2453_v63 = vmul.f32 %v4139_v40, %v2359_v27  ;;  %v2469_v59 = vmul.f32 %v4157_v20, %v2359_v27  ;;  %v2168_v33 = vmul.f32 1.442695, %v2122_v60  ;;  %v2200_v6 = vmul.f32 1.442695, %v2138_v54  ;;  %v4973_v54 = vld [vmem:[#allocation33_spill] sm:$0xff] }
 0x247   :  { %v4385_v13 = vadd.f32 %v4379_v62, %v4373_v7  ;;  %v2363_v2 = vmul.f32 %v4261_v45, %v2362_v35  ;;  %vm4388_vm2 = vcmp.eq.f32.partialorder %v2369_v55, 8.507059e+37  ;;  %v2372_v38 = vor.u32 1.1754944e-38, %v2371_v31 }
 0x248   :  { %v4392_v43 = vpop.eup %2951  ;;  %2485 = vst [vmem:[#allocation11 + $0x48] sm:$0xff] %v2453_v63  ;;  %2953 = vpow2.f32 %v2168_v33  ;;  %v2123_v40 = vsub.f32 %v2024_v58, %v2107_v41  ;;  %v2139_v25 = vsub.f32 %v2089_v10, %v2107_v41  ;;  %v2375_v49 = vmul.f32 %v4360_v17, %v4271_v0 }
 0x249   :  { %2955 = vrcp.f32 %v4385_v13  ;;  %2551 = vmatmul.f32.gmra.mxu2 %v2453_v63  ;;  %2501 = vst [vmem:[#allocation11 + $0xc8] sm:$0xff] %v2469_v59  ;;  %v2364_v16 = vadd.f32 %v4261_v45, %v2363_v2  ;;  %vm2379_vm5 = vweird.f32 %v4271_v0  ;;  %vm2380_vm6 = vweird.f32 %v4360_v17 }
 0x24a   :  { %2616 = vmatmul.f32.gmra.mxu3 %v2469_v59  ;;  %2957 = vpow2.f32 %v2200_v6  ;;  %v2170_v47 = vmul.f32 1.442695, %v2123_v40  ;;  %v2202_v18 = vmul.f32 1.442695, %v2139_v25  ;;  %v2376_v30 = vsub.f32 1.0, %v2375_v49  ;;  %vm4427_vm8 = vmor %vm2379_vm5, %vm2380_vm6  ;;  %v4977_v25 = vld [vmem:[#allocation23_spill] sm:$0xff] }
 0x24b   :  { %v2368_v32 = vsel %vm4398_vm3, %v4261_v45, %v2364_v16  ;;  %v2383_v12 = vand.u32 2147483647, %v4271_v0  ;;  %v2385_v26 = vand.u32 2147483648, %v4271_v0  ;;  %v2389_v14 = vmul.f32 %v4392_v43, %v4340_v22 }
 0x24c   :  { %v2373_v15 = vsel %vm4388_vm2, %v2372_v38, %v2368_v32  ;;  %2959 = vpow2.f32 %v2170_v47  ;;  %v2377_v46 = vmul.f32 %v4360_v17, %v2376_v30  ;;  %vm2393_vm7 = vweird.f32 %v4340_v22 }
 0x24d   :  { %v2454_v42 = vmul.f32 %v4189_v52, %v2373_v15  ;;  %v2470_v45 = vmul.f32 %v4196_v24, %v2373_v15  ;;  %2961 = vpow2.f32 %v2202_v18  ;;  %vm4431_vm9 = vcmp.eq.f32.partialorder %v2383_v12, 8.507059e+37 }
 0x24e   :  { %v4435_v10 = vpop.eup %2953  ;;  %v2378_v39 = vadd.f32 %v4360_v17, %v2377_v46  ;;  %v2386_v52 = vor.u32 1.1754944e-38, %v2385_v26  ;;  %v2390_v60 = vsub.f32 1.0, %v2389_v14  ;;  %vm2394_vm10 = vweird.f32 %v4392_v43 }
 0x24f   :  { %v4439_v24 = vpop.eup %2955  ;;  %v470_v0 = vmul.f32 %v4973_v54, %v4973_v54  ;;  %2486 = vst [vmem:[#allocation11 + $0x50] sm:$0xff] %v2454_v42  ;;  %v2397_v35 = vand.u32 2147483647, %v4340_v22  ;;  %v2399_v27 = vand.u32 2147483648, %v4340_v22  ;;  %v1254_v31 = vmul.f32 1.442695, %v4334_v21  ;;  %vm4467_vm11 = vmor %vm2393_vm7, %vm2394_vm10 }
 0x250   :  { %v4445_v55 = vpop.eup %2957  ;;  %v4974_v41 = vsub.s32 %v3921_v44, %v3346_v56  ;;  %2502 = vst [vmem:[#allocation11 + $0xd0] sm:$0xff] %v2470_v45  ;;  %v2382_v59 = vsel %vm4427_vm8, %v4360_v17, %v2378_v39  ;;  %v2391_v33 = vmul.f32 %v4392_v43, %v2390_v60  ;;  %v944_v6 = vsub.f32 1.0, %v4347_v11  ;;  %v4473_v11 = vpop.permute.xlu2 %1136 }
 0x251   :  { %1176 = vperm.xlu1 %2769, %v4366_v57   ;;  %v4459_v2 = vadd.f32 %v4445_v55, %v4435_v10  ;;  %2554 = vmatmul.f32.gmra.mxu2 %v2454_v42  ;;  %v2387_v44 = vsel %vm4431_vm9, %v2386_v52, %v2382_v59  ;;  %v2400_v17 = vor.u32 1.1754944e-38, %v2399_v27  ;;  %vm2398_vm12 = vcmp.eq.f32.partialorder %v2397_v35, 8.507059e+37 }
 0x252   :  { %v456_v63 = vcvt.s32.f32 %v4974_v41  ;;  %2619 = vmatmul.f32.gmra.mxu3 %v2470_v45  ;;  %v4471_v57 = vpop.eup %2959  ;;  %v2455_v28 = vmul.f32 %v4252_v36, %v2387_v44  ;;  %v2471_v38 = vmul.f32 %v4256_v3, %v2387_v44  ;;  %v2392_v20 = vadd.f32 %v4392_v43, %v2391_v33  ;;  %v4978_v45 = vld [vmem:[#allocation30_spill] sm:$0xff] }
 0x253   :  { %v4478_v40 = vpop.eup %2961  ;;  %v4482_v22 = vsel %vm473_vm4, %v470_v0, 3e+38  ;;  %v4485_v49 = vadd.f32 1e-08, %v4977_v25  ;;  %2963 = vrcp.f32 %v4459_v2  ;;  %v2403_v16 = vmul.f32 %v4439_v24, %v4385_v13 }
 0x254   :  { %2965 = vpow2.f32 %v1254_v31  ;;  %v472_v36 = vmul.f32 %v456_v63, %v456_v63  ;;  %v4492_v3 = vadd.f32 %v4478_v40, %v4471_v57  ;;  %2487 = vst [vmem:[#allocation11 + $0x58] sm:$0xff] %v2455_v28  ;;  %v2396_v47 = vsel %vm4467_vm11, %v4392_v43, %v2392_v20 }
 0x255   :  { %2503 = vst [vmem:[#allocation11 + $0xd8] sm:$0xff] %v2471_v38  ;;  %v2401_v30 = vsel %vm2398_vm12, %v2400_v17, %v2396_v47  ;;  %v2404_v32 = vsub.f32 1.0, %v2403_v16  ;;  %vm2407_vm13 = vweird.f32 %v4385_v13  ;;  %vm2408_vm14 = vweird.f32 %v4439_v24 }
 0x256   :  { %v1307_v18 = vpop.xlane.xlu0 %1306  ;;  %v2456_v26 = vmul.f32 %v4325_v34, %v2401_v30  ;;  %v2472_v14 = vmul.f32 %v4330_v51, %v2401_v30  ;;  %v945_v15 = vmul.f32 %v4118_v53, %v944_v6  ;;  %2967 = vrcp.f32 %v4485_v49  ;;  %vm4515_vm1 = vmor %vm2407_vm13, %vm2408_vm14 }
 0x257   :  { %v4499_v12 = vmax.f32 %v1307_v18, 1e-30  ;;  %v2405_v43 = vmul.f32 %v4439_v24, %v2404_v32  ;;  %v2411_v46 = vand.u32 2147483647, %v4385_v13  ;;  %v2413_v42 = vand.u32 2147483648, %v4385_v13 }
 0x258   :  { %v1207_v23 = vmul.f32 %v4978_v45, %v4482_v22  ;;  %2488 = vst [vmem:[#allocation11 + $0x60] sm:$0xff] %v2456_v26  ;;  %vm947_vm15 = vweird.f32 %v4056_v1  ;;  %vm948_vm0 = vweird.f32 %v4118_v53  ;;  %v946_v54 = vadd.f32 %v4118_v53, %v945_v15 }
 0x259   :  { %2969 = vrcp.f32 %v4499_v12  ;;  %v2964_v51 = vpop.eup %2963  ;;  %2557 = vmatmul.f32.gmra.mxu2 %v2455_v28  ;;  %2504 = vst [vmem:[#allocation11 + $0xe0] sm:$0xff] %v2472_v14  ;;  %v2406_v58 = vadd.f32 %v4439_v24, %v2405_v43  ;;  %vm2412_vm2 = vcmp.eq.f32.partialorder %v2411_v46, 8.507059e+37  ;;  %v2414_v39 = vor.u32 1.1754944e-38, %v2413_v42  ;;  %vm4542_vm6 = vmor %vm947_vm15, %vm948_vm0  ;;  %v4989_v43 = vld [vmem:[#allocation31_spill] sm:$0xff] }
 0x25a   :  { %2971 = vrcp.f32 %v4492_v3  ;;  %2622 = vmatmul.f32.gmra.mxu3 %v2471_v38  ;;  %v4521_v52 = vpop.eup %2965  ;;  %v951_v13 = vand.u32 2147483647, %v4056_v1  ;;  %v953_v0 = vand.u32 2147483648, %v4056_v1  ;;  %v2417_v35 = vmul.f32 %v2964_v51, %v4459_v2  ;;  %v4557_v1 = vpop.permute.xlu1 %1146 }
 0x25b   :  { %v1305_v60 = vpop.xlane.xlu2 %1304  ;;  %v2410_v31 = vsel %vm4515_vm1, %v4439_v24, %v2406_v58  ;;  %vm2421_vm3 = vweird.f32 %v4459_v2  ;;  %vm2422_vm5 = vweird.f32 %v2964_v51  ;;  %v2425_v59 = vand.u32 2147483647, %v4459_v2 }
 0x25c   :  { %v4527_v27 = vmax.f32 %v1305_v60, 1e-30  ;;  %v2415_v41 = vsel %vm2412_vm2, %v2414_v39, %v2410_v31  ;;  %v2418_v63 = vsub.f32 1.0, %v2417_v35  ;;  %v2427_v33 = vand.u32 2147483648, %v4459_v2  ;;  %v4535_v6 = vpop.eup %2967  ;;  %vm4567_vm8 = vmor %vm2421_vm3, %vm2422_vm5 }
 0x25d   :  { %v1252_v44 = vmul.f32 1.442695, %v1207_v23  ;;  %v2457_v17 = vmul.f32 %v4373_v7, %v2415_v41  ;;  %v4549_v28 = vmul.f32 %v4379_v62, %v2415_v41  ;;  %v4555_v25 = vsel %vm473_vm4, %v472_v36, 3e+38 }
 0x25e   :  { %2973 = vrcp.f32 %v4527_v27  ;;  %v2419_v38 = vmul.f32 %v2964_v51, %v2418_v63  ;;  %vm4560_vm7 = vcmp.eq.f32.partialorder %v951_v13, 8.507059e+37  ;;  %v954_v18 = vor.u32 1.1754944e-38, %v953_v0 }
 0x25f   :  { %v2970_v21 = vpop.eup %2969  ;;  %1318 = vadd.xlane.f32.xlu0 %v4521_v52  ;;  %v950_v56 = vsel %vm4542_vm6, %v4118_v53, %v946_v54  ;;  %2489 = vst [vmem:[#allocation11 + $0x68] sm:$0xff] %v2457_v17  ;;  %vm4574_vm4 = vcmp.eq.f32.partialorder %v2425_v59, 8.507059e+37  ;;  %v2428_v30 = vor.u32 1.1754944e-38, %v2427_v33  ;;  %2975 = vpow2.f32 %v1252_v44 }
 0x260   :  { %v4551_v20 = vpop.eup %2971  ;;  %v1499_v16 = vmul.f32 %v2970_v21, %v4499_v12  ;;  %v2420_v62 = vadd.f32 %v2964_v51, %v2419_v38  ;;  %v1507_v15 = vand.u32 2147483647, %v4499_v12  ;;  %v1509_v2 = vand.u32 2147483648, %v4499_v12  ;;  %2505 = vst [vmem:[#allocation11 + $0xe8] sm:$0xff] %v4549_v28 }
 0x261   :  { %2560 = vmatmul.f32.gmra.mxu2 %v2456_v26  ;;  %v1209_v53 = vmul.f32 %v4989_v43, %v4555_v25  ;;  %v929_v46 = vmul.f32 %v4535_v6, %v4485_v49  ;;  %v2431_v45 = vmul.f32 %v4551_v20, %v4492_v3  ;;  %vm1504_vm9 = vweird.f32 %v2970_v21 }
 0x262   :  { %v1500_v32 = vsub.f32 1.0, %v1499_v16  ;;  %2625 = vmatmul.f32.gmra.mxu3 %v2472_v14  ;;  %v2424_v42 = vsel %vm4567_vm8, %v2964_v51, %v2420_v62  ;;  %v955_v26 = vsel %vm4560_vm7, %v954_v18, %v950_v56  ;;  %vm1503_vm10 = vweird.f32 %v4499_v12  ;;  %v4992_v16 = vld [vmem:[#allocation24_spill] sm:$0xff] }
 0x263   :  { %v2429_v14 = vsel %vm4574_vm4, %v2428_v30, %v2424_v42  ;;  %vm4601_vm11 = vcmp.eq.f32.partialorder %v1507_v15, 8.507059e+37  ;;  %v1510_v13 = vor.u32 1.1754944e-38, %v1509_v2  ;;  %v1493_v0 = vand.u32 2147483647, %v4527_v27  ;;  %vm1505_vm12 = vmor %vm1503_vm10, %vm1504_vm9 }
 0x264   :  { %v2974_v23 = vpop.eup %2973  ;;  %v1501_v34 = vmul.f32 %v2970_v21, %v1500_v32  ;;  %v4596_v39 = vmul.f32 %v4435_v10, %v2429_v14  ;;  %v4599_v51 = vmul.f32 %v4445_v55, %v2429_v14  ;;  %v1495_v12 = vand.u32 2147483648, %v4527_v27 }
 0x265   :  { %v1485_v58 = vmul.f32 %v2974_v23, %v4527_v27  ;;  %v2432_v31 = vsub.f32 1.0, %v2431_v45  ;;  %vm2435_vm13 = vweird.f32 %v4492_v3  ;;  %v4609_v10 = vpop.eup %2975  ;;  %vm1490_vm14 = vweird.f32 %v2974_v23 }
 0x266   :  { %v1502_v60 = vadd.f32 %v2970_v21, %v1501_v34  ;;  %2490 = vst [vmem:[#allocation11 + $0x70] sm:$0xff] %v4596_v39  ;;  %vm2436_vm15 = vweird.f32 %v4551_v20  ;;  %v2439_v63 = vand.u32 2147483647, %v4492_v3  ;;  %v2441_v24 = vand.u32 2147483648, %v4492_v3 }
 0x267   :  { %v1486_v35 = vsub.f32 1.0, %v1485_v58  ;;  %2506 = vst [vmem:[#allocation11 + $0xf0] sm:$0xff] %v4599_v51  ;;  %v930_v38 = vsub.f32 1.0, %v929_v46  ;;  %v4620_v47 = vadd.f32 1e-08, %v4992_v16  ;;  %v2433_v18 = vmul.f32 %v4551_v20, %v2432_v31  ;;  %vm4632_vm1 = vmor %vm2435_vm13, %vm2436_vm15 }
 0x268   :  { %v1506_v55 = vsel %vm1505_vm12, %v2970_v21, %v1502_v60  ;;  %v1309_v41 = vpop.xlane.xlu1 %1308  ;;  %vm1489_vm0 = vweird.f32 %v4527_v27  ;;  %v1000_v56 = vmul.f32 -0.5, %v955_v26  ;;  %vm2440_vm3 = vcmp.eq.f32.partialorder %v2439_v63, 8.507059e+37 }
 0x269   :  { %v1511_v59 = vsel %vm4601_vm11, %v1510_v13, %v1506_v55  ;;  %v1487_v33 = vmul.f32 %v2974_v23, %v1486_v35  ;;  %v4616_v44 = vmax.f32 %v1309_v41, 1e-30  ;;  %2563 = vmatmul.f32.gmra.mxu2 %v2457_v17  ;;  %vm1491_vm2 = vmor %vm1489_vm0, %vm1490_vm14  ;;  %v2434_v17 = vadd.f32 %v4551_v20, %v2433_v18 }
 0x26a   :  { %v1842_v21 = vmul.f32 %v3640_v48, %v1511_v59  ;;  %1316 = vadd.xlane.f32.xlu2 %v4609_v10  ;;  %2628 = vmatmul.f32.gmra.mxu3 %v4549_v28  ;;  %v1496_v48 = vor.u32 1.1754944e-38, %v1495_v12  ;;  %vm1494_vm5 = vcmp.eq.f32.partialorder %v1493_v0, 8.507059e+37  ;;  %v2442_v36 = vor.u32 1.1754944e-38, %v2441_v24 }
 0x26b   :  { %v1488_v7 = vadd.f32 %v2974_v23, %v1487_v33  ;;  %2977 = vrcp.f32 %v4616_v44  ;;  %v1256_v30 = vmul.f32 1.442695, %v1209_v53  ;;  %v931_v32 = vmul.f32 %v4535_v6, %v930_v38 }
 0x26c   :  { %1874 = vst [vmem:[#allocation9 + $0x40] sm:$0xff] %v1842_v21  ;;  %v2438_v3 = vsel %vm4632_vm1, %v4551_v20, %v2434_v17  ;;  %2979 = vrcp.f32 %v4620_v47  ;;  %v1032_v2 = vmul.f32 %v1000_v56, %v955_v26  ;;  %vm933_vm6 = vweird.f32 %v4485_v49 }
 0x26d   :  { %v1492_v27 = vsel %vm1491_vm2, %v2974_v23, %v1488_v7  ;;  %v2443_v43 = vsel %vm2440_vm3, %v2442_v36, %v2438_v3  ;;  %vm934_vm7 = vweird.f32 %v4535_v6  ;;  %v937_v20 = vand.u32 2147483647, %v4485_v49  ;;  %v4997_v36 = vld [vmem:[#allocation17_spill] sm:$0xff]  ;;  %v1152_v3 = vpop.permute.xlu2 %1151 }
 0x26e   :  { %v1497_v28 = vsel %vm1494_vm5, %v1496_v48, %v1492_v27  ;;  %v2525_v46 = vpop.f32.mrf.mxu2  ;;  %v2459_v53 = vmul.f32 %v4471_v57, %v2443_v43  ;;  %v2475_v42 = vmul.f32 %v4478_v40, %v2443_v43  ;;  %v2590_v45 = vpop.f32.mrf.mxu3  ;;  %v939_v34 = vand.u32 2147483648, %v4485_v49  ;;  %vm4658_vm8 = vmor %vm933_vm6, %vm934_vm7 }
 0x26f   :  { %v1841_v15 = vmul.f32 %v3661_v29, %v1497_v28  ;;  %2638 = vst [vmem:[#allocation8] sm:$0xff] %v2525_v46  ;;  %v932_v26 = vadd.f32 %v4535_v6, %v931_v32  ;;  %2981 = vpow2.f32 %v1256_v30  ;;  %v1523_v58 = vand.u32 2147483648, %v4616_v44  ;;  %v4676_v48 = vpop.permute.xlu0 %1156 }
 0x270   :  { %2491 = vst [vmem:[#allocation11 + $0x78] sm:$0xff] %v2459_v53  ;;  %vm938_vm4 = vcmp.eq.f32.partialorder %v937_v20, 8.507059e+37  ;;  %vm1517_vm10 = vweird.f32 %v4616_v44  ;;  %vm961_vm13 = vweird.f32 %v4620_v47  ;;  %v967_v38 = vand.u32 2147483648, %v4620_v47  ;;  %v5000_v20 = vld [vmem:[#allocation34_spill] sm:$0xff] }
 0x271   :  { %v2978_v23 = vpop.eup %2977  ;;  %1873 = vst [vmem:[#allocation9 + $0x38] sm:$0xff] %v1841_v15  ;;  %2566 = vmatmul.f32.gmra.mxu2 %v4596_v39  ;;  %v940_v39 = vor.u32 1.1754944e-38, %v939_v34  ;;  %v936_v49 = vsel %vm4658_vm8, %v4535_v6, %v932_v26  ;;  %v1524_v0 = vor.u32 1.1754944e-38, %v1523_v58  ;;  %v965_v21 = vand.u32 2147483647, %v4620_v47  ;;  %v5001_v58 = vld [vmem:[#allocation26_spill] sm:$0xff] }
 0x272   :  { %v1513_v29 = vmul.f32 %v2978_v23, %v4616_v44  ;;  %2631 = vmatmul.f32.gmra.mxu3 %v4599_v51  ;;  %2507 = vst [vmem:[#allocation11 + $0xf8] sm:$0xff] %v2475_v42  ;;  %v2980_v14 = vpop.eup %2979  ;;  %vm1518_vm9 = vweird.f32 %v2978_v23  ;;  %v1521_v51 = vand.u32 2147483647, %v4616_v44  ;;  %v968_v56 = vor.u32 1.1754944e-38, %v967_v38 }
 0x273   :  { %1186 = vperm.xlu0 %2768, %v1032_v2   ;;  %2654 = vst [vmem:[#allocation8 + $0x80] sm:$0xff] %v2590_v45  ;;  %v957_v54 = vmul.f32 %v2980_v14, %v4620_v47  ;;  %vm1519_vm11 = vmor %vm1517_vm10, %vm1518_vm9  ;;  %v941_v35 = vsel %vm938_vm4, %v940_v39, %v936_v49  ;;  %vm962_vm14 = vweird.f32 %v2980_v14  ;;  %vm966_vm0 = vcmp.eq.f32.partialorder %v965_v21, 8.507059e+37 }
 0x274   :  { %v1514_v40 = vsub.f32 1.0, %v1513_v29  ;;  %vm1522_vm12 = vcmp.eq.f32.partialorder %v1521_v51, 8.507059e+37  ;;  %v999_v33 = vmul.f32 -0.5, %v941_v35  ;;  %vm963_vm15 = vmor %vm961_vm13, %vm962_vm14  ;;  %v1211_v30 = vmul.f32 %v3996_v37, %v4997_v36  ;;  %v4999_v37 = vld [vmem:[#allocation16_spill] sm:$0xff] }
 0x275   :  { %v4669_v55 = vpop.eup %2981  ;;  %v958_v6 = vsub.f32 1.0, %v957_v54  ;;  %v1210_v34 = vmul.f32 %v5000_v20, %v4999_v37  ;;  %v1217_v39 = vmul.f32 %v1152_v3, %v5001_v58  ;;  %v5008_v58 = vld [vmem:[#allocation20_spill] sm:$0xff] }
 0x276   :  { %v1515_v60 = vmul.f32 %v2978_v23, %v1514_v40  ;;  %v1031_v44 = vmul.f32 %v999_v33, %v941_v35  ;;  %v1260_v47 = vmul.f32 1.442695, %v1211_v30  ;;  %v5002_v35 = vld [vmem:[#allocation19_spill] sm:$0xff] }
 0x277   :  { %v2528_v12 = vpop.f32.mrf.mxu2  ;;  %v959_v24 = vmul.f32 %v2980_v14, %v958_v6  ;;  %v1272_v54 = vmul.f32 1.442695, %v1217_v39 }
 0x278   :  { %v1516_v13 = vadd.f32 %v2978_v23, %v1515_v60  ;;  %v2593_v31 = vpop.f32.mrf.mxu3  ;;  %2639 = vst [vmem:[#allocation8 + $0x8] sm:$0xff] %v2528_v12  ;;  %2983 = vpow2.f32 %v1260_v47  ;;  %v1258_v60 = vmul.f32 1.442695, %v1210_v34  ;;  %v1213_v12 = vmul.f32 %v4113_v19, %v5002_v35 }
 0x279   :  { %2569 = vmatmul.f32.gmra.mxu2 %v2459_v53  ;;  %2655 = vst [vmem:[#allocation8 + $0x88] sm:$0xff] %v2593_v31  ;;  %v960_v16 = vadd.f32 %v2980_v14, %v959_v24  ;;  %v4998_v53 = vld [vmem:[#allocation21_spill] sm:$0xff] }
 0x27a   :  { %v1520_v41 = vsel %vm1519_vm11, %v2978_v23, %v1516_v13  ;;  %2634 = vmatmul.f32.gmra.mxu3 %v2475_v42  ;;  %v1214_v42 = vmul.f32 %v4473_v11, %v4998_v53  ;;  %v1264_v21 = vmul.f32 1.442695, %v1213_v12 }
 0x27b   :  { %v1525_v63 = vsel %vm1522_vm12, %v1524_v0, %v1520_v41  ;;  %1320 = vadd.xlane.f32.xlu1 %v4669_v55 }
 0x27c   :  { %v1843_v59 = vmul.f32 %v3744_v8, %v1525_v63  ;;  %v964_v8 = vsel %vm963_vm15, %v2980_v14, %v960_v16  ;;  %v1266_v45 = vmul.f32 1.442695, %v1214_v42 }
 0x27d   :  { %v969_v62 = vsel %vm966_vm0, %v968_v56, %v964_v8 }
 0x27e   :  { %1875 = vst [vmem:[#allocation9 + $0x48] sm:$0xff] %v1843_v59  ;;  %v1001_v28 = vmul.f32 -0.5, %v969_v62  ;;  %v4682_v23 = vpop.eup %2983 }
 0x280   :  { %v1033_v32 = vmul.f32 %v1001_v28, %v969_v62  ;;  %v1162_v31 = vpop.permute.xlu1 %1161  ;;  %v5004_v28 = vld [vmem:[#allocation22_spill] sm:$0xff] }
 0x281   :  { %v1216_v47 = vmul.f32 %v4557_v1, %v5004_v28 }
 0x282   :  { %1181 = vperm.xlu2 %2770, %v1031_v44   ;;  %v5003_v44 = vld [vmem:[#allocation29_spill] sm:$0xff] }
 0x283   :  { %v2531_v18 = vpop.f32.mrf.mxu2  ;;  %v1270_v37 = vmul.f32 1.442695, %v1216_v47 }
 0x284   :  { %2640 = vst [vmem:[#allocation8 + $0x10] sm:$0xff] %v2531_v18  ;;  %v2596_v7 = vpop.f32.mrf.mxu3 }
 0x285   :  { %2656 = vst [vmem:[#allocation8 + $0x90] sm:$0xff] %v2596_v7 }
 0x28b   :  { %v2534_v17 = vpop.f32.mrf.mxu2 }
 0x28c   :  { %2641 = vst [vmem:[#allocation8 + $0x18] sm:$0xff] %v2534_v17  ;;  %v2599_v27 = vpop.f32.mrf.mxu3 }
 0x28d   :  { %2657 = vst [vmem:[#allocation8 + $0x98] sm:$0xff] %v2599_v27 }
 0x293   :  { %v2537_v2 = vpop.f32.mrf.mxu2 }
 0x294   :  { %v1313_v15 = vpop.xlane.xlu0 %1312  ;;  %1191 = vperm.xlu1 %2769, %v1033_v32   ;;  %2642 = vst [vmem:[#allocation8 + $0x20] sm:$0xff] %v2537_v2  ;;  %v2602_v46 = vpop.f32.mrf.mxu3 }
 0x295   :  { %v1365_v43 = vmax.f32 %v1313_v15, 1e-30  ;;  %2658 = vst [vmem:[#allocation8 + $0xa0] sm:$0xff] %v2602_v46  ;;  %v5006_v46 = vld [vmem:[#allocation35_spill] sm:$0xff] }
 0x297   :  { %2985 = vrcp.f32 %v1365_v43  ;;  %v1551_v49 = vand.u32 2147483648, %v1365_v43  ;;  %v1549_v0 = vand.u32 2147483647, %v1365_v43  ;;  %vm1545_vm2 = vweird.f32 %v1365_v43 }
 0x298   :  { %2987 = vpow2.f32 %v1266_v45 }
 0x299   :  { %v1552_v33 = vor.u32 1.1754944e-38, %v1551_v49  ;;  %vm1550_vm5 = vcmp.eq.f32.partialorder %v1549_v0, 8.507059e+37 }
 0x29b   :  { %v2540_v26 = vpop.f32.mrf.mxu2 }
 0x29c   :  { %v1311_v29 = vpop.xlane.xlu2 %1310  ;;  %2643 = vst [vmem:[#allocation8 + $0x28] sm:$0xff] %v2540_v26  ;;  %v2605_v14 = vpop.f32.mrf.mxu3 }
 0x29d   :  { %v2986_v57 = vpop.eup %2985  ;;  %v1364_v40 = vmax.f32 %v1311_v29, 1e-30  ;;  %1324 = vadd.xlane.f32.xlu0 %v4682_v23  ;;  %2659 = vst [vmem:[#allocation8 + $0xa8] sm:$0xff] %v2605_v14 }
 0x29e   :  { %v1541_v11 = vmul.f32 %v2986_v57, %v1365_v43  ;;  %vm1546_vm1 = vweird.f32 %v2986_v57  ;;  %v4690_v41 = vpop.eup %2987  ;;  %v5005_v43 = vld [vmem:[#allocation18_spill] sm:$0xff] }
 0x29f   :  { %2989 = vrcp.f32 %v1364_v40  ;;  %vm1547_vm3 = vmor %vm1545_vm2, %vm1546_vm1  ;;  %v1537_v56 = vand.u32 2147483648, %v1364_v40  ;;  %v1535_v27 = vand.u32 2147483647, %v1364_v40  ;;  %vm1531_vm7 = vweird.f32 %v1364_v40 }
 0x2a0   :  { %v1542_v51 = vsub.f32 1.0, %v1541_v11  ;;  %2991 = vpow2.f32 %v1258_v60  ;;  %v1212_v53 = vmul.f32 %v5006_v46, %v5005_v43 }
 0x2a1   :  { %2993 = vpow2.f32 %v1272_v54  ;;  %v1538_v3 = vor.u32 1.1754944e-38, %v1537_v56  ;;  %vm1536_vm4 = vcmp.eq.f32.partialorder %v1535_v27, 8.507059e+37 }
 0x2a2   :  { %v1543_v13 = vmul.f32 %v2986_v57, %v1542_v51  ;;  %2995 = vpow2.f32 %v1264_v21  ;;  %v1262_v29 = vmul.f32 1.442695, %v1212_v53 }
 0x2a4   :  { %v1544_v63 = vadd.f32 %v2986_v57, %v1543_v13  ;;  %v1167_v6 = vpop.permute.xlu2 %1166 }
 0x2a5   :  { %v2990_v59 = vpop.eup %2989  ;;  %v1220_v24 = vmul.f32 %v1167_v6, %v5003_v44  ;;  %1330 = vadd.xlane.f32.xlu0 %v4690_v41 }
 0x2a6   :  { %v1548_v38 = vsel %vm1547_vm3, %v2986_v57, %v1544_v63  ;;  %v1527_v16 = vmul.f32 %v2990_v59, %v1364_v40  ;;  %v4695_v62 = vpop.eup %2991  ;;  %vm1532_vm6 = vweird.f32 %v2990_v59  ;;  %v5007_v57 = vld [vmem:[#allocation28_spill] sm:$0xff] }
 0x2a7   :  { %v1553_v19 = vsel %vm1550_vm5, %v1552_v33, %v1548_v38  ;;  %v1278_v8 = vmul.f32 1.442695, %v1220_v24  ;;  %v4698_v30 = vpop.eup %2993  ;;  %vm1533_vm8 = vmor %vm1531_vm7, %vm1532_vm6  ;;  %v1219_v40 = vmul.f32 %v1162_v31, %v5007_v57  ;;  %v1172_v21 = vpop.permute.xlu0 %1171 }
 0x2a8   :  { %v1845_v18 = vmul.f32 %v3732_v50, %v1553_v19  ;;  %v1528_v7 = vsub.f32 1.0, %v1527_v16  ;;  %v4706_v20 = vpop.eup %2995  ;;  %v5010_v19 = vld [vmem:[#allocation32_spill] sm:$0xff] }
 0x2a9   :  { %2997 = vpow2.f32 %v1278_v8  ;;  %v1276_v11 = vmul.f32 1.442695, %v1219_v40 }
 0x2aa   :  { %1877 = vst [vmem:[#allocation9 + $0x58] sm:$0xff] %v1845_v18  ;;  %v1529_v17 = vmul.f32 %v2990_v59, %v1528_v7 }
 0x2ab   :  { %v1315_v36 = vpop.xlane.xlu1 %1314  ;;  %1322 = vadd.xlane.f32.xlu2 %v4695_v62 }
 0x2ac   :  { %v1530_v32 = vadd.f32 %v2990_v59, %v1529_v17  ;;  %v1366_v50 = vmax.f32 %v1315_v36, 1e-30  ;;  %v2543_v2 = vpop.f32.mrf.mxu2 }
 0x2ad   :  { %1336 = vadd.xlane.f32.xlu0 %v4698_v30  ;;  %2644 = vst [vmem:[#allocation8 + $0x30] sm:$0xff] %v2543_v2  ;;  %v2608_v45 = vpop.f32.mrf.mxu3 }
 0x2ae   :  { %v1534_v15 = vsel %vm1533_vm8, %v2990_v59, %v1530_v32  ;;  %2999 = vrcp.f32 %v1366_v50  ;;  %2660 = vst [vmem:[#allocation8 + $0xb0] sm:$0xff] %v2608_v45  ;;  %v1565_v60 = vand.u32 2147483648, %v1366_v50  ;;  %v1563_v49 = vand.u32 2147483647, %v1366_v50  ;;  %v5009_v59 = vld [vmem:[#allocation25_spill] sm:$0xff] }
 0x2af   :  { %v1539_v42 = vsel %vm1536_vm4, %v1538_v3, %v1534_v15  ;;  %v4708_v34 = vpop.eup %2997  ;;  %3001 = vpow2.f32 %v1270_v37  ;;  %vm1559_vm10 = vweird.f32 %v1366_v50  ;;  %v1218_v33 = vmul.f32 %v4676_v48, %v5009_v59 }
 0x2b0   :  { %v1844_v1 = vmul.f32 %v4022_v4, %v1539_v42  ;;  %3003 = vpow2.f32 %v1262_v29  ;;  %v1215_v4 = vmul.f32 %v4419_v5, %v5008_v58  ;;  %v1566_v35 = vor.u32 1.1754944e-38, %v1565_v60 }
 0x2b1   :  { %3005 = vpow2.f32 %v1276_v11  ;;  %vm1564_vm12 = vcmp.eq.f32.partialorder %v1563_v49, 8.507059e+37  ;;  %v1274_v38 = vmul.f32 1.442695, %v1218_v33 }
 0x2b2   :  { %1876 = vst [vmem:[#allocation9 + $0x50] sm:$0xff] %v1844_v1  ;;  %v1268_v13 = vmul.f32 1.442695, %v1215_v4 }
 0x2b3   :  { %1328 = vadd.xlane.f32.xlu2 %v4706_v20 }
 0x2b4   :  { %v3000_v26 = vpop.eup %2999  ;;  %3007 = vpow2.f32 %v1268_v13 }
 0x2b5   :  { %v1555_v14 = vmul.f32 %v3000_v26, %v1366_v50  ;;  %1342 = vadd.xlane.f32.xlu0 %v4708_v34  ;;  %vm1560_vm9 = vweird.f32 %v3000_v26  ;;  %v4715_v54 = vpop.eup %3001  ;;  %3009 = vpow2.f32 %v1274_v38 }
 0x2b6   :  { %vm1561_vm11 = vmor %vm1559_vm10, %vm1560_vm9  ;;  %v4718_v12 = vpop.eup %3003 }
 0x2b7   :  { %v1556_v39 = vsub.f32 1.0, %v1555_v14  ;;  %v4724_v24 = vpop.eup %3005 }
 0x2b9   :  { %v1557_v51 = vmul.f32 %v3000_v26, %v1556_v39 }
 0x2ba   :  { %v4728_v7 = vpop.eup %3007 }
 0x2bb   :  { %v1558_v0 = vadd.f32 %v3000_v26, %v1557_v51  ;;  %1334 = vadd.xlane.f32.xlu2 %v4715_v54  ;;  %v4732_v36 = vpop.eup %3009 }
 0x2bc   :  { %v2546_v5 = vpop.f32.mrf.mxu2  ;;  %v2611_v63 = vpop.f32.mrf.mxu3 }
 0x2bd   :  { %v1562_v31 = vsel %vm1561_vm11, %v3000_v26, %v1558_v0  ;;  %2645 = vst [vmem:[#allocation8 + $0x38] sm:$0xff] %v2546_v5 }
 0x2be   :  { %v1567_v6 = vsel %vm1564_vm12, %v1566_v35, %v1562_v31  ;;  %1326 = vadd.xlane.f32.xlu1 %v4718_v12  ;;  %2661 = vst [vmem:[#allocation8 + $0xb8] sm:$0xff] %v2611_v63 }
 0x2bf   :  { %v1846_v44 = vmul.f32 %v4111_v61, %v1567_v6  ;;  %v5011_v61 = vld [vmem:[#allocation27_spill] sm:$0xff] }
 0x2c0   :  { %v1221_v48 = vmul.f32 %v1172_v21, %v5011_v61 }
 0x2c1   :  { %1878 = vst [vmem:[#allocation9 + $0x60] sm:$0xff] %v1846_v44 }
 0x2c2   :  { %v1280_v27 = vmul.f32 1.442695, %v1221_v48 }
 0x2c3   :  { %v1177_v16 = vpop.permute.xlu1 %1176  ;;  %1340 = vadd.xlane.f32.xlu2 %v4724_v24 }
 0x2c4   :  { %v1222_v18 = vmul.f32 %v1177_v16, %v5010_v19  ;;  %v2549_v56 = vpop.f32.mrf.mxu2 }
 0x2c5   :  { %v2614_v8 = vpop.f32.mrf.mxu3  ;;  %2646 = vst [vmem:[#allocation8 + $0x40] sm:$0xff] %v2549_v56 }
 0x2c6   :  { %v1282_v17 = vmul.f32 1.442695, %v1222_v18  ;;  %1332 = vadd.xlane.f32.xlu1 %v4728_v7  ;;  %2662 = vst [vmem:[#allocation8 + $0xc0] sm:$0xff] %v2614_v8 }
 0x2c8   :  { %3011 = vpow2.f32 %v1282_v17 }
 0x2c9   :  { %3013 = vpow2.f32 %v1280_v27 }
 0x2cc   :  { %v2552_v28 = vpop.f32.mrf.mxu2 }
 0x2cd   :  { %v2617_v47 = vpop.f32.mrf.mxu3  ;;  %2647 = vst [vmem:[#allocation8 + $0x48] sm:$0xff] %v2552_v28 }
 0x2ce   :  { %v4734_v32 = vpop.eup %3011  ;;  %1338 = vadd.xlane.f32.xlu1 %v4732_v36  ;;  %2663 = vst [vmem:[#allocation8 + $0xc8] sm:$0xff] %v2617_v47 }
 0x2cf   :  { %1346 = vadd.xlane.f32.xlu2 %v4734_v32  ;;  %v4738_v15 = vpop.eup %3013 }
 0x2d2   :  { %v1319_v50 = vpop.xlane.xlu0 %1318 }
 0x2d3   :  { %v1368_v3 = vmax.f32 %v1319_v50, 1e-30 }
 0x2d4   :  { %v2555_v2 = vpop.f32.mrf.mxu2 }
 0x2d5   :  { %3015 = vrcp.f32 %v1368_v3  ;;  %v2620_v43 = vpop.f32.mrf.mxu3  ;;  %2648 = vst [vmem:[#allocation8 + $0x50] sm:$0xff] %v2555_v2  ;;  %v1593_v26 = vand.u32 2147483648, %v1368_v3  ;;  %v1591_v40 = vand.u32 2147483647, %v1368_v3  ;;  %vm1587_vm14 = vweird.f32 %v1368_v3 }
 0x2d6   :  { %1344 = vadd.xlane.f32.xlu1 %v4738_v15  ;;  %2664 = vst [vmem:[#allocation8 + $0xd0] sm:$0xff] %v2620_v43 }
 0x2d7   :  { %v1594_v58 = vor.u32 1.1754944e-38, %v1593_v26  ;;  %vm1592_vm0 = vcmp.eq.f32.partialorder %v1591_v40, 8.507059e+37 }
 0x2db   :  { %v3016_v46 = vpop.eup %3015 }
 0x2dc   :  { %v1583_v53 = vmul.f32 %v3016_v46, %v1368_v3  ;;  %v2558_v45 = vpop.f32.mrf.mxu2  ;;  %vm1588_vm13 = vweird.f32 %v3016_v46 }
 0x2dd   :  { %v1317_v42 = vpop.xlane.xlu2 %1316  ;;  %2649 = vst [vmem:[#allocation8 + $0x58] sm:$0xff] %v2558_v45  ;;  %v2623_v29 = vpop.f32.mrf.mxu3  ;;  %vm1589_vm15 = vmor %vm1587_vm14, %vm1588_vm13 }
 0x2de   :  { %v1584_v37 = vsub.f32 1.0, %v1583_v53  ;;  %v1367_v1 = vmax.f32 %v1317_v42, 1e-30  ;;  %2665 = vst [vmem:[#allocation8 + $0xd8] sm:$0xff] %v2623_v29 }
 0x2e0   :  { %v1585_v57 = vmul.f32 %v3016_v46, %v1584_v37  ;;  %3017 = vrcp.f32 %v1367_v1  ;;  %v1579_v33 = vand.u32 2147483648, %v1367_v1  ;;  %v1577_v38 = vand.u32 2147483647, %v1367_v1 }
 0x2e1   :  { %vm1573_vm2 = vweird.f32 %v1367_v1 }
 0x2e2   :  { %v1586_v14 = vadd.f32 %v3016_v46, %v1585_v57  ;;  %vm1578_vm5 = vcmp.eq.f32.partialorder %v1577_v38, 8.507059e+37 }
 0x2e4   :  { %v1590_v4 = vsel %vm1589_vm15, %v3016_v46, %v1586_v14  ;;  %v2561_v35 = vpop.f32.mrf.mxu2 }
 0x2e5   :  { %v1595_v39 = vsel %vm1592_vm0, %v1594_v58, %v1590_v4  ;;  %v1182_v11 = vpop.permute.xlu2 %1181  ;;  %v1187_v60 = vpop.permute.xlu0 %1186  ;;  %2650 = vst [vmem:[#allocation8 + $0x60] sm:$0xff] %v2561_v35 }
 0x2e6   :  { %v3018_v51 = vpop.eup %3017  ;;  %v1848_v49 = vmul.f32 %v4521_v52, %v1595_v39  ;;  %v1223_v13 = vmul.f32 %v1182_v11, %v4482_v22  ;;  %v1224_v0 = vmul.f32 %v1187_v60, %v3665_v9  ;;  %v2626_v31 = vpop.f32.mrf.mxu3  ;;  %v1580_v22 = vor.u32 1.1754944e-38, %v1579_v33 }
 0x2e7   :  { %v1569_v5 = vmul.f32 %v3018_v51, %v1367_v1  ;;  %2666 = vst [vmem:[#allocation8 + $0xe0] sm:$0xff] %v2626_v31  ;;  %vm1574_vm1 = vweird.f32 %v3018_v51 }
 0x2e8   :  { %1880 = vst [vmem:[#allocation9 + $0x70] sm:$0xff] %v1848_v49  ;;  %v1284_v63 = vmul.f32 1.442695, %v1223_v13  ;;  %v1286_v6 = vmul.f32 1.442695, %v1224_v0  ;;  %vm1575_vm3 = vmor %vm1573_vm2, %vm1574_vm1 }
 0x2e9   :  { %v1570_v59 = vsub.f32 1.0, %v1569_v5 }
 0x2ea   :  { %3019 = vpow2.f32 %v1284_v63 }
 0x2eb   :  { %v1571_v44 = vmul.f32 %v3018_v51, %v1570_v59  ;;  %3021 = vpow2.f32 %v1286_v6 }
 0x2ec   :  { %v2564_v16 = vpop.f32.mrf.mxu2 }
 0x2ed   :  { %v1572_v52 = vadd.f32 %v3018_v51, %v1571_v44  ;;  %2651 = vst [vmem:[#allocation8 + $0x68] sm:$0xff] %v2564_v16 }
 0x2ee   :  { %v1321_v9 = vpop.xlane.xlu1 %1320  ;;  %v2629_v18 = vpop.f32.mrf.mxu3 }
 0x2ef   :  { %v1576_v21 = vsel %vm1575_vm3, %v3018_v51, %v1572_v52  ;;  %v1369_v19 = vmax.f32 %v1321_v9, 1e-30  ;;  %2667 = vst [vmem:[#allocation8 + $0xe8] sm:$0xff] %v2629_v18 }
 0x2f0   :  { %v4744_v56 = vpop.eup %3019  ;;  %v1581_v8 = vsel %vm1578_vm5, %v1580_v22, %v1576_v21 }
 0x2f1   :  { %v4746_v17 = vpop.eup %3021  ;;  %v1847_v61 = vmul.f32 %v4609_v10, %v1581_v8  ;;  %3023 = vrcp.f32 %v1369_v19  ;;  %1348 = vadd.xlane.f32.xlu0 %v4744_v56  ;;  %v1607_v3 = vand.u32 2147483648, %v1369_v19  ;;  %v1605_v43 = vand.u32 2147483647, %v1369_v19 }
 0x2f2   :  { %1350 = vadd.xlane.f32.xlu1 %v4746_v17  ;;  %vm1601_vm7 = vweird.f32 %v1369_v19 }
 0x2f3   :  { %1879 = vst [vmem:[#allocation9 + $0x68] sm:$0xff] %v1847_v61  ;;  %v1608_v53 = vor.u32 1.1754944e-38, %v1607_v3  ;;  %vm1606_vm4 = vcmp.eq.f32.partialorder %v1605_v43, 8.507059e+37 }
 0x2f4   :  { %v2567_v48 = vpop.f32.mrf.mxu2 }
 0x2f5   :  { %2652 = vst [vmem:[#allocation8 + $0x70] sm:$0xff] %v2567_v48 }
 0x2f6   :  { %v2632_v28 = vpop.f32.mrf.mxu3 }
 0x2f7   :  { %v3024_v27 = vpop.eup %3023  ;;  %2668 = vst [vmem:[#allocation8 + $0xf0] sm:$0xff] %v2632_v28 }
 0x2f8   :  { %v1597_v47 = vmul.f32 %v3024_v27, %v1369_v19  ;;  %vm1602_vm6 = vweird.f32 %v3024_v27 }
 0x2f9   :  { %vm1603_vm8 = vmor %vm1601_vm7, %vm1602_vm6 }
 0x2fa   :  { %v1598_v50 = vsub.f32 1.0, %v1597_v47 }
 0x2fc   :  { %v1599_v2 = vmul.f32 %v3024_v27, %v1598_v50  ;;  %v2570_v10 = vpop.f32.mrf.mxu2 }
 0x2fd   :  { %2653 = vst [vmem:[#allocation8 + $0x78] sm:$0xff] %v2570_v10 }
 0x2fe   :  { %v1600_v46 = vadd.f32 %v3024_v27, %v1599_v2  ;;  %v2635_v42 = vpop.f32.mrf.mxu3 }
 0x2ff   :  { %2669 = vst [vmem:[#allocation8 + $0xf8] sm:$0xff] %v2635_v42 }
 0x300   :  { %v1604_v45 = vsel %vm1603_vm8, %v3024_v27, %v1600_v46  ;;  %2682 = dma.vmem_to_hbm [thread:$0]  %s2675_s10, 4096, %s2677_s13, [#allocation4], %s3215_s30, %s3215_s30, %s3216_s6  }
 0x301   :  { %v1609_v37 = vsel %vm1606_vm4, %v1608_v53, %v1604_v45 }
 0x302   :  { %v1849_v1 = vmul.f32 %v4669_v55, %v1609_v37 }
 0x304   :  { %1881 = vst [vmem:[#allocation9 + $0x78] sm:$0xff] %v1849_v1 }
 0x306   :  { %v1192_v29 = vpop.permute.xlu1 %1191 }
 0x307   :  { %v1225_v26 = vmul.f32 %v1192_v29, %v4555_v25 }
 0x309   :  { %v1288_v57 = vmul.f32 1.442695, %v1225_v26 }
 0x30b   :  { %3025 = vpow2.f32 %v1288_v57 }
 0x310   :  { %v1325_v40 = vpop.xlane.xlu0 %1324 }
 0x311   :  { %v4753_v14 = vpop.eup %3025  ;;  %v1371_v58 = vmax.f32 %v1325_v40, 1e-30 }
 0x312   :  { %1352 = vadd.xlane.f32.xlu2 %v4753_v14 }
 0x313   :  { %3027 = vrcp.f32 %v1371_v58  ;;  %v1635_v55 = vand.u32 2147483648, %v1371_v58  ;;  %v1633_v13 = vand.u32 2147483647, %v1371_v58  ;;  %vm1629_vm10 = vweird.f32 %v1371_v58 }
 0x315   :  { %v1636_v63 = vor.u32 1.1754944e-38, %v1635_v55  ;;  %vm1634_vm12 = vcmp.eq.f32.partialorder %v1633_v13, 8.507059e+37 }
 0x318   :  { %v1331_v4 = vpop.xlane.xlu0 %1330 }
 0x319   :  { %v3028_v39 = vpop.eup %3027  ;;  %v1374_v11 = vmax.f32 %v1331_v4, 1e-30 }
 0x31a   :  { %v1625_v60 = vmul.f32 %v3028_v39, %v1371_v58  ;;  %vm1630_vm9 = vweird.f32 %v3028_v39 }
 0x31b   :  { %3029 = vrcp.f32 %v1374_v11  ;;  %vm1631_vm11 = vmor %vm1629_vm10, %vm1630_vm9  ;;  %v1677_v22 = vand.u32 2147483648, %v1374_v11  ;;  %v1675_v16 = vand.u32 2147483647, %v1374_v11  ;;  %vm1671_vm14 = vweird.f32 %v1374_v11 }
 0x31c   :  { %v1626_v51 = vsub.f32 1.0, %v1625_v60 }
 0x31d   :  { %v1678_v27 = vor.u32 1.1754944e-38, %v1677_v22  ;;  %vm1676_vm0 = vcmp.eq.f32.partialorder %v1675_v16, 8.507059e+37 }
 0x31e   :  { %v1627_v49 = vmul.f32 %v3028_v39, %v1626_v51  ;;  %v1323_v25 = vpop.xlane.xlu2 %1322 }
 0x31f   :  { %v1370_v0 = vmax.f32 %v1323_v25, 1e-30 }
 0x320   :  { %v1628_v35 = vadd.f32 %v3028_v39, %v1627_v49  ;;  %v1337_v31 = vpop.xlane.xlu0 %1336 }
 0x321   :  { %v3030_v5 = vpop.eup %3029  ;;  %3031 = vrcp.f32 %v1370_v0  ;;  %v1377_v33 = vmax.f32 %v1337_v31, 1e-30  ;;  %v1619_v2 = vand.u32 2147483647, %v1370_v0  ;;  %v1621_v43 = vand.u32 2147483648, %v1370_v0 }
 0x322   :  { %v1632_v6 = vsel %vm1631_vm11, %v3028_v39, %v1628_v35  ;;  %v1667_v59 = vmul.f32 %v3030_v5, %v1374_v11  ;;  %vm1672_vm13 = vweird.f32 %v3030_v5  ;;  %vm1615_vm2 = vweird.f32 %v1370_v0 }
 0x323   :  { %v1637_v44 = vsel %vm1634_vm12, %v1636_v63, %v1632_v6  ;;  %3033 = vrcp.f32 %v1377_v33  ;;  %vm1673_vm15 = vmor %vm1671_vm14, %vm1672_vm13  ;;  %v1717_v37 = vand.u32 2147483647, %v1377_v33  ;;  %v1719_v1 = vand.u32 2147483648, %v1377_v33 }
 0x324   :  { %v1851_v38 = vmul.f32 %v4682_v23, %v1637_v44  ;;  %v1668_v52 = vsub.f32 1.0, %v1667_v59  ;;  %v1622_v57 = vor.u32 1.1754944e-38, %v1621_v43  ;;  %vm1620_vm6 = vcmp.eq.f32.partialorder %v1619_v2, 8.507059e+37 }
 0x325   :  { %vm1713_vm7 = vweird.f32 %v1377_v33  ;;  %vm1718_vm4 = vcmp.eq.f32.partialorder %v1717_v37, 8.507059e+37  ;;  %v1720_v49 = vor.u32 1.1754944e-38, %v1719_v1 }
 0x326   :  { %1883 = vst [vmem:[#allocation9 + $0x88] sm:$0xff] %v1851_v38  ;;  %v1669_v9 = vmul.f32 %v3030_v5, %v1668_v52  ;;  %v1329_v21 = vpop.xlane.xlu2 %1328 }
 0x327   :  { %v3032_v19 = vpop.eup %3031  ;;  %v4763_v18 = vmax.f32 %v1329_v21, 1e-30 }
 0x328   :  { %v1670_v8 = vadd.f32 %v3030_v5, %v1669_v9  ;;  %v1611_v61 = vmul.f32 %v3032_v19, %v1370_v0  ;;  %v1343_v48 = vpop.xlane.xlu0 %1342  ;;  %vm1616_vm1 = vweird.f32 %v3032_v19 }
 0x329   :  { %3035 = vrcp.f32 %v4763_v18  ;;  %v3034_v23 = vpop.eup %3033  ;;  %v4766_v50 = vmax.f32 %v1343_v48, 1e-30  ;;  %vm1617_vm3 = vmor %vm1615_vm2, %vm1616_vm1  ;;  %v1663_v0 = vand.u32 2147483648, %v4763_v18  ;;  %v1661_v6 = vand.u32 2147483647, %v4763_v18 }
 0x32a   :  { %v1674_v28 = vsel %vm1673_vm15, %v3030_v5, %v1670_v8  ;;  %v1612_v47 = vsub.f32 1.0, %v1611_v61  ;;  %v1709_v46 = vmul.f32 %v3034_v23, %v1377_v33  ;;  %vm1714_vm5 = vweird.f32 %v3034_v23 }
 0x32b   :  { %v1679_v3 = vsel %vm1676_vm0, %v1678_v27, %v1674_v28  ;;  %3037 = vrcp.f32 %v4766_v50  ;;  %vm1715_vm8 = vmor %vm1713_vm7, %vm1714_vm5  ;;  %vm1657_vm10 = vweird.f32 %v4763_v18  ;;  %v1759_v44 = vand.u32 2147483647, %v4766_v50 }
 0x32c   :  { %v1854_v10 = vmul.f32 %v4690_v41, %v1679_v3  ;;  %v1613_v53 = vmul.f32 %v3032_v19, %v1612_v47  ;;  %v1710_v42 = vsub.f32 1.0, %v1709_v46  ;;  %v1761_v38 = vand.u32 2147483648, %v4766_v50 }
 0x32d   :  { %v1664_v9 = vor.u32 1.1754944e-38, %v1663_v0  ;;  %vm1662_vm13 = vcmp.eq.f32.partialorder %v1661_v6, 8.507059e+37  ;;  %vm1755_vm14 = vweird.f32 %v4766_v50  ;;  %vm1760_vm0 = vcmp.eq.f32.partialorder %v1759_v44, 8.507059e+37 }
 0x32e   :  { %1886 = vst [vmem:[#allocation9 + $0xa0] sm:$0xff] %v1854_v10  ;;  %v1614_v45 = vadd.f32 %v3032_v19, %v1613_v53  ;;  %v1335_v29 = vpop.xlane.xlu2 %1334  ;;  %v1711_v40 = vmul.f32 %v3034_v23, %v1710_v42  ;;  %v1762_v27 = vor.u32 1.1754944e-38, %v1761_v38 }
 0x32f   :  { %v3036_v26 = vpop.eup %3035  ;;  %v4770_v58 = vmax.f32 %v1335_v29, 1e-30 }
 0x330   :  { %v1618_v4 = vsel %vm1617_vm3, %v3032_v19, %v1614_v45  ;;  %v1653_v41 = vmul.f32 %v3036_v26, %v4763_v18  ;;  %v1712_v11 = vadd.f32 %v3034_v23, %v1711_v40  ;;  %vm1658_vm9 = vweird.f32 %v3036_v26 }
 0x331   :  { %v1623_v39 = vsel %vm1620_vm6, %v1622_v57, %v1618_v4  ;;  %3039 = vrcp.f32 %v4770_v58  ;;  %v1327_v60 = vpop.xlane.xlu1 %1326  ;;  %v3038_v51 = vpop.eup %3037  ;;  %vm1659_vm11 = vmor %vm1657_vm10, %vm1658_vm9  ;;  %v1703_v3 = vand.u32 2147483647, %v4770_v58  ;;  %v1705_v2 = vand.u32 2147483648, %v4770_v58 }
 0x332   :  { %v1850_v55 = vmul.f32 %v4695_v62, %v1623_v39  ;;  %v1654_v13 = vsub.f32 1.0, %v1653_v41  ;;  %v1716_v25 = vsel %vm1715_vm8, %v3034_v23, %v1712_v11  ;;  %v1751_v35 = vmul.f32 %v3038_v51, %v4766_v50 }
 0x333   :  { %v4777_v31 = vmax.f32 %v1327_v60, 1e-30  ;;  %v1721_v5 = vsel %vm1718_vm4, %v1720_v49, %v1716_v25  ;;  %vm1756_vm12 = vweird.f32 %v3038_v51  ;;  %vm1699_vm2 = vweird.f32 %v4770_v58 }
 0x334   :  { %1882 = vst [vmem:[#allocation9 + $0x80] sm:$0xff] %v1850_v55  ;;  %v1655_v63 = vmul.f32 %v3036_v26, %v1654_v13  ;;  %v1857_v59 = vmul.f32 %v4698_v30, %v1721_v5  ;;  %v1752_v62 = vsub.f32 1.0, %v1751_v35  ;;  %vm1757_vm15 = vmor %vm1755_vm14, %vm1756_vm12  ;;  %vm1704_vm5 = vcmp.eq.f32.partialorder %v1703_v3, 8.507059e+37 }
 0x335   :  { %3041 = vrcp.f32 %v4777_v31  ;;  %v1647_v53 = vand.u32 2147483647, %v4777_v31  ;;  %v1706_v1 = vor.u32 1.1754944e-38, %v1705_v2  ;;  %v1649_v29 = vand.u32 2147483648, %v4777_v31 }
 0x336   :  { %v1656_v33 = vadd.f32 %v3036_v26, %v1655_v63  ;;  %v1341_v52 = vpop.xlane.xlu2 %1340  ;;  %1889 = vst [vmem:[#allocation9 + $0xb8] sm:$0xff] %v1857_v59  ;;  %v1753_v16 = vmul.f32 %v3038_v51, %v1752_v62  ;;  %vm1643_vm7 = vweird.f32 %v4777_v31 }
 0x337   :  { %v3040_v22 = vpop.eup %3039  ;;  %v4785_v21 = vmax.f32 %v1341_v52, 1e-30  ;;  %vm4803_vm8 = vcmp.eq.f32.partialorder %v1647_v53, 8.507059e+37  ;;  %v1650_v49 = vor.u32 1.1754944e-38, %v1649_v29 }
 0x338   :  { %v1660_v30 = vsel %vm1659_vm11, %v3036_v26, %v1656_v33  ;;  %v1695_v19 = vmul.f32 %v3040_v22, %v4770_v58  ;;  %v1754_v61 = vadd.f32 %v3038_v51, %v1753_v16  ;;  %vm1700_vm1 = vweird.f32 %v3040_v22 }
 0x339   :  { %v1665_v8 = vsel %vm1662_vm13, %v1664_v9, %v1660_v30  ;;  %3043 = vrcp.f32 %v4785_v21  ;;  %v1333_v18 = vpop.xlane.xlu1 %1332  ;;  %vm1701_vm3 = vmor %vm1699_vm2, %vm1700_vm1  ;;  %v1745_v13 = vand.u32 2147483647, %v4785_v21  ;;  %v1747_v25 = vand.u32 2147483648, %v4785_v21 }
 0x33a   :  { %v1853_v48 = vmul.f32 %v4706_v20, %v1665_v8  ;;  %v1696_v23 = vsub.f32 1.0, %v1695_v19  ;;  %v1758_v47 = vsel %vm1757_vm15, %v3038_v51, %v1754_v61  ;;  %v4793_v43 = vmax.f32 %v1333_v18, 1e-30 }
 0x33b   :  { %v3042_v28 = vpop.eup %3041  ;;  %v1763_v46 = vsel %vm1760_vm0, %v1762_v27, %v1758_v47  ;;  %vm1741_vm10 = vweird.f32 %v4785_v21  ;;  %vm1746_vm12 = vcmp.eq.f32.partialorder %v1745_v13, 8.507059e+37  ;;  %v1748_v62 = vor.u32 1.1754944e-38, %v1747_v25 }
 0x33c   :  { %1885 = vst [vmem:[#allocation9 + $0x98] sm:$0xff] %v1853_v48  ;;  %v1697_v50 = vmul.f32 %v3040_v22, %v1696_v23  ;;  %v1639_v10 = vmul.f32 %v3042_v28, %v4777_v31  ;;  %v1860_v20 = vmul.f32 %v4708_v34, %v1763_v46  ;;  %3045 = vrcp.f32 %v4793_v43 }
 0x33d   :  { %vm1644_vm6 = vweird.f32 %v3042_v28  ;;  %v1691_v33 = vand.u32 2147483648, %v4793_v43  ;;  %v1689_v52 = vand.u32 2147483647, %v4793_v43  ;;  %vm1685_vm14 = vweird.f32 %v4793_v43 }
 0x33e   :  { %v1698_v42 = vadd.f32 %v3040_v22, %v1697_v50  ;;  %v1640_v45 = vsub.f32 1.0, %v1639_v10  ;;  %1892 = vst [vmem:[#allocation9 + $0xd0] sm:$0xff] %v1860_v20  ;;  %vm1645_vm4 = vmor %vm1643_vm7, %vm1644_vm6 }
 0x33f   :  { %v3044_v37 = vpop.eup %3043  ;;  %v1692_v19 = vor.u32 1.1754944e-38, %v1691_v33  ;;  %vm1690_vm0 = vcmp.eq.f32.partialorder %v1689_v52, 8.507059e+37 }
 0x340   :  { %v1702_v26 = vsel %vm1701_vm3, %v3040_v22, %v1698_v42  ;;  %v1641_v57 = vmul.f32 %v3042_v28, %v1640_v45  ;;  %v1737_v34 = vmul.f32 %v3044_v37, %v4785_v21  ;;  %vm1742_vm9 = vweird.f32 %v3044_v37 }
 0x341   :  { %v1707_v40 = vsel %vm1704_vm5, %v1706_v1, %v1702_v26  ;;  %v1339_v58 = vpop.xlane.xlu1 %1338  ;;  %vm1743_vm11 = vmor %vm1741_vm10, %vm1742_vm9 }
 0x342   :  { %v1856_v41 = vmul.f32 %v4715_v54, %v1707_v40  ;;  %v1642_v39 = vadd.f32 %v3042_v28, %v1641_v57  ;;  %v1738_v11 = vsub.f32 1.0, %v1737_v34  ;;  %v4808_v60 = vmax.f32 %v1339_v58, 1e-30  ;;  %v1347_v51 = vpop.xlane.xlu2 %1346  ;;  %v3046_v55 = vpop.eup %3045 }
 0x343   :  { %v4812_v0 = vmax.f32 %v1347_v51, 1e-30  ;;  %v1681_v54 = vmul.f32 %v3046_v55, %v4793_v43  ;;  %vm1686_vm13 = vweird.f32 %v3046_v55 }
 0x344   :  { %1888 = vst [vmem:[#allocation9 + $0xb0] sm:$0xff] %v1856_v41  ;;  %v1646_v35 = vsel %vm1645_vm4, %v3042_v28, %v1642_v39  ;;  %v1739_v31 = vmul.f32 %v3044_v37, %v1738_v11  ;;  %3047 = vrcp.f32 %v4808_v60  ;;  %vm1687_vm15 = vmor %vm1685_vm14, %vm1686_vm13  ;;  %v1733_v28 = vand.u32 2147483648, %v4808_v60 }
 0x345   :  { %v1651_v5 = vsel %vm4803_vm8, %v1650_v49, %v1646_v35  ;;  %v1682_v59 = vsub.f32 1.0, %v1681_v54  ;;  %3049 = vrcp.f32 %v4812_v0  ;;  %v1731_v3 = vand.u32 2147483647, %v4808_v60 }
 0x346   :  { %v1852_v63 = vmul.f32 %v4718_v12, %v1651_v5  ;;  %v1740_v6 = vadd.f32 %v3044_v37, %v1739_v31  ;;  %vm1727_vm2 = vweird.f32 %v4808_v60  ;;  %v1789_v43 = vand.u32 2147483648, %v4812_v0 }
 0x347   :  { %v1683_v38 = vmul.f32 %v3046_v55, %v1682_v59  ;;  %v1734_v20 = vor.u32 1.1754944e-38, %v1733_v28  ;;  %vm1732_vm6 = vcmp.eq.f32.partialorder %v1731_v3, 8.507059e+37  ;;  %vm1783_vm7 = vweird.f32 %v4812_v0 }
 0x348   :  { %1884 = vst [vmem:[#allocation9 + $0x90] sm:$0xff] %v1852_v63  ;;  %v1744_v44 = vsel %vm1743_vm11, %v3044_v37, %v1740_v6  ;;  %v1790_v1 = vor.u32 1.1754944e-38, %v1789_v43 }
 0x349   :  { %v1749_v22 = vsel %vm1746_vm12, %v1748_v62, %v1744_v44  ;;  %v1345_v9 = vpop.xlane.xlu1 %1344  ;;  %v1684_v16 = vadd.f32 %v3046_v55, %v1683_v38 }
 0x34a   :  { %v1859_v12 = vmul.f32 %v4724_v24, %v1749_v22  ;;  %v1381_v21 = vmax.f32 %v1345_v9, 1e-30  ;;  %v3048_v30 = vpop.eup %3047 }
 0x34b   :  { %v1688_v8 = vsel %vm1687_vm15, %v3046_v55, %v1684_v16  ;;  %v1723_v61 = vmul.f32 %v3048_v30, %v4808_v60  ;;  %v3050_v18 = vpop.eup %3049  ;;  %vm1728_vm1 = vweird.f32 %v3048_v30 }
 0x34c   :  { %1891 = vst [vmem:[#allocation9 + $0xc8] sm:$0xff] %v1859_v12  ;;  %3051 = vrcp.f32 %v1381_v21  ;;  %v1693_v48 = vsel %vm1690_vm0, %v1692_v19, %v1688_v8  ;;  %v1779_v24 = vmul.f32 %v3050_v18, %v4812_v0  ;;  %vm1784_vm3 = vweird.f32 %v3050_v18  ;;  %vm1729_vm5 = vmor %vm1727_vm2, %vm1728_vm1 }
 0x34d   :  { %v1855_v27 = vmul.f32 %v4728_v7, %v1693_v48  ;;  %v1724_v23 = vsub.f32 1.0, %v1723_v61  ;;  %v1787_v7 = vand.u32 2147483647, %v4812_v0  ;;  %vm1785_vm8 = vmor %vm1783_vm7, %vm1784_vm3  ;;  %v1775_v34 = vand.u32 2147483648, %v1381_v21 }
 0x34e   :  { %v1780_v2 = vsub.f32 1.0, %v1779_v24  ;;  %v1773_v58 = vand.u32 2147483647, %v1381_v21  ;;  %vm1769_vm10 = vweird.f32 %v1381_v21 }
 0x34f   :  { %1887 = vst [vmem:[#allocation9 + $0xa8] sm:$0xff] %v1855_v27  ;;  %v1725_v47 = vmul.f32 %v3048_v30, %v1724_v23  ;;  %vm1788_vm4 = vcmp.eq.f32.partialorder %v1787_v7, 8.507059e+37  ;;  %v1776_v11 = vor.u32 1.1754944e-38, %v1775_v34 }
 0x350   :  { %v1781_v10 = vmul.f32 %v3050_v18, %v1780_v2  ;;  %vm1774_vm12 = vcmp.eq.f32.partialorder %v1773_v58, 8.507059e+37 }
 0x351   :  { %v1726_v50 = vadd.f32 %v3048_v30, %v1725_v47 }
 0x352   :  { %v3052_v46 = vpop.eup %3051  ;;  %v1782_v45 = vadd.f32 %v3050_v18, %v1781_v10 }
 0x353   :  { %v1765_v53 = vmul.f32 %v3052_v46, %v1381_v21  ;;  %v1730_v42 = vsel %vm1729_vm5, %v3048_v30, %v1726_v50  ;;  %vm1770_vm9 = vweird.f32 %v3052_v46 }
 0x354   :  { %v1735_v37 = vsel %vm1732_vm6, %v1734_v20, %v1730_v42  ;;  %v1786_v57 = vsel %vm1785_vm8, %v3050_v18, %v1782_v45  ;;  %vm1771_vm11 = vmor %vm1769_vm10, %vm1770_vm9 }
 0x355   :  { %v1766_v29 = vsub.f32 1.0, %v1765_v53  ;;  %v1858_v26 = vmul.f32 %v4732_v36, %v1735_v37  ;;  %v1791_v40 = vsel %vm1788_vm4, %v1790_v1, %v1786_v57 }
 0x356   :  { %v1862_v41 = vmul.f32 %v4734_v32, %v1791_v40 }
 0x357   :  { %v1767_v4 = vmul.f32 %v3052_v46, %v1766_v29  ;;  %1890 = vst [vmem:[#allocation9 + $0xc0] sm:$0xff] %v1858_v26 }
 0x358   :  { %1894 = vst [vmem:[#allocation9 + $0xe0] sm:$0xff] %v1862_v41 }
 0x359   :  { %v1768_v39 = vadd.f32 %v3052_v46, %v1767_v4 }
 0x35b   :  { %v1772_v60 = vsel %vm1771_vm11, %v3052_v46, %v1768_v39 }
 0x35c   :  { %v1777_v51 = vsel %vm1774_vm12, %v1776_v11, %v1772_v60 }
 0x35d   :  { %v1861_v36 = vmul.f32 %v4738_v15, %v1777_v51 }
 0x35f   :  { %1893 = vst [vmem:[#allocation9 + $0xd8] sm:$0xff] %v1861_v36 }
 0x364   :  { %v1349_v55 = vpop.xlane.xlu0 %1348 }
 0x365   :  { %v1383_v49 = vmax.f32 %v1349_v55, 1e-30  ;;  %v1351_v13 = vpop.xlane.xlu1 %1350 }
 0x366   :  { %v1384_v25 = vmax.f32 %v1351_v13, 1e-30 }
 0x367   :  { %3053 = vrcp.f32 %v1383_v49  ;;  %v1803_v5 = vand.u32 2147483648, %v1383_v49  ;;  %v1801_v59 = vand.u32 2147483647, %v1383_v49  ;;  %vm1797_vm15 = vweird.f32 %v1383_v49 }
 0x368   :  { %3055 = vrcp.f32 %v1384_v25  ;;  %v1817_v62 = vand.u32 2147483648, %v1384_v25  ;;  %v1815_v15 = vand.u32 2147483647, %v1384_v25  ;;  %vm1811_vm1 = vweird.f32 %v1384_v25 }
 0x369   :  { %v1804_v38 = vor.u32 1.1754944e-38, %v1803_v5  ;;  %vm1802_vm2 = vcmp.eq.f32.partialorder %v1801_v59, 8.507059e+37 }
 0x36a   :  { %v1818_v9 = vor.u32 1.1754944e-38, %v1817_v62  ;;  %vm1816_vm5 = vcmp.eq.f32.partialorder %v1815_v15, 8.507059e+37 }
 0x36d   :  { %v3054_v0 = vpop.eup %3053 }
 0x36e   :  { %v3056_v35 = vpop.eup %3055  ;;  %v1793_v32 = vmul.f32 %v3054_v0, %v1383_v49  ;;  %vm1798_vm13 = vweird.f32 %v3054_v0 }
 0x36f   :  { %v1807_v31 = vmul.f32 %v3056_v35, %v1384_v25  ;;  %vm1812_vm14 = vweird.f32 %v3056_v35  ;;  %vm1799_vm0 = vmor %vm1797_vm15, %vm1798_vm13 }
 0x370   :  { %v1794_v54 = vsub.f32 1.0, %v1793_v32  ;;  %vm1813_vm3 = vmor %vm1811_vm1, %vm1812_vm14 }
 0x371   :  { %v1808_v63 = vsub.f32 1.0, %v1807_v31 }
 0x372   :  { %v1795_v6 = vmul.f32 %v3054_v0, %v1794_v54 }
 0x373   :  { %v1809_v33 = vmul.f32 %v3056_v35, %v1808_v63 }
 0x374   :  { %v1796_v44 = vadd.f32 %v3054_v0, %v1795_v6 }
 0x375   :  { %v1810_v52 = vadd.f32 %v3056_v35, %v1809_v33 }
 0x376   :  { %v1800_v22 = vsel %vm1799_vm0, %v3054_v0, %v1796_v44 }
 0x377   :  { %v1805_v12 = vsel %vm1802_vm2, %v1804_v38, %v1800_v22  ;;  %v1814_v16 = vsel %vm1813_vm3, %v3056_v35, %v1810_v52 }
 0x378   :  { %v1863_v21 = vmul.f32 %v4744_v56, %v1805_v12  ;;  %v1819_v30 = vsel %vm1816_vm5, %v1818_v9, %v1814_v16 }
 0x379   :  { %v1864_v19 = vmul.f32 %v4746_v17, %v1819_v30 }
 0x37a   :  { %1895 = vst [vmem:[#allocation9 + $0xe8] sm:$0xff] %v1863_v21 }
 0x37b   :  { %1896 = vst [vmem:[#allocation9 + $0xf0] sm:$0xff] %v1864_v19 }
 0x385   :  { %v1353_v8 = vpop.xlane.xlu2 %1352 }
 0x386   :  { %v1385_v61 = vmax.f32 %v1353_v8, 1e-30 }
 0x388   :  { %3057 = vrcp.f32 %v1385_v61  ;;  %v1831_v23 = vand.u32 2147483648, %v1385_v61  ;;  %v1829_v28 = vand.u32 2147483647, %v1385_v61  ;;  %vm1825_vm7 = vweird.f32 %v1385_v61 }
 0x38a   :  { %v1832_v3 = vor.u32 1.1754944e-38, %v1831_v23  ;;  %vm1830_vm4 = vcmp.eq.f32.partialorder %v1829_v28, 8.507059e+37 }
 0x38e   :  { %v3058_v18 = vpop.eup %3057 }
 0x38f   :  { %v1821_v48 = vmul.f32 %v3058_v18, %v1385_v61  ;;  %vm1826_vm6 = vweird.f32 %v3058_v18 }
 0x390   :  { %vm1827_vm8 = vmor %vm1825_vm7, %vm1826_vm6 }
 0x391   :  { %v1822_v27 = vsub.f32 1.0, %v1821_v48 }
 0x393   :  { %v1823_v24 = vmul.f32 %v3058_v18, %v1822_v27 }
 0x395   :  { %v1824_v47 = vadd.f32 %v3058_v18, %v1823_v24 }
 0x397   :  { %v1828_v56 = vsel %vm1827_vm8, %v3058_v18, %v1824_v47 }
 0x398   :  { %v1833_v17 = vsel %vm1830_vm4, %v1832_v3, %v1828_v56 }
 0x399   :  { %v1865_v2 = vmul.f32 %v4753_v14, %v1833_v17 }
 0x39b   :  { %1897 = vst [vmem:[#allocation9 + $0xf8] sm:$0xff] %v1865_v2 }
 0x39c   :  { %2695 = dma.vmem_to_hbm [thread:$0]  %s2688_s14, 4096, %s2690_s17, [#allocation10], %s3215_s30, %s3215_s30, %s3216_s6  }
 0x39d   :  { %2708 = dma.vmem_to_hbm [thread:$0]  %s2701_s19, 4096, %s2703_s22, [#allocation10], %s3215_s30, %s3215_s30, %s3216_s6  }
 0x39e   :  { %3207 = dma.done.wait [#allocation4], 4096  }
 0x39f   :  { %3208 = vsyncadd [#allocation4], 4294963200 }
 0x3a0   :  { %3209 = dma.done.wait [#allocation10], 8192  }
 0x3a1   :  { %3210 = vsyncadd [#allocation10], 4294959104 }
 0x3a2   :  { %2721 = vsyncpa [#allocation3], 1 }
 0x3a3   :  { %2722 = vsyncpa [#allocation6], 1 }
 0x3a4   :  { %2723 = vsyncpa [#allocation4], 1 }
 0x3a5   :  { %2724 = vsyncpa [#allocation10], 1 }

</bundles_post_ra>
